<compile_context>
chip_gen: v5e
topology: v5e:2x2
jax: 0.10.0
libtpu: 0.0.40
codegen_flags: <defaults>
</compile_context>

<pallas_src>
import functools

import numpy as np
import jax
import jax.numpy as jnp
from jax.experimental import pallas as pl
from jax.experimental.pallas import tpu as pltpu


# ----------------------------------------------------------------------------
# Pallas kernel: everything (pool + dwconv + residual + LayerNorm), one step.
# ----------------------------------------------------------------------------
def _tree_sum(terms):
    """Balanced pairwise sum so VPU adds are not one long serial chain."""
    while len(terms) > 1:
        nxt = []
        for i in range(0, len(terms) - 1, 2):
            nxt.append(terms[i] + terms[i + 1])
        if len(terms) % 2:
            nxt.append(terms[-1])
        terms = nxt
    return terms[0]


def _fused_kernel(x_ref, m_ref, w_ref, b_ref, a_ref, g_ref, bt_ref, o_ref,
                  *, level_meta, eps):
    # x_ref:  (HW, L)       input, spatial-flat rows, batch*channel lanes
    # m_ref:  (R, HW)       stacked [P; S_k@P] matrices for every level
    # w_ref:  (NL*9, L)     depthwise tap weights, lane-packed
    # b_ref:  (NL, L)       conv biases, lane-packed
    # a_ref:  (L, L)        block-diagonal (1/C) group-averaging matrix
    # g_ref:  (1, L)        LayerNorm weight (lane-packed)
    # bt_ref: (1, L)        LayerNorm bias   (lane-packed)
    # o_ref:  (tot_Tp, L)   padded concatenated tokens (lane-dense)
    x = x_ref[...]
    # single large MXU matmul: pooled tokens AND all 9 shifted-tap tokens,
    # for every level, in one shot.
    y = jnp.dot(m_ref[...], x, preferred_element_type=jnp.float32)   # (R, L)

    accs = []
    for lvl, (Tp, roff) in enumerate(level_meta):
        # residual (pooled) + conv bias
        terms = [y[roff:roff + Tp] + b_ref[pl.ds(lvl, 1), :]]
        # depthwise 3x3 conv = per-lane weighted sum of the 9 tap slices (VPU)
        for k in range(9):
            s = roff + (k + 1) * Tp
            terms.append(y[s:s + Tp] * w_ref[pl.ds(lvl * 9 + k, 1), :])
        accs.append(_tree_sum(terms))
    acc = jnp.concatenate(accs, axis=0)                               # (tot_Tp, L)

    # LayerNorm over the C channels of each (token, image) group of lanes.
    # Group mean/var via block-diagonal averaging matmul (no cross-lane reshape).
    a = a_ref[...]
    mu = jnp.dot(acc, a, preferred_element_type=jnp.float32)
    d = acc - mu
    var = jnp.dot(d * d, a, preferred_element_type=jnp.float32)
    yn = d * jax.lax.rsqrt(var + eps)
    o_ref[...] = (yn * g_ref[...] + bt_ref[...]).astype(o_ref.dtype)


# ----------------------------------------------------------------------------
# Static (shape-only) matrices — parameter-setup glue on the host.
# ----------------------------------------------------------------------------
def _adaptive_pool_matrix(in_size, out_size):
    """Averaging matrix implementing torch adaptive_avg_pool1d semantics."""
    P = np.zeros((out_size, in_size), dtype=np.float32)
    for o in range(out_size):
        s = (o * in_size) // out_size
        e = -(-((o + 1) * in_size) // out_size)  # ceil
        P[o, s:e] = 1.0 / float(e - s)
    return P


def _shift_matrices(oh, ow):
    """S[k] moves each token to its (di-1, dj-1) neighbour, zeros at borders."""
    T = oh * ow
    S = np.zeros((9, T, T), dtype=np.float32)
    for di in range(3):
        for dj in range(3):
            k = di * 3 + dj
            for i in range(oh):
                for j in range(ow):
                    ii, jj = i + di - 1, j + dj - 1
                    if 0 <= ii < oh and 0 <= jj < ow:
                        S[k, i * ow + j, ii * ow + jj] = 1.0
    return S


# ----------------------------------------------------------------------------
# Forward pass.
# ----------------------------------------------------------------------------
def pooling_mhsa_forward(x, params, redu_ratios, compute_dtype=jnp.float32):
    """x: (B, N, C, hy, wy) float32 (PyTorch axis convention)."""
    B, N, C, hy, wy = x.shape
    BN = B * N
    HW = hy * wy
    L = BN * C
    NL = len(redu_ratios)

    # ---- host-side, shape-only: stacked pool+shift matrices --------------
    blocks = []
    meta = []                      # (T, Tp, row_off, tokpad_off) per level
    row_off = 0
    tokpad_off = 0
    for r in redu_ratios:
        oh = int(round(hy / r))
        ow = int(round(wy / r))
        T = oh * ow
        Tp = -(-T // 8) * 8        # pad rows to sublane multiple
        P = np.kron(_adaptive_pool_matrix(hy, oh),
                    _adaptive_pool_matrix(wy, ow))                 # (T, HW)
        S = _shift_matrices(oh, ow)                                # (9, T, T)
        blk = np.zeros((10 * Tp, HW), np.float32)
        blk[:T] = P
        for k in range(9):
            blk[(k + 1) * Tp:(k + 1) * Tp + T] = S[k] @ P          # Q_k = S_k @ P
        blocks.append(blk)
        meta.append((T, Tp, row_off, tokpad_off))
        row_off += 10 * Tp
        tokpad_off += Tp
    M = jnp.asarray(np.concatenate(blocks, axis=0), compute_dtype)  # (R, HW)
    R = M.shape[0]
    tot_Tp = tokpad_off

    # block-diagonal group-averaging matrix for the packed LayerNorm
    A = jnp.asarray(np.kron(np.eye(BN, dtype=np.float32),
                            np.full((C, C), 1.0 / C, np.float32)))  # (L, L)

    # ---- parameter packing (lane layout: lane = image*C + channel) -------
    wtaps = jnp.stack([W.reshape(C, 9).T for (W, _) in params["convs"]], 0)  # (NL,9,C)
    wtaps = jnp.tile(wtaps, (1, 1, BN)).reshape(NL * 9, L)                   # (NL*9,L)
    bconvs = jnp.stack([b for (_, b) in params["convs"]], 0)                 # (NL, C)
    bconvs = jnp.tile(bconvs, (1, BN))                                       # (NL, L)
    gamma_p = jnp.tile(params["gamma"], BN).reshape(1, L)
    beta_p = jnp.tile(params["beta"], BN).reshape(1, L)

    # ---- input packing: (B,N,C,h,w) -> (HW, BN*C), channels in lanes ------
    x2 = x.reshape(BN, C, HW)
    x_packed = jnp.transpose(x2, (2, 0, 1)).reshape(HW, L).astype(compute_dtype)

    kern = functools.partial(
        _fused_kernel,
        level_meta=tuple((Tp, roff) for (_, Tp, roff, _) in meta),
        eps=1e-5)

    out_pad = pl.pallas_call(
        kern,
        out_shape=jax.ShapeDtypeStruct((tot_Tp, L), jnp.float32),
        grid=(1,),
        in_specs=[
            pl.BlockSpec((HW, L), lambda i: (0, 0)),       # x
            pl.BlockSpec((R, HW), lambda i: (0, 0)),       # stacked P/Q matrix
            pl.BlockSpec((NL * 9, L), lambda i: (0, 0)),   # tap weights
            pl.BlockSpec((NL, L), lambda i: (0, 0)),       # conv biases
            pl.BlockSpec((L, L), lambda i: (0, 0)),        # LN group-avg matrix
            pl.BlockSpec((1, L), lambda i: (0, 0)),        # LN gamma
            pl.BlockSpec((1, L), lambda i: (0, 0)),        # LN beta
        ],
        out_specs=pl.BlockSpec((tot_Tp, L), lambda i: (0, 0)),
        compiler_params=pltpu.CompilerParams(
            dimension_semantics=("arbitrary",),
            vmem_limit_bytes=32 * 1024 * 1024),
    )(x_packed, M, wtaps, bconvs, A, gamma_p, beta_p)

    # ---- drop pad rows, unpack lanes back to (B, N, total_T, C) ----------
    pieces = [jax.lax.slice_in_dim(out_pad, toff, toff + T, axis=0)
              for (T, _, _, toff) in meta]
    out_packed = jnp.concatenate(pieces, axis=0)            # (total_T, L)
    total_T = out_packed.shape[0]
    tok = out_packed.reshape(total_T, BN, C).transpose(1, 0, 2)
    return tok.reshape(B, N, total_T, C)


# ----------------------------------------------------------------------------
# Pure-JAX reference (divisible pooling sizes, as used in the test).
# ----------------------------------------------------------------------------
def _reference(x, params, redu_ratios):
    B, N, C, hy, wy = x.shape
    BN = B * N
    x4 = x.reshape(BN, C, hy, wy)
    outs = []
    for r, (W, bconv) in zip(redu_ratios, params["convs"]):
        oh = int(round(hy / r))
        ow = int(round(wy / r))
        pool = x4.reshape(BN, C, oh, hy // oh, ow, wy // ow).mean(axis=(3, 5))
        conv = jax.lax.conv_general_dilated(
            pool, W.reshape(C, 1, 3, 3),
            window_strides=(1, 1), padding=((1, 1), (1, 1)),
            dimension_numbers=("NCHW", "OIHW", "NCHW"),
            feature_group_count=C)
        pool = pool + conv + bconv[None, :, None, None]
        outs.append(pool.reshape(BN, C, -1))
    cat = jnp.concatenate(outs, axis=2)                # (BN, C, total_T)
    tok = jnp.transpose(cat, (0, 2, 1))                # (BN, total_T, C)
    mu = tok.mean(-1, keepdims=True)
    var = ((tok - mu) ** 2).mean(-1, keepdims=True)
    y = (tok - mu) / jnp.sqrt(var + 1e-5) * params["gamma"] + params["beta"]
    return y.reshape(B, N, -1, C)


if __name__ == "__main__":
    B, N, C, hy, wy = 2, 2, 32, 16, 16
    redu_ratios = [1, 2, 4, 8]

    key = jax.random.PRNGKey(0)
    k_x, k_conv, k_gamma, k_beta = jax.random.split(key, 4)
    x = jax.random.normal(k_x, (B, N, C, hy, wy), jnp.float32)

    conv_keys = jax.random.split(k_conv, 2 * len(redu_ratios))
    convs = []
    for i in range(len(redu_ratios)):
        W = 0.1 * jax.random.normal(conv_keys[2 * i], (C, 3, 3), jnp.float32)
        bcv = 0.1 * jax.random.normal(conv_keys[2 * i + 1], (C,), jnp.float32)
        convs.append((W, bcv))
    gamma = 1.0 + 0.1 * jax.random.normal(k_gamma, (C,), jnp.float32)
    beta = 0.1 * jax.random.normal(k_beta, (C,), jnp.float32)
    params = {"convs": convs, "gamma": gamma, "beta": beta}

    out = jax.block_until_ready(pooling_mhsa_forward(x, params, redu_ratios))
    ref = jax.block_until_ready(_reference(x, params, redu_ratios))

    assert out.shape == ref.shape == (B, N, 256 + 64 + 16 + 4, C)
    if not np.allclose(np.asarray(out), np.asarray(ref), atol=1e-4, rtol=1e-4):
        raise AssertionError("Pallas kernel does not match reference")
    print("KERNEL_OK")
</pallas_src>

<mosaic_0001>
module attributes {stable_mosaic.version = 11 : i64} {
  func.func @_fused_kernel(%arg0: i32, %arg1: memref<256x128xf32, #tpu.memory_space<vmem>>, %arg2: memref<3440x256xf32, #tpu.memory_space<vmem>>, %arg3: memref<36x128xf32, #tpu.memory_space<vmem>>, %arg4: memref<4x128xf32, #tpu.memory_space<vmem>>, %arg5: memref<128x128xf32, #tpu.memory_space<vmem>>, %arg6: memref<1x128xf32, #tpu.memory_space<vmem>>, %arg7: memref<1x128xf32, #tpu.memory_space<vmem>>, %arg8: memref<344x128xf32, #tpu.memory_space<vmem>>) attributes {dimension_semantics = [#tpu.dimension_semantics<arbitrary>], iteration_bounds = array<i64: 1>, scalar_prefetch = 0 : i64, scratch_operands = 0 : i64, tpu.core_type = #tpu.core_type<tc>, window_params = [{pipeline_mode = #tpu.pipeline_mode<synchronous>, transform_indices = @transform_0, window_bounds = array<i64: 256, 128>}, {pipeline_mode = #tpu.pipeline_mode<synchronous>, transform_indices = @transform_1, window_bounds = array<i64: 3440, 256>}, {pipeline_mode = #tpu.pipeline_mode<synchronous>, transform_indices = @transform_2, window_bounds = array<i64: 36, 128>}, {pipeline_mode = #tpu.pipeline_mode<synchronous>, transform_indices = @transform_3, window_bounds = array<i64: 4, 128>}, {pipeline_mode = #tpu.pipeline_mode<synchronous>, transform_indices = @transform_4, window_bounds = array<i64: 128, 128>}, {pipeline_mode = #tpu.pipeline_mode<synchronous>, transform_indices = @transform_5, window_bounds = array<i64: 1, 128>}, {pipeline_mode = #tpu.pipeline_mode<synchronous>, transform_indices = @transform_6, window_bounds = array<i64: 1, 128>}, {pipeline_mode = #tpu.pipeline_mode<synchronous>, transform_indices = @transform_7, window_bounds = array<i64: 344, 128>}]} {
    %c0 = arith.constant 0 : index
    %c0_0 = arith.constant 0 : index
    %0 = vector.load %arg1[%c0, %c0_0] : memref<256x128xf32, #tpu.memory_space<vmem>>, vector<256x128xf32>
    %c0_1 = arith.constant 0 : index
    %c0_2 = arith.constant 0 : index
    %1 = vector.load %arg2[%c0_1, %c0_2] : memref<3440x256xf32, #tpu.memory_space<vmem>>, vector<3440x256xf32>
    %cst = arith.constant dense<0.000000e+00> : vector<3440x128xf32>
    %2 = tpu.matmul %1, %0, %cst {dimension_numbers = #tpu.dot_dimension_numbers<[1], [0], [0], [1], [0, 0, 1, 1], [], []>} : vector<3440x256xf32>, vector<256x128xf32>, vector<3440x128xf32> -> vector<3440x128xf32>
    %3 = vector.extract_strided_slice %2 {offsets = [0, 0], sizes = [256, 128], strides = [1, 1]} : vector<3440x128xf32> to vector<256x128xf32>
    %c0_3 = arith.constant 0 : index
    %c0_4 = arith.constant 0 : index
    %4 = vector.load %arg4[%c0_3, %c0_4] : memref<4x128xf32, #tpu.memory_space<vmem>>, vector<1x128xf32>
    %5 = vector.broadcast %4 : vector<1x128xf32> to vector<256x128xf32>
    %6 = arith.addf %3, %5 : vector<256x128xf32>
    %7 = vector.extract_strided_slice %2 {offsets = [256, 0], sizes = [256, 128], strides = [1, 1]} : vector<3440x128xf32> to vector<256x128xf32>
    %c0_5 = arith.constant 0 : index
    %c0_6 = arith.constant 0 : index
    %8 = vector.load %arg3[%c0_5, %c0_6] : memref<36x128xf32, #tpu.memory_space<vmem>>, vector<1x128xf32>
    %9 = vector.broadcast %8 : vector<1x128xf32> to vector<256x128xf32>
    %10 = arith.mulf %7, %9 : vector<256x128xf32>
    %11 = vector.extract_strided_slice %2 {offsets = [512, 0], sizes = [256, 128], strides = [1, 1]} : vector<3440x128xf32> to vector<256x128xf32>
    %c1 = arith.constant 1 : index
    %c0_7 = arith.constant 0 : index
    %12 = vector.load %arg3[%c1, %c0_7] : memref<36x128xf32, #tpu.memory_space<vmem>>, vector<1x128xf32>
    %13 = vector.broadcast %12 : vector<1x128xf32> to vector<256x128xf32>
    %14 = arith.mulf %11, %13 : vector<256x128xf32>
    %15 = vector.extract_strided_slice %2 {offsets = [768, 0], sizes = [256, 128], strides = [1, 1]} : vector<3440x128xf32> to vector<256x128xf32>
    %c2 = arith.constant 2 : index
    %c0_8 = arith.constant 0 : index
    %16 = vector.load %arg3[%c2, %c0_8] : memref<36x128xf32, #tpu.memory_space<vmem>>, vector<1x128xf32>
    %17 = vector.broadcast %16 : vector<1x128xf32> to vector<256x128xf32>
    %18 = arith.mulf %15, %17 : vector<256x128xf32>
    %19 = vector.extract_strided_slice %2 {offsets = [1024, 0], sizes = [256, 128], strides = [1, 1]} : vector<3440x128xf32> to vector<256x128xf32>
    %c3 = arith.constant 3 : index
    %c0_9 = arith.constant 0 : index
    %20 = vector.load %arg3[%c3, %c0_9] : memref<36x128xf32, #tpu.memory_space<vmem>>, vector<1x128xf32>
    %21 = vector.broadcast %20 : vector<1x128xf32> to vector<256x128xf32>
    %22 = arith.mulf %19, %21 : vector<256x128xf32>
    %23 = vector.extract_strided_slice %2 {offsets = [1280, 0], sizes = [256, 128], strides = [1, 1]} : vector<3440x128xf32> to vector<256x128xf32>
    %c4 = arith.constant 4 : index
    %c0_10 = arith.constant 0 : index
    %24 = vector.load %arg3[%c4, %c0_10] : memref<36x128xf32, #tpu.memory_space<vmem>>, vector<1x128xf32>
    %25 = vector.broadcast %24 : vector<1x128xf32> to vector<256x128xf32>
    %26 = arith.mulf %23, %25 : vector<256x128xf32>
    %27 = vector.extract_strided_slice %2 {offsets = [1536, 0], sizes = [256, 128], strides = [1, 1]} : vector<3440x128xf32> to vector<256x128xf32>
    %c5 = arith.constant 5 : index
    %c0_11 = arith.constant 0 : index
    %28 = vector.load %arg3[%c5, %c0_11] : memref<36x128xf32, #tpu.memory_space<vmem>>, vector<1x128xf32>
    %29 = vector.broadcast %28 : vector<1x128xf32> to vector<256x128xf32>
    %30 = arith.mulf %27, %29 : vector<256x128xf32>
    %31 = vector.extract_strided_slice %2 {offsets = [1792, 0], sizes = [256, 128], strides = [1, 1]} : vector<3440x128xf32> to vector<256x128xf32>
    %c6 = arith.constant 6 : index
    %c0_12 = arith.constant 0 : index
    %32 = vector.load %arg3[%c6, %c0_12] : memref<36x128xf32, #tpu.memory_space<vmem>>, vector<1x128xf32>
    %33 = vector.broadcast %32 : vector<1x128xf32> to vector<256x128xf32>
    %34 = arith.mulf %31, %33 : vector<256x128xf32>
    %35 = vector.extract_strided_slice %2 {offsets = [2048, 0], sizes = [256, 128], strides = [1, 1]} : vector<3440x128xf32> to vector<256x128xf32>
    %c7 = arith.constant 7 : index
    %c0_13 = arith.constant 0 : index
    %36 = vector.load %arg3[%c7, %c0_13] : memref<36x128xf32, #tpu.memory_space<vmem>>, vector<1x128xf32>
    %37 = vector.broadcast %36 : vector<1x128xf32> to vector<256x128xf32>
    %38 = arith.mulf %35, %37 : vector<256x128xf32>
    %39 = vector.extract_strided_slice %2 {offsets = [2304, 0], sizes = [256, 128], strides = [1, 1]} : vector<3440x128xf32> to vector<256x128xf32>
    %c8 = arith.constant 8 : index
    %c0_14 = arith.constant 0 : index
    %40 = vector.load %arg3[%c8, %c0_14] : memref<36x128xf32, #tpu.memory_space<vmem>>, vector<1x128xf32>
    %41 = vector.broadcast %40 : vector<1x128xf32> to vector<256x128xf32>
    %42 = arith.mulf %39, %41 : vector<256x128xf32>
    %43 = arith.addf %6, %10 : vector<256x128xf32>
    %44 = arith.addf %14, %18 : vector<256x128xf32>
    %45 = arith.addf %22, %26 : vector<256x128xf32>
    %46 = arith.addf %30, %34 : vector<256x128xf32>
    %47 = arith.addf %38, %42 : vector<256x128xf32>
    %48 = arith.addf %43, %44 : vector<256x128xf32>
    %49 = arith.addf %45, %46 : vector<256x128xf32>
    %50 = arith.addf %48, %49 : vector<256x128xf32>
    %51 = arith.addf %50, %47 : vector<256x128xf32>
    %52 = vector.extract_strided_slice %2 {offsets = [2560, 0], sizes = [64, 128], strides = [1, 1]} : vector<3440x128xf32> to vector<64x128xf32>
    %c1_15 = arith.constant 1 : index
    %c0_16 = arith.constant 0 : index
    %53 = vector.load %arg4[%c1_15, %c0_16] : memref<4x128xf32, #tpu.memory_space<vmem>>, vector<1x128xf32>
    %54 = vector.broadcast %53 : vector<1x128xf32> to vector<64x128xf32>
    %55 = arith.addf %52, %54 : vector<64x128xf32>
    %56 = vector.extract_strided_slice %2 {offsets = [2624, 0], sizes = [64, 128], strides = [1, 1]} : vector<3440x128xf32> to vector<64x128xf32>
    %c9 = arith.constant 9 : index
    %c0_17 = arith.constant 0 : index
    %57 = vector.load %arg3[%c9, %c0_17] : memref<36x128xf32, #tpu.memory_space<vmem>>, vector<1x128xf32>
    %58 = vector.broadcast %57 : vector<1x128xf32> to vector<64x128xf32>
    %59 = arith.mulf %56, %58 : vector<64x128xf32>
    %60 = vector.extract_strided_slice %2 {offsets = [2688, 0], sizes = [64, 128], strides = [1, 1]} : vector<3440x128xf32> to vector<64x128xf32>
    %c10 = arith.constant 10 : index
    %c0_18 = arith.constant 0 : index
    %61 = vector.load %arg3[%c10, %c0_18] : memref<36x128xf32, #tpu.memory_space<vmem>>, vector<1x128xf32>
    %62 = vector.broadcast %61 : vector<1x128xf32> to vector<64x128xf32>
    %63 = arith.mulf %60, %62 : vector<64x128xf32>
    %64 = vector.extract_strided_slice %2 {offsets = [2752, 0], sizes = [64, 128], strides = [1, 1]} : vector<3440x128xf32> to vector<64x128xf32>
    %c11 = arith.constant 11 : index
    %c0_19 = arith.constant 0 : index
    %65 = vector.load %arg3[%c11, %c0_19] : memref<36x128xf32, #tpu.memory_space<vmem>>, vector<1x128xf32>
    %66 = vector.broadcast %65 : vector<1x128xf32> to vector<64x128xf32>
    %67 = arith.mulf %64, %66 : vector<64x128xf32>
    %68 = vector.extract_strided_slice %2 {offsets = [2816, 0], sizes = [64, 128], strides = [1, 1]} : vector<3440x128xf32> to vector<64x128xf32>
    %c12 = arith.constant 12 : index
    %c0_20 = arith.constant 0 : index
    %69 = vector.load %arg3[%c12, %c0_20] : memref<36x128xf32, #tpu.memory_space<vmem>>, vector<1x128xf32>
    %70 = vector.broadcast %69 : vector<1x128xf32> to vector<64x128xf32>
    %71 = arith.mulf %68, %70 : vector<64x128xf32>
    %72 = vector.extract_strided_slice %2 {offsets = [2880, 0], sizes = [64, 128], strides = [1, 1]} : vector<3440x128xf32> to vector<64x128xf32>
    %c13 = arith.constant 13 : index
    %c0_21 = arith.constant 0 : index
    %73 = vector.load %arg3[%c13, %c0_21] : memref<36x128xf32, #tpu.memory_space<vmem>>, vector<1x128xf32>
    %74 = vector.broadcast %73 : vector<1x128xf32> to vector<64x128xf32>
    %75 = arith.mulf %72, %74 : vector<64x128xf32>
    %76 = vector.extract_strided_slice %2 {offsets = [2944, 0], sizes = [64, 128], strides = [1, 1]} : vector<3440x128xf32> to vector<64x128xf32>
    %c14 = arith.constant 14 : index
    %c0_22 = arith.constant 0 : index
    %77 = vector.load %arg3[%c14, %c0_22] : memref<36x128xf32, #tpu.memory_space<vmem>>, vector<1x128xf32>
    %78 = vector.broadcast %77 : vector<1x128xf32> to vector<64x128xf32>
    %79 = arith.mulf %76, %78 : vector<64x128xf32>
    %80 = vector.extract_strided_slice %2 {offsets = [3008, 0], sizes = [64, 128], strides = [1, 1]} : vector<3440x128xf32> to vector<64x128xf32>
    %c15 = arith.constant 15 : index
    %c0_23 = arith.constant 0 : index
    %81 = vector.load %arg3[%c15, %c0_23] : memref<36x128xf32, #tpu.memory_space<vmem>>, vector<1x128xf32>
    %82 = vector.broadcast %81 : vector<1x128xf32> to vector<64x128xf32>
    %83 = arith.mulf %80, %82 : vector<64x128xf32>
    %84 = vector.extract_strided_slice %2 {offsets = [3072, 0], sizes = [64, 128], strides = [1, 1]} : vector<3440x128xf32> to vector<64x128xf32>
    %c16 = arith.constant 16 : index
    %c0_24 = arith.constant 0 : index
    %85 = vector.load %arg3[%c16, %c0_24] : memref<36x128xf32, #tpu.memory_space<vmem>>, vector<1x128xf32>
    %86 = vector.broadcast %85 : vector<1x128xf32> to vector<64x128xf32>
    %87 = arith.mulf %84, %86 : vector<64x128xf32>
    %88 = vector.extract_strided_slice %2 {offsets = [3136, 0], sizes = [64, 128], strides = [1, 1]} : vector<3440x128xf32> to vector<64x128xf32>
    %c17 = arith.constant 17 : index
    %c0_25 = arith.constant 0 : index
    %89 = vector.load %arg3[%c17, %c0_25] : memref<36x128xf32, #tpu.memory_space<vmem>>, vector<1x128xf32>
    %90 = vector.broadcast %89 : vector<1x128xf32> to vector<64x128xf32>
    %91 = arith.mulf %88, %90 : vector<64x128xf32>
    %92 = arith.addf %55, %59 : vector<64x128xf32>
    %93 = arith.addf %63, %67 : vector<64x128xf32>
    %94 = arith.addf %71, %75 : vector<64x128xf32>
    %95 = arith.addf %79, %83 : vector<64x128xf32>
    %96 = arith.addf %87, %91 : vector<64x128xf32>
    %97 = arith.addf %92, %93 : vector<64x128xf32>
    %98 = arith.addf %94, %95 : vector<64x128xf32>
    %99 = arith.addf %97, %98 : vector<64x128xf32>
    %100 = arith.addf %99, %96 : vector<64x128xf32>
    %101 = vector.extract_strided_slice %2 {offsets = [3200, 0], sizes = [16, 128], strides = [1, 1]} : vector<3440x128xf32> to vector<16x128xf32>
    %c2_26 = arith.constant 2 : index
    %c0_27 = arith.constant 0 : index
    %102 = vector.load %arg4[%c2_26, %c0_27] : memref<4x128xf32, #tpu.memory_space<vmem>>, vector<1x128xf32>
    %103 = vector.broadcast %102 : vector<1x128xf32> to vector<16x128xf32>
    %104 = arith.addf %101, %103 : vector<16x128xf32>
    %105 = vector.extract_strided_slice %2 {offsets = [3216, 0], sizes = [16, 128], strides = [1, 1]} : vector<3440x128xf32> to vector<16x128xf32>
    %c18 = arith.constant 18 : index
    %c0_28 = arith.constant 0 : index
    %106 = vector.load %arg3[%c18, %c0_28] : memref<36x128xf32, #tpu.memory_space<vmem>>, vector<1x128xf32>
    %107 = vector.broadcast %106 : vector<1x128xf32> to vector<16x128xf32>
    %108 = arith.mulf %105, %107 : vector<16x128xf32>
    %109 = vector.extract_strided_slice %2 {offsets = [3232, 0], sizes = [16, 128], strides = [1, 1]} : vector<3440x128xf32> to vector<16x128xf32>
    %c19 = arith.constant 19 : index
    %c0_29 = arith.constant 0 : index
    %110 = vector.load %arg3[%c19, %c0_29] : memref<36x128xf32, #tpu.memory_space<vmem>>, vector<1x128xf32>
    %111 = vector.broadcast %110 : vector<1x128xf32> to vector<16x128xf32>
    %112 = arith.mulf %109, %111 : vector<16x128xf32>
    %113 = vector.extract_strided_slice %2 {offsets = [3248, 0], sizes = [16, 128], strides = [1, 1]} : vector<3440x128xf32> to vector<16x128xf32>
    %c20 = arith.constant 20 : index
    %c0_30 = arith.constant 0 : index
    %114 = vector.load %arg3[%c20, %c0_30] : memref<36x128xf32, #tpu.memory_space<vmem>>, vector<1x128xf32>
    %115 = vector.broadcast %114 : vector<1x128xf32> to vector<16x128xf32>
    %116 = arith.mulf %113, %115 : vector<16x128xf32>
    %117 = vector.extract_strided_slice %2 {offsets = [3264, 0], sizes = [16, 128], strides = [1, 1]} : vector<3440x128xf32> to vector<16x128xf32>
    %c21 = arith.constant 21 : index
    %c0_31 = arith.constant 0 : index
    %118 = vector.load %arg3[%c21, %c0_31] : memref<36x128xf32, #tpu.memory_space<vmem>>, vector<1x128xf32>
    %119 = vector.broadcast %118 : vector<1x128xf32> to vector<16x128xf32>
    %120 = arith.mulf %117, %119 : vector<16x128xf32>
    %121 = vector.extract_strided_slice %2 {offsets = [3280, 0], sizes = [16, 128], strides = [1, 1]} : vector<3440x128xf32> to vector<16x128xf32>
    %c22 = arith.constant 22 : index
    %c0_32 = arith.constant 0 : index
    %122 = vector.load %arg3[%c22, %c0_32] : memref<36x128xf32, #tpu.memory_space<vmem>>, vector<1x128xf32>
    %123 = vector.broadcast %122 : vector<1x128xf32> to vector<16x128xf32>
    %124 = arith.mulf %121, %123 : vector<16x128xf32>
    %125 = vector.extract_strided_slice %2 {offsets = [3296, 0], sizes = [16, 128], strides = [1, 1]} : vector<3440x128xf32> to vector<16x128xf32>
    %c23 = arith.constant 23 : index
    %c0_33 = arith.constant 0 : index
    %126 = vector.load %arg3[%c23, %c0_33] : memref<36x128xf32, #tpu.memory_space<vmem>>, vector<1x128xf32>
    %127 = vector.broadcast %126 : vector<1x128xf32> to vector<16x128xf32>
    %128 = arith.mulf %125, %127 : vector<16x128xf32>
    %129 = vector.extract_strided_slice %2 {offsets = [3312, 0], sizes = [16, 128], strides = [1, 1]} : vector<3440x128xf32> to vector<16x128xf32>
    %c24 = arith.constant 24 : index
    %c0_34 = arith.constant 0 : index
    %130 = vector.load %arg3[%c24, %c0_34] : memref<36x128xf32, #tpu.memory_space<vmem>>, vector<1x128xf32>
    %131 = vector.broadcast %130 : vector<1x128xf32> to vector<16x128xf32>
    %132 = arith.mulf %129, %131 : vector<16x128xf32>
    %133 = vector.extract_strided_slice %2 {offsets = [3328, 0], sizes = [16, 128], strides = [1, 1]} : vector<3440x128xf32> to vector<16x128xf32>
    %c25 = arith.constant 25 : index
    %c0_35 = arith.constant 0 : index
    %134 = vector.load %arg3[%c25, %c0_35] : memref<36x128xf32, #tpu.memory_space<vmem>>, vector<1x128xf32>
    %135 = vector.broadcast %134 : vector<1x128xf32> to vector<16x128xf32>
    %136 = arith.mulf %133, %135 : vector<16x128xf32>
    %137 = vector.extract_strided_slice %2 {offsets = [3344, 0], sizes = [16, 128], strides = [1, 1]} : vector<3440x128xf32> to vector<16x128xf32>
    %c26 = arith.constant 26 : index
    %c0_36 = arith.constant 0 : index
    %138 = vector.load %arg3[%c26, %c0_36] : memref<36x128xf32, #tpu.memory_space<vmem>>, vector<1x128xf32>
    %139 = vector.broadcast %138 : vector<1x128xf32> to vector<16x128xf32>
    %140 = arith.mulf %137, %139 : vector<16x128xf32>
    %141 = arith.addf %104, %108 : vector<16x128xf32>
    %142 = arith.addf %112, %116 : vector<16x128xf32>
    %143 = arith.addf %120, %124 : vector<16x128xf32>
    %144 = arith.addf %128, %132 : vector<16x128xf32>
    %145 = arith.addf %136, %140 : vector<16x128xf32>
    %146 = arith.addf %141, %142 : vector<16x128xf32>
    %147 = arith.addf %143, %144 : vector<16x128xf32>
    %148 = arith.addf %146, %147 : vector<16x128xf32>
    %149 = arith.addf %148, %145 : vector<16x128xf32>
    %150 = vector.extract_strided_slice %2 {offsets = [3360, 0], sizes = [8, 128], strides = [1, 1]} : vector<3440x128xf32> to vector<8x128xf32>
    %c3_37 = arith.constant 3 : index
    %c0_38 = arith.constant 0 : index
    %151 = vector.load %arg4[%c3_37, %c0_38] : memref<4x128xf32, #tpu.memory_space<vmem>>, vector<1x128xf32>
    %152 = vector.broadcast %151 : vector<1x128xf32> to vector<8x128xf32>
    %153 = arith.addf %150, %152 : vector<8x128xf32>
    %154 = vector.extract_strided_slice %2 {offsets = [3368, 0], sizes = [8, 128], strides = [1, 1]} : vector<3440x128xf32> to vector<8x128xf32>
    %c27 = arith.constant 27 : index
    %c0_39 = arith.constant 0 : index
    %155 = vector.load %arg3[%c27, %c0_39] : memref<36x128xf32, #tpu.memory_space<vmem>>, vector<1x128xf32>
    %156 = vector.broadcast %155 : vector<1x128xf32> to vector<8x128xf32>
    %157 = arith.mulf %154, %156 : vector<8x128xf32>
    %158 = vector.extract_strided_slice %2 {offsets = [3376, 0], sizes = [8, 128], strides = [1, 1]} : vector<3440x128xf32> to vector<8x128xf32>
    %c28 = arith.constant 28 : index
    %c0_40 = arith.constant 0 : index
    %159 = vector.load %arg3[%c28, %c0_40] : memref<36x128xf32, #tpu.memory_space<vmem>>, vector<1x128xf32>
    %160 = vector.broadcast %159 : vector<1x128xf32> to vector<8x128xf32>
    %161 = arith.mulf %158, %160 : vector<8x128xf32>
    %162 = vector.extract_strided_slice %2 {offsets = [3384, 0], sizes = [8, 128], strides = [1, 1]} : vector<3440x128xf32> to vector<8x128xf32>
    %c29 = arith.constant 29 : index
    %c0_41 = arith.constant 0 : index
    %163 = vector.load %arg3[%c29, %c0_41] : memref<36x128xf32, #tpu.memory_space<vmem>>, vector<1x128xf32>
    %164 = vector.broadcast %163 : vector<1x128xf32> to vector<8x128xf32>
    %165 = arith.mulf %162, %164 : vector<8x128xf32>
    %166 = vector.extract_strided_slice %2 {offsets = [3392, 0], sizes = [8, 128], strides = [1, 1]} : vector<3440x128xf32> to vector<8x128xf32>
    %c30 = arith.constant 30 : index
    %c0_42 = arith.constant 0 : index
    %167 = vector.load %arg3[%c30, %c0_42] : memref<36x128xf32, #tpu.memory_space<vmem>>, vector<1x128xf32>
    %168 = vector.broadcast %167 : vector<1x128xf32> to vector<8x128xf32>
    %169 = arith.mulf %166, %168 : vector<8x128xf32>
    %170 = vector.extract_strided_slice %2 {offsets = [3400, 0], sizes = [8, 128], strides = [1, 1]} : vector<3440x128xf32> to vector<8x128xf32>
    %c31 = arith.constant 31 : index
    %c0_43 = arith.constant 0 : index
    %171 = vector.load %arg3[%c31, %c0_43] : memref<36x128xf32, #tpu.memory_space<vmem>>, vector<1x128xf32>
    %172 = vector.broadcast %171 : vector<1x128xf32> to vector<8x128xf32>
    %173 = arith.mulf %170, %172 : vector<8x128xf32>
    %174 = vector.extract_strided_slice %2 {offsets = [3408, 0], sizes = [8, 128], strides = [1, 1]} : vector<3440x128xf32> to vector<8x128xf32>
    %c32 = arith.constant 32 : index
    %c0_44 = arith.constant 0 : index
    %175 = vector.load %arg3[%c32, %c0_44] : memref<36x128xf32, #tpu.memory_space<vmem>>, vector<1x128xf32>
    %176 = vector.broadcast %175 : vector<1x128xf32> to vector<8x128xf32>
    %177 = arith.mulf %174, %176 : vector<8x128xf32>
    %178 = vector.extract_strided_slice %2 {offsets = [3416, 0], sizes = [8, 128], strides = [1, 1]} : vector<3440x128xf32> to vector<8x128xf32>
    %c33 = arith.constant 33 : index
    %c0_45 = arith.constant 0 : index
    %179 = vector.load %arg3[%c33, %c0_45] : memref<36x128xf32, #tpu.memory_space<vmem>>, vector<1x128xf32>
    %180 = vector.broadcast %179 : vector<1x128xf32> to vector<8x128xf32>
    %181 = arith.mulf %178, %180 : vector<8x128xf32>
    %182 = vector.extract_strided_slice %2 {offsets = [3424, 0], sizes = [8, 128], strides = [1, 1]} : vector<3440x128xf32> to vector<8x128xf32>
    %c34 = arith.constant 34 : index
    %c0_46 = arith.constant 0 : index
    %183 = vector.load %arg3[%c34, %c0_46] : memref<36x128xf32, #tpu.memory_space<vmem>>, vector<1x128xf32>
    %184 = vector.broadcast %183 : vector<1x128xf32> to vector<8x128xf32>
    %185 = arith.mulf %182, %184 : vector<8x128xf32>
    %186 = vector.extract_strided_slice %2 {offsets = [3432, 0], sizes = [8, 128], strides = [1, 1]} : vector<3440x128xf32> to vector<8x128xf32>
    %c35 = arith.constant 35 : index
    %c0_47 = arith.constant 0 : index
    %187 = vector.load %arg3[%c35, %c0_47] : memref<36x128xf32, #tpu.memory_space<vmem>>, vector<1x128xf32>
    %188 = vector.broadcast %187 : vector<1x128xf32> to vector<8x128xf32>
    %189 = arith.mulf %186, %188 : vector<8x128xf32>
    %190 = arith.addf %153, %157 : vector<8x128xf32>
    %191 = arith.addf %161, %165 : vector<8x128xf32>
    %192 = arith.addf %169, %173 : vector<8x128xf32>
    %193 = arith.addf %177, %181 : vector<8x128xf32>
    %194 = arith.addf %185, %189 : vector<8x128xf32>
    %195 = arith.addf %190, %191 : vector<8x128xf32>
    %196 = arith.addf %192, %193 : vector<8x128xf32>
    %197 = arith.addf %195, %196 : vector<8x128xf32>
    %198 = arith.addf %197, %194 : vector<8x128xf32>
    %199 = tpu.concatenate %51, %100, %149, %198 in 0 : vector<256x128xf32>, vector<64x128xf32>, vector<16x128xf32>, vector<8x128xf32> -> vector<344x128xf32>
    %c0_48 = arith.constant 0 : index
    %c0_49 = arith.constant 0 : index
    %200 = vector.load %arg5[%c0_48, %c0_49] : memref<128x128xf32, #tpu.memory_space<vmem>>, vector<128x128xf32>
    %cst_50 = arith.constant dense<0.000000e+00> : vector<344x128xf32>
    %201 = tpu.matmul %199, %200, %cst_50 {dimension_numbers = #tpu.dot_dimension_numbers<[1], [0], [0], [1], [0, 0, 1, 1], [], []>} : vector<344x128xf32>, vector<128x128xf32>, vector<344x128xf32> -> vector<344x128xf32>
    %202 = arith.subf %199, %201 : vector<344x128xf32>
    %203 = arith.mulf %202, %202 : vector<344x128xf32>
    %cst_51 = arith.constant dense<0.000000e+00> : vector<344x128xf32>
    %204 = tpu.matmul %203, %200, %cst_51 {dimension_numbers = #tpu.dot_dimension_numbers<[1], [0], [0], [1], [0, 0, 1, 1], [], []>} : vector<344x128xf32>, vector<128x128xf32>, vector<344x128xf32> -> vector<344x128xf32>
    %cst_52 = arith.constant 9.99999974E-6 : f32
    %205 = vector.broadcast %cst_52 : f32 to vector<344x128xf32>
    %206 = arith.addf %204, %205 : vector<344x128xf32>
    %207 = math.rsqrt %206 : vector<344x128xf32>
    %208 = arith.mulf %202, %207 : vector<344x128xf32>
    %c0_53 = arith.constant 0 : index
    %c0_54 = arith.constant 0 : index
    %209 = vector.load %arg6[%c0_53, %c0_54] : memref<1x128xf32, #tpu.memory_space<vmem>>, vector<1x128xf32>
    %210 = vector.broadcast %209 : vector<1x128xf32> to vector<344x128xf32>
    %211 = arith.mulf %208, %210 : vector<344x128xf32>
    %c0_55 = arith.constant 0 : index
    %c0_56 = arith.constant 0 : index
    %212 = vector.load %arg7[%c0_55, %c0_56] : memref<1x128xf32, #tpu.memory_space<vmem>>, vector<1x128xf32>
    %213 = vector.broadcast %212 : vector<1x128xf32> to vector<344x128xf32>
    %214 = arith.addf %211, %213 : vector<344x128xf32>
    %c0_57 = arith.constant 0 : index
    %c0_58 = arith.constant 0 : index
    %215 = vector.load %arg8[%c0_57, %c0_58] : memref<344x128xf32, #tpu.memory_space<vmem>>, vector<344x128xf32>
    tpu.vector_store %arg8[%c0_57, %c0_58], %214 {strides = array<i32>} : memref<344x128xf32, #tpu.memory_space<vmem>>, vector<344x128xf32>,
    return
  }
  func.func @transform_0(%arg0: i32) -> (i32, i32) {
    %c0_i32 = arith.constant 0 : i32
    %c0_i32_0 = arith.constant 0 : i32
    %c0_i32_1 = arith.constant 0 : i32
    return %c0_i32, %c0_i32_0 : i32, i32
  }
  func.func @transform_1(%arg0: i32) -> (i32, i32) {
    %c0_i32 = arith.constant 0 : i32
    %c0_i32_0 = arith.constant 0 : i32
    %c0_i32_1 = arith.constant 0 : i32
    return %c0_i32, %c0_i32_0 : i32, i32
  }
  func.func @transform_2(%arg0: i32) -> (i32, i32) {
    %c0_i32 = arith.constant 0 : i32
    %c0_i32_0 = arith.constant 0 : i32
    %c0_i32_1 = arith.constant 0 : i32
    return %c0_i32, %c0_i32_0 : i32, i32
  }
  func.func @transform_3(%arg0: i32) -> (i32, i32) {
    %c0_i32 = arith.constant 0 : i32
    %c0_i32_0 = arith.constant 0 : i32
    %c0_i32_1 = arith.constant 0 : i32
    return %c0_i32, %c0_i32_0 : i32, i32
  }
  func.func @transform_4(%arg0: i32) -> (i32, i32) {
    %c0_i32 = arith.constant 0 : i32
    %c0_i32_0 = arith.constant 0 : i32
    %c0_i32_1 = arith.constant 0 : i32
    return %c0_i32, %c0_i32_0 : i32, i32
  }
  func.func @transform_5(%arg0: i32) -> (i32, i32) {
    %c0_i32 = arith.constant 0 : i32
    %c0_i32_0 = arith.constant 0 : i32
    %c0_i32_1 = arith.constant 0 : i32
    return %c0_i32, %c0_i32_0 : i32, i32
  }
  func.func @transform_6(%arg0: i32) -> (i32, i32) {
    %c0_i32 = arith.constant 0 : i32
    %c0_i32_0 = arith.constant 0 : i32
    %c0_i32_1 = arith.constant 0 : i32
    return %c0_i32, %c0_i32_0 : i32, i32
  }
  func.func @transform_7(%arg0: i32) -> (i32, i32) {
    %c0_i32 = arith.constant 0 : i32
    %c0_i32_0 = arith.constant 0 : i32
    %c0_i32_1 = arith.constant 0 : i32
    return %c0_i32, %c0_i32_0 : i32, i32
  }
}

</mosaic_0001>

<bundles_post_ra>
// kernel: tpu_custom_call.1
= control target key start
LH: loop header
LB: loop body
LE: loop exit
PB: predicated region body
PF: predicated region fallthrough
CT: control target
= control target key end

     0   :  { %12 = vsyncpa [#allocation3], 0  ;;  %s9000_s0 = inlined_call_operand.hbm [shape: f32[256,128], index: 0, kind: input, shape index: {}]   ;;  %s9001_s1 = inlined_call_operand.hbm [shape: f32[3440,256], index: 1, kind: input, shape index: {}]   ;;  %s9002_s2 = inlined_call_operand.hbm [shape: f32[36,128], index: 2, kind: input, shape index: {}]   ;;  %s9003_s3 = inlined_call_operand.hbm [shape: f32[4,128], index: 3, kind: input, shape index: {}]   ;;  %s9004_s4 = inlined_call_operand.hbm [shape: f32[128,128], index: 4, kind: input, shape index: {}]   ;;  %s9005_s5 = inlined_call_operand.hbm [shape: f32[1,128], index: 5, kind: input, shape index: {}]   ;;  %s9006_s6 = inlined_call_operand.hbm [shape: f32[1,128], index: 6, kind: input, shape index: {}]   ;;  %s9007_s7 = inlined_call_operand.hbm [shape: f32[344,128], index: 7, kind: output, shape index: {}]  }
   0x1   :  { %13 = vsyncpa [#allocation6], 0 }
   0x2   :  { %14 = vsyncpa [#allocation9], 0 }
   0x3   :  { %15 = vsyncpa [#allocation12], 0  ;;  %s34_s26 = sshll.u32 %s9001_s1, 4  ;;  %s35_s26 = int_to_ptr.hbm [resolvable:$true] %s34_s26 }
   0x4   :  { %16 = vsyncpa [#allocation4], 0  ;;  %s5944_s27 = smov [#allocation5]   ;;  %s61_s8 = sshll.u32 %s9003_s3, 4  ;;  %s62_s8 = int_to_ptr.hbm [resolvable:$true] %s61_s8 }
   0x5   :  { %s36_s28 = sshll.u32 %s5944_s27, 4  ;;  %s5945_s9 = smov 256   ;;  %s37_s28 = int_to_ptr.vmem [resolvable:$true] %s36_s28 }
   0x6   :  { %s5946_s10 = smov 16   ;;  %s5947_s11 = smov [#allocation8]  }
   0x7   :  { %42 = dma.hbm_to_vmem [thread:$0]  %s35_s26, 110080, %s37_s28, [#allocation6], %s5945_s9, %s5945_s9, %s5946_s10  }
   0x8   :  { %s63_s12 = sshll.u32 %s5947_s11, 4  ;;  %s85_s15 = sshll.u32 %s9005_s5, 4  ;;  %s64_s12 = int_to_ptr.vmem [resolvable:$true] %s63_s12  ;;  %s86_s15 = int_to_ptr.hbm [resolvable:$true] %s85_s15 }
   0x9   :  { %66 = dma.hbm_to_vmem [thread:$0]  %s62_s8, 64, %s64_s12, [#allocation9]  }
   0xa   :  { %s21_s17 = sshll.u32 %s9000_s0, 4  ;;  %s5948_s18 = smov [#allocation11]   ;;  %s22_s17 = int_to_ptr.hbm [resolvable:$true] %s21_s17 }
   0xb   :  { %s87_s19 = sshll.u32 %s5948_s18, 4  ;;  %s5949_s3 = smov [#allocation2]   ;;  %s88_s19 = int_to_ptr.vmem [resolvable:$true] %s87_s19 }
   0xc   :  { %90 = dma.hbm_to_vmem [thread:$0]  %s86_s15, 16, %s88_s19, [#allocation12]  }
   0xd   :  { %s23_s20 = sshll.u32 %s5949_s3, 4  ;;  %s5950_s21 = smov 128   ;;  %s24_s20 = int_to_ptr.vmem [resolvable:$true] %s23_s20 }
   0xe   :  { %s5951_s22 = smov 8   ;;  %s47_s24 = sshll.u32 %s9002_s2, 4  ;;  %s48_s24 = int_to_ptr.hbm [resolvable:$true] %s47_s24 }
   0xf   :  { %29 = dma.hbm_to_vmem [thread:$0]  %s22_s17, 4096, %s24_s20, [#allocation3], %s5950_s21, %s5950_s21, %s5951_s22  }
  0x10   :  { %s5952_s0 = smov [#allocation7]   ;;  %s71_s28 = sshll.u32 %s9004_s4, 4  ;;  %s72_s28 = int_to_ptr.hbm [resolvable:$true] %s71_s28 }
  0x11   :  { %s49_s25 = sshll.u32 %s5952_s0, 4  ;;  %s5953_s29 = smov [#allocation10]   ;;  %s50_s25 = int_to_ptr.vmem [resolvable:$true] %s49_s25 }
  0x12   :  { %55 = dma.hbm_to_vmem [thread:$0]  %s48_s24, 640, %s50_s25, [#allocation6], %s5950_s21, %s5950_s21, %s5951_s22  }
  0x13   :  { %s73_s30 = sshll.u32 %s5953_s29, 4  ;;  %s96_s10 = sshll.u32 %s9006_s6, 4  ;;  %s74_s30 = int_to_ptr.vmem [resolvable:$true] %s73_s30  ;;  %s97_s10 = int_to_ptr.hbm [resolvable:$true] %s96_s10 }
  0x14   :  { %79 = dma.hbm_to_vmem [thread:$0]  %s72_s28, 2048, %s74_s30, [#allocation9], %s5950_s21, %s5950_s21, %s5951_s22  }
  0x15   :  { %s5954_s2 = smov [#allocation13]  }
  0x16   :  { %s98_s11 = sshll.u32 %s5954_s2, 4  ;;  %s99_s11 = int_to_ptr.vmem [resolvable:$true] %s98_s11 }
  0x17   :  { %101 = dma.hbm_to_vmem [thread:$0]  %s97_s10, 16, %s99_s11, [#allocation12]  }
  0x18   :  { %5934 = dma.done.wait [#allocation3], 4096  }
  0x19   :  { %5935 = vsyncadd [#allocation3], 4294963200 }
  0x1a   :  { %5936 = dma.done.wait [#allocation6], 110720  }
  0x1b   :  { %5937 = vsyncadd [#allocation6], 4294856576 }
  0x1c   :  { %5938 = dma.done.wait [#allocation9], 2112  }
  0x1d   :  { %5939 = vsyncadd [#allocation9], 4294965184 }
  0x1e   :  { %5940 = dma.done.wait [#allocation12], 32  }
  0x1f   :  { %5941 = vsyncadd [#allocation12], 4294967264  ;;  %v145_v0 = vld [vmem:[#allocation2 + $0x78] sm:$0xff]  ;;  %v144_v2 = vld [vmem:[#allocation2 + $0x70] sm:$0xff]  ;;  %s5955_s4 = smov [#allocation14]   ;;  %s5543_s14 = sshll.u32 %s9007_s7, 4  ;;  %s5544_s14 = int_to_ptr.hbm [resolvable:$true] %s5543_s14 }
  0x20   :  { %v161_v1 = vld [vmem:[#allocation2 + $0xf8] sm:$0xff]  ;;  %1022 = vmatpush.msra.mxu0 %v145_v0  ;;  %5559 = vmatpush.msra.mxu2 %v145_v0  ;;  %v160_v3 = vld [vmem:[#allocation2 + $0xf0] sm:$0xff]  ;;  %v143_v4 = vld [vmem:[#allocation2 + $0x68] sm:$0xff]  ;;  %s5541_s6 = sshll.u32 %s5955_s4, 4  ;;  %s5542_s6 = int_to_ptr.vmem [resolvable:$true] %s5541_s6 }
  0x21   :  { %2329 = vmatpush.msra.mxu1 %v161_v1  ;;  %5575 = vmatpush.msra.mxu3 %v161_v1  ;;  %v159_v5 = vld [vmem:[#allocation2 + $0xe8] sm:$0xff]  ;;  %v142_v6 = vld [vmem:[#allocation2 + $0x60] sm:$0xff]  ;;  %v141_v8 = vld [vmem:[#allocation2 + $0x58] sm:$0xff] }
  0x22   :  { %1023 = vmatpush.msra.mxu0 %v144_v2  ;;  %5560 = vmatpush.msra.mxu2 %v144_v2  ;;  %v158_v7 = vld [vmem:[#allocation2 + $0xe0] sm:$0xff]  ;;  %v157_v9 = vld [vmem:[#allocation2 + $0xd8] sm:$0xff]  ;;  %v140_v10 = vld [vmem:[#allocation2 + $0x50] sm:$0xff] }
  0x23   :  { %2330 = vmatpush.msra.mxu1 %v160_v3  ;;  %5576 = vmatpush.msra.mxu3 %v160_v3  ;;  %v156_v11 = vld [vmem:[#allocation2 + $0xd0] sm:$0xff]  ;;  %v139_v12 = vld [vmem:[#allocation2 + $0x48] sm:$0xff]  ;;  %v138_v14 = vld [vmem:[#allocation2 + $0x40] sm:$0xff] }
  0x24   :  { %1024 = vmatpush.msra.mxu0 %v143_v4  ;;  %5561 = vmatpush.msra.mxu2 %v143_v4  ;;  %v155_v13 = vld [vmem:[#allocation2 + $0xc8] sm:$0xff]  ;;  %v154_v15 = vld [vmem:[#allocation2 + $0xc0] sm:$0xff]  ;;  %v137_v16 = vld [vmem:[#allocation2 + $0x38] sm:$0xff] }
  0x25   :  { %2331 = vmatpush.msra.mxu1 %v159_v5  ;;  %5577 = vmatpush.msra.mxu3 %v159_v5  ;;  %v153_v17 = vld [vmem:[#allocation2 + $0xb8] sm:$0xff]  ;;  %v136_v18 = vld [vmem:[#allocation2 + $0x30] sm:$0xff]  ;;  %v135_v20 = vld [vmem:[#allocation2 + $0x28] sm:$0xff] }
  0x26   :  { %1025 = vmatpush.msra.mxu0 %v142_v6  ;;  %5562 = vmatpush.msra.mxu2 %v142_v6  ;;  %v152_v19 = vld [vmem:[#allocation2 + $0xb0] sm:$0xff]  ;;  %v151_v21 = vld [vmem:[#allocation2 + $0xa8] sm:$0xff]  ;;  %v134_v22 = vld [vmem:[#allocation2 + $0x20] sm:$0xff] }
  0x27   :  { %2332 = vmatpush.msra.mxu1 %v158_v7  ;;  %5578 = vmatpush.msra.mxu3 %v158_v7  ;;  %v150_v23 = vld [vmem:[#allocation2 + $0xa0] sm:$0xff]  ;;  %v133_v24 = vld [vmem:[#allocation2 + $0x18] sm:$0xff]  ;;  %v132_v26 = vld [vmem:[#allocation2 + $0x10] sm:$0xff] }
  0x28   :  { %1026 = vmatpush.msra.mxu0 %v141_v8  ;;  %5563 = vmatpush.msra.mxu2 %v141_v8  ;;  %v149_v25 = vld [vmem:[#allocation2 + $0x98] sm:$0xff]  ;;  %v148_v27 = vld [vmem:[#allocation2 + $0x90] sm:$0xff]  ;;  %v131_v28 = vld [vmem:[#allocation2 + $0x8] sm:$0xff] }
  0x29   :  { %2333 = vmatpush.msra.mxu1 %v157_v9  ;;  %5579 = vmatpush.msra.mxu3 %v157_v9  ;;  %v147_v29 = vld [vmem:[#allocation2 + $0x88] sm:$0xff]  ;;  %v130_v30 = vld [vmem:[#allocation2] sm:$0xff]  ;;  %v636_v33 = vld [vmem:[#allocation5 + $0xed0] sm:$0xff] }
  0x2a   :  { %1027 = vmatpush.msra.mxu0 %v140_v10  ;;  %5564 = vmatpush.msra.mxu2 %v140_v10  ;;  %v146_v31 = vld [vmem:[#allocation2 + $0x80] sm:$0xff]  ;;  %v163_v34 = vld [vmem:[#allocation5 + $0x8] sm:$0xff]  ;;  %v637_v35 = vld [vmem:[#allocation5 + $0xed8] sm:$0xff] }
  0x2b   :  { %2334 = vmatpush.msra.mxu1 %v156_v11  ;;  %5580 = vmatpush.msra.mxu3 %v156_v11  ;;  %v162_v32 = vld [vmem:[#allocation5] sm:$0xff]  ;;  %v164_v36 = vld [vmem:[#allocation5 + $0x10] sm:$0xff]  ;;  %v165_v38 = vld [vmem:[#allocation5 + $0x18] sm:$0xff] }
  0x2c   :  { %1028 = vmatpush.msra.mxu0 %v139_v12  ;;  %5565 = vmatpush.msra.mxu2 %v139_v12  ;;  %v638_v37 = vld [vmem:[#allocation5 + $0xee0] sm:$0xff]  ;;  %v639_v39 = vld [vmem:[#allocation5 + $0xee8] sm:$0xff]  ;;  %v640_v41 = vld [vmem:[#allocation5 + $0xef0] sm:$0xff] }
  0x2d   :  { %2335 = vmatpush.msra.mxu1 %v155_v13  ;;  %5581 = vmatpush.msra.mxu3 %v155_v13  ;;  %v166_v40 = vld [vmem:[#allocation5 + $0x20] sm:$0xff]  ;;  %v167_v42 = vld [vmem:[#allocation5 + $0x28] sm:$0xff]  ;;  %v641_v43 = vld [vmem:[#allocation5 + $0xef8] sm:$0xff] }
  0x2e   :  { %1029 = vmatpush.msra.mxu0 %v138_v14  ;;  %5566 = vmatpush.msra.mxu2 %v138_v14  ;;  %v168_v44 = vld [vmem:[#allocation5 + $0x30] sm:$0xff]  ;;  %v642_v45 = vld [vmem:[#allocation5 + $0xf00] sm:$0xff]  ;;  %v169_v46 = vld [vmem:[#allocation5 + $0x38] sm:$0xff] }
  0x2f   :  { %2336 = vmatpush.msra.mxu1 %v154_v15  ;;  %5582 = vmatpush.msra.mxu3 %v154_v15  ;;  %v643_v47 = vld [vmem:[#allocation5 + $0xf08] sm:$0xff]  ;;  %v170_v48 = vld [vmem:[#allocation5 + $0x40] sm:$0xff]  ;;  %v644_v49 = vld [vmem:[#allocation5 + $0xf10] sm:$0xff] }
  0x30   :  { %1030 = vmatpush.msra.mxu0 %v137_v16  ;;  %5567 = vmatpush.msra.mxu2 %v137_v16  ;;  %v171_v50 = vld [vmem:[#allocation5 + $0x48] sm:$0xff]  ;;  %v645_v51 = vld [vmem:[#allocation5 + $0xf18] sm:$0xff]  ;;  %v172_v52 = vld [vmem:[#allocation5 + $0x50] sm:$0xff] }
  0x31   :  { %2337 = vmatpush.msra.mxu1 %v153_v17  ;;  %5583 = vmatpush.msra.mxu3 %v153_v17  ;;  %v646_v53 = vld [vmem:[#allocation5 + $0xf20] sm:$0xff]  ;;  %v173_v54 = vld [vmem:[#allocation5 + $0x58] sm:$0xff]  ;;  %v647_v55 = vld [vmem:[#allocation5 + $0xf28] sm:$0xff] }
  0x32   :  { %1031 = vmatpush.msra.mxu0 %v136_v18  ;;  %5568 = vmatpush.msra.mxu2 %v136_v18  ;;  %v174_v56 = vld [vmem:[#allocation5 + $0x60] sm:$0xff]  ;;  %v648_v57 = vld [vmem:[#allocation5 + $0xf30] sm:$0xff]  ;;  %v175_v58 = vld [vmem:[#allocation5 + $0x68] sm:$0xff] }
  0x33   :  { %2338 = vmatpush.msra.mxu1 %v152_v19  ;;  %5584 = vmatpush.msra.mxu3 %v152_v19  ;;  %v649_v59 = vld [vmem:[#allocation5 + $0xf38] sm:$0xff]  ;;  %v176_v60 = vld [vmem:[#allocation5 + $0x70] sm:$0xff]  ;;  %v650_v61 = vld [vmem:[#allocation5 + $0xf40] sm:$0xff] }
  0x34   :  { %1032 = vmatpush.msra.mxu0 %v135_v20  ;;  %5569 = vmatpush.msra.mxu2 %v135_v20  ;;  %v177_v62 = vld [vmem:[#allocation5 + $0x78] sm:$0xff]  ;;  %v651_v63 = vld [vmem:[#allocation5 + $0xf48] sm:$0xff]  ;;  %v178_v0 = vld [vmem:[#allocation5 + $0x80] sm:$0xff] }
  0x35   :  { %2339 = vmatpush.msra.mxu1 %v151_v21  ;;  %5585 = vmatpush.msra.mxu3 %v151_v21  ;;  %v652_v1 = vld [vmem:[#allocation5 + $0xf50] sm:$0xff]  ;;  %v179_v2 = vld [vmem:[#allocation5 + $0x88] sm:$0xff]  ;;  %v653_v3 = vld [vmem:[#allocation5 + $0xf58] sm:$0xff] }
  0x36   :  { %1033 = vmatpush.msra.mxu0 %v134_v22  ;;  %5570 = vmatpush.msra.mxu2 %v134_v22  ;;  %v180_v4 = vld [vmem:[#allocation5 + $0x90] sm:$0xff]  ;;  %v654_v5 = vld [vmem:[#allocation5 + $0xf60] sm:$0xff]  ;;  %v181_v6 = vld [vmem:[#allocation5 + $0x98] sm:$0xff] }
  0x37   :  { %2340 = vmatpush.msra.mxu1 %v150_v23  ;;  %5586 = vmatpush.msra.mxu3 %v150_v23  ;;  %v655_v7 = vld [vmem:[#allocation5 + $0xf68] sm:$0xff]  ;;  %v182_v8 = vld [vmem:[#allocation5 + $0xa0] sm:$0xff]  ;;  %v656_v9 = vld [vmem:[#allocation5 + $0xf70] sm:$0xff] }
  0x38   :  { %1034 = vmatpush.msra.mxu0 %v133_v24  ;;  %5571 = vmatpush.msra.mxu2 %v133_v24  ;;  %v183_v10 = vld [vmem:[#allocation5 + $0xa8] sm:$0xff]  ;;  %v657_v11 = vld [vmem:[#allocation5 + $0xf78] sm:$0xff]  ;;  %v184_v12 = vld [vmem:[#allocation5 + $0xb0] sm:$0xff] }
  0x39   :  { %2341 = vmatpush.msra.mxu1 %v149_v25  ;;  %5587 = vmatpush.msra.mxu3 %v149_v25  ;;  %v658_v13 = vld [vmem:[#allocation5 + $0xf80] sm:$0xff]  ;;  %v185_v14 = vld [vmem:[#allocation5 + $0xb8] sm:$0xff]  ;;  %v659_v15 = vld [vmem:[#allocation5 + $0xf88] sm:$0xff] }
  0x3a   :  { %1035 = vmatpush.msra.mxu0 %v132_v26  ;;  %5572 = vmatpush.msra.mxu2 %v132_v26  ;;  %v186_v16 = vld [vmem:[#allocation5 + $0xc0] sm:$0xff]  ;;  %v660_v17 = vld [vmem:[#allocation5 + $0xf90] sm:$0xff]  ;;  %v187_v18 = vld [vmem:[#allocation5 + $0xc8] sm:$0xff] }
  0x3b   :  { %2342 = vmatpush.msra.mxu1 %v148_v27  ;;  %5588 = vmatpush.msra.mxu3 %v148_v27  ;;  %v661_v19 = vld [vmem:[#allocation5 + $0xf98] sm:$0xff]  ;;  %v188_v20 = vld [vmem:[#allocation5 + $0xd0] sm:$0xff]  ;;  %v662_v21 = vld [vmem:[#allocation5 + $0xfa0] sm:$0xff] }
  0x3c   :  { %1036 = vmatpush.msra.mxu0 %v131_v28  ;;  %5573 = vmatpush.msra.mxu2 %v131_v28  ;;  %v189_v22 = vld [vmem:[#allocation5 + $0xd8] sm:$0xff]  ;;  %v663_v23 = vld [vmem:[#allocation5 + $0xfa8] sm:$0xff]  ;;  %v190_v24 = vld [vmem:[#allocation5 + $0xe0] sm:$0xff] }
  0x3d   :  { %2343 = vmatpush.msra.mxu1 %v147_v29  ;;  %5589 = vmatpush.msra.mxu3 %v147_v29  ;;  %v664_v25 = vld [vmem:[#allocation5 + $0xfb0] sm:$0xff]  ;;  %v191_v26 = vld [vmem:[#allocation5 + $0xe8] sm:$0xff]  ;;  %v665_v27 = vld [vmem:[#allocation5 + $0xfb8] sm:$0xff] }
  0x3e   :  { %1037 = vmatpush.msra.mxu0 %v130_v30  ;;  %5574 = vmatpush.msra.mxu2 %v130_v30  ;;  %v192_v28 = vld [vmem:[#allocation5 + $0xf0] sm:$0xff]  ;;  %v666_v29 = vld [vmem:[#allocation5 + $0xfc0] sm:$0xff]  ;;  %v193_v30 = vld [vmem:[#allocation5 + $0xf8] sm:$0xff] }
  0x3f   :  { %2344 = vmatpush.msra.mxu1 %v146_v31  ;;  %5590 = vmatpush.msra.mxu3 %v146_v31  ;;  %v667_v31 = vld [vmem:[#allocation5 + $0xfc8] sm:$0xff] }
  0x40   :  { %1038 = vmatmul.f32.vlgmr.msra.gmra.mxu0 %v162_v32  ;;  %1749 = vmatmul.f32.vlgmr.msra.gmra.mxu2 %v636_v33  ;;  %v194_v33 = vld [vmem:[#allocation5 + $0x100] sm:$0xff] }
  0x41   :  { %2345 = vmatmul.f32.vlgmr.msra.gmra.mxu1 %v163_v34  ;;  %3056 = vmatmul.f32.vlgmr.msra.gmra.mxu3 %v637_v35  ;;  %v668_v34 = vld [vmem:[#allocation5 + $0xfd0] sm:$0xff] }
  0x48   :  { %1041 = vmatmul.f32.gmra.mxu0 %v164_v36  ;;  %1752 = vmatmul.f32.gmra.mxu2 %v638_v37  ;;  %v195_v36 = vld [vmem:[#allocation5 + $0x108] sm:$0xff]  ;;  %v669_v37 = vld [vmem:[#allocation5 + $0xfd8] sm:$0xff] }
  0x49   :  { %2348 = vmatmul.f32.gmra.mxu1 %v165_v38  ;;  %3059 = vmatmul.f32.gmra.mxu3 %v639_v39 }
  0x50   :  { %1044 = vmatmul.f32.gmra.mxu0 %v166_v40  ;;  %1755 = vmatmul.f32.gmra.mxu2 %v640_v41 }
  0x51   :  { %2351 = vmatmul.f32.gmra.mxu1 %v167_v42  ;;  %3062 = vmatmul.f32.gmra.mxu3 %v641_v43  ;;  %v196_v42 = vld [vmem:[#allocation5 + $0x110] sm:$0xff]  ;;  %v670_v43 = vld [vmem:[#allocation5 + $0xfe0] sm:$0xff] }
  0x58   :  { %1047 = vmatmul.f32.gmra.mxu0 %v168_v44  ;;  %1758 = vmatmul.f32.gmra.mxu2 %v642_v45  ;;  %v197_v45 = vld [vmem:[#allocation5 + $0x118] sm:$0xff] }
  0x59   :  { %2354 = vmatmul.f32.gmra.mxu1 %v169_v46  ;;  %3065 = vmatmul.f32.gmra.mxu3 %v643_v47  ;;  %v671_v46 = vld [vmem:[#allocation5 + $0xfe8] sm:$0xff] }
  0x60   :  { %1050 = vmatmul.f32.gmra.mxu0 %v170_v48  ;;  %1761 = vmatmul.f32.gmra.mxu2 %v644_v49 }
  0x61   :  { %2357 = vmatmul.f32.gmra.mxu1 %v171_v50  ;;  %3068 = vmatmul.f32.gmra.mxu3 %v645_v51  ;;  %v198_v51 = vld [vmem:[#allocation5 + $0x120] sm:$0xff] }
  0x68   :  { %1053 = vmatmul.f32.gmra.mxu0 %v172_v52  ;;  %1764 = vmatmul.f32.gmra.mxu2 %v646_v53  ;;  %v672_v52 = vld [vmem:[#allocation5 + $0xff0] sm:$0xff] }
  0x69   :  { %2360 = vmatmul.f32.gmra.mxu1 %v173_v54  ;;  %3071 = vmatmul.f32.gmra.mxu3 %v647_v55  ;;  %v199_v54 = vld [vmem:[#allocation5 + $0x128] sm:$0xff]  ;;  %v673_v55 = vld [vmem:[#allocation5 + $0xff8] sm:$0xff] }
  0x70   :  { %1056 = vmatmul.f32.gmra.mxu0 %v174_v56  ;;  %1767 = vmatmul.f32.gmra.mxu2 %v648_v57 }
  0x71   :  { %2363 = vmatmul.f32.gmra.mxu1 %v175_v58  ;;  %3074 = vmatmul.f32.gmra.mxu3 %v649_v59 }
  0x78   :  { %1059 = vmatmul.f32.gmra.mxu0 %v176_v60  ;;  %1770 = vmatmul.f32.gmra.mxu2 %v650_v61  ;;  %v200_v60 = vld [vmem:[#allocation5 + $0x130] sm:$0xff]  ;;  %v674_v61 = vld [vmem:[#allocation5 + $0x1000] sm:$0xff] }
  0x79   :  { %2366 = vmatmul.f32.gmra.mxu1 %v177_v62  ;;  %3077 = vmatmul.f32.gmra.mxu3 %v651_v63  ;;  %v201_v63 = vld [vmem:[#allocation5 + $0x138] sm:$0xff] }
  0x80   :  { %1062 = vmatmul.f32.gmra.mxu0 %v178_v0  ;;  %1773 = vmatmul.f32.gmra.mxu2 %v652_v1  ;;  %v675_v0 = vld [vmem:[#allocation5 + $0x1008] sm:$0xff] }
  0x81   :  { %2369 = vmatmul.f32.gmra.mxu1 %v179_v2  ;;  %3080 = vmatmul.f32.gmra.mxu3 %v653_v3 }
  0x88   :  { %1065 = vmatmul.f32.gmra.mxu0 %v180_v4  ;;  %1776 = vmatmul.f32.gmra.mxu2 %v654_v5  ;;  %v202_v5 = vld [vmem:[#allocation5 + $0x140] sm:$0xff] }
  0x89   :  { %2372 = vmatmul.f32.gmra.mxu1 %v181_v6  ;;  %3083 = vmatmul.f32.gmra.mxu3 %v655_v7  ;;  %v676_v6 = vld [vmem:[#allocation5 + $0x1010] sm:$0xff] }
  0x90   :  { %1068 = vmatmul.f32.gmra.mxu0 %v182_v8  ;;  %1779 = vmatmul.f32.gmra.mxu2 %v656_v9  ;;  %v203_v8 = vld [vmem:[#allocation5 + $0x148] sm:$0xff]  ;;  %v677_v9 = vld [vmem:[#allocation5 + $0x1018] sm:$0xff] }
  0x91   :  { %2375 = vmatmul.f32.gmra.mxu1 %v183_v10  ;;  %3086 = vmatmul.f32.gmra.mxu3 %v657_v11 }
  0x98   :  { %1071 = vmatmul.f32.gmra.mxu0 %v184_v12  ;;  %1782 = vmatmul.f32.gmra.mxu2 %v658_v13 }
  0x99   :  { %2378 = vmatmul.f32.gmra.mxu1 %v185_v14  ;;  %3089 = vmatmul.f32.gmra.mxu3 %v659_v15  ;;  %v204_v14 = vld [vmem:[#allocation5 + $0x150] sm:$0xff]  ;;  %v678_v15 = vld [vmem:[#allocation5 + $0x1020] sm:$0xff] }
  0xa0   :  { %1074 = vmatmul.f32.gmra.mxu0 %v186_v16  ;;  %1785 = vmatmul.f32.gmra.mxu2 %v660_v17  ;;  %v205_v17 = vld [vmem:[#allocation5 + $0x158] sm:$0xff] }
  0xa1   :  { %2381 = vmatmul.f32.gmra.mxu1 %v187_v18  ;;  %3092 = vmatmul.f32.gmra.mxu3 %v661_v19  ;;  %v679_v18 = vld [vmem:[#allocation5 + $0x1028] sm:$0xff] }
  0xa8   :  { %1077 = vmatmul.f32.gmra.mxu0 %v188_v20  ;;  %1788 = vmatmul.f32.gmra.mxu2 %v662_v21 }
  0xa9   :  { %2384 = vmatmul.f32.gmra.mxu1 %v189_v22  ;;  %3095 = vmatmul.f32.gmra.mxu3 %v663_v23  ;;  %v206_v23 = vld [vmem:[#allocation5 + $0x160] sm:$0xff] }
  0xb0   :  { %1080 = vmatmul.f32.gmra.mxu0 %v190_v24  ;;  %1791 = vmatmul.f32.gmra.mxu2 %v664_v25  ;;  %v680_v24 = vld [vmem:[#allocation5 + $0x1030] sm:$0xff] }
  0xb1   :  { %2387 = vmatmul.f32.gmra.mxu1 %v191_v26  ;;  %3098 = vmatmul.f32.gmra.mxu3 %v665_v27  ;;  %v207_v26 = vld [vmem:[#allocation5 + $0x168] sm:$0xff]  ;;  %v681_v27 = vld [vmem:[#allocation5 + $0x1038] sm:$0xff] }
  0xb8   :  { %1083 = vmatmul.f32.gmra.mxu0 %v192_v28  ;;  %1794 = vmatmul.f32.gmra.mxu2 %v666_v29 }
  0xb9   :  { %2390 = vmatmul.f32.gmra.mxu1 %v193_v30  ;;  %3101 = vmatmul.f32.gmra.mxu3 %v667_v31 }
  0xbd   :  { %v6026_v32 = vpop.f32.mrf.mxu0 }
  0xbe   :  { %9038 = vst [vmem:[#allocation20_spill] sm:$0xff] %v6026_v32  ;;  %v6028_v35 = vpop.f32.mrf.mxu1  ;;  %v721_v32 = vld [vmem:[#allocation5 + $0x1178] sm:$0xff] }
  0xbf   :  { %9039 = vst [vmem:[#allocation21_spill] sm:$0xff] %v6028_v35  ;;  %v247_v35 = vld [vmem:[#allocation5 + $0x2a8] sm:$0xff] }
  0xc0   :  { %1086 = vmatmul.f32.gmra.mxu0 %v194_v33  ;;  %1797 = vmatmul.f32.gmra.mxu2 %v668_v34  ;;  %v208_v33 = vld [vmem:[#allocation5 + $0x170] sm:$0xff]  ;;  %v682_v34 = vld [vmem:[#allocation5 + $0x1040] sm:$0xff] }
  0xc1   :  { %2393 = vmatmul.f32.gmra.mxu1 %v195_v36  ;;  %3104 = vmatmul.f32.gmra.mxu3 %v669_v37  ;;  %v209_v37 = vld [vmem:[#allocation5 + $0x178] sm:$0xff] }
  0xc3   :  { %v1750_v38 = vpop.f32.mrf.mxu2 }
  0xc4   :  { %v3057_v39 = vpop.f32.mrf.mxu3 }
  0xc5   :  { %v6030_v40 = vadd.f32 %v3057_v39, %v1750_v38  ;;  %v6032_v41 = vpop.f32.mrf.mxu0  ;;  %v683_v38 = vld [vmem:[#allocation5 + $0x1048] sm:$0xff] }
  0xc6   :  { %9040 = vst [vmem:[#allocation22_spill] sm:$0xff] %v6032_v41  ;;  %v6034_v44 = vpop.f32.mrf.mxu1 }
  0xc7   :  { %9041 = vst [vmem:[#allocation23_spill] sm:$0xff] %v6034_v44  ;;  %v719_v44 = vld [vmem:[#allocation5 + $0x1168] sm:$0xff] }
  0xc8   :  { %1089 = vmatmul.f32.gmra.mxu0 %v196_v42  ;;  %1800 = vmatmul.f32.gmra.mxu2 %v670_v43 }
  0xc9   :  { %2396 = vmatmul.f32.gmra.mxu1 %v197_v45  ;;  %3107 = vmatmul.f32.gmra.mxu3 %v671_v46  ;;  %v210_v46 = vld [vmem:[#allocation5 + $0x180] sm:$0xff] }
  0xcb   :  { %v1753_v47 = vpop.f32.mrf.mxu2 }
  0xcc   :  { %v3060_v48 = vpop.f32.mrf.mxu3 }
  0xcd   :  { %v6036_v49 = vadd.f32 %v3060_v48, %v1753_v47  ;;  %v6038_v50 = vpop.f32.mrf.mxu0  ;;  %v684_v47 = vld [vmem:[#allocation5 + $0x1050] sm:$0xff] }
  0xce   :  { %9042 = vst [vmem:[#allocation24_spill] sm:$0xff] %v6038_v50  ;;  %v6040_v53 = vpop.f32.mrf.mxu1  ;;  %v245_v50 = vld [vmem:[#allocation5 + $0x298] sm:$0xff] }
  0xcf   :  { %9043 = vst [vmem:[#allocation25_spill] sm:$0xff] %v6040_v53 }
  0xd0   :  { %1092 = vmatmul.f32.gmra.mxu0 %v198_v51  ;;  %1803 = vmatmul.f32.gmra.mxu2 %v672_v52  ;;  %v211_v51 = vld [vmem:[#allocation5 + $0x188] sm:$0xff]  ;;  %v685_v52 = vld [vmem:[#allocation5 + $0x1058] sm:$0xff] }
  0xd1   :  { %2399 = vmatmul.f32.gmra.mxu1 %v199_v54  ;;  %3110 = vmatmul.f32.gmra.mxu3 %v673_v55 }
  0xd3   :  { %v1756_v56 = vpop.f32.mrf.mxu2 }
  0xd4   :  { %v3063_v57 = vpop.f32.mrf.mxu3 }
  0xd5   :  { %v6042_v58 = vadd.f32 %v3063_v57, %v1756_v56  ;;  %v6044_v59 = vpop.f32.mrf.mxu0 }
  0xd6   :  { %9045 = vst [vmem:[#allocation27_spill] sm:$0xff] %v6044_v59  ;;  %v6046_v62 = vpop.f32.mrf.mxu1  ;;  %v717_v59 = vld [vmem:[#allocation5 + $0x1158] sm:$0xff] }
  0xd7   :  { %9044 = vst [vmem:[#allocation26_spill] sm:$0xff] %v6042_v58  ;;  %v301_v58 = vld [vmem:[#allocation5 + $0x458] sm:$0xff] }
  0xd8   :  { %9046 = vst [vmem:[#allocation28_spill] sm:$0xff] %v6046_v62  ;;  %1095 = vmatmul.f32.gmra.mxu0 %v200_v60  ;;  %1806 = vmatmul.f32.gmra.mxu2 %v674_v61  ;;  %v212_v60 = vld [vmem:[#allocation5 + $0x190] sm:$0xff]  ;;  %v686_v61 = vld [vmem:[#allocation5 + $0x1060] sm:$0xff]  ;;  %v243_v62 = vld [vmem:[#allocation5 + $0x288] sm:$0xff] }
  0xd9   :  { %2402 = vmatmul.f32.gmra.mxu1 %v201_v63  ;;  %3113 = vmatmul.f32.gmra.mxu3 %v675_v0  ;;  %v213_v0 = vld [vmem:[#allocation5 + $0x198] sm:$0xff] }
  0xdb   :  { %v1759_v1 = vpop.f32.mrf.mxu2 }
  0xdc   :  { %v3066_v2 = vpop.f32.mrf.mxu3 }
  0xdd   :  { %v6048_v3 = vadd.f32 %v3066_v2, %v1759_v1  ;;  %v6050_v4 = vpop.f32.mrf.mxu0  ;;  %v687_v1 = vld [vmem:[#allocation5 + $0x1068] sm:$0xff] }
  0xde   :  { %9048 = vst [vmem:[#allocation30_spill] sm:$0xff] %v6050_v4  ;;  %v6052_v7 = vpop.f32.mrf.mxu1 }
  0xdf   :  { %9047 = vst [vmem:[#allocation29_spill] sm:$0xff] %v6048_v3  ;;  %v771_v3 = vld [vmem:[#allocation5 + $0x1308] sm:$0xff] }
  0xe0   :  { %9049 = vst [vmem:[#allocation31_spill] sm:$0xff] %v6052_v7  ;;  %1098 = vmatmul.f32.gmra.mxu0 %v202_v5  ;;  %1809 = vmatmul.f32.gmra.mxu2 %v676_v6  ;;  %v715_v7 = vld [vmem:[#allocation5 + $0x1148] sm:$0xff] }
  0xe1   :  { %2405 = vmatmul.f32.gmra.mxu1 %v203_v8  ;;  %3116 = vmatmul.f32.gmra.mxu3 %v677_v9  ;;  %v214_v9 = vld [vmem:[#allocation5 + $0x1a0] sm:$0xff] }
  0xe3   :  { %v1762_v10 = vpop.f32.mrf.mxu2 }
  0xe4   :  { %v3069_v11 = vpop.f32.mrf.mxu3 }
  0xe5   :  { %v6054_v12 = vadd.f32 %v3069_v11, %v1762_v10  ;;  %v6056_v13 = vpop.f32.mrf.mxu0  ;;  %v688_v10 = vld [vmem:[#allocation5 + $0x1070] sm:$0xff] }
  0xe6   :  { %9051 = vst [vmem:[#allocation33_spill] sm:$0xff] %v6056_v13  ;;  %v6058_v16 = vpop.f32.mrf.mxu1  ;;  %v241_v13 = vld [vmem:[#allocation5 + $0x278] sm:$0xff] }
  0xe7   :  { %9050 = vst [vmem:[#allocation32_spill] sm:$0xff] %v6054_v12  ;;  %v767_v12 = vld [vmem:[#allocation5 + $0x12e8] sm:$0xff] }
  0xe8   :  { %9052 = vst [vmem:[#allocation34_spill] sm:$0xff] %v6058_v16  ;;  %1101 = vmatmul.f32.gmra.mxu0 %v204_v14  ;;  %1812 = vmatmul.f32.gmra.mxu2 %v678_v15  ;;  %v215_v14 = vld [vmem:[#allocation5 + $0x1a8] sm:$0xff]  ;;  %v689_v15 = vld [vmem:[#allocation5 + $0x1078] sm:$0xff] }
  0xe9   :  { %2408 = vmatmul.f32.gmra.mxu1 %v205_v17  ;;  %3119 = vmatmul.f32.gmra.mxu3 %v679_v18 }
  0xeb   :  { %v1765_v19 = vpop.f32.mrf.mxu2 }
  0xec   :  { %v3072_v20 = vpop.f32.mrf.mxu3 }
  0xed   :  { %v6060_v21 = vadd.f32 %v3072_v20, %v1765_v19  ;;  %v6062_v22 = vpop.f32.mrf.mxu0 }
  0xee   :  { %9054 = vst [vmem:[#allocation36_spill] sm:$0xff] %v6062_v22  ;;  %v6064_v25 = vpop.f32.mrf.mxu1  ;;  %v713_v22 = vld [vmem:[#allocation5 + $0x1138] sm:$0xff] }
  0xef   :  { %9053 = vst [vmem:[#allocation35_spill] sm:$0xff] %v6060_v21  ;;  %v765_v21 = vld [vmem:[#allocation5 + $0x12d8] sm:$0xff] }
  0xf0   :  { %9055 = vst [vmem:[#allocation37_spill] sm:$0xff] %v6064_v25  ;;  %1104 = vmatmul.f32.gmra.mxu0 %v206_v23  ;;  %1815 = vmatmul.f32.gmra.mxu2 %v680_v24  ;;  %v216_v23 = vld [vmem:[#allocation5 + $0x1b0] sm:$0xff]  ;;  %v690_v24 = vld [vmem:[#allocation5 + $0x1080] sm:$0xff]  ;;  %v239_v25 = vld [vmem:[#allocation5 + $0x268] sm:$0xff] }
  0xf1   :  { %2411 = vmatmul.f32.gmra.mxu1 %v207_v26  ;;  %3122 = vmatmul.f32.gmra.mxu3 %v681_v27  ;;  %v217_v27 = vld [vmem:[#allocation5 + $0x1b8] sm:$0xff] }
  0xf3   :  { %v1768_v28 = vpop.f32.mrf.mxu2 }
  0xf4   :  { %v3075_v29 = vpop.f32.mrf.mxu3 }
  0xf5   :  { %v6066_v30 = vadd.f32 %v3075_v29, %v1768_v28  ;;  %v6068_v31 = vpop.f32.mrf.mxu0  ;;  %v691_v28 = vld [vmem:[#allocation5 + $0x1088] sm:$0xff] }
  0xf6   :  { %9057 = vst [vmem:[#allocation39_spill] sm:$0xff] %v6068_v31  ;;  %v6070_v36 = vpop.f32.mrf.mxu1 }
  0xf7   :  { %9056 = vst [vmem:[#allocation38_spill] sm:$0xff] %v6066_v30  ;;  %v763_v30 = vld [vmem:[#allocation5 + $0x12c8] sm:$0xff] }
  0xf8   :  { %9058 = vst [vmem:[#allocation40_spill] sm:$0xff] %v6070_v36  ;;  %1107 = vmatmul.f32.gmra.mxu0 %v208_v33  ;;  %1818 = vmatmul.f32.gmra.mxu2 %v682_v34  ;;  %v711_v36 = vld [vmem:[#allocation5 + $0x1128] sm:$0xff] }
  0xf9   :  { %2414 = vmatmul.f32.gmra.mxu1 %v209_v37  ;;  %3125 = vmatmul.f32.gmra.mxu3 %v683_v38  ;;  %v218_v38 = vld [vmem:[#allocation5 + $0x1c0] sm:$0xff] }
  0xfb   :  { %v1771_v39 = vpop.f32.mrf.mxu2 }
  0xfc   :  { %v3078_v42 = vpop.f32.mrf.mxu3 }
  0xfd   :  { %v6072_v43 = vadd.f32 %v3078_v42, %v1771_v39  ;;  %v6074_v45 = vpop.f32.mrf.mxu0  ;;  %v692_v39 = vld [vmem:[#allocation5 + $0x1090] sm:$0xff] }
  0xfe   :  { %9060 = vst [vmem:[#allocation42_spill] sm:$0xff] %v6074_v45  ;;  %v6076_v48 = vpop.f32.mrf.mxu1  ;;  %v237_v45 = vld [vmem:[#allocation5 + $0x258] sm:$0xff] }
  0xff   :  { %9059 = vst [vmem:[#allocation41_spill] sm:$0xff] %v6072_v43  ;;  %v761_v43 = vld [vmem:[#allocation5 + $0x12b8] sm:$0xff] }
 0x100   :  { %9061 = vst [vmem:[#allocation43_spill] sm:$0xff] %v6076_v48  ;;  %1110 = vmatmul.f32.gmra.mxu0 %v210_v46  ;;  %1821 = vmatmul.f32.gmra.mxu2 %v684_v47  ;;  %v219_v46 = vld [vmem:[#allocation5 + $0x1c8] sm:$0xff]  ;;  %v693_v47 = vld [vmem:[#allocation5 + $0x1098] sm:$0xff] }
 0x101   :  { %2417 = vmatmul.f32.gmra.mxu1 %v211_v51  ;;  %3128 = vmatmul.f32.gmra.mxu3 %v685_v52 }
 0x103   :  { %v1774_v54 = vpop.f32.mrf.mxu2 }
 0x104   :  { %v3081_v55 = vpop.f32.mrf.mxu3 }
 0x105   :  { %v6078_v56 = vadd.f32 %v3081_v55, %v1774_v54  ;;  %v6080_v57 = vpop.f32.mrf.mxu0 }
 0x106   :  { %9063 = vst [vmem:[#allocation45_spill] sm:$0xff] %v6080_v57  ;;  %v6082_v63 = vpop.f32.mrf.mxu1  ;;  %v709_v57 = vld [vmem:[#allocation5 + $0x1118] sm:$0xff] }
 0x107   :  { %9062 = vst [vmem:[#allocation44_spill] sm:$0xff] %v6078_v56  ;;  %v757_v56 = vld [vmem:[#allocation5 + $0x1298] sm:$0xff] }
 0x108   :  { %9064 = vst [vmem:[#allocation46_spill] sm:$0xff] %v6082_v63  ;;  %1113 = vmatmul.f32.gmra.mxu0 %v212_v60  ;;  %1824 = vmatmul.f32.gmra.mxu2 %v686_v61  ;;  %v220_v60 = vld [vmem:[#allocation5 + $0x1d0] sm:$0xff]  ;;  %v694_v61 = vld [vmem:[#allocation5 + $0x10a0] sm:$0xff]  ;;  %v235_v63 = vld [vmem:[#allocation5 + $0x248] sm:$0xff] }
 0x109   :  { %2420 = vmatmul.f32.gmra.mxu1 %v213_v0  ;;  %3131 = vmatmul.f32.gmra.mxu3 %v687_v1  ;;  %v221_v1 = vld [vmem:[#allocation5 + $0x1d8] sm:$0xff] }
 0x10b   :  { %v1777_v2 = vpop.f32.mrf.mxu2 }
 0x10c   :  { %v3084_v5 = vpop.f32.mrf.mxu3 }
 0x10d   :  { %v6084_v6 = vadd.f32 %v3084_v5, %v1777_v2  ;;  %v6086_v8 = vpop.f32.mrf.mxu0  ;;  %v695_v2 = vld [vmem:[#allocation5 + $0x10a8] sm:$0xff] }
 0x10e   :  { %9066 = vst [vmem:[#allocation48_spill] sm:$0xff] %v6086_v8  ;;  %v6088_v11 = vpop.f32.mrf.mxu1 }
 0x10f   :  { %9065 = vst [vmem:[#allocation47_spill] sm:$0xff] %v6084_v6  ;;  %v751_v6 = vld [vmem:[#allocation5 + $0x1268] sm:$0xff] }
 0x110   :  { %9067 = vst [vmem:[#allocation49_spill] sm:$0xff] %v6088_v11  ;;  %1116 = vmatmul.f32.gmra.mxu0 %v214_v9  ;;  %1827 = vmatmul.f32.gmra.mxu2 %v688_v10  ;;  %v707_v11 = vld [vmem:[#allocation5 + $0x1108] sm:$0xff] }
 0x111   :  { %2423 = vmatmul.f32.gmra.mxu1 %v215_v14  ;;  %3134 = vmatmul.f32.gmra.mxu3 %v689_v15  ;;  %v222_v15 = vld [vmem:[#allocation5 + $0x1e0] sm:$0xff] }
 0x113   :  { %v1780_v17 = vpop.f32.mrf.mxu2 }
 0x114   :  { %v3087_v18 = vpop.f32.mrf.mxu3 }
 0x115   :  { %v6090_v19 = vadd.f32 %v3087_v18, %v1780_v17  ;;  %v6092_v20 = vpop.f32.mrf.mxu0  ;;  %v696_v17 = vld [vmem:[#allocation5 + $0x10b0] sm:$0xff] }
 0x116   :  { %9069 = vst [vmem:[#allocation51_spill] sm:$0xff] %v6092_v20  ;;  %v6094_v26 = vpop.f32.mrf.mxu1  ;;  %v233_v20 = vld [vmem:[#allocation5 + $0x238] sm:$0xff] }
 0x117   :  { %9068 = vst [vmem:[#allocation50_spill] sm:$0xff] %v6090_v19  ;;  %v745_v19 = vld [vmem:[#allocation5 + $0x1238] sm:$0xff] }
 0x118   :  { %9070 = vst [vmem:[#allocation52_spill] sm:$0xff] %v6094_v26  ;;  %1119 = vmatmul.f32.gmra.mxu0 %v216_v23  ;;  %1830 = vmatmul.f32.gmra.mxu2 %v690_v24  ;;  %v223_v23 = vld [vmem:[#allocation5 + $0x1e8] sm:$0xff]  ;;  %v697_v24 = vld [vmem:[#allocation5 + $0x10b8] sm:$0xff] }
 0x119   :  { %2426 = vmatmul.f32.gmra.mxu1 %v217_v27  ;;  %3137 = vmatmul.f32.gmra.mxu3 %v691_v28 }
 0x11b   :  { %v1783_v29 = vpop.f32.mrf.mxu2 }
 0x11c   :  { %v3090_v33 = vpop.f32.mrf.mxu3 }
 0x11d   :  { %v6096_v34 = vadd.f32 %v3090_v33, %v1783_v29  ;;  %v6098_v37 = vpop.f32.mrf.mxu0 }
 0x11e   :  { %9072 = vst [vmem:[#allocation54_spill] sm:$0xff] %v6098_v37  ;;  %v6100_v42 = vpop.f32.mrf.mxu1  ;;  %v705_v37 = vld [vmem:[#allocation5 + $0x10f8] sm:$0xff] }
 0x11f   :  { %9071 = vst [vmem:[#allocation53_spill] sm:$0xff] %v6096_v34  ;;  %v739_v34 = vld [vmem:[#allocation5 + $0x1208] sm:$0xff] }
 0x120   :  { %9073 = vst [vmem:[#allocation55_spill] sm:$0xff] %v6100_v42  ;;  %1122 = vmatmul.f32.gmra.mxu0 %v218_v38  ;;  %1833 = vmatmul.f32.gmra.mxu2 %v692_v39  ;;  %v224_v38 = vld [vmem:[#allocation5 + $0x1f0] sm:$0xff]  ;;  %v698_v39 = vld [vmem:[#allocation5 + $0x10c0] sm:$0xff]  ;;  %v231_v42 = vld [vmem:[#allocation5 + $0x228] sm:$0xff] }
 0x121   :  { %2429 = vmatmul.f32.gmra.mxu1 %v219_v46  ;;  %3140 = vmatmul.f32.gmra.mxu3 %v693_v47  ;;  %v225_v47 = vld [vmem:[#allocation5 + $0x1f8] sm:$0xff] }
 0x123   :  { %v1786_v51 = vpop.f32.mrf.mxu2 }
 0x124   :  { %v3093_v52 = vpop.f32.mrf.mxu3 }
 0x125   :  { %v6102_v54 = vadd.f32 %v3093_v52, %v1786_v51  ;;  %v6104_v55 = vpop.f32.mrf.mxu0  ;;  %v699_v51 = vld [vmem:[#allocation5 + $0x10c8] sm:$0xff] }
 0x126   :  { %v6106_v0 = vpop.f32.mrf.mxu1 }
 0x127   :  { %9074 = vst [vmem:[#allocation56_spill] sm:$0xff] %v6102_v54  ;;  %v733_v54 = vld [vmem:[#allocation5 + $0x11d8] sm:$0xff] }
 0x128   :  { %1125 = vmatmul.f32.gmra.mxu0 %v220_v60  ;;  %1836 = vmatmul.f32.gmra.mxu2 %v694_v61 }
 0x129   :  { %2432 = vmatmul.f32.gmra.mxu1 %v221_v1  ;;  %3143 = vmatmul.f32.gmra.mxu3 %v695_v2  ;;  %v226_v2 = vld [vmem:[#allocation5 + $0x200] sm:$0xff] }
 0x12b   :  { %v1789_v5 = vpop.f32.mrf.mxu2 }
 0x12c   :  { %v3096_v9 = vpop.f32.mrf.mxu3 }
 0x12d   :  { %v6108_v10 = vadd.f32 %v3096_v9, %v1789_v5  ;;  %v6110_v14 = vpop.f32.mrf.mxu0  ;;  %v700_v5 = vld [vmem:[#allocation5 + $0x10d0] sm:$0xff] }
 0x12e   :  { %v6112_v18 = vpop.f32.mrf.mxu1 }
 0x12f   :  { %9075 = vst [vmem:[#allocation57_spill] sm:$0xff] %v6108_v10  ;;  %v727_v10 = vld [vmem:[#allocation5 + $0x11a8] sm:$0xff] }
 0x130   :  { %1128 = vmatmul.f32.gmra.mxu0 %v222_v15  ;;  %1839 = vmatmul.f32.gmra.mxu2 %v696_v17  ;;  %v227_v15 = vld [vmem:[#allocation5 + $0x208] sm:$0xff]  ;;  %v701_v17 = vld [vmem:[#allocation5 + $0x10d8] sm:$0xff] }
 0x131   :  { %2435 = vmatmul.f32.gmra.mxu1 %v223_v23  ;;  %3146 = vmatmul.f32.gmra.mxu3 %v697_v24 }
 0x133   :  { %v1792_v27 = vpop.f32.mrf.mxu2 }
 0x134   :  { %v3099_v28 = vpop.f32.mrf.mxu3 }
 0x135   :  { %v6114_v29 = vadd.f32 %v3099_v28, %v1792_v27  ;;  %v6116_v33 = vpop.f32.mrf.mxu0 }
 0x136   :  { %9077 = vst [vmem:[#allocation59_spill] sm:$0xff] %v6116_v33  ;;  %v6118_v46 = vpop.f32.mrf.mxu1 }
 0x137   :  { %9076 = vst [vmem:[#allocation58_spill] sm:$0xff] %v6114_v29  ;;  %v251_v29 = vld [vmem:[#allocation5 + $0x2c8] sm:$0xff] }
 0x138   :  { %9078 = vst [vmem:[#allocation60_spill] sm:$0xff] %v6118_v46  ;;  %1131 = vmatmul.f32.gmra.mxu0 %v224_v38  ;;  %1842 = vmatmul.f32.gmra.mxu2 %v698_v39  ;;  %v228_v38 = vld [vmem:[#allocation5 + $0x210] sm:$0xff]  ;;  %v702_v39 = vld [vmem:[#allocation5 + $0x10e0] sm:$0xff] }
 0x139   :  { %2438 = vmatmul.f32.gmra.mxu1 %v225_v47  ;;  %3149 = vmatmul.f32.gmra.mxu3 %v699_v51  ;;  %v229_v51 = vld [vmem:[#allocation5 + $0x218] sm:$0xff] }
 0x13b   :  { %v1795_v52 = vpop.f32.mrf.mxu2 }
 0x13c   :  { %v3102_v60 = vpop.f32.mrf.mxu3 }
 0x13d   :  { %v6120_v61 = vadd.f32 %v3102_v60, %v1795_v52  ;;  %v6122_v1 = vpop.f32.mrf.mxu0  ;;  %v703_v52 = vld [vmem:[#allocation5 + $0x10e8] sm:$0xff] }
 0x13e   :  { %9080 = vst [vmem:[#allocation62_spill] sm:$0xff] %v6122_v1  ;;  %v6124_v9 = vpop.f32.mrf.mxu1 }
 0x13f   :  { %9079 = vst [vmem:[#allocation61_spill] sm:$0xff] %v6120_v61 }
 0x140   :  { %9081 = vst [vmem:[#allocation63_spill] sm:$0xff] %v6124_v9  ;;  %1134 = vmatmul.f32.gmra.mxu0 %v226_v2  ;;  %1845 = vmatmul.f32.gmra.mxu2 %v700_v5 }
 0x141   :  { %2441 = vmatmul.f32.gmra.mxu1 %v227_v15  ;;  %3152 = vmatmul.f32.gmra.mxu3 %v701_v17  ;;  %v230_v17 = vld [vmem:[#allocation5 + $0x220] sm:$0xff] }
 0x143   :  { %v1798_v23 = vpop.f32.mrf.mxu2 }
 0x144   :  { %v3105_v24 = vpop.f32.mrf.mxu3 }
 0x145   :  { %v6126_v27 = vadd.f32 %v3105_v24, %v1798_v23  ;;  %v6128_v28 = vpop.f32.mrf.mxu0  ;;  %v704_v23 = vld [vmem:[#allocation5 + $0x10f0] sm:$0xff] }
 0x146   :  { %9083 = vst [vmem:[#allocation65_spill] sm:$0xff] %v6128_v28  ;;  %v6130_v47 = vpop.f32.mrf.mxu1  ;;  %v295_v28 = vld [vmem:[#allocation5 + $0x428] sm:$0xff] }
 0x147   :  { %9082 = vst [vmem:[#allocation64_spill] sm:$0xff] %v6126_v27  ;;  %v723_v27 = vld [vmem:[#allocation5 + $0x1188] sm:$0xff] }
 0x148   :  { %9084 = vst [vmem:[#allocation66_spill] sm:$0xff] %v6130_v47  ;;  %1137 = vmatmul.f32.gmra.mxu0 %v228_v38  ;;  %1848 = vmatmul.f32.gmra.mxu2 %v702_v39 }
 0x149   :  { %2444 = vmatmul.f32.gmra.mxu1 %v229_v51  ;;  %3155 = vmatmul.f32.gmra.mxu3 %v703_v52 }
 0x14b   :  { %v1801_v60 = vpop.f32.mrf.mxu2 }
 0x14c   :  { %v3108_v2 = vpop.f32.mrf.mxu3 }
 0x14d   :  { %v6132_v5 = vadd.f32 %v3108_v2, %v1801_v60  ;;  %v6134_v15 = vpop.f32.mrf.mxu0  ;;  %v232_v60 = vld [vmem:[#allocation5 + $0x230] sm:$0xff]  ;;  %v706_v2 = vld [vmem:[#allocation5 + $0x1100] sm:$0xff] }
 0x14e   :  { %9086 = vst [vmem:[#allocation68_spill] sm:$0xff] %v6134_v15  ;;  %v6136_v24 = vpop.f32.mrf.mxu1  ;;  %v293_v15 = vld [vmem:[#allocation5 + $0x418] sm:$0xff] }
 0x14f   :  { %9085 = vst [vmem:[#allocation67_spill] sm:$0xff] %v6132_v5  ;;  %v249_v5 = vld [vmem:[#allocation5 + $0x2b8] sm:$0xff] }
 0x150   :  { %9087 = vst [vmem:[#allocation69_spill] sm:$0xff] %v6136_v24  ;;  %1140 = vmatmul.f32.gmra.mxu0 %v230_v17  ;;  %1851 = vmatmul.f32.gmra.mxu2 %v704_v23 }
 0x151   :  { %2447 = vmatmul.f32.gmra.mxu1 %v231_v42  ;;  %3158 = vmatmul.f32.gmra.mxu3 %v705_v37 }
 0x153   :  { %v1804_v38 = vpop.f32.mrf.mxu2 }
 0x154   :  { %v3111_v39 = vpop.f32.mrf.mxu3 }
 0x155   :  { %v6138_v51 = vadd.f32 %v3111_v39, %v1804_v38  ;;  %v6140_v52 = vpop.f32.mrf.mxu0  ;;  %v234_v38 = vld [vmem:[#allocation5 + $0x240] sm:$0xff]  ;;  %v708_v39 = vld [vmem:[#allocation5 + $0x1110] sm:$0xff] }
 0x156   :  { %9089 = vst [vmem:[#allocation71_spill] sm:$0xff] %v6140_v52  ;;  %v6142_v26 = vpop.f32.mrf.mxu1  ;;  %v291_v52 = vld [vmem:[#allocation5 + $0x408] sm:$0xff] }
 0x157   :  { %9088 = vst [vmem:[#allocation70_spill] sm:$0xff] %v6138_v51 }
 0x158   :  { %9090 = vst [vmem:[#allocation72_spill] sm:$0xff] %v6142_v26  ;;  %1143 = vmatmul.f32.gmra.mxu0 %v232_v60  ;;  %1854 = vmatmul.f32.gmra.mxu2 %v706_v2 }
 0x159   :  { %2450 = vmatmul.f32.gmra.mxu1 %v233_v20  ;;  %3161 = vmatmul.f32.gmra.mxu3 %v707_v11 }
 0x15b   :  { %v1807_v17 = vpop.f32.mrf.mxu2 }
 0x15c   :  { %v3114_v23 = vpop.f32.mrf.mxu3 }
 0x15d   :  { %v6144_v42 = vadd.f32 %v3114_v23, %v1807_v17  ;;  %v6146_v37 = vpop.f32.mrf.mxu0  ;;  %v236_v17 = vld [vmem:[#allocation5 + $0x250] sm:$0xff]  ;;  %v710_v23 = vld [vmem:[#allocation5 + $0x1120] sm:$0xff] }
 0x15e   :  { %9091 = vst [vmem:[#allocation73_spill] sm:$0xff] %v6146_v37  ;;  %v6148_v8 = vpop.f32.mrf.mxu1  ;;  %v289_v37 = vld [vmem:[#allocation5 + $0x3f8] sm:$0xff] }
 0x15f   :  { %9092 = vst [vmem:[#allocation74_spill] sm:$0xff] %v6148_v8 }
 0x160   :  { %1146 = vmatmul.f32.gmra.mxu0 %v234_v38  ;;  %1857 = vmatmul.f32.gmra.mxu2 %v708_v39 }
 0x161   :  { %2453 = vmatmul.f32.gmra.mxu1 %v235_v63  ;;  %3164 = vmatmul.f32.gmra.mxu3 %v709_v57 }
 0x163   :  { %v1810_v60 = vpop.f32.mrf.mxu2 }
 0x164   :  { %v3117_v2 = vpop.f32.mrf.mxu3 }
 0x165   :  { %v6150_v20 = vadd.f32 %v3117_v2, %v1810_v60  ;;  %v6152_v11 = vpop.f32.mrf.mxu0  ;;  %v238_v60 = vld [vmem:[#allocation5 + $0x260] sm:$0xff]  ;;  %v712_v2 = vld [vmem:[#allocation5 + $0x1130] sm:$0xff] }
 0x166   :  { %9093 = vst [vmem:[#allocation75_spill] sm:$0xff] %v6152_v11  ;;  %v6154_v48 = vpop.f32.mrf.mxu1  ;;  %v287_v11 = vld [vmem:[#allocation5 + $0x3e8] sm:$0xff] }
 0x167   :  { %9094 = vst [vmem:[#allocation76_spill] sm:$0xff] %v6154_v48  ;;  %v759_v48 = vld [vmem:[#allocation5 + $0x12a8] sm:$0xff] }
 0x168   :  { %1149 = vmatmul.f32.gmra.mxu0 %v236_v17  ;;  %1860 = vmatmul.f32.gmra.mxu2 %v710_v23 }
 0x169   :  { %2456 = vmatmul.f32.gmra.mxu1 %v237_v45  ;;  %3167 = vmatmul.f32.gmra.mxu3 %v711_v36 }
 0x16b   :  { %v1813_v38 = vpop.f32.mrf.mxu2 }
 0x16c   :  { %v3120_v39 = vpop.f32.mrf.mxu3 }
 0x16d   :  { %v6156_v63 = vadd.f32 %v3120_v39, %v1813_v38  ;;  %v6158_v57 = vpop.f32.mrf.mxu0  ;;  %v240_v38 = vld [vmem:[#allocation5 + $0x270] sm:$0xff]  ;;  %v714_v39 = vld [vmem:[#allocation5 + $0x1140] sm:$0xff] }
 0x16e   :  { %9095 = vst [vmem:[#allocation77_spill] sm:$0xff] %v6158_v57  ;;  %v6160_v31 = vpop.f32.mrf.mxu1  ;;  %v755_v57 = vld [vmem:[#allocation5 + $0x1288] sm:$0xff] }
 0x16f   :  { %9096 = vst [vmem:[#allocation78_spill] sm:$0xff] %v6160_v31  ;;  %v4547_v31 = vld [vmem:[#allocation10 + $0x70] sm:$0xff] }
 0x170   :  { %1152 = vmatmul.f32.gmra.mxu0 %v238_v60  ;;  %1863 = vmatmul.f32.gmra.mxu2 %v712_v2 }
 0x171   :  { %2459 = vmatmul.f32.gmra.mxu1 %v239_v25  ;;  %3170 = vmatmul.f32.gmra.mxu3 %v713_v22 }
 0x173   :  { %v1816_v17 = vpop.f32.mrf.mxu2 }
 0x174   :  { %v3123_v23 = vpop.f32.mrf.mxu3 }
 0x175   :  { %v6162_v45 = vadd.f32 %v3123_v23, %v1816_v17  ;;  %v6164_v36 = vpop.f32.mrf.mxu0  ;;  %v242_v17 = vld [vmem:[#allocation5 + $0x280] sm:$0xff]  ;;  %v716_v23 = vld [vmem:[#allocation5 + $0x1150] sm:$0xff] }
 0x176   :  { %9097 = vst [vmem:[#allocation79_spill] sm:$0xff] %v6164_v36  ;;  %v6166_v16 = vpop.f32.mrf.mxu1  ;;  %v749_v36 = vld [vmem:[#allocation5 + $0x1258] sm:$0xff] }
 0x177   :  { %9098 = vst [vmem:[#allocation80_spill] sm:$0xff] %v6166_v16  ;;  %v747_v16 = vld [vmem:[#allocation5 + $0x1248] sm:$0xff] }
 0x178   :  { %1155 = vmatmul.f32.gmra.mxu0 %v240_v38  ;;  %1866 = vmatmul.f32.gmra.mxu2 %v714_v39 }
 0x179   :  { %2462 = vmatmul.f32.gmra.mxu1 %v241_v13  ;;  %3173 = vmatmul.f32.gmra.mxu3 %v715_v7 }
 0x17b   :  { %v1819_v60 = vpop.f32.mrf.mxu2 }
 0x17c   :  { %v3126_v2 = vpop.f32.mrf.mxu3 }
 0x17d   :  { %v6168_v25 = vadd.f32 %v3126_v2, %v1819_v60  ;;  %v6170_v22 = vpop.f32.mrf.mxu0  ;;  %v244_v60 = vld [vmem:[#allocation5 + $0x290] sm:$0xff]  ;;  %v718_v2 = vld [vmem:[#allocation5 + $0x1160] sm:$0xff] }
 0x17e   :  { %9099 = vst [vmem:[#allocation81_spill] sm:$0xff] %v6170_v22  ;;  %v6172_v4 = vpop.f32.mrf.mxu1  ;;  %v743_v22 = vld [vmem:[#allocation5 + $0x1228] sm:$0xff] }
 0x17f   :  { %9100 = vst [vmem:[#allocation82_spill] sm:$0xff] %v6172_v4  ;;  %v741_v4 = vld [vmem:[#allocation5 + $0x1218] sm:$0xff] }
 0x180   :  { %1158 = vmatmul.f32.gmra.mxu0 %v242_v17  ;;  %1869 = vmatmul.f32.gmra.mxu2 %v716_v23 }
 0x181   :  { %2465 = vmatmul.f32.gmra.mxu1 %v243_v62  ;;  %3176 = vmatmul.f32.gmra.mxu3 %v717_v59 }
 0x183   :  { %v1822_v38 = vpop.f32.mrf.mxu2 }
 0x184   :  { %v3129_v39 = vpop.f32.mrf.mxu3 }
 0x185   :  { %v6174_v13 = vadd.f32 %v3129_v39, %v1822_v38  ;;  %v6176_v7 = vpop.f32.mrf.mxu0  ;;  %v246_v38 = vld [vmem:[#allocation5 + $0x2a0] sm:$0xff]  ;;  %v720_v39 = vld [vmem:[#allocation5 + $0x1170] sm:$0xff] }
 0x186   :  { %9101 = vst [vmem:[#allocation83_spill] sm:$0xff] %v6176_v7  ;;  %v6178_v53 = vpop.f32.mrf.mxu1  ;;  %v737_v7 = vld [vmem:[#allocation5 + $0x11f8] sm:$0xff] }
 0x187   :  { %9102 = vst [vmem:[#allocation84_spill] sm:$0xff] %v6178_v53  ;;  %v735_v53 = vld [vmem:[#allocation5 + $0x11e8] sm:$0xff] }
 0x188   :  { %1161 = vmatmul.f32.gmra.mxu0 %v244_v60  ;;  %1872 = vmatmul.f32.gmra.mxu2 %v718_v2 }
 0x189   :  { %2468 = vmatmul.f32.gmra.mxu1 %v245_v50  ;;  %3179 = vmatmul.f32.gmra.mxu3 %v719_v44 }
 0x18b   :  { %v1825_v17 = vpop.f32.mrf.mxu2 }
 0x18c   :  { %v3132_v23 = vpop.f32.mrf.mxu3 }
 0x18d   :  { %v6180_v62 = vadd.f32 %v3132_v23, %v1825_v17  ;;  %v6182_v59 = vpop.f32.mrf.mxu0  ;;  %v248_v17 = vld [vmem:[#allocation5 + $0x2b0] sm:$0xff]  ;;  %v722_v23 = vld [vmem:[#allocation5 + $0x1180] sm:$0xff] }
 0x18e   :  { %9103 = vst [vmem:[#allocation85_spill] sm:$0xff] %v6182_v59  ;;  %v6184_v41 = vpop.f32.mrf.mxu1  ;;  %v731_v59 = vld [vmem:[#allocation5 + $0x11c8] sm:$0xff] }
 0x18f   :  { %9104 = vst [vmem:[#allocation86_spill] sm:$0xff] %v6184_v41  ;;  %v729_v41 = vld [vmem:[#allocation5 + $0x11b8] sm:$0xff] }
 0x190   :  { %1164 = vmatmul.f32.gmra.mxu0 %v246_v38  ;;  %1875 = vmatmul.f32.gmra.mxu2 %v720_v39 }
 0x191   :  { %2471 = vmatmul.f32.gmra.mxu1 %v247_v35  ;;  %3182 = vmatmul.f32.gmra.mxu3 %v721_v32 }
 0x193   :  { %v1828_v60 = vpop.f32.mrf.mxu2 }
 0x194   :  { %v3135_v2 = vpop.f32.mrf.mxu3 }
 0x195   :  { %v6186_v50 = vadd.f32 %v3135_v2, %v1828_v60  ;;  %v6188_v44 = vpop.f32.mrf.mxu0  ;;  %v250_v60 = vld [vmem:[#allocation5 + $0x2c0] sm:$0xff]  ;;  %v724_v2 = vld [vmem:[#allocation5 + $0x1190] sm:$0xff] }
 0x196   :  { %9105 = vst [vmem:[#allocation87_spill] sm:$0xff] %v6188_v44  ;;  %v6190_v51 = vpop.f32.mrf.mxu1  ;;  %v725_v44 = vld [vmem:[#allocation5 + $0x1198] sm:$0xff] }
 0x197   :  { %9106 = vst [vmem:[#allocation88_spill] sm:$0xff] %v6190_v51 }
 0x198   :  { %1167 = vmatmul.f32.gmra.mxu0 %v248_v17  ;;  %1878 = vmatmul.f32.gmra.mxu2 %v722_v23  ;;  %v4548_v23 = vld [vmem:[#allocation10 + $0x78] sm:$0xff] }
 0x199   :  { %2474 = vmatmul.f32.gmra.mxu1 %v249_v5  ;;  %3185 = vmatmul.f32.gmra.mxu3 %v723_v27 }
 0x19a   :  { %4549 = vmatpush.msrb.mxu2 %v4548_v23  ;;  %4781 = vmatpush.msrb.mxu3 %v4548_v23  ;;  %v728_v23 = vld [vmem:[#allocation5 + $0x11b0] sm:$0xff] }
 0x19b   :  { %v1831_v38 = vpop.f32.mrf.mxu2 }
 0x19c   :  { %v3138_v39 = vpop.f32.mrf.mxu3  ;;  %4550 = vmatpush.msrb.mxu2 %v4547_v31  ;;  %4782 = vmatpush.msrb.mxu3 %v4547_v31 }
 0x19d   :  { %v6192_v35 = vadd.f32 %v3138_v39, %v1831_v38  ;;  %v6194_v32 = vpop.f32.mrf.mxu0  ;;  %v252_v39 = vld [vmem:[#allocation5 + $0x2d0] sm:$0xff] }
 0x19e   :  { %9107 = vst [vmem:[#allocation89_spill] sm:$0xff] %v6194_v32  ;;  %v6196_v61 = vpop.f32.mrf.mxu1  ;;  %v726_v32 = vld [vmem:[#allocation5 + $0x11a0] sm:$0xff] }
 0x19f   :  { %9108 = vst [vmem:[#allocation90_spill] sm:$0xff] %v6196_v61  ;;  %v253_v61 = vld [vmem:[#allocation5 + $0x2d8] sm:$0xff] }
 0x1a0   :  { %1170 = vmatmul.f32.gmra.mxu0 %v250_v60  ;;  %1881 = vmatmul.f32.gmra.mxu2 %v724_v2 }
 0x1a1   :  { %2477 = vmatmul.f32.gmra.mxu1 %v251_v29  ;;  %3188 = vmatmul.f32.gmra.mxu3 %v725_v44 }
 0x1a3   :  { %v1834_v17 = vpop.f32.mrf.mxu2 }
 0x1a4   :  { %v3141_v5 = vpop.f32.mrf.mxu3 }
 0x1a5   :  { %v6198_v27 = vadd.f32 %v3141_v5, %v1834_v17  ;;  %v6200_v38 = vpop.f32.mrf.mxu0  ;;  %v254_v17 = vld [vmem:[#allocation5 + $0x2e0] sm:$0xff] }
 0x1a6   :  { %9109 = vst [vmem:[#allocation91_spill] sm:$0xff] %v6200_v38  ;;  %v6202_v51 = vpop.f32.mrf.mxu1  ;;  %v255_v38 = vld [vmem:[#allocation5 + $0x2e8] sm:$0xff] }
 0x1a7   :  { %9110 = vst [vmem:[#allocation92_spill] sm:$0xff] %v6202_v51 }
 0x1a8   :  { %1173 = vmatmul.f32.gmra.mxu0 %v252_v39  ;;  %1884 = vmatmul.f32.gmra.mxu2 %v726_v32 }
 0x1a9   :  { %2480 = vmatmul.f32.gmra.mxu1 %v253_v61  ;;  %3191 = vmatmul.f32.gmra.mxu3 %v727_v10 }
 0x1ab   :  { %v1837_v29 = vpop.f32.mrf.mxu2 }
 0x1ac   :  { %v3144_v44 = vpop.f32.mrf.mxu3 }
 0x1ad   :  { %v6204_v60 = vadd.f32 %v3144_v44, %v1837_v29  ;;  %v6206_v2 = vpop.f32.mrf.mxu0  ;;  %v256_v29 = vld [vmem:[#allocation5 + $0x2f0] sm:$0xff]  ;;  %v730_v44 = vld [vmem:[#allocation5 + $0x11c0] sm:$0xff] }
 0x1ae   :  { %9111 = vst [vmem:[#allocation93_spill] sm:$0xff] %v6206_v2  ;;  %v6208_v5 = vpop.f32.mrf.mxu1  ;;  %v257_v2 = vld [vmem:[#allocation5 + $0x2f8] sm:$0xff] }
 0x1af   :  { %9112 = vst [vmem:[#allocation94_spill] sm:$0xff] %v6208_v5 }
 0x1b0   :  { %1176 = vmatmul.f32.gmra.mxu0 %v254_v17  ;;  %1887 = vmatmul.f32.gmra.mxu2 %v728_v23 }
 0x1b1   :  { %2483 = vmatmul.f32.gmra.mxu1 %v255_v38  ;;  %3194 = vmatmul.f32.gmra.mxu3 %v729_v41 }
 0x1b3   :  { %v1840_v39 = vpop.f32.mrf.mxu2 }
 0x1b4   :  { %v3147_v32 = vpop.f32.mrf.mxu3 }
 0x1b5   :  { %v6210_v61 = vadd.f32 %v3147_v32, %v1840_v39  ;;  %v6212_v10 = vpop.f32.mrf.mxu0  ;;  %v258_v39 = vld [vmem:[#allocation5 + $0x300] sm:$0xff]  ;;  %v732_v32 = vld [vmem:[#allocation5 + $0x11d0] sm:$0xff] }
 0x1b6   :  { %9113 = vst [vmem:[#allocation95_spill] sm:$0xff] %v6212_v10  ;;  %v6214_v51 = vpop.f32.mrf.mxu1  ;;  %v259_v10 = vld [vmem:[#allocation5 + $0x308] sm:$0xff] }
 0x1b7   :  { %9114 = vst [vmem:[#allocation96_spill] sm:$0xff] %v6214_v51 }
 0x1b8   :  { %1179 = vmatmul.f32.gmra.mxu0 %v256_v29  ;;  %1890 = vmatmul.f32.gmra.mxu2 %v730_v44 }
 0x1b9   :  { %2486 = vmatmul.f32.gmra.mxu1 %v257_v2  ;;  %3197 = vmatmul.f32.gmra.mxu3 %v731_v59 }
 0x1bb   :  { %v1843_v17 = vpop.f32.mrf.mxu2 }
 0x1bc   :  { %v3150_v23 = vpop.f32.mrf.mxu3 }
 0x1bd   :  { %v6216_v38 = vadd.f32 %v3150_v23, %v1843_v17  ;;  %v6218_v41 = vpop.f32.mrf.mxu0  ;;  %v260_v17 = vld [vmem:[#allocation5 + $0x310] sm:$0xff]  ;;  %v734_v23 = vld [vmem:[#allocation5 + $0x11e0] sm:$0xff] }
 0x1be   :  { %9115 = vst [vmem:[#allocation97_spill] sm:$0xff] %v6218_v41  ;;  %v6220_v5 = vpop.f32.mrf.mxu1  ;;  %v261_v41 = vld [vmem:[#allocation5 + $0x318] sm:$0xff] }
 0x1bf   :  { %9116 = vst [vmem:[#allocation98_spill] sm:$0xff] %v6220_v5 }
 0x1c0   :  { %1182 = vmatmul.f32.gmra.mxu0 %v258_v39  ;;  %1893 = vmatmul.f32.gmra.mxu2 %v732_v32 }
 0x1c1   :  { %2489 = vmatmul.f32.gmra.mxu1 %v259_v10  ;;  %3200 = vmatmul.f32.gmra.mxu3 %v733_v54 }
 0x1c3   :  { %v1846_v29 = vpop.f32.mrf.mxu2 }
 0x1c4   :  { %v3153_v44 = vpop.f32.mrf.mxu3 }
 0x1c5   :  { %v6222_v2 = vadd.f32 %v3153_v44, %v1846_v29  ;;  %v6224_v59 = vpop.f32.mrf.mxu0  ;;  %v262_v29 = vld [vmem:[#allocation5 + $0x320] sm:$0xff]  ;;  %v736_v44 = vld [vmem:[#allocation5 + $0x11f0] sm:$0xff] }
 0x1c6   :  { %9117 = vst [vmem:[#allocation99_spill] sm:$0xff] %v6224_v59  ;;  %v6226_v51 = vpop.f32.mrf.mxu1  ;;  %v263_v59 = vld [vmem:[#allocation5 + $0x328] sm:$0xff] }
 0x1c7   :  { %9118 = vst [vmem:[#allocation100_spill] sm:$0xff] %v6226_v51 }
 0x1c8   :  { %1185 = vmatmul.f32.gmra.mxu0 %v260_v17  ;;  %1896 = vmatmul.f32.gmra.mxu2 %v734_v23 }
 0x1c9   :  { %2492 = vmatmul.f32.gmra.mxu1 %v261_v41  ;;  %3203 = vmatmul.f32.gmra.mxu3 %v735_v53 }
 0x1cb   :  { %v1849_v39 = vpop.f32.mrf.mxu2 }
 0x1cc   :  { %v3156_v32 = vpop.f32.mrf.mxu3 }
 0x1cd   :  { %v6228_v10 = vadd.f32 %v3156_v32, %v1849_v39  ;;  %v6230_v54 = vpop.f32.mrf.mxu0  ;;  %v264_v39 = vld [vmem:[#allocation5 + $0x330] sm:$0xff]  ;;  %v738_v32 = vld [vmem:[#allocation5 + $0x1200] sm:$0xff] }
 0x1ce   :  { %9119 = vst [vmem:[#allocation101_spill] sm:$0xff] %v6230_v54  ;;  %v6232_v5 = vpop.f32.mrf.mxu1  ;;  %v265_v54 = vld [vmem:[#allocation5 + $0x338] sm:$0xff] }
 0x1cf   :  { %9120 = vst [vmem:[#allocation102_spill] sm:$0xff] %v6232_v5 }
 0x1d0   :  { %1188 = vmatmul.f32.gmra.mxu0 %v262_v29  ;;  %1899 = vmatmul.f32.gmra.mxu2 %v736_v44 }
 0x1d1   :  { %2495 = vmatmul.f32.gmra.mxu1 %v263_v59  ;;  %3206 = vmatmul.f32.gmra.mxu3 %v737_v7 }
 0x1d3   :  { %v1852_v17 = vpop.f32.mrf.mxu2 }
 0x1d4   :  { %v3159_v23 = vpop.f32.mrf.mxu3 }
 0x1d5   :  { %v6234_v41 = vadd.f32 %v3159_v23, %v1852_v17  ;;  %v6236_v53 = vpop.f32.mrf.mxu0  ;;  %v266_v17 = vld [vmem:[#allocation5 + $0x340] sm:$0xff]  ;;  %v740_v23 = vld [vmem:[#allocation5 + $0x1210] sm:$0xff] }
 0x1d6   :  { %9121 = vst [vmem:[#allocation103_spill] sm:$0xff] %v6236_v53  ;;  %v6238_v51 = vpop.f32.mrf.mxu1  ;;  %v267_v53 = vld [vmem:[#allocation5 + $0x348] sm:$0xff] }
 0x1d7   :  { %9122 = vst [vmem:[#allocation104_spill] sm:$0xff] %v6238_v51 }
 0x1d8   :  { %1191 = vmatmul.f32.gmra.mxu0 %v264_v39  ;;  %1902 = vmatmul.f32.gmra.mxu2 %v738_v32 }
 0x1d9   :  { %2498 = vmatmul.f32.gmra.mxu1 %v265_v54  ;;  %3209 = vmatmul.f32.gmra.mxu3 %v739_v34 }
 0x1db   :  { %v1855_v29 = vpop.f32.mrf.mxu2 }
 0x1dc   :  { %v3162_v44 = vpop.f32.mrf.mxu3 }
 0x1dd   :  { %v6240_v59 = vadd.f32 %v3162_v44, %v1855_v29  ;;  %v6242_v7 = vpop.f32.mrf.mxu0  ;;  %v268_v29 = vld [vmem:[#allocation5 + $0x350] sm:$0xff]  ;;  %v742_v44 = vld [vmem:[#allocation5 + $0x1220] sm:$0xff] }
 0x1de   :  { %9123 = vst [vmem:[#allocation105_spill] sm:$0xff] %v6242_v7  ;;  %v6244_v5 = vpop.f32.mrf.mxu1  ;;  %v269_v7 = vld [vmem:[#allocation5 + $0x358] sm:$0xff] }
 0x1df   :  { %9124 = vst [vmem:[#allocation106_spill] sm:$0xff] %v6244_v5 }
 0x1e0   :  { %1194 = vmatmul.f32.gmra.mxu0 %v266_v17  ;;  %1905 = vmatmul.f32.gmra.mxu2 %v740_v23 }
 0x1e1   :  { %2501 = vmatmul.f32.gmra.mxu1 %v267_v53  ;;  %3212 = vmatmul.f32.gmra.mxu3 %v741_v4 }
 0x1e3   :  { %v1858_v39 = vpop.f32.mrf.mxu2 }
 0x1e4   :  { %v3165_v32 = vpop.f32.mrf.mxu3 }
 0x1e5   :  { %v6246_v54 = vadd.f32 %v3165_v32, %v1858_v39  ;;  %v6248_v34 = vpop.f32.mrf.mxu0  ;;  %v270_v39 = vld [vmem:[#allocation5 + $0x360] sm:$0xff]  ;;  %v744_v32 = vld [vmem:[#allocation5 + $0x1230] sm:$0xff] }
 0x1e6   :  { %9125 = vst [vmem:[#allocation107_spill] sm:$0xff] %v6248_v34  ;;  %v6250_v51 = vpop.f32.mrf.mxu1  ;;  %v271_v34 = vld [vmem:[#allocation5 + $0x368] sm:$0xff] }
 0x1e7   :  { %9126 = vst [vmem:[#allocation108_spill] sm:$0xff] %v6250_v51 }
 0x1e8   :  { %1197 = vmatmul.f32.gmra.mxu0 %v268_v29  ;;  %1908 = vmatmul.f32.gmra.mxu2 %v742_v44 }
 0x1e9   :  { %2504 = vmatmul.f32.gmra.mxu1 %v269_v7  ;;  %3215 = vmatmul.f32.gmra.mxu3 %v743_v22 }
 0x1eb   :  { %v1861_v17 = vpop.f32.mrf.mxu2 }
 0x1ec   :  { %v3168_v23 = vpop.f32.mrf.mxu3 }
 0x1ed   :  { %v6252_v53 = vadd.f32 %v3168_v23, %v1861_v17  ;;  %v6254_v4 = vpop.f32.mrf.mxu0  ;;  %v272_v17 = vld [vmem:[#allocation5 + $0x370] sm:$0xff]  ;;  %v746_v23 = vld [vmem:[#allocation5 + $0x1240] sm:$0xff] }
 0x1ee   :  { %9127 = vst [vmem:[#allocation109_spill] sm:$0xff] %v6254_v4  ;;  %v6256_v5 = vpop.f32.mrf.mxu1  ;;  %v273_v4 = vld [vmem:[#allocation5 + $0x378] sm:$0xff] }
 0x1ef   :  { %9128 = vst [vmem:[#allocation110_spill] sm:$0xff] %v6256_v5 }
 0x1f0   :  { %1200 = vmatmul.f32.gmra.mxu0 %v270_v39  ;;  %1911 = vmatmul.f32.gmra.mxu2 %v744_v32 }
 0x1f1   :  { %2507 = vmatmul.f32.gmra.mxu1 %v271_v34  ;;  %3218 = vmatmul.f32.gmra.mxu3 %v745_v19 }
 0x1f3   :  { %v1864_v29 = vpop.f32.mrf.mxu2 }
 0x1f4   :  { %v3171_v44 = vpop.f32.mrf.mxu3 }
 0x1f5   :  { %v6258_v7 = vadd.f32 %v3171_v44, %v1864_v29  ;;  %v6260_v22 = vpop.f32.mrf.mxu0  ;;  %v274_v29 = vld [vmem:[#allocation5 + $0x380] sm:$0xff]  ;;  %v748_v44 = vld [vmem:[#allocation5 + $0x1250] sm:$0xff] }
 0x1f6   :  { %9129 = vst [vmem:[#allocation111_spill] sm:$0xff] %v6260_v22  ;;  %v6262_v51 = vpop.f32.mrf.mxu1  ;;  %v275_v22 = vld [vmem:[#allocation5 + $0x388] sm:$0xff] }
 0x1f7   :  { %9130 = vst [vmem:[#allocation112_spill] sm:$0xff] %v6262_v51 }
 0x1f8   :  { %1203 = vmatmul.f32.gmra.mxu0 %v272_v17  ;;  %1914 = vmatmul.f32.gmra.mxu2 %v746_v23 }
 0x1f9   :  { %2510 = vmatmul.f32.gmra.mxu1 %v273_v4  ;;  %3221 = vmatmul.f32.gmra.mxu3 %v747_v16 }
 0x1fb   :  { %v1867_v39 = vpop.f32.mrf.mxu2 }
 0x1fc   :  { %v3174_v32 = vpop.f32.mrf.mxu3 }
 0x1fd   :  { %v6264_v34 = vadd.f32 %v3174_v32, %v1867_v39  ;;  %v6266_v19 = vpop.f32.mrf.mxu0  ;;  %v276_v39 = vld [vmem:[#allocation5 + $0x390] sm:$0xff]  ;;  %v750_v32 = vld [vmem:[#allocation5 + $0x1260] sm:$0xff] }
 0x1fe   :  { %9131 = vst [vmem:[#allocation113_spill] sm:$0xff] %v6266_v19  ;;  %v6268_v5 = vpop.f32.mrf.mxu1  ;;  %v277_v19 = vld [vmem:[#allocation5 + $0x398] sm:$0xff] }
 0x1ff   :  { %9132 = vst [vmem:[#allocation114_spill] sm:$0xff] %v6268_v5  ;;  %v753_v5 = vld [vmem:[#allocation5 + $0x1278] sm:$0xff] }
 0x200   :  { %1206 = vmatmul.f32.gmra.mxu0 %v274_v29  ;;  %1917 = vmatmul.f32.gmra.mxu2 %v748_v44 }
 0x201   :  { %2513 = vmatmul.f32.gmra.mxu1 %v275_v22  ;;  %3224 = vmatmul.f32.gmra.mxu3 %v749_v36 }
 0x203   :  { %v1870_v17 = vpop.f32.mrf.mxu2 }
 0x204   :  { %v3177_v23 = vpop.f32.mrf.mxu3 }
 0x205   :  { %v6270_v4 = vadd.f32 %v3177_v23, %v1870_v17  ;;  %v6272_v16 = vpop.f32.mrf.mxu0  ;;  %v278_v17 = vld [vmem:[#allocation5 + $0x3a0] sm:$0xff]  ;;  %v752_v23 = vld [vmem:[#allocation5 + $0x1270] sm:$0xff] }
 0x206   :  { %9133 = vst [vmem:[#allocation115_spill] sm:$0xff] %v6272_v16  ;;  %v6274_v51 = vpop.f32.mrf.mxu1 }
 0x207   :  { %9134 = vst [vmem:[#allocation116_spill] sm:$0xff] %v6274_v51  ;;  %v279_v51 = vld [vmem:[#allocation5 + $0x3a8] sm:$0xff] }
 0x208   :  { %1209 = vmatmul.f32.gmra.mxu0 %v276_v39  ;;  %1920 = vmatmul.f32.gmra.mxu2 %v750_v32  ;;  %v280_v32 = vld [vmem:[#allocation5 + $0x3b0] sm:$0xff] }
 0x209   :  { %2516 = vmatmul.f32.gmra.mxu1 %v277_v19  ;;  %3227 = vmatmul.f32.gmra.mxu3 %v751_v6 }
 0x20b   :  { %v1873_v36 = vpop.f32.mrf.mxu2 }
 0x20c   :  { %v3180_v22 = vpop.f32.mrf.mxu3 }
 0x20d   :  { %v6276_v29 = vadd.f32 %v3180_v22, %v1873_v36  ;;  %v6278_v44 = vpop.f32.mrf.mxu0  ;;  %v754_v36 = vld [vmem:[#allocation5 + $0x1280] sm:$0xff] }
 0x20e   :  { %9135 = vst [vmem:[#allocation117_spill] sm:$0xff] %v6278_v44  ;;  %v6280_v16 = vpop.f32.mrf.mxu1  ;;  %v281_v44 = vld [vmem:[#allocation5 + $0x3b8] sm:$0xff] }
 0x20f   :  { %9136 = vst [vmem:[#allocation118_spill] sm:$0xff] %v6280_v16 }
 0x210   :  { %1212 = vmatmul.f32.gmra.mxu0 %v278_v17  ;;  %1923 = vmatmul.f32.gmra.mxu2 %v752_v23 }
 0x211   :  { %2519 = vmatmul.f32.gmra.mxu1 %v279_v51  ;;  %3230 = vmatmul.f32.gmra.mxu3 %v753_v5 }
 0x213   :  { %v1876_v19 = vpop.f32.mrf.mxu2 }
 0x214   :  { %v3183_v6 = vpop.f32.mrf.mxu3 }
 0x215   :  { %v6282_v39 = vadd.f32 %v3183_v6, %v1876_v19  ;;  %v6284_v31 = vpop.f32.mrf.mxu0  ;;  %v282_v19 = vld [vmem:[#allocation5 + $0x3c0] sm:$0xff]  ;;  %v756_v6 = vld [vmem:[#allocation5 + $0x1290] sm:$0xff] }
 0x216   :  { %9137 = vst [vmem:[#allocation119_spill] sm:$0xff] %v6284_v31  ;;  %v6286_v22 = vpop.f32.mrf.mxu1  ;;  %v283_v31 = vld [vmem:[#allocation5 + $0x3c8] sm:$0xff] }
 0x217   :  { %9138 = vst [vmem:[#allocation120_spill] sm:$0xff] %v6286_v22 }
 0x218   :  { %1215 = vmatmul.f32.gmra.mxu0 %v280_v32  ;;  %1926 = vmatmul.f32.gmra.mxu2 %v754_v36 }
 0x219   :  { %2522 = vmatmul.f32.gmra.mxu1 %v281_v44  ;;  %3233 = vmatmul.f32.gmra.mxu3 %v755_v57 }
 0x21b   :  { %v1879_v17 = vpop.f32.mrf.mxu2 }
 0x21c   :  { %v3186_v23 = vpop.f32.mrf.mxu3 }
 0x21d   :  { %v6288_v51 = vadd.f32 %v3186_v23, %v1879_v17  ;;  %v6290_v5 = vpop.f32.mrf.mxu0  ;;  %v284_v17 = vld [vmem:[#allocation5 + $0x3d0] sm:$0xff]  ;;  %v758_v23 = vld [vmem:[#allocation5 + $0x12a0] sm:$0xff] }
 0x21e   :  { %9139 = vst [vmem:[#allocation121_spill] sm:$0xff] %v6290_v5  ;;  %v6292_v16 = vpop.f32.mrf.mxu1  ;;  %v285_v5 = vld [vmem:[#allocation5 + $0x3d8] sm:$0xff] }
 0x21f   :  { %9140 = vst [vmem:[#allocation122_spill] sm:$0xff] %v6292_v16 }
 0x220   :  { %1218 = vmatmul.f32.gmra.mxu0 %v282_v19  ;;  %1929 = vmatmul.f32.gmra.mxu2 %v756_v6 }
 0x221   :  { %2525 = vmatmul.f32.gmra.mxu1 %v283_v31  ;;  %3236 = vmatmul.f32.gmra.mxu3 %v757_v56 }
 0x223   :  { %v1882_v32 = vpop.f32.mrf.mxu2 }
 0x224   :  { %v3189_v36 = vpop.f32.mrf.mxu3 }
 0x225   :  { %v6294_v44 = vadd.f32 %v3189_v36, %v1882_v32  ;;  %v6296_v57 = vpop.f32.mrf.mxu0  ;;  %v286_v32 = vld [vmem:[#allocation5 + $0x3e0] sm:$0xff]  ;;  %v760_v36 = vld [vmem:[#allocation5 + $0x12b0] sm:$0xff] }
 0x226   :  { %v6298_v22 = vpop.f32.mrf.mxu1 }
 0x228   :  { %1221 = vmatmul.f32.gmra.mxu0 %v284_v17  ;;  %1932 = vmatmul.f32.gmra.mxu2 %v758_v23 }
 0x229   :  { %2528 = vmatmul.f32.gmra.mxu1 %v285_v5  ;;  %3239 = vmatmul.f32.gmra.mxu3 %v759_v48 }
 0x22b   :  { %v1885_v19 = vpop.f32.mrf.mxu2 }
 0x22c   :  { %v3192_v6 = vpop.f32.mrf.mxu3 }
 0x22d   :  { %v6300_v31 = vadd.f32 %v3192_v6, %v1885_v19  ;;  %v6302_v56 = vpop.f32.mrf.mxu0  ;;  %v288_v19 = vld [vmem:[#allocation5 + $0x3f0] sm:$0xff]  ;;  %v762_v6 = vld [vmem:[#allocation5 + $0x12c0] sm:$0xff] }
 0x22e   :  { %v6304_v16 = vpop.f32.mrf.mxu1 }
 0x230   :  { %1224 = vmatmul.f32.gmra.mxu0 %v286_v32  ;;  %1935 = vmatmul.f32.gmra.mxu2 %v760_v36 }
 0x231   :  { %2531 = vmatmul.f32.gmra.mxu1 %v287_v11  ;;  %3242 = vmatmul.f32.gmra.mxu3 %v761_v43 }
 0x233   :  { %v1888_v17 = vpop.f32.mrf.mxu2 }
 0x234   :  { %v3195_v23 = vpop.f32.mrf.mxu3 }
 0x235   :  { %v6306_v5 = vadd.f32 %v3195_v23, %v1888_v17  ;;  %v6308_v48 = vpop.f32.mrf.mxu0  ;;  %v290_v17 = vld [vmem:[#allocation5 + $0x400] sm:$0xff]  ;;  %v764_v23 = vld [vmem:[#allocation5 + $0x12d0] sm:$0xff] }
 0x236   :  { %v6310_v8 = vpop.f32.mrf.mxu1 }
 0x237   :  { %9141 = vst [vmem:[#allocation123_spill] sm:$0xff] %v6310_v8 }
 0x238   :  { %1227 = vmatmul.f32.gmra.mxu0 %v288_v19  ;;  %1938 = vmatmul.f32.gmra.mxu2 %v762_v6 }
 0x239   :  { %2534 = vmatmul.f32.gmra.mxu1 %v289_v37  ;;  %3245 = vmatmul.f32.gmra.mxu3 %v763_v30 }
 0x23b   :  { %v1891_v32 = vpop.f32.mrf.mxu2 }
 0x23c   :  { %v3198_v36 = vpop.f32.mrf.mxu3 }
 0x23d   :  { %v6312_v11 = vadd.f32 %v3198_v36, %v1891_v32  ;;  %v6314_v43 = vpop.f32.mrf.mxu0  ;;  %v292_v32 = vld [vmem:[#allocation5 + $0x410] sm:$0xff]  ;;  %v766_v36 = vld [vmem:[#allocation5 + $0x12e0] sm:$0xff] }
 0x23e   :  { %9142 = vst [vmem:[#allocation124_spill] sm:$0xff] %v6314_v43  ;;  %v6316_v26 = vpop.f32.mrf.mxu1 }
 0x23f   :  { %9143 = vst [vmem:[#allocation125_spill] sm:$0xff] %v6316_v26 }
 0x240   :  { %1230 = vmatmul.f32.gmra.mxu0 %v290_v17  ;;  %1941 = vmatmul.f32.gmra.mxu2 %v764_v23 }
 0x241   :  { %2537 = vmatmul.f32.gmra.mxu1 %v291_v52  ;;  %3248 = vmatmul.f32.gmra.mxu3 %v765_v21 }
 0x243   :  { %v1894_v19 = vpop.f32.mrf.mxu2 }
 0x244   :  { %v3201_v6 = vpop.f32.mrf.mxu3 }
 0x245   :  { %v6318_v37 = vadd.f32 %v3201_v6, %v1894_v19  ;;  %v6320_v30 = vpop.f32.mrf.mxu0  ;;  %v294_v19 = vld [vmem:[#allocation5 + $0x420] sm:$0xff]  ;;  %v768_v6 = vld [vmem:[#allocation5 + $0x12f0] sm:$0xff] }
 0x246   :  { %9144 = vst [vmem:[#allocation126_spill] sm:$0xff] %v6320_v30  ;;  %v6322_v24 = vpop.f32.mrf.mxu1  ;;  %v769_v30 = vld [vmem:[#allocation5 + $0x12f8] sm:$0xff] }
 0x247   :  { %9145 = vst [vmem:[#allocation127_spill] sm:$0xff] %v6322_v24 }
 0x248   :  { %1233 = vmatmul.f32.gmra.mxu0 %v292_v32  ;;  %1944 = vmatmul.f32.gmra.mxu2 %v766_v36 }
 0x249   :  { %2540 = vmatmul.f32.gmra.mxu1 %v293_v15  ;;  %3251 = vmatmul.f32.gmra.mxu3 %v767_v12 }
 0x24b   :  { %v1897_v17 = vpop.f32.mrf.mxu2 }
 0x24c   :  { %v3204_v23 = vpop.f32.mrf.mxu3 }
 0x24d   :  { %v6324_v52 = vadd.f32 %v3204_v23, %v1897_v17  ;;  %v6326_v21 = vpop.f32.mrf.mxu0  ;;  %v296_v17 = vld [vmem:[#allocation5 + $0x430] sm:$0xff]  ;;  %v770_v23 = vld [vmem:[#allocation5 + $0x1300] sm:$0xff] }
 0x24e   :  { %9146 = vst [vmem:[#allocation128_spill] sm:$0xff] %v6326_v21  ;;  %v6328_v47 = vpop.f32.mrf.mxu1  ;;  %v297_v21 = vld [vmem:[#allocation5 + $0x438] sm:$0xff] }
 0x24f   :  { %9147 = vst [vmem:[#allocation129_spill] sm:$0xff] %v6328_v47  ;;  %v6336_v47 = vld [vmem:[#allocation7 + $0x7] ss:$0 sm:$0xff] }
 0x250   :  { %1236 = vmatmul.f32.gmra.mxu0 %v294_v19  ;;  %1947 = vmatmul.f32.gmra.mxu2 %v768_v6  ;;  %v3910_v6 = vmul.f32 %v6336_v47, %v6144_v42  ;;  %v3911_v42 = vmul.f32 %v6336_v47, %v6150_v20 }
 0x251   :  { %2543 = vmatmul.f32.gmra.mxu1 %v295_v28  ;;  %3254 = vmatmul.f32.gmra.mxu3 %v769_v30  ;;  %v6338_v30 = vld [vmem:[#allocation7 + $0x8] ss:$0 sm:$0xff] }
 0x253   :  { %v1900_v32 = vpop.f32.mrf.mxu2 }
 0x254   :  { %v3207_v36 = vpop.f32.mrf.mxu3 }
 0x255   :  { %v6330_v15 = vadd.f32 %v3207_v36, %v1900_v32  ;;  %v6332_v12 = vpop.f32.mrf.mxu0 }
 0x256   :  { %9148 = vst [vmem:[#allocation130_spill] sm:$0xff] %v6332_v12  ;;  %v6334_v24 = vpop.f32.mrf.mxu1  ;;  %v298_v12 = vld [vmem:[#allocation5 + $0x440] sm:$0xff] }
 0x257   :  { %9149 = vst [vmem:[#allocation131_spill] sm:$0xff] %v6334_v24  ;;  %v772_v24 = vld [vmem:[#allocation5 + $0x1310] sm:$0xff] }
 0x258   :  { %1239 = vmatmul.f32.gmra.mxu0 %v296_v17  ;;  %1950 = vmatmul.f32.gmra.mxu2 %v770_v23  ;;  %v299_v17 = vld [vmem:[#allocation5 + $0x448] sm:$0xff]  ;;  %v773_v23 = vld [vmem:[#allocation5 + $0x1318] sm:$0xff] }
 0x259   :  { %2546 = vmatmul.f32.gmra.mxu1 %v297_v21  ;;  %3257 = vmatmul.f32.gmra.mxu3 %v771_v3 }
 0x25b   :  { %v1903_v28 = vpop.f32.mrf.mxu2 }
 0x25c   :  { %v3210_v19 = vpop.f32.mrf.mxu3 }
 0x25d   :  { %v3211_v32 = vadd.f32 %v3210_v19, %v1903_v28  ;;  %v6342_v36 = vpop.f32.mrf.mxu0 }
 0x25e   :  { %9150 = vst [vmem:[#allocation132_spill] sm:$0xff] %v6342_v36  ;;  %v6344_v9 = vpop.f32.mrf.mxu1  ;;  %v300_v36 = vld [vmem:[#allocation5 + $0x450] sm:$0xff] }
 0x25f   :  { %9151 = vst [vmem:[#allocation133_spill] sm:$0xff] %v6344_v9  ;;  %v3944_v1 = vmul.f32 %v6338_v30, %v3211_v32  ;;  %v774_v9 = vld [vmem:[#allocation5 + $0x1320] sm:$0xff]  ;;  %v775_v32 = vld [vmem:[#allocation5 + $0x1328] sm:$0xff] }
 0x260   :  { %1242 = vmatmul.f32.gmra.mxu0 %v298_v12  ;;  %1953 = vmatmul.f32.gmra.mxu2 %v772_v24  ;;  %v4546_v12 = vld [vmem:[#allocation10 + $0x68] sm:$0xff] }
 0x261   :  { %v6347_v3 = vadd.f32 %v3944_v1, %v3910_v6  ;;  %2549 = vmatmul.f32.gmra.mxu1 %v299_v17  ;;  %3260 = vmatmul.f32.gmra.mxu3 %v773_v23  ;;  %v3912_v6 = vmul.f32 %v6336_v47, %v6156_v63  ;;  %v3913_v63 = vmul.f32 %v6336_v47, %v6162_v45 }
 0x262   :  { %4551 = vmatpush.msrb.mxu2 %v4546_v12  ;;  %4783 = vmatpush.msrb.mxu3 %v4546_v12  ;;  %v3914_v45 = vmul.f32 %v6336_v47, %v6168_v25  ;;  %v3915_v25 = vmul.f32 %v6336_v47, %v6174_v13  ;;  %v3916_v13 = vmul.f32 %v6336_v47, %v6180_v62 }
 0x263   :  { %9152 = vst [vmem:[#allocation134_spill] sm:$0xff] %v6347_v3  ;;  %v1906_v21 = vpop.f32.mrf.mxu2  ;;  %v776_v3 = vld [vmem:[#allocation5 + $0x1330] sm:$0xff]  ;;  %v3917_v62 = vmul.f32 %v6336_v47, %v6186_v50  ;;  %v3918_v50 = vmul.f32 %v6336_v47, %v6192_v35  ;;  %v3919_v35 = vmul.f32 %v6336_v47, %v6198_v27  ;;  %v3920_v27 = vmul.f32 %v6336_v47, %v6204_v60 }
 0x264   :  { %v3213_v26 = vpop.f32.mrf.mxu3  ;;  %v3921_v60 = vmul.f32 %v6336_v47, %v6210_v61  ;;  %v3922_v61 = vmul.f32 %v6336_v47, %v6216_v38  ;;  %v3923_v38 = vmul.f32 %v6336_v47, %v6222_v2 }
 0x265   :  { %v3214_v28 = vadd.f32 %v3213_v26, %v1906_v21  ;;  %v6351_v19 = vpop.f32.mrf.mxu0  ;;  %v302_v21 = vld [vmem:[#allocation5 + $0x460] sm:$0xff] }
 0x266   :  { %9153 = vst [vmem:[#allocation135_spill] sm:$0xff] %v6351_v19  ;;  %v6353_v43 = vpop.f32.mrf.mxu1  ;;  %v879_v19 = vld [vmem:[#allocation5 + $0x1668] sm:$0xff] }
 0x267   :  { %9154 = vst [vmem:[#allocation136_spill] sm:$0xff] %v6353_v43  ;;  %v3945_v24 = vmul.f32 %v6338_v30, %v3214_v28  ;;  %v381_v43 = vld [vmem:[#allocation5 + $0x6d8] sm:$0xff] }
 0x268   :  { %1245 = vmatmul.f32.gmra.mxu0 %v300_v36  ;;  %1956 = vmatmul.f32.gmra.mxu2 %v774_v9  ;;  %v303_v9 = vld [vmem:[#allocation5 + $0x468] sm:$0xff]  ;;  %v777_v36 = vld [vmem:[#allocation5 + $0x1338] sm:$0xff] }
 0x269   :  { %v6356_v1 = vadd.f32 %v3945_v24, %v3911_v42  ;;  %2552 = vmatmul.f32.gmra.mxu1 %v301_v58  ;;  %3263 = vmatmul.f32.gmra.mxu3 %v775_v32 }
 0x26b   :  { %9155 = vst [vmem:[#allocation137_spill] sm:$0xff] %v6356_v1  ;;  %v1909_v26 = vpop.f32.mrf.mxu2  ;;  %v778_v1 = vld [vmem:[#allocation5 + $0x1340] sm:$0xff] }
 0x26c   :  { %v3216_v20 = vpop.f32.mrf.mxu3 }
 0x26d   :  { %v3217_v17 = vadd.f32 %v3216_v20, %v1909_v26  ;;  %v6360_v23 = vpop.f32.mrf.mxu0  ;;  %v304_v20 = vld [vmem:[#allocation5 + $0x470] sm:$0xff] }
 0x26e   :  { %9156 = vst [vmem:[#allocation138_spill] sm:$0xff] %v6360_v23  ;;  %v6362_v28 = vpop.f32.mrf.mxu1  ;;  %v305_v23 = vld [vmem:[#allocation5 + $0x478] sm:$0xff] }
 0x26f   :  { %9157 = vst [vmem:[#allocation139_spill] sm:$0xff] %v6362_v28  ;;  %v3946_v58 = vmul.f32 %v6338_v30, %v3217_v17  ;;  %v779_v17 = vld [vmem:[#allocation5 + $0x1348] sm:$0xff] }
 0x270   :  { %1248 = vmatmul.f32.gmra.mxu0 %v302_v21  ;;  %1959 = vmatmul.f32.gmra.mxu2 %v776_v3 }
 0x271   :  { %v6365_v42 = vadd.f32 %v3946_v58, %v3912_v6  ;;  %2555 = vmatmul.f32.gmra.mxu1 %v303_v9  ;;  %3266 = vmatmul.f32.gmra.mxu3 %v777_v36 }
 0x273   :  { %9158 = vst [vmem:[#allocation140_spill] sm:$0xff] %v6365_v42  ;;  %v1912_v32 = vpop.f32.mrf.mxu2 }
 0x274   :  { %v3219_v24 = vpop.f32.mrf.mxu3 }
 0x275   :  { %v3220_v12 = vadd.f32 %v3219_v24, %v1912_v32  ;;  %v6369_v26 = vpop.f32.mrf.mxu0  ;;  %v306_v32 = vld [vmem:[#allocation5 + $0x480] sm:$0xff]  ;;  %v780_v24 = vld [vmem:[#allocation5 + $0x1350] sm:$0xff] }
 0x276   :  { %9159 = vst [vmem:[#allocation141_spill] sm:$0xff] %v6369_v26  ;;  %v6371_v28 = vpop.f32.mrf.mxu1  ;;  %v847_v26 = vld [vmem:[#allocation5 + $0x1568] sm:$0xff] }
 0x277   :  { %9160 = vst [vmem:[#allocation142_spill] sm:$0xff] %v6371_v28  ;;  %v3947_v3 = vmul.f32 %v6338_v30, %v3220_v12  ;;  %v307_v28 = vld [vmem:[#allocation5 + $0x488] sm:$0xff]  ;;  %v781_v12 = vld [vmem:[#allocation5 + $0x1358] sm:$0xff] }
 0x278   :  { %1251 = vmatmul.f32.gmra.mxu0 %v304_v20  ;;  %1962 = vmatmul.f32.gmra.mxu2 %v778_v1 }
 0x279   :  { %v6374_v6 = vadd.f32 %v3947_v3, %v3913_v63  ;;  %2558 = vmatmul.f32.gmra.mxu1 %v305_v23  ;;  %3269 = vmatmul.f32.gmra.mxu3 %v779_v17 }
 0x27b   :  { %9161 = vst [vmem:[#allocation143_spill] sm:$0xff] %v6374_v6  ;;  %v1915_v21 = vpop.f32.mrf.mxu2 }
 0x27c   :  { %v3222_v9 = vpop.f32.mrf.mxu3 }
 0x27d   :  { %v3223_v36 = vadd.f32 %v3222_v9, %v1915_v21  ;;  %v6378_v58 = vpop.f32.mrf.mxu0  ;;  %v308_v21 = vld [vmem:[#allocation5 + $0x490] sm:$0xff]  ;;  %v782_v9 = vld [vmem:[#allocation5 + $0x1360] sm:$0xff] }
 0x27e   :  { %9162 = vst [vmem:[#allocation144_spill] sm:$0xff] %v6378_v58  ;;  %v6380_v42 = vpop.f32.mrf.mxu1 }
 0x27f   :  { %9163 = vst [vmem:[#allocation145_spill] sm:$0xff] %v6380_v42  ;;  %v3948_v1 = vmul.f32 %v6338_v30, %v3223_v36  ;;  %v309_v42 = vld [vmem:[#allocation5 + $0x498] sm:$0xff]  ;;  %v783_v36 = vld [vmem:[#allocation5 + $0x1368] sm:$0xff] }
 0x280   :  { %1254 = vmatmul.f32.gmra.mxu0 %v306_v32  ;;  %1965 = vmatmul.f32.gmra.mxu2 %v780_v24 }
 0x281   :  { %v6383_v23 = vadd.f32 %v3948_v1, %v3914_v45  ;;  %2561 = vmatmul.f32.gmra.mxu1 %v307_v28  ;;  %3272 = vmatmul.f32.gmra.mxu3 %v781_v12 }
 0x283   :  { %9164 = vst [vmem:[#allocation146_spill] sm:$0xff] %v6383_v23  ;;  %v1918_v63 = vpop.f32.mrf.mxu2 }
 0x284   :  { %v3225_v20 = vpop.f32.mrf.mxu3 }
 0x285   :  { %v3226_v17 = vadd.f32 %v3225_v20, %v1918_v63  ;;  %v6387_v3 = vpop.f32.mrf.mxu0  ;;  %v310_v63 = vld [vmem:[#allocation5 + $0x4a0] sm:$0xff]  ;;  %v784_v20 = vld [vmem:[#allocation5 + $0x1370] sm:$0xff] }
 0x286   :  { %9165 = vst [vmem:[#allocation147_spill] sm:$0xff] %v6387_v3  ;;  %v6389_v6 = vpop.f32.mrf.mxu1  ;;  %v369_v3 = vld [vmem:[#allocation5 + $0x678] sm:$0xff] }
 0x287   :  { %9166 = vst [vmem:[#allocation148_spill] sm:$0xff] %v6389_v6  ;;  %v3949_v32 = vmul.f32 %v6338_v30, %v3226_v17  ;;  %v311_v6 = vld [vmem:[#allocation5 + $0x4a8] sm:$0xff]  ;;  %v785_v17 = vld [vmem:[#allocation5 + $0x1378] sm:$0xff] }
 0x288   :  { %1257 = vmatmul.f32.gmra.mxu0 %v308_v21  ;;  %1968 = vmatmul.f32.gmra.mxu2 %v782_v9 }
 0x289   :  { %v6392_v28 = vadd.f32 %v3949_v32, %v3915_v25  ;;  %2564 = vmatmul.f32.gmra.mxu1 %v309_v42  ;;  %3275 = vmatmul.f32.gmra.mxu3 %v783_v36 }
 0x28b   :  { %9167 = vst [vmem:[#allocation149_spill] sm:$0xff] %v6392_v28  ;;  %v1921_v45 = vpop.f32.mrf.mxu2 }
 0x28c   :  { %v3228_v24 = vpop.f32.mrf.mxu3 }
 0x28d   :  { %v3229_v12 = vadd.f32 %v3228_v24, %v1921_v45  ;;  %v6396_v1 = vpop.f32.mrf.mxu0  ;;  %v312_v45 = vld [vmem:[#allocation5 + $0x4b0] sm:$0xff]  ;;  %v786_v24 = vld [vmem:[#allocation5 + $0x1380] sm:$0xff] }
 0x28e   :  { %9168 = vst [vmem:[#allocation150_spill] sm:$0xff] %v6396_v1  ;;  %v6398_v23 = vpop.f32.mrf.mxu1  ;;  %v841_v1 = vld [vmem:[#allocation5 + $0x1538] sm:$0xff] }
 0x28f   :  { %9169 = vst [vmem:[#allocation151_spill] sm:$0xff] %v6398_v23  ;;  %v3950_v21 = vmul.f32 %v6338_v30, %v3229_v12  ;;  %v313_v23 = vld [vmem:[#allocation5 + $0x4b8] sm:$0xff]  ;;  %v787_v12 = vld [vmem:[#allocation5 + $0x1388] sm:$0xff] }
 0x290   :  { %1260 = vmatmul.f32.gmra.mxu0 %v310_v63  ;;  %1971 = vmatmul.f32.gmra.mxu2 %v784_v20 }
 0x291   :  { %v6401_v42 = vadd.f32 %v3950_v21, %v3916_v13  ;;  %2567 = vmatmul.f32.gmra.mxu1 %v311_v6  ;;  %3278 = vmatmul.f32.gmra.mxu3 %v785_v17 }
 0x293   :  { %9170 = vst [vmem:[#allocation152_spill] sm:$0xff] %v6401_v42  ;;  %v1924_v25 = vpop.f32.mrf.mxu2 }
 0x294   :  { %v3231_v9 = vpop.f32.mrf.mxu3 }
 0x295   :  { %v3232_v36 = vadd.f32 %v3231_v9, %v1924_v25  ;;  %v6405_v32 = vpop.f32.mrf.mxu0  ;;  %v314_v25 = vld [vmem:[#allocation5 + $0x4c0] sm:$0xff]  ;;  %v788_v9 = vld [vmem:[#allocation5 + $0x1390] sm:$0xff] }
 0x296   :  { %9171 = vst [vmem:[#allocation153_spill] sm:$0xff] %v6405_v32  ;;  %v6407_v28 = vpop.f32.mrf.mxu1  ;;  %v359_v32 = vld [vmem:[#allocation5 + $0x628] sm:$0xff] }
 0x297   :  { %9172 = vst [vmem:[#allocation154_spill] sm:$0xff] %v6407_v28  ;;  %v3951_v63 = vmul.f32 %v6338_v30, %v3232_v36  ;;  %v315_v28 = vld [vmem:[#allocation5 + $0x4c8] sm:$0xff]  ;;  %v789_v36 = vld [vmem:[#allocation5 + $0x1398] sm:$0xff] }
 0x298   :  { %1263 = vmatmul.f32.gmra.mxu0 %v312_v45  ;;  %1974 = vmatmul.f32.gmra.mxu2 %v786_v24 }
 0x299   :  { %v6410_v6 = vadd.f32 %v3951_v63, %v3917_v62  ;;  %2570 = vmatmul.f32.gmra.mxu1 %v313_v23  ;;  %3281 = vmatmul.f32.gmra.mxu3 %v787_v12 }
 0x29b   :  { %9173 = vst [vmem:[#allocation155_spill] sm:$0xff] %v6410_v6  ;;  %v1927_v13 = vpop.f32.mrf.mxu2 }
 0x29c   :  { %v3234_v20 = vpop.f32.mrf.mxu3 }
 0x29d   :  { %v3235_v17 = vadd.f32 %v3234_v20, %v1927_v13  ;;  %v6414_v21 = vpop.f32.mrf.mxu0  ;;  %v316_v13 = vld [vmem:[#allocation5 + $0x4d0] sm:$0xff]  ;;  %v790_v20 = vld [vmem:[#allocation5 + $0x13a0] sm:$0xff] }
 0x29e   :  { %9174 = vst [vmem:[#allocation156_spill] sm:$0xff] %v6414_v21  ;;  %v6416_v42 = vpop.f32.mrf.mxu1  ;;  %v355_v21 = vld [vmem:[#allocation5 + $0x608] sm:$0xff] }
 0x29f   :  { %9175 = vst [vmem:[#allocation157_spill] sm:$0xff] %v6416_v42  ;;  %v3952_v45 = vmul.f32 %v6338_v30, %v3235_v17  ;;  %v317_v42 = vld [vmem:[#allocation5 + $0x4d8] sm:$0xff]  ;;  %v791_v17 = vld [vmem:[#allocation5 + $0x13a8] sm:$0xff] }
 0x2a0   :  { %1266 = vmatmul.f32.gmra.mxu0 %v314_v25  ;;  %1977 = vmatmul.f32.gmra.mxu2 %v788_v9 }
 0x2a1   :  { %v6419_v23 = vadd.f32 %v3952_v45, %v3918_v50  ;;  %2573 = vmatmul.f32.gmra.mxu1 %v315_v28  ;;  %3284 = vmatmul.f32.gmra.mxu3 %v789_v36 }
 0x2a3   :  { %9176 = vst [vmem:[#allocation158_spill] sm:$0xff] %v6419_v23  ;;  %v1930_v62 = vpop.f32.mrf.mxu2 }
 0x2a4   :  { %v3237_v24 = vpop.f32.mrf.mxu3 }
 0x2a5   :  { %v3238_v12 = vadd.f32 %v3237_v24, %v1930_v62  ;;  %v6423_v63 = vpop.f32.mrf.mxu0  ;;  %v318_v62 = vld [vmem:[#allocation5 + $0x4e0] sm:$0xff]  ;;  %v792_v24 = vld [vmem:[#allocation5 + $0x13b0] sm:$0xff] }
 0x2a6   :  { %9177 = vst [vmem:[#allocation159_spill] sm:$0xff] %v6423_v63  ;;  %v6425_v6 = vpop.f32.mrf.mxu1 }
 0x2a7   :  { %9178 = vst [vmem:[#allocation160_spill] sm:$0xff] %v6425_v6  ;;  %v3953_v25 = vmul.f32 %v6338_v30, %v3238_v12  ;;  %v319_v6 = vld [vmem:[#allocation5 + $0x4e8] sm:$0xff]  ;;  %v793_v12 = vld [vmem:[#allocation5 + $0x13b8] sm:$0xff] }
 0x2a8   :  { %1269 = vmatmul.f32.gmra.mxu0 %v316_v13  ;;  %1980 = vmatmul.f32.gmra.mxu2 %v790_v20 }
 0x2a9   :  { %v6428_v28 = vadd.f32 %v3953_v25, %v3919_v35  ;;  %2576 = vmatmul.f32.gmra.mxu1 %v317_v42  ;;  %3287 = vmatmul.f32.gmra.mxu3 %v791_v17 }
 0x2ab   :  { %9179 = vst [vmem:[#allocation161_spill] sm:$0xff] %v6428_v28  ;;  %v1933_v50 = vpop.f32.mrf.mxu2 }
 0x2ac   :  { %v3240_v9 = vpop.f32.mrf.mxu3 }
 0x2ad   :  { %v3241_v36 = vadd.f32 %v3240_v9, %v1933_v50  ;;  %v6432_v45 = vpop.f32.mrf.mxu0  ;;  %v320_v50 = vld [vmem:[#allocation5 + $0x4f0] sm:$0xff]  ;;  %v794_v9 = vld [vmem:[#allocation5 + $0x13c0] sm:$0xff] }
 0x2ae   :  { %9180 = vst [vmem:[#allocation162_spill] sm:$0xff] %v6432_v45  ;;  %v6434_v23 = vpop.f32.mrf.mxu1  ;;  %v353_v45 = vld [vmem:[#allocation5 + $0x5f8] sm:$0xff] }
 0x2af   :  { %9181 = vst [vmem:[#allocation163_spill] sm:$0xff] %v6434_v23  ;;  %v3954_v13 = vmul.f32 %v6338_v30, %v3241_v36  ;;  %v321_v23 = vld [vmem:[#allocation5 + $0x4f8] sm:$0xff]  ;;  %v795_v36 = vld [vmem:[#allocation5 + $0x13c8] sm:$0xff] }
 0x2b0   :  { %1272 = vmatmul.f32.gmra.mxu0 %v318_v62  ;;  %1983 = vmatmul.f32.gmra.mxu2 %v792_v24 }
 0x2b1   :  { %v6437_v42 = vadd.f32 %v3954_v13, %v3920_v27  ;;  %2579 = vmatmul.f32.gmra.mxu1 %v319_v6  ;;  %3290 = vmatmul.f32.gmra.mxu3 %v793_v12 }
 0x2b3   :  { %9182 = vst [vmem:[#allocation164_spill] sm:$0xff] %v6437_v42  ;;  %v1936_v35 = vpop.f32.mrf.mxu2 }
 0x2b4   :  { %v3243_v20 = vpop.f32.mrf.mxu3 }
 0x2b5   :  { %v3244_v17 = vadd.f32 %v3243_v20, %v1936_v35  ;;  %v6441_v25 = vpop.f32.mrf.mxu0  ;;  %v322_v35 = vld [vmem:[#allocation5 + $0x500] sm:$0xff]  ;;  %v796_v20 = vld [vmem:[#allocation5 + $0x13d0] sm:$0xff] }
 0x2b6   :  { %9183 = vst [vmem:[#allocation165_spill] sm:$0xff] %v6441_v25  ;;  %v6443_v28 = vpop.f32.mrf.mxu1 }
 0x2b7   :  { %9184 = vst [vmem:[#allocation166_spill] sm:$0xff] %v6443_v28  ;;  %v3955_v62 = vmul.f32 %v6338_v30, %v3244_v17  ;;  %v323_v28 = vld [vmem:[#allocation5 + $0x508] sm:$0xff]  ;;  %v797_v17 = vld [vmem:[#allocation5 + $0x13d8] sm:$0xff] }
 0x2b8   :  { %1275 = vmatmul.f32.gmra.mxu0 %v320_v50  ;;  %1986 = vmatmul.f32.gmra.mxu2 %v794_v9 }
 0x2b9   :  { %v6446_v6 = vadd.f32 %v3955_v62, %v3921_v60  ;;  %2582 = vmatmul.f32.gmra.mxu1 %v321_v23  ;;  %3293 = vmatmul.f32.gmra.mxu3 %v795_v36 }
 0x2bb   :  { %9185 = vst [vmem:[#allocation167_spill] sm:$0xff] %v6446_v6  ;;  %v1939_v27 = vpop.f32.mrf.mxu2 }
 0x2bc   :  { %v3246_v24 = vpop.f32.mrf.mxu3 }
 0x2bd   :  { %v3247_v12 = vadd.f32 %v3246_v24, %v1939_v27  ;;  %v6450_v13 = vpop.f32.mrf.mxu0  ;;  %v324_v27 = vld [vmem:[#allocation5 + $0x510] sm:$0xff]  ;;  %v798_v24 = vld [vmem:[#allocation5 + $0x13e0] sm:$0xff] }
 0x2be   :  { %9186 = vst [vmem:[#allocation168_spill] sm:$0xff] %v6450_v13  ;;  %v6452_v42 = vpop.f32.mrf.mxu1  ;;  %v826_v13 = vld [vmem:[#allocation5 + $0x14c0] sm:$0xff] }
 0x2bf   :  { %9187 = vst [vmem:[#allocation169_spill] sm:$0xff] %v6452_v42  ;;  %v3956_v50 = vmul.f32 %v6338_v30, %v3247_v12  ;;  %v325_v42 = vld [vmem:[#allocation5 + $0x518] sm:$0xff]  ;;  %v799_v12 = vld [vmem:[#allocation5 + $0x13e8] sm:$0xff] }
 0x2c0   :  { %1278 = vmatmul.f32.gmra.mxu0 %v322_v35  ;;  %1989 = vmatmul.f32.gmra.mxu2 %v796_v20 }
 0x2c1   :  { %v6455_v23 = vadd.f32 %v3956_v50, %v3922_v61  ;;  %2585 = vmatmul.f32.gmra.mxu1 %v323_v28  ;;  %3296 = vmatmul.f32.gmra.mxu3 %v797_v17  ;;  %v4545_v61 = vld [vmem:[#allocation10 + $0x60] sm:$0xff]  ;;  %v3924_v17 = vmul.f32 %v6336_v47, %v6228_v10  ;;  %v3925_v10 = vmul.f32 %v6336_v47, %v6234_v41 }
 0x2c2   :  { %4552 = vmatpush.msrb.mxu2 %v4545_v61  ;;  %4784 = vmatpush.msrb.mxu3 %v4545_v61  ;;  %v3926_v41 = vmul.f32 %v6336_v47, %v6240_v59  ;;  %v3927_v59 = vmul.f32 %v6336_v47, %v6246_v54  ;;  %v3928_v54 = vmul.f32 %v6336_v47, %v6252_v53 }
 0x2c3   :  { %9188 = vst [vmem:[#allocation170_spill] sm:$0xff] %v6455_v23  ;;  %v1942_v60 = vpop.f32.mrf.mxu2  ;;  %v800_v23 = vld [vmem:[#allocation5 + $0x13f0] sm:$0xff]  ;;  %v3929_v53 = vmul.f32 %v6336_v47, %v6258_v7  ;;  %v3930_v7 = vmul.f32 %v6336_v47, %v6264_v34  ;;  %v3931_v34 = vmul.f32 %v6336_v47, %v6270_v4  ;;  %v3932_v4 = vmul.f32 %v6336_v47, %v6276_v29 }
 0x2c4   :  { %v3249_v9 = vpop.f32.mrf.mxu3  ;;  %v3933_v29 = vmul.f32 %v6336_v47, %v6282_v39  ;;  %v3934_v39 = vmul.f32 %v6336_v47, %v6288_v51  ;;  %v3935_v51 = vmul.f32 %v6336_v47, %v6294_v44 }
 0x2c5   :  { %v3250_v36 = vadd.f32 %v3249_v9, %v1942_v60  ;;  %v6459_v62 = vpop.f32.mrf.mxu0  ;;  %v326_v9 = vld [vmem:[#allocation5 + $0x520] sm:$0xff] }
 0x2c6   :  { %9189 = vst [vmem:[#allocation171_spill] sm:$0xff] %v6459_v62  ;;  %v6461_v6 = vpop.f32.mrf.mxu1  ;;  %v824_v62 = vld [vmem:[#allocation5 + $0x14b0] sm:$0xff] }
 0x2c7   :  { %9190 = vst [vmem:[#allocation172_spill] sm:$0xff] %v6461_v6  ;;  %v3957_v35 = vmul.f32 %v6338_v30, %v3250_v36  ;;  %v329_v6 = vld [vmem:[#allocation5 + $0x538] sm:$0xff] }
 0x2c8   :  { %1281 = vmatmul.f32.gmra.mxu0 %v324_v27  ;;  %1992 = vmatmul.f32.gmra.mxu2 %v798_v24  ;;  %v327_v27 = vld [vmem:[#allocation5 + $0x528] sm:$0xff] }
 0x2c9   :  { %v6464_v28 = vadd.f32 %v3957_v35, %v3923_v38  ;;  %2588 = vmatmul.f32.gmra.mxu1 %v325_v42  ;;  %3299 = vmatmul.f32.gmra.mxu3 %v799_v12  ;;  %v801_v38 = vld [vmem:[#allocation5 + $0x13f8] sm:$0xff] }
 0x2cb   :  { %v1945_v2 = vpop.f32.mrf.mxu2 }
 0x2cc   :  { %v3252_v20 = vpop.f32.mrf.mxu3 }
 0x2cd   :  { %v3253_v50 = vadd.f32 %v3252_v20, %v1945_v2  ;;  %v6468_v60 = vpop.f32.mrf.mxu0  ;;  %v328_v20 = vld [vmem:[#allocation5 + $0x530] sm:$0xff] }
 0x2ce   :  { %9191 = vst [vmem:[#allocation173_spill] sm:$0xff] %v6468_v60  ;;  %v6470_v36 = vpop.f32.mrf.mxu1 }
 0x2cf   :  { %9192 = vst [vmem:[#allocation174_spill] sm:$0xff] %v6470_v36  ;;  %v3958_v42 = vmul.f32 %v6338_v30, %v3253_v50  ;;  %v802_v36 = vld [vmem:[#allocation5 + $0x1400] sm:$0xff]  ;;  %v803_v50 = vld [vmem:[#allocation5 + $0x1408] sm:$0xff] }
 0x2d0   :  { %1284 = vmatmul.f32.gmra.mxu0 %v326_v9  ;;  %1995 = vmatmul.f32.gmra.mxu2 %v800_v23 }
 0x2d1   :  { %v6473_v24 = vadd.f32 %v3958_v42, %v3924_v17  ;;  %2591 = vmatmul.f32.gmra.mxu1 %v327_v27  ;;  %3302 = vmatmul.f32.gmra.mxu3 %v801_v38 }
 0x2d3   :  { %9193 = vst [vmem:[#allocation175_spill] sm:$0xff] %v6473_v24  ;;  %v1948_v12 = vpop.f32.mrf.mxu2  ;;  %v943_v24 = vld [vmem:[#allocation5 + $0x1868] sm:$0xff] }
 0x2d4   :  { %v3255_v35 = vpop.f32.mrf.mxu3 }
 0x2d5   :  { %v3256_v61 = vadd.f32 %v3255_v35, %v1948_v12  ;;  %v6477_v2 = vpop.f32.mrf.mxu0  ;;  %v330_v12 = vld [vmem:[#allocation5 + $0x540] sm:$0xff]  ;;  %v804_v35 = vld [vmem:[#allocation5 + $0x1410] sm:$0xff] }
 0x2d6   :  { %9194 = vst [vmem:[#allocation176_spill] sm:$0xff] %v6477_v2  ;;  %v6479_v60 = vpop.f32.mrf.mxu1  ;;  %v331_v2 = vld [vmem:[#allocation5 + $0x548] sm:$0xff] }
 0x2d7   :  { %9195 = vst [vmem:[#allocation177_spill] sm:$0xff] %v6479_v60  ;;  %v3959_v23 = vmul.f32 %v6338_v30, %v3256_v61  ;;  %v805_v61 = vld [vmem:[#allocation5 + $0x1418] sm:$0xff] }
 0x2d8   :  { %1287 = vmatmul.f32.gmra.mxu0 %v328_v20  ;;  %1998 = vmatmul.f32.gmra.mxu2 %v802_v36 }
 0x2d9   :  { %v6482_v17 = vadd.f32 %v3959_v23, %v3925_v10  ;;  %2594 = vmatmul.f32.gmra.mxu1 %v329_v6  ;;  %3305 = vmatmul.f32.gmra.mxu3 %v803_v50 }
 0x2db   :  { %9196 = vst [vmem:[#allocation178_spill] sm:$0xff] %v6482_v17  ;;  %v1951_v9 = vpop.f32.mrf.mxu2 }
 0x2dc   :  { %v3258_v27 = vpop.f32.mrf.mxu3 }
 0x2dd   :  { %v3259_v38 = vadd.f32 %v3258_v27, %v1951_v9  ;;  %v6486_v42 = vpop.f32.mrf.mxu0  ;;  %v332_v9 = vld [vmem:[#allocation5 + $0x550] sm:$0xff]  ;;  %v806_v27 = vld [vmem:[#allocation5 + $0x1420] sm:$0xff] }
 0x2de   :  { %9197 = vst [vmem:[#allocation179_spill] sm:$0xff] %v6486_v42  ;;  %v6488_v60 = vpop.f32.mrf.mxu1  ;;  %v333_v42 = vld [vmem:[#allocation5 + $0x558] sm:$0xff] }
 0x2df   :  { %9198 = vst [vmem:[#allocation180_spill] sm:$0xff] %v6488_v60  ;;  %v3960_v36 = vmul.f32 %v6338_v30, %v3259_v38  ;;  %v807_v38 = vld [vmem:[#allocation5 + $0x1428] sm:$0xff] }
 0x2e0   :  { %1290 = vmatmul.f32.gmra.mxu0 %v330_v12  ;;  %2001 = vmatmul.f32.gmra.mxu2 %v804_v35 }
 0x2e1   :  { %v6491_v6 = vadd.f32 %v3960_v36, %v3926_v41  ;;  %2597 = vmatmul.f32.gmra.mxu1 %v331_v2  ;;  %3308 = vmatmul.f32.gmra.mxu3 %v805_v61 }
 0x2e3   :  { %9199 = vst [vmem:[#allocation181_spill] sm:$0xff] %v6491_v6  ;;  %v1954_v10 = vpop.f32.mrf.mxu2 }
 0x2e4   :  { %v3261_v20 = vpop.f32.mrf.mxu3 }
 0x2e5   :  { %v3262_v50 = vadd.f32 %v3261_v20, %v1954_v10  ;;  %v6495_v23 = vpop.f32.mrf.mxu0  ;;  %v334_v10 = vld [vmem:[#allocation5 + $0x560] sm:$0xff]  ;;  %v808_v20 = vld [vmem:[#allocation5 + $0x1430] sm:$0xff] }
 0x2e6   :  { %9200 = vst [vmem:[#allocation182_spill] sm:$0xff] %v6495_v23  ;;  %v6497_v60 = vpop.f32.mrf.mxu1  ;;  %v335_v23 = vld [vmem:[#allocation5 + $0x568] sm:$0xff] }
 0x2e7   :  { %9201 = vst [vmem:[#allocation183_spill] sm:$0xff] %v6497_v60  ;;  %v3961_v12 = vmul.f32 %v6338_v30, %v3262_v50  ;;  %v809_v50 = vld [vmem:[#allocation5 + $0x1438] sm:$0xff] }
 0x2e8   :  { %1293 = vmatmul.f32.gmra.mxu0 %v332_v9  ;;  %2004 = vmatmul.f32.gmra.mxu2 %v806_v27 }
 0x2e9   :  { %v6500_v2 = vadd.f32 %v3961_v12, %v3927_v59  ;;  %2600 = vmatmul.f32.gmra.mxu1 %v333_v42  ;;  %3311 = vmatmul.f32.gmra.mxu3 %v807_v38 }
 0x2eb   :  { %9202 = vst [vmem:[#allocation184_spill] sm:$0xff] %v6500_v2  ;;  %v1957_v41 = vpop.f32.mrf.mxu2 }
 0x2ec   :  { %v3264_v35 = vpop.f32.mrf.mxu3 }
 0x2ed   :  { %v3265_v61 = vadd.f32 %v3264_v35, %v1957_v41  ;;  %v6504_v36 = vpop.f32.mrf.mxu0  ;;  %v336_v41 = vld [vmem:[#allocation5 + $0x570] sm:$0xff]  ;;  %v810_v35 = vld [vmem:[#allocation5 + $0x1440] sm:$0xff] }
 0x2ee   :  { %9203 = vst [vmem:[#allocation185_spill] sm:$0xff] %v6504_v36  ;;  %v6506_v60 = vpop.f32.mrf.mxu1  ;;  %v337_v36 = vld [vmem:[#allocation5 + $0x578] sm:$0xff] }
 0x2ef   :  { %9204 = vst [vmem:[#allocation186_spill] sm:$0xff] %v6506_v60  ;;  %v3962_v9 = vmul.f32 %v6338_v30, %v3265_v61  ;;  %v811_v61 = vld [vmem:[#allocation5 + $0x1448] sm:$0xff] }
 0x2f0   :  { %1296 = vmatmul.f32.gmra.mxu0 %v334_v10  ;;  %2007 = vmatmul.f32.gmra.mxu2 %v808_v20 }
 0x2f1   :  { %v6509_v42 = vadd.f32 %v3962_v9, %v3928_v54  ;;  %2603 = vmatmul.f32.gmra.mxu1 %v335_v23  ;;  %3314 = vmatmul.f32.gmra.mxu3 %v809_v50 }
 0x2f3   :  { %9205 = vst [vmem:[#allocation187_spill] sm:$0xff] %v6509_v42  ;;  %v1960_v59 = vpop.f32.mrf.mxu2 }
 0x2f4   :  { %v3267_v27 = vpop.f32.mrf.mxu3 }
 0x2f5   :  { %v3268_v38 = vadd.f32 %v3267_v27, %v1960_v59  ;;  %v6513_v12 = vpop.f32.mrf.mxu0  ;;  %v338_v59 = vld [vmem:[#allocation5 + $0x580] sm:$0xff]  ;;  %v812_v27 = vld [vmem:[#allocation5 + $0x1450] sm:$0xff] }
 0x2f6   :  { %9206 = vst [vmem:[#allocation188_spill] sm:$0xff] %v6513_v12  ;;  %v6515_v60 = vpop.f32.mrf.mxu1  ;;  %v339_v12 = vld [vmem:[#allocation5 + $0x588] sm:$0xff] }
 0x2f7   :  { %9207 = vst [vmem:[#allocation189_spill] sm:$0xff] %v6515_v60  ;;  %v3963_v10 = vmul.f32 %v6338_v30, %v3268_v38  ;;  %v813_v38 = vld [vmem:[#allocation5 + $0x1458] sm:$0xff] }
 0x2f8   :  { %1299 = vmatmul.f32.gmra.mxu0 %v336_v41  ;;  %2010 = vmatmul.f32.gmra.mxu2 %v810_v35 }
 0x2f9   :  { %v6518_v23 = vadd.f32 %v3963_v10, %v3929_v53  ;;  %2606 = vmatmul.f32.gmra.mxu1 %v337_v36  ;;  %3317 = vmatmul.f32.gmra.mxu3 %v811_v61 }
 0x2fb   :  { %9208 = vst [vmem:[#allocation190_spill] sm:$0xff] %v6518_v23  ;;  %v1963_v54 = vpop.f32.mrf.mxu2  ;;  %v881_v23 = vld [vmem:[#allocation5 + $0x1678] sm:$0xff] }
 0x2fc   :  { %v3270_v20 = vpop.f32.mrf.mxu3 }
 0x2fd   :  { %v3271_v50 = vadd.f32 %v3270_v20, %v1963_v54  ;;  %v6522_v9 = vpop.f32.mrf.mxu0  ;;  %v340_v54 = vld [vmem:[#allocation5 + $0x590] sm:$0xff]  ;;  %v814_v20 = vld [vmem:[#allocation5 + $0x1460] sm:$0xff] }
 0x2fe   :  { %9209 = vst [vmem:[#allocation191_spill] sm:$0xff] %v6522_v9  ;;  %v6524_v60 = vpop.f32.mrf.mxu1  ;;  %v341_v9 = vld [vmem:[#allocation5 + $0x598] sm:$0xff] }
 0x2ff   :  { %9210 = vst [vmem:[#allocation192_spill] sm:$0xff] %v6524_v60  ;;  %v3964_v41 = vmul.f32 %v6338_v30, %v3271_v50  ;;  %v815_v50 = vld [vmem:[#allocation5 + $0x1468] sm:$0xff] }
 0x300   :  { %1302 = vmatmul.f32.gmra.mxu0 %v338_v59  ;;  %2013 = vmatmul.f32.gmra.mxu2 %v812_v27 }
 0x301   :  { %v6527_v36 = vadd.f32 %v3964_v41, %v3930_v7  ;;  %2609 = vmatmul.f32.gmra.mxu1 %v339_v12  ;;  %3320 = vmatmul.f32.gmra.mxu3 %v813_v38 }
 0x303   :  { %9211 = vst [vmem:[#allocation193_spill] sm:$0xff] %v6527_v36  ;;  %v1966_v53 = vpop.f32.mrf.mxu2 }
 0x304   :  { %v3273_v35 = vpop.f32.mrf.mxu3 }
 0x305   :  { %v3274_v61 = vadd.f32 %v3273_v35, %v1966_v53  ;;  %v6531_v10 = vpop.f32.mrf.mxu0  ;;  %v342_v53 = vld [vmem:[#allocation5 + $0x5a0] sm:$0xff]  ;;  %v816_v35 = vld [vmem:[#allocation5 + $0x1470] sm:$0xff] }
 0x306   :  { %9212 = vst [vmem:[#allocation194_spill] sm:$0xff] %v6531_v10  ;;  %v6533_v60 = vpop.f32.mrf.mxu1  ;;  %v343_v10 = vld [vmem:[#allocation5 + $0x5a8] sm:$0xff] }
 0x307   :  { %9213 = vst [vmem:[#allocation195_spill] sm:$0xff] %v6533_v60  ;;  %v3965_v59 = vmul.f32 %v6338_v30, %v3274_v61  ;;  %v817_v61 = vld [vmem:[#allocation5 + $0x1478] sm:$0xff] }
 0x308   :  { %1305 = vmatmul.f32.gmra.mxu0 %v340_v54  ;;  %2016 = vmatmul.f32.gmra.mxu2 %v814_v20 }
 0x309   :  { %v6536_v12 = vadd.f32 %v3965_v59, %v3931_v34  ;;  %2612 = vmatmul.f32.gmra.mxu1 %v341_v9  ;;  %3323 = vmatmul.f32.gmra.mxu3 %v815_v50 }
 0x30b   :  { %9214 = vst [vmem:[#allocation196_spill] sm:$0xff] %v6536_v12  ;;  %v1969_v7 = vpop.f32.mrf.mxu2  ;;  %v849_v12 = vld [vmem:[#allocation5 + $0x1578] sm:$0xff] }
 0x30c   :  { %v3276_v27 = vpop.f32.mrf.mxu3 }
 0x30d   :  { %v3277_v38 = vadd.f32 %v3276_v27, %v1969_v7  ;;  %v6540_v41 = vpop.f32.mrf.mxu0  ;;  %v344_v7 = vld [vmem:[#allocation5 + $0x5b0] sm:$0xff]  ;;  %v818_v27 = vld [vmem:[#allocation5 + $0x1480] sm:$0xff] }
 0x30e   :  { %9215 = vst [vmem:[#allocation197_spill] sm:$0xff] %v6540_v41  ;;  %v6542_v60 = vpop.f32.mrf.mxu1  ;;  %v345_v41 = vld [vmem:[#allocation5 + $0x5b8] sm:$0xff] }
 0x30f   :  { %9216 = vst [vmem:[#allocation198_spill] sm:$0xff] %v6542_v60  ;;  %v3966_v54 = vmul.f32 %v6338_v30, %v3277_v38  ;;  %v819_v38 = vld [vmem:[#allocation5 + $0x1488] sm:$0xff] }
 0x310   :  { %1308 = vmatmul.f32.gmra.mxu0 %v342_v53  ;;  %2019 = vmatmul.f32.gmra.mxu2 %v816_v35 }
 0x311   :  { %v6545_v9 = vadd.f32 %v3966_v54, %v3932_v4  ;;  %2615 = vmatmul.f32.gmra.mxu1 %v343_v10  ;;  %3326 = vmatmul.f32.gmra.mxu3 %v817_v61 }
 0x313   :  { %9217 = vst [vmem:[#allocation199_spill] sm:$0xff] %v6545_v9  ;;  %v1972_v34 = vpop.f32.mrf.mxu2  ;;  %v371_v9 = vld [vmem:[#allocation5 + $0x688] sm:$0xff] }
 0x314   :  { %v3279_v20 = vpop.f32.mrf.mxu3 }
 0x315   :  { %v3280_v50 = vadd.f32 %v3279_v20, %v1972_v34  ;;  %v6549_v59 = vpop.f32.mrf.mxu0  ;;  %v346_v34 = vld [vmem:[#allocation5 + $0x5c0] sm:$0xff]  ;;  %v820_v20 = vld [vmem:[#allocation5 + $0x1490] sm:$0xff] }
 0x316   :  { %9218 = vst [vmem:[#allocation200_spill] sm:$0xff] %v6549_v59  ;;  %v6551_v60 = vpop.f32.mrf.mxu1  ;;  %v347_v59 = vld [vmem:[#allocation5 + $0x5c8] sm:$0xff] }
 0x317   :  { %9219 = vst [vmem:[#allocation201_spill] sm:$0xff] %v6551_v60  ;;  %v3967_v53 = vmul.f32 %v6338_v30, %v3280_v50  ;;  %v821_v50 = vld [vmem:[#allocation5 + $0x1498] sm:$0xff] }
 0x318   :  { %1311 = vmatmul.f32.gmra.mxu0 %v344_v7  ;;  %2022 = vmatmul.f32.gmra.mxu2 %v818_v27 }
 0x319   :  { %v6554_v10 = vadd.f32 %v3967_v53, %v3933_v29  ;;  %2618 = vmatmul.f32.gmra.mxu1 %v345_v41  ;;  %3329 = vmatmul.f32.gmra.mxu3 %v819_v38 }
 0x31b   :  { %9220 = vst [vmem:[#allocation202_spill] sm:$0xff] %v6554_v10  ;;  %v1975_v4 = vpop.f32.mrf.mxu2  ;;  %v843_v10 = vld [vmem:[#allocation5 + $0x1548] sm:$0xff] }
 0x31c   :  { %v3282_v35 = vpop.f32.mrf.mxu3 }
 0x31d   :  { %v3283_v61 = vadd.f32 %v3282_v35, %v1975_v4  ;;  %v6558_v54 = vpop.f32.mrf.mxu0  ;;  %v348_v4 = vld [vmem:[#allocation5 + $0x5d0] sm:$0xff]  ;;  %v822_v35 = vld [vmem:[#allocation5 + $0x14a0] sm:$0xff] }
 0x31e   :  { %9221 = vst [vmem:[#allocation203_spill] sm:$0xff] %v6558_v54  ;;  %v6560_v60 = vpop.f32.mrf.mxu1  ;;  %v349_v54 = vld [vmem:[#allocation5 + $0x5d8] sm:$0xff] }
 0x31f   :  { %9222 = vst [vmem:[#allocation204_spill] sm:$0xff] %v6560_v60  ;;  %v3968_v7 = vmul.f32 %v6338_v30, %v3283_v61  ;;  %v823_v61 = vld [vmem:[#allocation5 + $0x14a8] sm:$0xff] }
 0x320   :  { %1314 = vmatmul.f32.gmra.mxu0 %v346_v34  ;;  %2025 = vmatmul.f32.gmra.mxu2 %v820_v20 }
 0x321   :  { %v6563_v41 = vadd.f32 %v3968_v7, %v3934_v39  ;;  %2621 = vmatmul.f32.gmra.mxu1 %v347_v59  ;;  %3332 = vmatmul.f32.gmra.mxu3 %v821_v50  ;;  %v4544_v39 = vld [vmem:[#allocation10 + $0x58] sm:$0xff]  ;;  %v3936_v50 = vmul.f32 %v6336_v47, %v6300_v31  ;;  %v3937_v31 = vmul.f32 %v6336_v47, %v6306_v5 }
 0x322   :  { %4553 = vmatpush.msrb.mxu2 %v4544_v39  ;;  %4785 = vmatpush.msrb.mxu3 %v4544_v39  ;;  %v3938_v5 = vmul.f32 %v6336_v47, %v6312_v11  ;;  %v3939_v11 = vmul.f32 %v6336_v47, %v6318_v37  ;;  %v3940_v37 = vmul.f32 %v6336_v47, %v6324_v52 }
 0x323   :  { %9223 = vst [vmem:[#allocation205_spill] sm:$0xff] %v6563_v41  ;;  %v1978_v29 = vpop.f32.mrf.mxu2  ;;  %v3941_v52 = vmul.f32 %v6336_v47, %v6330_v15 }
 0x324   :  { %v3285_v27 = vpop.f32.mrf.mxu3 }
 0x325   :  { %v3286_v38 = vadd.f32 %v3285_v27, %v1978_v29  ;;  %v6567_v53 = vpop.f32.mrf.mxu0  ;;  %v350_v27 = vld [vmem:[#allocation5 + $0x5e0] sm:$0xff] }
 0x326   :  { %v6569_v60 = vpop.f32.mrf.mxu1 }
 0x327   :  { %v3969_v34 = vmul.f32 %v6338_v30, %v3286_v38 }
 0x328   :  { %1317 = vmatmul.f32.gmra.mxu0 %v348_v4  ;;  %2028 = vmatmul.f32.gmra.mxu2 %v822_v35  ;;  %v351_v4 = vld [vmem:[#allocation5 + $0x5e8] sm:$0xff] }
 0x329   :  { %v6572_v59 = vadd.f32 %v3969_v34, %v3935_v51  ;;  %2624 = vmatmul.f32.gmra.mxu1 %v349_v54  ;;  %3335 = vmatmul.f32.gmra.mxu3 %v823_v61  ;;  %v825_v51 = vld [vmem:[#allocation5 + $0x14b8] sm:$0xff] }
 0x32b   :  { %9224 = vst [vmem:[#allocation206_spill] sm:$0xff] %v6572_v59  ;;  %v1981_v44 = vpop.f32.mrf.mxu2  ;;  %v361_v59 = vld [vmem:[#allocation5 + $0x638] sm:$0xff] }
 0x32c   :  { %v3288_v20 = vpop.f32.mrf.mxu3 }
 0x32d   :  { %v3289_v7 = vadd.f32 %v3288_v20, %v1981_v44  ;;  %v6576_v29 = vpop.f32.mrf.mxu0  ;;  %v352_v20 = vld [vmem:[#allocation5 + $0x5f0] sm:$0xff] }
 0x32e   :  { %v6578_v38 = vpop.f32.mrf.mxu1 }
 0x32f   :  { %v3970_v54 = vmul.f32 %v6338_v30, %v3289_v7  ;;  %v827_v7 = vld [vmem:[#allocation5 + $0x14c8] sm:$0xff] }
 0x330   :  { %1320 = vmatmul.f32.gmra.mxu0 %v350_v27  ;;  %2031 = vmatmul.f32.gmra.mxu2 %v824_v62 }
 0x331   :  { %v6581_v35 = vadd.f32 %v3970_v54, %v3936_v50  ;;  %2627 = vmatmul.f32.gmra.mxu1 %v351_v4  ;;  %3338 = vmatmul.f32.gmra.mxu3 %v825_v51 }
 0x333   :  { %9225 = vst [vmem:[#allocation207_spill] sm:$0xff] %v6581_v35  ;;  %v1984_v61 = vpop.f32.mrf.mxu2  ;;  %v357_v35 = vld [vmem:[#allocation5 + $0x618] sm:$0xff] }
 0x334   :  { %v3291_v34 = vpop.f32.mrf.mxu3 }
 0x335   :  { %v3292_v39 = vadd.f32 %v3291_v34, %v1984_v61  ;;  %v6585_v44 = vpop.f32.mrf.mxu0  ;;  %v354_v61 = vld [vmem:[#allocation5 + $0x600] sm:$0xff]  ;;  %v828_v34 = vld [vmem:[#allocation5 + $0x14d0] sm:$0xff] }
 0x336   :  { %9226 = vst [vmem:[#allocation208_spill] sm:$0xff] %v6585_v44  ;;  %v6587_v25 = vpop.f32.mrf.mxu1  ;;  %v950_v44 = vld [vmem:[#allocation5 + $0x18a0] sm:$0xff] }
 0x337   :  { %9227 = vst [vmem:[#allocation209_spill] sm:$0xff] %v6587_v25  ;;  %v3971_v62 = vmul.f32 %v6338_v30, %v3292_v39  ;;  %v829_v39 = vld [vmem:[#allocation5 + $0x14d8] sm:$0xff] }
 0x338   :  { %1323 = vmatmul.f32.gmra.mxu0 %v352_v20  ;;  %2034 = vmatmul.f32.gmra.mxu2 %v826_v13 }
 0x339   :  { %v6590_v50 = vadd.f32 %v3971_v62, %v3937_v31  ;;  %2630 = vmatmul.f32.gmra.mxu1 %v353_v45  ;;  %3341 = vmatmul.f32.gmra.mxu3 %v827_v7 }
 0x33b   :  { %9228 = vst [vmem:[#allocation210_spill] sm:$0xff] %v6590_v50  ;;  %v1987_v27 = vpop.f32.mrf.mxu2 }
 0x33c   :  { %v3294_v4 = vpop.f32.mrf.mxu3 }
 0x33d   :  { %v3295_v51 = vadd.f32 %v3294_v4, %v1987_v27  ;;  %v6594_v54 = vpop.f32.mrf.mxu0  ;;  %v356_v27 = vld [vmem:[#allocation5 + $0x610] sm:$0xff]  ;;  %v830_v4 = vld [vmem:[#allocation5 + $0x14e0] sm:$0xff] }
 0x33e   :  { %9229 = vst [vmem:[#allocation211_spill] sm:$0xff] %v6594_v54  ;;  %v6596_v63 = vpop.f32.mrf.mxu1  ;;  %v445_v54 = vld [vmem:[#allocation5 + $0x8d8] sm:$0xff] }
 0x33f   :  { %9230 = vst [vmem:[#allocation212_spill] sm:$0xff] %v6596_v63  ;;  %v3972_v13 = vmul.f32 %v6338_v30, %v3295_v51  ;;  %v831_v51 = vld [vmem:[#allocation5 + $0x14e8] sm:$0xff] }
 0x340   :  { %1326 = vmatmul.f32.gmra.mxu0 %v354_v61  ;;  %2037 = vmatmul.f32.gmra.mxu2 %v828_v34 }
 0x341   :  { %v6599_v45 = vadd.f32 %v3972_v13, %v3938_v5  ;;  %2633 = vmatmul.f32.gmra.mxu1 %v355_v21  ;;  %3344 = vmatmul.f32.gmra.mxu3 %v829_v39 }
 0x343   :  { %9231 = vst [vmem:[#allocation213_spill] sm:$0xff] %v6599_v45  ;;  %v1990_v31 = vpop.f32.mrf.mxu2 }
 0x344   :  { %v3297_v20 = vpop.f32.mrf.mxu3 }
 0x345   :  { %v3298_v7 = vadd.f32 %v3297_v20, %v1990_v31  ;;  %v6603_v62 = vpop.f32.mrf.mxu0  ;;  %v358_v31 = vld [vmem:[#allocation5 + $0x620] sm:$0xff]  ;;  %v832_v20 = vld [vmem:[#allocation5 + $0x14f0] sm:$0xff] }
 0x346   :  { %9232 = vst [vmem:[#allocation214_spill] sm:$0xff] %v6603_v62  ;;  %v6605_v50 = vpop.f32.mrf.mxu1  ;;  %v4541_v62 = vld [vmem:[#allocation10 + $0x40] sm:$0xff] }
 0x347   :  { %9233 = vst [vmem:[#allocation215_spill] sm:$0xff] %v6605_v50  ;;  %v3973_v61 = vmul.f32 %v6338_v30, %v3298_v7  ;;  %v833_v7 = vld [vmem:[#allocation5 + $0x14f8] sm:$0xff] }
 0x348   :  { %1329 = vmatmul.f32.gmra.mxu0 %v356_v27  ;;  %2040 = vmatmul.f32.gmra.mxu2 %v830_v4 }
 0x349   :  { %v6608_v21 = vadd.f32 %v3973_v61, %v3939_v11  ;;  %2636 = vmatmul.f32.gmra.mxu1 %v357_v35  ;;  %3347 = vmatmul.f32.gmra.mxu3 %v831_v51 }
 0x34b   :  { %9234 = vst [vmem:[#allocation216_spill] sm:$0xff] %v6608_v21  ;;  %v1993_v5 = vpop.f32.mrf.mxu2 }
 0x34c   :  { %v3300_v34 = vpop.f32.mrf.mxu3 }
 0x34d   :  { %v3301_v39 = vadd.f32 %v3300_v34, %v1993_v5  ;;  %v6612_v13 = vpop.f32.mrf.mxu0  ;;  %v360_v5 = vld [vmem:[#allocation5 + $0x630] sm:$0xff]  ;;  %v834_v34 = vld [vmem:[#allocation5 + $0x1500] sm:$0xff] }
 0x34e   :  { %9235 = vst [vmem:[#allocation217_spill] sm:$0xff] %v6612_v13  ;;  %v6614_v45 = vpop.f32.mrf.mxu1 }
 0x34f   :  { %9236 = vst [vmem:[#allocation218_spill] sm:$0xff] %v6614_v45  ;;  %v3974_v27 = vmul.f32 %v6338_v30, %v3301_v39  ;;  %v835_v30 = vld [vmem:[#allocation5 + $0x1508] sm:$0xff] }
 0x350   :  { %1332 = vmatmul.f32.gmra.mxu0 %v358_v31  ;;  %2043 = vmatmul.f32.gmra.mxu2 %v832_v20  ;;  %v5731_v39 = vld [vmem:[#allocation7 + $0x8] ss:$0 sm:$0xff] }
 0x351   :  { %v6617_v35 = vadd.f32 %v3974_v27, %v3940_v37  ;;  %2639 = vmatmul.f32.gmra.mxu1 %v359_v32  ;;  %3350 = vmatmul.f32.gmra.mxu3 %v833_v7  ;;  %v362_v7 = vld [vmem:[#allocation5 + $0x640] sm:$0xff]  ;;  %v836_v27 = vld [vmem:[#allocation5 + $0x1510] sm:$0xff] }
 0x353   :  { %9237 = vst [vmem:[#allocation219_spill] sm:$0xff] %v6617_v35  ;;  %v1996_v11 = vpop.f32.mrf.mxu2  ;;  %v837_v35 = vld [vmem:[#allocation5 + $0x1518] sm:$0xff] }
 0x354   :  { %v3303_v4 = vpop.f32.mrf.mxu3 }
 0x355   :  { %v3304_v51 = vadd.f32 %v3303_v4, %v1996_v11  ;;  %v6621_v61 = vpop.f32.mrf.mxu0  ;;  %v363_v4 = vld [vmem:[#allocation5 + $0x648] sm:$0xff] }
 0x356   :  { %9238 = vst [vmem:[#allocation220_spill] sm:$0xff] %v6621_v61  ;;  %v6623_v21 = vpop.f32.mrf.mxu1  ;;  %v886_v61 = vld [vmem:[#allocation5 + $0x16a0] sm:$0xff] }
 0x357   :  { %9239 = vst [vmem:[#allocation221_spill] sm:$0xff] %v6623_v21  ;;  %v3975_v31 = vmul.f32 %v5731_v39, %v3304_v51 }
 0x358   :  { %1335 = vmatmul.f32.gmra.mxu0 %v360_v5  ;;  %2046 = vmatmul.f32.gmra.mxu2 %v834_v34  ;;  %v364_v34 = vld [vmem:[#allocation5 + $0x650] sm:$0xff] }
 0x359   :  { %v6625_v32 = vadd.f32 %v3975_v31, %v3941_v52  ;;  %2642 = vmatmul.f32.gmra.mxu1 %v361_v59  ;;  %3353 = vmatmul.f32.gmra.mxu3 %v835_v30  ;;  %v838_v30 = vld [vmem:[#allocation5 + $0x1520] sm:$0xff]  ;;  %v365_v31 = vld [vmem:[#allocation5 + $0x658] sm:$0xff] }
 0x35b   :  { %9240 = vst [vmem:[#allocation222_spill] sm:$0xff] %v6625_v32  ;;  %v1999_v37 = vpop.f32.mrf.mxu2  ;;  %v367_v32 = vld [vmem:[#allocation5 + $0x668] sm:$0xff] }
 0x35c   :  { %v3306_v20 = vpop.f32.mrf.mxu3 }
 0x35d   :  { %v6627_v47 = vadd.f32 %v3306_v20, %v1999_v37  ;;  %v6629_v15 = vpop.f32.mrf.mxu0  ;;  %v839_v37 = vld [vmem:[#allocation5 + $0x1528] sm:$0xff] }
 0x35e   :  { %9241 = vst [vmem:[#allocation223_spill] sm:$0xff] %v6629_v15  ;;  %v6631_v11 = vpop.f32.mrf.mxu1 }
 0x35f   :  { %9242 = vst [vmem:[#allocation224_spill] sm:$0xff] %v6631_v11  ;;  %v883_v11 = vld [vmem:[#allocation5 + $0x1688] sm:$0xff] }
 0x360   :  { %1338 = vmatmul.f32.gmra.mxu0 %v362_v7  ;;  %2049 = vmatmul.f32.gmra.mxu2 %v836_v27 }
 0x361   :  { %2645 = vmatmul.f32.gmra.mxu1 %v363_v4  ;;  %3356 = vmatmul.f32.gmra.mxu3 %v837_v35  ;;  %v366_v4 = vld [vmem:[#allocation5 + $0x660] sm:$0xff] }
 0x363   :  { %v2002_v52 = vpop.f32.mrf.mxu2 }
 0x364   :  { %v3309_v51 = vpop.f32.mrf.mxu3 }
 0x365   :  { %v6633_v59 = vadd.f32 %v3309_v51, %v2002_v52  ;;  %v6635_v5 = vpop.f32.mrf.mxu0  ;;  %v840_v52 = vld [vmem:[#allocation5 + $0x1530] sm:$0xff] }
 0x366   :  { %9243 = vst [vmem:[#allocation225_spill] sm:$0xff] %v6635_v5  ;;  %v6637_v39 = vpop.f32.mrf.mxu1 }
 0x367   :  { %9244 = vst [vmem:[#allocation226_spill] sm:$0xff] %v6637_v39 }
 0x368   :  { %1341 = vmatmul.f32.gmra.mxu0 %v364_v34  ;;  %2052 = vmatmul.f32.gmra.mxu2 %v838_v30 }
 0x369   :  { %2648 = vmatmul.f32.gmra.mxu1 %v365_v31  ;;  %3359 = vmatmul.f32.gmra.mxu3 %v839_v37 }
 0x36b   :  { %v2005_v20 = vpop.f32.mrf.mxu2 }
 0x36c   :  { %v3312_v7 = vpop.f32.mrf.mxu3 }
 0x36d   :  { %v6639_v27 = vadd.f32 %v3312_v7, %v2005_v20  ;;  %v6641_v35 = vpop.f32.mrf.mxu0  ;;  %v368_v20 = vld [vmem:[#allocation5 + $0x670] sm:$0xff]  ;;  %v842_v7 = vld [vmem:[#allocation5 + $0x1540] sm:$0xff] }
 0x36e   :  { %9245 = vst [vmem:[#allocation227_spill] sm:$0xff] %v6641_v35  ;;  %v6643_v51 = vpop.f32.mrf.mxu1 }
 0x36f   :  { %9246 = vst [vmem:[#allocation228_spill] sm:$0xff] %v6643_v51  ;;  %v851_v51 = vld [vmem:[#allocation5 + $0x1588] sm:$0xff] }
 0x370   :  { %1344 = vmatmul.f32.gmra.mxu0 %v366_v4  ;;  %2055 = vmatmul.f32.gmra.mxu2 %v840_v52 }
 0x371   :  { %2651 = vmatmul.f32.gmra.mxu1 %v367_v32  ;;  %3362 = vmatmul.f32.gmra.mxu3 %v841_v1 }
 0x373   :  { %v2008_v34 = vpop.f32.mrf.mxu2 }
 0x374   :  { %v3315_v30 = vpop.f32.mrf.mxu3 }
 0x375   :  { %v6645_v31 = vadd.f32 %v3315_v30, %v2008_v34  ;;  %v6647_v37 = vpop.f32.mrf.mxu0  ;;  %v370_v34 = vld [vmem:[#allocation5 + $0x680] sm:$0xff]  ;;  %v844_v30 = vld [vmem:[#allocation5 + $0x1550] sm:$0xff] }
 0x376   :  { %9247 = vst [vmem:[#allocation229_spill] sm:$0xff] %v6647_v37  ;;  %v6649_v41 = vpop.f32.mrf.mxu1  ;;  %v845_v37 = vld [vmem:[#allocation5 + $0x1558] sm:$0xff] }
 0x377   :  { %9248 = vst [vmem:[#allocation230_spill] sm:$0xff] %v6649_v41 }
 0x378   :  { %1347 = vmatmul.f32.gmra.mxu0 %v368_v20  ;;  %2058 = vmatmul.f32.gmra.mxu2 %v842_v7 }
 0x379   :  { %2654 = vmatmul.f32.gmra.mxu1 %v369_v3  ;;  %3365 = vmatmul.f32.gmra.mxu3 %v843_v10 }
 0x37b   :  { %v2011_v4 = vpop.f32.mrf.mxu2 }
 0x37c   :  { %v3318_v52 = vpop.f32.mrf.mxu3 }
 0x37d   :  { %v6651_v32 = vadd.f32 %v3318_v52, %v2011_v4  ;;  %v6653_v1 = vpop.f32.mrf.mxu0  ;;  %v372_v4 = vld [vmem:[#allocation5 + $0x690] sm:$0xff]  ;;  %v846_v52 = vld [vmem:[#allocation5 + $0x1560] sm:$0xff] }
 0x37e   :  { %9249 = vst [vmem:[#allocation231_spill] sm:$0xff] %v6653_v1  ;;  %v6655_v58 = vpop.f32.mrf.mxu1  ;;  %v373_v1 = vld [vmem:[#allocation5 + $0x698] sm:$0xff] }
 0x37f   :  { %9250 = vst [vmem:[#allocation232_spill] sm:$0xff] %v6655_v58 }
 0x380   :  { %1350 = vmatmul.f32.gmra.mxu0 %v370_v34  ;;  %2061 = vmatmul.f32.gmra.mxu2 %v844_v30  ;;  %v4543_v34 = vld [vmem:[#allocation10 + $0x50] sm:$0xff] }
 0x381   :  { %2657 = vmatmul.f32.gmra.mxu1 %v371_v9  ;;  %3368 = vmatmul.f32.gmra.mxu3 %v845_v37 }
 0x382   :  { %4554 = vmatpush.msrb.mxu2 %v4543_v34  ;;  %4786 = vmatpush.msrb.mxu3 %v4543_v34  ;;  %v376_v34 = vld [vmem:[#allocation5 + $0x6b0] sm:$0xff] }
 0x383   :  { %v2014_v20 = vpop.f32.mrf.mxu2 }
 0x384   :  { %v3321_v7 = vpop.f32.mrf.mxu3 }
 0x385   :  { %v6657_v3 = vadd.f32 %v3321_v7, %v2014_v20  ;;  %v6659_v10 = vpop.f32.mrf.mxu0  ;;  %v374_v7 = vld [vmem:[#allocation5 + $0x6a0] sm:$0xff] }
 0x386   :  { %9251 = vst [vmem:[#allocation233_spill] sm:$0xff] %v6659_v10  ;;  %v6661_v41 = vpop.f32.mrf.mxu1  ;;  %v848_v10 = vld [vmem:[#allocation5 + $0x1570] sm:$0xff] }
 0x387   :  { %9252 = vst [vmem:[#allocation234_spill] sm:$0xff] %v6661_v41  ;;  %v375_v41 = vld [vmem:[#allocation5 + $0x6a8] sm:$0xff] }
 0x388   :  { %1353 = vmatmul.f32.gmra.mxu0 %v372_v4  ;;  %2064 = vmatmul.f32.gmra.mxu2 %v846_v52 }
 0x389   :  { %2660 = vmatmul.f32.gmra.mxu1 %v373_v1  ;;  %3371 = vmatmul.f32.gmra.mxu3 %v847_v26 }
 0x38b   :  { %v2017_v9 = vpop.f32.mrf.mxu2 }
 0x38c   :  { %v3324_v37 = vpop.f32.mrf.mxu3 }
 0x38d   :  { %v6663_v30 = vadd.f32 %v3324_v37, %v2017_v9  ;;  %v6665_v20 = vpop.f32.mrf.mxu0  ;;  %v850_v9 = vld [vmem:[#allocation5 + $0x1580] sm:$0xff] }
 0x38e   :  { %9253 = vst [vmem:[#allocation235_spill] sm:$0xff] %v6665_v20  ;;  %v6667_v58 = vpop.f32.mrf.mxu1  ;;  %v377_v20 = vld [vmem:[#allocation5 + $0x6b8] sm:$0xff] }
 0x38f   :  { %9254 = vst [vmem:[#allocation236_spill] sm:$0xff] %v6667_v58  ;;  %v6675_v58 = vld [vmem:[#allocation8 + $0x1] ss:$0 sm:$0xff] }
 0x390   :  { %1356 = vmatmul.f32.gmra.mxu0 %v374_v7  ;;  %2067 = vmatmul.f32.gmra.mxu2 %v848_v10  ;;  %v4266_v7 = vadd.f32 %v6675_v58, %v6627_v47  ;;  %v4267_v47 = vadd.f32 %v6675_v58, %v6633_v59  ;;  %v4268_v59 = vadd.f32 %v6675_v58, %v6639_v27 }
 0x391   :  { %2663 = vmatmul.f32.gmra.mxu1 %v375_v41  ;;  %3374 = vmatmul.f32.gmra.mxu3 %v849_v12  ;;  %v6677_v12 = vld [vmem:[#allocation7 + $0x9] ss:$0 sm:$0xff]  ;;  %v4269_v27 = vadd.f32 %v6675_v58, %v6645_v31  ;;  %v4270_v31 = vadd.f32 %v6675_v58, %v6651_v32  ;;  %v4271_v32 = vadd.f32 %v6675_v58, %v6657_v3 }
 0x392   :  { %v4272_v3 = vadd.f32 %v6675_v58, %v6663_v30 }
 0x393   :  { %v2020_v26 = vpop.f32.mrf.mxu2 }
 0x394   :  { %v3327_v1 = vpop.f32.mrf.mxu3 }
 0x395   :  { %v6669_v4 = vadd.f32 %v3327_v1, %v2020_v26  ;;  %v6671_v52 = vpop.f32.mrf.mxu0 }
 0x396   :  { %9255 = vst [vmem:[#allocation237_spill] sm:$0xff] %v6671_v52  ;;  %v6673_v37 = vpop.f32.mrf.mxu1  ;;  %v378_v52 = vld [vmem:[#allocation5 + $0x6c0] sm:$0xff] }
 0x397   :  { %9256 = vst [vmem:[#allocation238_spill] sm:$0xff] %v6673_v37  ;;  %v852_v37 = vld [vmem:[#allocation5 + $0x1590] sm:$0xff]  ;;  %v4273_v30 = vadd.f32 %v6675_v58, %v6669_v4 }
 0x398   :  { %1359 = vmatmul.f32.gmra.mxu0 %v376_v34  ;;  %2070 = vmatmul.f32.gmra.mxu2 %v850_v9  ;;  %v379_v34 = vld [vmem:[#allocation5 + $0x6c8] sm:$0xff]  ;;  %v853_v9 = vld [vmem:[#allocation5 + $0x1598] sm:$0xff] }
 0x399   :  { %2666 = vmatmul.f32.gmra.mxu1 %v377_v20  ;;  %3377 = vmatmul.f32.gmra.mxu3 %v851_v51 }
 0x39b   :  { %v2023_v41 = vpop.f32.mrf.mxu2 }
 0x39c   :  { %v3330_v10 = vpop.f32.mrf.mxu3 }
 0x39d   :  { %v3331_v26 = vadd.f32 %v3330_v10, %v2023_v41  ;;  %v6681_v1 = vpop.f32.mrf.mxu0 }
 0x39e   :  { %9257 = vst [vmem:[#allocation239_spill] sm:$0xff] %v6681_v1  ;;  %v6683_v35 = vpop.f32.mrf.mxu1  ;;  %v380_v1 = vld [vmem:[#allocation5 + $0x6d0] sm:$0xff] }
 0x39f   :  { %9258 = vst [vmem:[#allocation240_spill] sm:$0xff] %v6683_v35  ;;  %v4276_v36 = vmul.f32 %v6677_v12, %v3331_v26  ;;  %v854_v35 = vld [vmem:[#allocation5 + $0x15a0] sm:$0xff]  ;;  %v855_v26 = vld [vmem:[#allocation5 + $0x15a8] sm:$0xff] }
 0x3a0   :  { %1362 = vmatmul.f32.gmra.mxu0 %v378_v52  ;;  %2073 = vmatmul.f32.gmra.mxu2 %v852_v37 }
 0x3a1   :  { %v6686_v51 = vadd.f32 %v4276_v36, %v4266_v7  ;;  %2669 = vmatmul.f32.gmra.mxu1 %v379_v34  ;;  %3380 = vmatmul.f32.gmra.mxu3 %v853_v9  ;;  %v382_v9 = vld [vmem:[#allocation5 + $0x6e0] sm:$0xff] }
 0x3a3   :  { %v2026_v20 = vpop.f32.mrf.mxu2 }
 0x3a4   :  { %v3333_v39 = vpop.f32.mrf.mxu3 }
 0x3a5   :  { %v3334_v41 = vadd.f32 %v3333_v39, %v2026_v20  ;;  %v6690_v10 = vpop.f32.mrf.mxu0  ;;  %v856_v20 = vld [vmem:[#allocation5 + $0x15b0] sm:$0xff] }
 0x3a6   :  { %9259 = vst [vmem:[#allocation241_spill] sm:$0xff] %v6690_v10  ;;  %v6692_v5 = vpop.f32.mrf.mxu1  ;;  %v383_v10 = vld [vmem:[#allocation5 + $0x6e8] sm:$0xff] }
 0x3a7   :  { %9260 = vst [vmem:[#allocation242_spill] sm:$0xff] %v6692_v5  ;;  %v4277_v52 = vmul.f32 %v6677_v12, %v3334_v41  ;;  %v857_v41 = vld [vmem:[#allocation5 + $0x15b8] sm:$0xff] }
 0x3a8   :  { %1365 = vmatmul.f32.gmra.mxu0 %v380_v1  ;;  %2076 = vmatmul.f32.gmra.mxu2 %v854_v35 }
 0x3a9   :  { %v6695_v36 = vadd.f32 %v4277_v52, %v4267_v47  ;;  %2672 = vmatmul.f32.gmra.mxu1 %v381_v43  ;;  %3383 = vmatmul.f32.gmra.mxu3 %v855_v26 }
 0x3ab   :  { %v2029_v37 = vpop.f32.mrf.mxu2 }
 0x3ac   :  { %v3336_v7 = vpop.f32.mrf.mxu3 }
 0x3ad   :  { %v3337_v39 = vadd.f32 %v3336_v7, %v2029_v37  ;;  %v6699_v34 = vpop.f32.mrf.mxu0  ;;  %v384_v37 = vld [vmem:[#allocation5 + $0x6f0] sm:$0xff]  ;;  %v858_v7 = vld [vmem:[#allocation5 + $0x15c0] sm:$0xff] }
 0x3ae   :  { %9261 = vst [vmem:[#allocation243_spill] sm:$0xff] %v6699_v34  ;;  %v6701_v5 = vpop.f32.mrf.mxu1  ;;  %v385_v34 = vld [vmem:[#allocation5 + $0x6f8] sm:$0xff] }
 0x3af   :  { %9262 = vst [vmem:[#allocation244_spill] sm:$0xff] %v6701_v5  ;;  %v4278_v35 = vmul.f32 %v6677_v12, %v3337_v39  ;;  %v859_v39 = vld [vmem:[#allocation5 + $0x15c8] sm:$0xff] }
 0x3b0   :  { %1368 = vmatmul.f32.gmra.mxu0 %v382_v9  ;;  %2079 = vmatmul.f32.gmra.mxu2 %v856_v20 }
 0x3b1   :  { %v6704_v43 = vadd.f32 %v4278_v35, %v4268_v59  ;;  %2675 = vmatmul.f32.gmra.mxu1 %v383_v10  ;;  %3386 = vmatmul.f32.gmra.mxu3 %v857_v41 }
 0x3b3   :  { %v2032_v1 = vpop.f32.mrf.mxu2 }
 0x3b4   :  { %v3339_v47 = vpop.f32.mrf.mxu3 }
 0x3b5   :  { %v3340_v26 = vadd.f32 %v3339_v47, %v2032_v1  ;;  %v6708_v52 = vpop.f32.mrf.mxu0  ;;  %v386_v1 = vld [vmem:[#allocation5 + $0x700] sm:$0xff]  ;;  %v860_v47 = vld [vmem:[#allocation5 + $0x15d0] sm:$0xff] }
 0x3b6   :  { %9263 = vst [vmem:[#allocation245_spill] sm:$0xff] %v6708_v52  ;;  %v6710_v5 = vpop.f32.mrf.mxu1  ;;  %v387_v52 = vld [vmem:[#allocation5 + $0x708] sm:$0xff] }
 0x3b7   :  { %9264 = vst [vmem:[#allocation246_spill] sm:$0xff] %v6710_v5  ;;  %v4279_v9 = vmul.f32 %v6677_v12, %v3340_v26  ;;  %v861_v26 = vld [vmem:[#allocation5 + $0x15d8] sm:$0xff] }
 0x3b8   :  { %1371 = vmatmul.f32.gmra.mxu0 %v384_v37  ;;  %2082 = vmatmul.f32.gmra.mxu2 %v858_v7 }
 0x3b9   :  { %v6713_v10 = vadd.f32 %v4279_v9, %v4269_v27  ;;  %2678 = vmatmul.f32.gmra.mxu1 %v385_v34  ;;  %3389 = vmatmul.f32.gmra.mxu3 %v859_v39 }
 0x3bb   :  { %v2035_v59 = vpop.f32.mrf.mxu2 }
 0x3bc   :  { %v3342_v20 = vpop.f32.mrf.mxu3 }
 0x3bd   :  { %v3343_v41 = vadd.f32 %v3342_v20, %v2035_v59  ;;  %v6717_v35 = vpop.f32.mrf.mxu0  ;;  %v388_v59 = vld [vmem:[#allocation5 + $0x710] sm:$0xff]  ;;  %v862_v20 = vld [vmem:[#allocation5 + $0x15e0] sm:$0xff] }
 0x3be   :  { %9265 = vst [vmem:[#allocation247_spill] sm:$0xff] %v6717_v35  ;;  %v6719_v5 = vpop.f32.mrf.mxu1  ;;  %v389_v35 = vld [vmem:[#allocation5 + $0x718] sm:$0xff] }
 0x3bf   :  { %9266 = vst [vmem:[#allocation248_spill] sm:$0xff] %v6719_v5  ;;  %v4280_v37 = vmul.f32 %v6677_v12, %v3343_v41  ;;  %v863_v41 = vld [vmem:[#allocation5 + $0x15e8] sm:$0xff] }
 0x3c0   :  { %1374 = vmatmul.f32.gmra.mxu0 %v386_v1  ;;  %2085 = vmatmul.f32.gmra.mxu2 %v860_v47 }
 0x3c1   :  { %v6722_v34 = vadd.f32 %v4280_v37, %v4270_v31  ;;  %2681 = vmatmul.f32.gmra.mxu1 %v387_v52  ;;  %3392 = vmatmul.f32.gmra.mxu3 %v861_v26 }
 0x3c3   :  { %v2038_v27 = vpop.f32.mrf.mxu2 }
 0x3c4   :  { %v3345_v7 = vpop.f32.mrf.mxu3 }
 0x3c5   :  { %v3346_v39 = vadd.f32 %v3345_v7, %v2038_v27  ;;  %v6726_v9 = vpop.f32.mrf.mxu0  ;;  %v390_v27 = vld [vmem:[#allocation5 + $0x720] sm:$0xff]  ;;  %v864_v7 = vld [vmem:[#allocation5 + $0x15f0] sm:$0xff] }
 0x3c6   :  { %9267 = vst [vmem:[#allocation249_spill] sm:$0xff] %v6726_v9  ;;  %v6728_v5 = vpop.f32.mrf.mxu1  ;;  %v391_v9 = vld [vmem:[#allocation5 + $0x728] sm:$0xff] }
 0x3c7   :  { %9268 = vst [vmem:[#allocation250_spill] sm:$0xff] %v6728_v5  ;;  %v4281_v1 = vmul.f32 %v6677_v12, %v3346_v39  ;;  %v865_v39 = vld [vmem:[#allocation5 + $0x15f8] sm:$0xff] }
 0x3c8   :  { %1377 = vmatmul.f32.gmra.mxu0 %v388_v59  ;;  %2088 = vmatmul.f32.gmra.mxu2 %v862_v20 }
 0x3c9   :  { %v6731_v52 = vadd.f32 %v4281_v1, %v4271_v32  ;;  %2684 = vmatmul.f32.gmra.mxu1 %v389_v35  ;;  %3395 = vmatmul.f32.gmra.mxu3 %v863_v41 }
 0x3cb   :  { %v2041_v31 = vpop.f32.mrf.mxu2 }
 0x3cc   :  { %v3348_v47 = vpop.f32.mrf.mxu3 }
 0x3cd   :  { %v3349_v26 = vadd.f32 %v3348_v47, %v2041_v31  ;;  %v6735_v37 = vpop.f32.mrf.mxu0  ;;  %v392_v31 = vld [vmem:[#allocation5 + $0x730] sm:$0xff]  ;;  %v866_v47 = vld [vmem:[#allocation5 + $0x1600] sm:$0xff] }
 0x3ce   :  { %9269 = vst [vmem:[#allocation251_spill] sm:$0xff] %v6735_v37  ;;  %v6737_v5 = vpop.f32.mrf.mxu1  ;;  %v393_v37 = vld [vmem:[#allocation5 + $0x738] sm:$0xff] }
 0x3cf   :  { %9270 = vst [vmem:[#allocation252_spill] sm:$0xff] %v6737_v5  ;;  %v4282_v59 = vmul.f32 %v6677_v12, %v3349_v26  ;;  %v867_v26 = vld [vmem:[#allocation5 + $0x1608] sm:$0xff] }
 0x3d0   :  { %1380 = vmatmul.f32.gmra.mxu0 %v390_v27  ;;  %2091 = vmatmul.f32.gmra.mxu2 %v864_v7 }
 0x3d1   :  { %v6740_v35 = vadd.f32 %v4282_v59, %v4272_v3  ;;  %2687 = vmatmul.f32.gmra.mxu1 %v391_v9  ;;  %3398 = vmatmul.f32.gmra.mxu3 %v865_v39  ;;  %v394_v39 = vld [vmem:[#allocation5 + $0x740] sm:$0xff]  ;;  %v868_v59 = vld [vmem:[#allocation5 + $0x1610] sm:$0xff] }
 0x3d3   :  { %v2044_v32 = vpop.f32.mrf.mxu2 }
 0x3d4   :  { %v3351_v20 = vpop.f32.mrf.mxu3 }
 0x3d5   :  { %v3352_v41 = vadd.f32 %v3351_v20, %v2044_v32  ;;  %v6744_v1 = vpop.f32.mrf.mxu0  ;;  %v395_v20 = vld [vmem:[#allocation5 + $0x748] sm:$0xff] }
 0x3d6   :  { %9271 = vst [vmem:[#allocation253_spill] sm:$0xff] %v6744_v1  ;;  %v6746_v5 = vpop.f32.mrf.mxu1  ;;  %v877_v1 = vld [vmem:[#allocation5 + $0x1658] sm:$0xff] }
 0x3d7   :  { %9272 = vst [vmem:[#allocation254_spill] sm:$0xff] %v6746_v5  ;;  %v4283_v27 = vmul.f32 %v6677_v12, %v3352_v41  ;;  %v869_v5 = vld [vmem:[#allocation5 + $0x1618] sm:$0xff] }
 0x3d8   :  { %1383 = vmatmul.f32.gmra.mxu0 %v392_v31  ;;  %2094 = vmatmul.f32.gmra.mxu2 %v866_v47  ;;  %v396_v31 = vld [vmem:[#allocation5 + $0x750] sm:$0xff]  ;;  %v870_v47 = vld [vmem:[#allocation5 + $0x1620] sm:$0xff] }
 0x3d9   :  { %v6749_v9 = vadd.f32 %v4283_v27, %v4273_v30  ;;  %2690 = vmatmul.f32.gmra.mxu1 %v393_v37  ;;  %3401 = vmatmul.f32.gmra.mxu3 %v867_v26  ;;  %v397_v27 = vld [vmem:[#allocation5 + $0x758] sm:$0xff] }
 0x3db   :  { %v2047_v3 = vpop.f32.mrf.mxu2 }
 0x3dc   :  { %v3354_v7 = vpop.f32.mrf.mxu3 }
 0x3dd   :  { %v6751_v58 = vadd.f32 %v3354_v7, %v2047_v3  ;;  %v6753_v4 = vpop.f32.mrf.mxu0  ;;  %v871_v3 = vld [vmem:[#allocation5 + $0x1628] sm:$0xff] }
 0x3de   :  { %9273 = vst [vmem:[#allocation255_spill] sm:$0xff] %v6753_v4  ;;  %v6755_v32 = vpop.f32.mrf.mxu1  ;;  %v873_v4 = vld [vmem:[#allocation5 + $0x1638] sm:$0xff] }
 0x3df   :  { %9274 = vst [vmem:[#allocation256_spill] sm:$0xff] %v6755_v32  ;;  %v399_v32 = vld [vmem:[#allocation5 + $0x768] sm:$0xff] }
 0x3e0   :  { %1386 = vmatmul.f32.gmra.mxu0 %v394_v39  ;;  %2097 = vmatmul.f32.gmra.mxu2 %v868_v59 }
 0x3e1   :  { %2693 = vmatmul.f32.gmra.mxu1 %v395_v20  ;;  %3404 = vmatmul.f32.gmra.mxu3 %v869_v5  ;;  %v398_v20 = vld [vmem:[#allocation5 + $0x760] sm:$0xff] }
 0x3e3   :  { %v2050_v12 = vpop.f32.mrf.mxu2 }
 0x3e4   :  { %v3357_v30 = vpop.f32.mrf.mxu3 }
 0x3e5   :  { %v6757_v37 = vadd.f32 %v3357_v30, %v2050_v12  ;;  %v6759_v41 = vpop.f32.mrf.mxu0  ;;  %v872_v12 = vld [vmem:[#allocation5 + $0x1630] sm:$0xff] }
 0x3e6   :  { %9275 = vst [vmem:[#allocation257_spill] sm:$0xff] %v6759_v41  ;;  %v6761_v26 = vpop.f32.mrf.mxu1  ;;  %v4542_v30 = vld [vmem:[#allocation10 + $0x48] sm:$0xff] }
 0x3e7   :  { %9276 = vst [vmem:[#allocation258_spill] sm:$0xff] %v6761_v26  ;;  %4555 = vmatpush.msrb.mxu2 %v4542_v30  ;;  %4787 = vmatpush.msrb.mxu3 %v4542_v30  ;;  %v401_v26 = vld [vmem:[#allocation5 + $0x778] sm:$0xff]  ;;  %v402_v30 = vld [vmem:[#allocation5 + $0x780] sm:$0xff] }
 0x3e8   :  { %1389 = vmatmul.f32.gmra.mxu0 %v396_v31  ;;  %2100 = vmatmul.f32.gmra.mxu2 %v870_v47 }
 0x3e9   :  { %2696 = vmatmul.f32.gmra.mxu1 %v397_v27  ;;  %3407 = vmatmul.f32.gmra.mxu3 %v871_v3 }
 0x3ea   :  { %4556 = vmatpush.msrb.mxu2 %v4541_v62  ;;  %4788 = vmatpush.msrb.mxu3 %v4541_v62  ;;  %v898_v62 = vld [vmem:[#allocation5 + $0x1700] sm:$0xff] }
 0x3eb   :  { %v2053_v7 = vpop.f32.mrf.mxu2 }
 0x3ec   :  { %v3360_v39 = vpop.f32.mrf.mxu3 }
 0x3ed   :  { %v6763_v59 = vadd.f32 %v3360_v39, %v2053_v7  ;;  %v6765_v5 = vpop.f32.mrf.mxu0  ;;  %v400_v7 = vld [vmem:[#allocation5 + $0x770] sm:$0xff]  ;;  %v874_v39 = vld [vmem:[#allocation5 + $0x1640] sm:$0xff] }
 0x3ee   :  { %9277 = vst [vmem:[#allocation259_spill] sm:$0xff] %v6765_v5  ;;  %v6767_v41 = vpop.f32.mrf.mxu1 }
 0x3ef   :  { %9278 = vst [vmem:[#allocation260_spill] sm:$0xff] %v6767_v41  ;;  %v875_v41 = vld [vmem:[#allocation5 + $0x1648] sm:$0xff] }
 0x3f0   :  { %1392 = vmatmul.f32.gmra.mxu0 %v398_v20  ;;  %2103 = vmatmul.f32.gmra.mxu2 %v872_v12 }
 0x3f1   :  { %2699 = vmatmul.f32.gmra.mxu1 %v399_v32  ;;  %3410 = vmatmul.f32.gmra.mxu3 %v873_v4 }
 0x3f3   :  { %v2056_v31 = vpop.f32.mrf.mxu2 }
 0x3f4   :  { %v3363_v47 = vpop.f32.mrf.mxu3 }
 0x3f5   :  { %v6769_v27 = vadd.f32 %v3363_v47, %v2056_v31  ;;  %v6771_v3 = vpop.f32.mrf.mxu0  ;;  %v876_v31 = vld [vmem:[#allocation5 + $0x1650] sm:$0xff] }
 0x3f6   :  { %9279 = vst [vmem:[#allocation261_spill] sm:$0xff] %v6771_v3  ;;  %v6773_v5 = vpop.f32.mrf.mxu1  ;;  %v403_v3 = vld [vmem:[#allocation5 + $0x788] sm:$0xff] }
 0x3f7   :  { %9280 = vst [vmem:[#allocation262_spill] sm:$0xff] %v6773_v5 }
 0x3f8   :  { %1395 = vmatmul.f32.gmra.mxu0 %v400_v7  ;;  %2106 = vmatmul.f32.gmra.mxu2 %v874_v39 }
 0x3f9   :  { %2702 = vmatmul.f32.gmra.mxu1 %v401_v26  ;;  %3413 = vmatmul.f32.gmra.mxu3 %v875_v41 }
 0x3fb   :  { %v2059_v20 = vpop.f32.mrf.mxu2 }
 0x3fc   :  { %v3366_v12 = vpop.f32.mrf.mxu3 }
 0x3fd   :  { %v6775_v32 = vadd.f32 %v3366_v12, %v2059_v20  ;;  %v6777_v4 = vpop.f32.mrf.mxu0  ;;  %v404_v20 = vld [vmem:[#allocation5 + $0x790] sm:$0xff]  ;;  %v878_v12 = vld [vmem:[#allocation5 + $0x1660] sm:$0xff] }
 0x3fe   :  { %9281 = vst [vmem:[#allocation263_spill] sm:$0xff] %v6777_v4  ;;  %v6779_v47 = vpop.f32.mrf.mxu1  ;;  %v405_v4 = vld [vmem:[#allocation5 + $0x798] sm:$0xff] }
 0x3ff   :  { %9282 = vst [vmem:[#allocation264_spill] sm:$0xff] %v6779_v47 }
 0x400   :  { %1398 = vmatmul.f32.gmra.mxu0 %v402_v30  ;;  %2109 = vmatmul.f32.gmra.mxu2 %v876_v31 }
 0x401   :  { %2705 = vmatmul.f32.gmra.mxu1 %v403_v3  ;;  %3416 = vmatmul.f32.gmra.mxu3 %v877_v1 }
 0x403   :  { %v2062_v7 = vpop.f32.mrf.mxu2 }
 0x404   :  { %v3369_v39 = vpop.f32.mrf.mxu3 }
 0x405   :  { %v6781_v26 = vadd.f32 %v3369_v39, %v2062_v7  ;;  %v6783_v41 = vpop.f32.mrf.mxu0  ;;  %v406_v7 = vld [vmem:[#allocation5 + $0x7a0] sm:$0xff]  ;;  %v880_v39 = vld [vmem:[#allocation5 + $0x1670] sm:$0xff] }
 0x406   :  { %9283 = vst [vmem:[#allocation265_spill] sm:$0xff] %v6783_v41  ;;  %v6785_v5 = vpop.f32.mrf.mxu1  ;;  %v407_v41 = vld [vmem:[#allocation5 + $0x7a8] sm:$0xff] }
 0x407   :  { %9284 = vst [vmem:[#allocation266_spill] sm:$0xff] %v6785_v5 }
 0x408   :  { %1401 = vmatmul.f32.gmra.mxu0 %v404_v20  ;;  %2112 = vmatmul.f32.gmra.mxu2 %v878_v12 }
 0x409   :  { %2708 = vmatmul.f32.gmra.mxu1 %v405_v4  ;;  %3419 = vmatmul.f32.gmra.mxu3 %v879_v19 }
 0x40b   :  { %v2065_v30 = vpop.f32.mrf.mxu2 }
 0x40c   :  { %v3372_v31 = vpop.f32.mrf.mxu3 }
 0x40d   :  { %v6787_v3 = vadd.f32 %v3372_v31, %v2065_v30  ;;  %v6789_v1 = vpop.f32.mrf.mxu0  ;;  %v408_v30 = vld [vmem:[#allocation5 + $0x7b0] sm:$0xff]  ;;  %v882_v31 = vld [vmem:[#allocation5 + $0x1680] sm:$0xff] }
 0x40e   :  { %9285 = vst [vmem:[#allocation267_spill] sm:$0xff] %v6789_v1  ;;  %v6791_v47 = vpop.f32.mrf.mxu1  ;;  %v409_v1 = vld [vmem:[#allocation5 + $0x7b8] sm:$0xff] }
 0x40f   :  { %9286 = vst [vmem:[#allocation268_spill] sm:$0xff] %v6791_v47  ;;  %v6799_v47 = vld [vmem:[#allocation7 + $0xa] ss:$0 sm:$0xff] }
 0x410   :  { %1404 = vmatmul.f32.gmra.mxu0 %v406_v7  ;;  %2115 = vmatmul.f32.gmra.mxu2 %v880_v39  ;;  %v4286_v39 = vmul.f32 %v6799_v47, %v6751_v58 }
 0x411   :  { %2711 = vmatmul.f32.gmra.mxu1 %v407_v41  ;;  %3422 = vmatmul.f32.gmra.mxu3 %v881_v23  ;;  %v6801_v23 = vld [vmem:[#allocation7 + $0xb] ss:$0 sm:$0xff] }
 0x413   :  { %v2068_v20 = vpop.f32.mrf.mxu2 }
 0x414   :  { %v3375_v12 = vpop.f32.mrf.mxu3 }
 0x415   :  { %v6793_v4 = vadd.f32 %v3375_v12, %v2068_v20  ;;  %v6795_v19 = vpop.f32.mrf.mxu0 }
 0x416   :  { %9287 = vst [vmem:[#allocation269_spill] sm:$0xff] %v6795_v19  ;;  %v6797_v5 = vpop.f32.mrf.mxu1  ;;  %v410_v19 = vld [vmem:[#allocation5 + $0x7c0] sm:$0xff] }
 0x417   :  { %9288 = vst [vmem:[#allocation270_spill] sm:$0xff] %v6797_v5  ;;  %v884_v5 = vld [vmem:[#allocation5 + $0x1690] sm:$0xff] }
 0x418   :  { %1407 = vmatmul.f32.gmra.mxu0 %v408_v30  ;;  %2118 = vmatmul.f32.gmra.mxu2 %v882_v31  ;;  %v411_v30 = vld [vmem:[#allocation5 + $0x7c8] sm:$0xff]  ;;  %v885_v31 = vld [vmem:[#allocation5 + $0x1698] sm:$0xff] }
 0x419   :  { %2714 = vmatmul.f32.gmra.mxu1 %v409_v1  ;;  %3425 = vmatmul.f32.gmra.mxu3 %v883_v11 }
 0x41b   :  { %v2071_v41 = vpop.f32.mrf.mxu2 }
 0x41c   :  { %v3378_v7 = vpop.f32.mrf.mxu3 }
 0x41d   :  { %v3379_v20 = vadd.f32 %v3378_v7, %v2071_v41  ;;  %v6805_v12 = vpop.f32.mrf.mxu0  ;;  %v4287_v7 = vmul.f32 %v6799_v47, %v6757_v37 }
 0x41e   :  { %9289 = vst [vmem:[#allocation271_spill] sm:$0xff] %v6805_v12  ;;  %v6807_v15 = vpop.f32.mrf.mxu1 }
 0x41f   :  { %9290 = vst [vmem:[#allocation272_spill] sm:$0xff] %v6807_v15  ;;  %v4296_v42 = vmul.f32 %v6801_v23, %v3379_v20  ;;  %v412_v15 = vld [vmem:[#allocation5 + $0x7d0] sm:$0xff] }
 0x420   :  { %1410 = vmatmul.f32.gmra.mxu0 %v410_v19  ;;  %2121 = vmatmul.f32.gmra.mxu2 %v884_v5  ;;  %v413_v19 = vld [vmem:[#allocation5 + $0x7d8] sm:$0xff]  ;;  %v887_v5 = vld [vmem:[#allocation5 + $0x16a8] sm:$0xff] }
 0x421   :  { %v4372_v11 = vadd.f32 %v4296_v42, %v4286_v39  ;;  %2717 = vmatmul.f32.gmra.mxu1 %v411_v30  ;;  %3428 = vmatmul.f32.gmra.mxu3 %v885_v31  ;;  %v4288_v30 = vmul.f32 %v6799_v47, %v6763_v59 }
 0x423   :  { %v6811_v1 = vadd.f32 %v4372_v11, %v6686_v51  ;;  %v2074_v58 = vpop.f32.mrf.mxu2 }
 0x424   :  { %v3381_v41 = vpop.f32.mrf.mxu3 }
 0x425   :  { %v3382_v12 = vadd.f32 %v3381_v41, %v2074_v58  ;;  %v6815_v21 = vpop.f32.mrf.mxu0  ;;  %v414_v58 = vld [vmem:[#allocation5 + $0x7e0] sm:$0xff]  ;;  %v888_v41 = vld [vmem:[#allocation5 + $0x16b0] sm:$0xff] }
 0x426   :  { %v6817_v2 = vpop.f32.mrf.mxu1 }
 0x427   :  { %v4297_v42 = vmul.f32 %v6801_v23, %v3382_v12 }
 0x428   :  { %1413 = vmatmul.f32.gmra.mxu0 %v412_v15  ;;  %2124 = vmatmul.f32.gmra.mxu2 %v886_v61  ;;  %v415_v15 = vld [vmem:[#allocation5 + $0x7e8] sm:$0xff]  ;;  %v889_v61 = vld [vmem:[#allocation5 + $0x16b8] sm:$0xff] }
 0x429   :  { %v4373_v51 = vadd.f32 %v4297_v42, %v4287_v7  ;;  %2720 = vmatmul.f32.gmra.mxu1 %v413_v19  ;;  %3431 = vmatmul.f32.gmra.mxu3 %v887_v5  ;;  %v4289_v5 = vmul.f32 %v6799_v47, %v6769_v27 }
 0x42b   :  { %v6821_v39 = vadd.f32 %v4373_v51, %v6695_v36  ;;  %v2077_v37 = vpop.f32.mrf.mxu2 }
 0x42c   :  { %v3384_v20 = vpop.f32.mrf.mxu3 }
 0x42d   :  { %v3385_v31 = vadd.f32 %v3384_v20, %v2077_v37  ;;  %v6825_v11 = vpop.f32.mrf.mxu0  ;;  %v416_v37 = vld [vmem:[#allocation5 + $0x7f0] sm:$0xff]  ;;  %v890_v20 = vld [vmem:[#allocation5 + $0x16c0] sm:$0xff] }
 0x42e   :  { %v6827_v45 = vpop.f32.mrf.mxu1 }
 0x42f   :  { %v4298_v12 = vmul.f32 %v6801_v23, %v3385_v31  ;;  %v417_v31 = vld [vmem:[#allocation5 + $0x7f8] sm:$0xff] }
 0x430   :  { %1416 = vmatmul.f32.gmra.mxu0 %v414_v58  ;;  %2127 = vmatmul.f32.gmra.mxu2 %v888_v41  ;;  %v891_v58 = vld [vmem:[#allocation5 + $0x16c8] sm:$0xff] }
 0x431   :  { %v4374_v36 = vadd.f32 %v4298_v12, %v4288_v30  ;;  %2723 = vmatmul.f32.gmra.mxu1 %v415_v15  ;;  %3434 = vmatmul.f32.gmra.mxu3 %v889_v61  ;;  %v4290_v61 = vmul.f32 %v6799_v47, %v6775_v32 }
 0x433   :  { %v6831_v7 = vadd.f32 %v4374_v36, %v6704_v43  ;;  %v2080_v59 = vpop.f32.mrf.mxu2 }
 0x434   :  { %v3387_v19 = vpop.f32.mrf.mxu3 }
 0x435   :  { %v3388_v42 = vadd.f32 %v3387_v19, %v2080_v59  ;;  %v6835_v51 = vpop.f32.mrf.mxu0  ;;  %v418_v59 = vld [vmem:[#allocation5 + $0x800] sm:$0xff]  ;;  %v892_v19 = vld [vmem:[#allocation5 + $0x16d0] sm:$0xff] }
 0x436   :  { %v6837_v13 = vpop.f32.mrf.mxu1 }
 0x437   :  { %v4299_v30 = vmul.f32 %v6801_v23, %v3388_v42  ;;  %v419_v42 = vld [vmem:[#allocation5 + $0x808] sm:$0xff] }
 0x438   :  { %1419 = vmatmul.f32.gmra.mxu0 %v416_v37  ;;  %2130 = vmatmul.f32.gmra.mxu2 %v890_v20  ;;  %v893_v37 = vld [vmem:[#allocation5 + $0x16d8] sm:$0xff] }
 0x439   :  { %v4375_v43 = vadd.f32 %v4299_v30, %v4289_v5  ;;  %2726 = vmatmul.f32.gmra.mxu1 %v417_v31  ;;  %3437 = vmatmul.f32.gmra.mxu3 %v891_v58  ;;  %v4291_v58 = vmul.f32 %v6799_v47, %v6781_v26 }
 0x43b   :  { %v6841_v41 = vadd.f32 %v4375_v43, %v6713_v10  ;;  %v2083_v27 = vpop.f32.mrf.mxu2 }
 0x43c   :  { %v3390_v15 = vpop.f32.mrf.mxu3 }
 0x43d   :  { %v3391_v12 = vadd.f32 %v3390_v15, %v2083_v27  ;;  %v6845_v36 = vpop.f32.mrf.mxu0  ;;  %v420_v27 = vld [vmem:[#allocation5 + $0x810] sm:$0xff]  ;;  %v894_v15 = vld [vmem:[#allocation5 + $0x16e0] sm:$0xff] }
 0x43e   :  { %9291 = vst [vmem:[#allocation273_spill] sm:$0xff] %v6845_v36  ;;  %v6847_v6 = vpop.f32.mrf.mxu1  ;;  %v947_v36 = vld [vmem:[#allocation5 + $0x1888] sm:$0xff] }
 0x43f   :  { %9292 = vst [vmem:[#allocation274_spill] sm:$0xff] %v6847_v6  ;;  %v4300_v5 = vmul.f32 %v6801_v23, %v3391_v12  ;;  %v421_v12 = vld [vmem:[#allocation5 + $0x818] sm:$0xff] }
 0x440   :  { %1422 = vmatmul.f32.gmra.mxu0 %v418_v59  ;;  %2133 = vmatmul.f32.gmra.mxu2 %v892_v19  ;;  %v895_v59 = vld [vmem:[#allocation5 + $0x16e8] sm:$0xff]  ;;  %v945_v6 = vld [vmem:[#allocation5 + $0x1878] sm:$0xff] }
 0x441   :  { %v4376_v10 = vadd.f32 %v4300_v5, %v4290_v61  ;;  %2729 = vmatmul.f32.gmra.mxu1 %v419_v42  ;;  %3440 = vmatmul.f32.gmra.mxu3 %v893_v37  ;;  %v4292_v37 = vmul.f32 %v6799_v47, %v6787_v3 }
 0x443   :  { %v6851_v20 = vadd.f32 %v4376_v10, %v6722_v34  ;;  %v2086_v32 = vpop.f32.mrf.mxu2 }
 0x444   :  { %v3393_v31 = vpop.f32.mrf.mxu3 }
 0x445   :  { %v3394_v30 = vadd.f32 %v3393_v31, %v2086_v32  ;;  %v6855_v43 = vpop.f32.mrf.mxu0  ;;  %v422_v32 = vld [vmem:[#allocation5 + $0x820] sm:$0xff]  ;;  %v896_v31 = vld [vmem:[#allocation5 + $0x16f0] sm:$0xff] }
 0x446   :  { %9293 = vst [vmem:[#allocation275_spill] sm:$0xff] %v6855_v43  ;;  %v6857_v50 = vpop.f32.mrf.mxu1 }
 0x447   :  { %9294 = vst [vmem:[#allocation276_spill] sm:$0xff] %v6857_v50  ;;  %v4301_v61 = vmul.f32 %v6801_v23, %v3394_v30 }
 0x448   :  { %1425 = vmatmul.f32.gmra.mxu0 %v420_v27  ;;  %2136 = vmatmul.f32.gmra.mxu2 %v894_v15  ;;  %v423_v27 = vld [vmem:[#allocation5 + $0x828] sm:$0xff] }
 0x449   :  { %v4377_v34 = vadd.f32 %v4301_v61, %v4291_v58  ;;  %2732 = vmatmul.f32.gmra.mxu1 %v421_v12  ;;  %3443 = vmatmul.f32.gmra.mxu3 %v895_v59  ;;  %v897_v58 = vld [vmem:[#allocation5 + $0x16f8] sm:$0xff]  ;;  %v4293_v61 = vmul.f32 %v6799_v47, %v6793_v4 }
 0x44b   :  { %v6861_v19 = vadd.f32 %v4377_v34, %v6731_v52  ;;  %v2089_v26 = vpop.f32.mrf.mxu2 }
 0x44c   :  { %v3396_v42 = vpop.f32.mrf.mxu3 }
 0x44d   :  { %v3397_v5 = vadd.f32 %v3396_v42, %v2089_v26  ;;  %v6865_v10 = vpop.f32.mrf.mxu0  ;;  %v424_v42 = vld [vmem:[#allocation5 + $0x830] sm:$0xff] }
 0x44e   :  { %9295 = vst [vmem:[#allocation277_spill] sm:$0xff] %v6865_v10  ;;  %v6867_v30 = vpop.f32.mrf.mxu1  ;;  %v915_v10 = vld [vmem:[#allocation5 + $0x1788] sm:$0xff] }
 0x44f   :  { %9296 = vst [vmem:[#allocation278_spill] sm:$0xff] %v6867_v30  ;;  %v4302_v52 = vmul.f32 %v6801_v23, %v3397_v5  ;;  %v425_v5 = vld [vmem:[#allocation5 + $0x838] sm:$0xff] }
 0x450   :  { %1428 = vmatmul.f32.gmra.mxu0 %v422_v32  ;;  %2139 = vmatmul.f32.gmra.mxu2 %v896_v31  ;;  %v899_v32 = vld [vmem:[#allocation5 + $0x1708] sm:$0xff] }
 0x451   :  { %v4378_v15 = vadd.f32 %v4302_v52, %v4292_v37  ;;  %2735 = vmatmul.f32.gmra.mxu1 %v423_v27  ;;  %3446 = vmatmul.f32.gmra.mxu3 %v897_v58  ;;  %v426_v52 = vld [vmem:[#allocation5 + $0x840] sm:$0xff] }
 0x453   :  { %v6871_v3 = vadd.f32 %v4378_v15, %v6740_v35  ;;  %v2092_v12 = vpop.f32.mrf.mxu2  ;;  %v900_v15 = vld [vmem:[#allocation5 + $0x1710] sm:$0xff] }
 0x454   :  { %v3399_v59 = vpop.f32.mrf.mxu3 }
 0x455   :  { %v3400_v34 = vadd.f32 %v3399_v59, %v2092_v12  ;;  %v6875_v26 = vpop.f32.mrf.mxu0  ;;  %v427_v59 = vld [vmem:[#allocation5 + $0x848] sm:$0xff] }
 0x456   :  { %9297 = vst [vmem:[#allocation279_spill] sm:$0xff] %v6875_v26  ;;  %v6877_v30 = vpop.f32.mrf.mxu1  ;;  %v913_v26 = vld [vmem:[#allocation5 + $0x1778] sm:$0xff] }
 0x457   :  { %9298 = vst [vmem:[#allocation280_spill] sm:$0xff] %v6877_v30  ;;  %v4303_v37 = vmul.f32 %v6801_v23, %v3400_v34  ;;  %v901_v23 = vld [vmem:[#allocation5 + $0x1718] sm:$0xff]  ;;  %v911_v30 = vld [vmem:[#allocation5 + $0x1768] sm:$0xff] }
 0x458   :  { %1431 = vmatmul.f32.gmra.mxu0 %v424_v42  ;;  %2142 = vmatmul.f32.gmra.mxu2 %v898_v62  ;;  %v428_v62 = vld [vmem:[#allocation5 + $0x850] sm:$0xff] }
 0x459   :  { %v4379_v35 = vadd.f32 %v4303_v37, %v4293_v61  ;;  %2738 = vmatmul.f32.gmra.mxu1 %v425_v5  ;;  %3449 = vmatmul.f32.gmra.mxu3 %v899_v32  ;;  %v902_v5 = vld [vmem:[#allocation5 + $0x1720] sm:$0xff]  ;;  %v429_v37 = vld [vmem:[#allocation5 + $0x858] sm:$0xff] }
 0x45b   :  { %v6881_v31 = vadd.f32 %v4379_v35, %v6749_v9  ;;  %v2095_v47 = vpop.f32.mrf.mxu2  ;;  %v903_v35 = vld [vmem:[#allocation5 + $0x1728] sm:$0xff] }
 0x45c   :  { %v3402_v4 = vpop.f32.mrf.mxu3 }
 0x45d   :  { %v6883_v27 = vadd.f32 %v3402_v4, %v2095_v47  ;;  %v6885_v58 = vpop.f32.mrf.mxu0 }
 0x45e   :  { %9299 = vst [vmem:[#allocation281_spill] sm:$0xff] %v6885_v58  ;;  %v6887_v12 = vpop.f32.mrf.mxu1  ;;  %v909_v58 = vld [vmem:[#allocation5 + $0x1758] sm:$0xff] }
 0x45f   :  { %9300 = vst [vmem:[#allocation282_spill] sm:$0xff] %v6887_v12  ;;  %v907_v12 = vld [vmem:[#allocation5 + $0x1748] sm:$0xff] }
 0x460   :  { %1434 = vmatmul.f32.gmra.mxu0 %v426_v52  ;;  %2145 = vmatmul.f32.gmra.mxu2 %v900_v15 }
 0x461   :  { %2741 = vmatmul.f32.gmra.mxu1 %v427_v59  ;;  %3452 = vmatmul.f32.gmra.mxu3 %v901_v23  ;;  %v430_v59 = vld [vmem:[#allocation5 + $0x860] sm:$0xff]  ;;  %v904_v23 = vld [vmem:[#allocation5 + $0x1730] sm:$0xff] }
 0x463   :  { %v2098_v61 = vpop.f32.mrf.mxu2 }
 0x464   :  { %v3405_v34 = vpop.f32.mrf.mxu3 }
 0x465   :  { %v6889_v9 = vadd.f32 %v3405_v34, %v2098_v61  ;;  %v6891_v42 = vpop.f32.mrf.mxu0  ;;  %v431_v34 = vld [vmem:[#allocation5 + $0x868] sm:$0xff] }
 0x466   :  { %9301 = vst [vmem:[#allocation283_spill] sm:$0xff] %v6891_v42  ;;  %v6893_v32 = vpop.f32.mrf.mxu1  ;;  %v905_v42 = vld [vmem:[#allocation5 + $0x1738] sm:$0xff] }
 0x467   :  { %9302 = vst [vmem:[#allocation284_spill] sm:$0xff] %v6893_v32 }
 0x468   :  { %1437 = vmatmul.f32.gmra.mxu0 %v428_v62  ;;  %2148 = vmatmul.f32.gmra.mxu2 %v902_v5 }
 0x469   :  { %2744 = vmatmul.f32.gmra.mxu1 %v429_v37  ;;  %3455 = vmatmul.f32.gmra.mxu3 %v903_v35 }
 0x46b   :  { %v2101_v47 = vpop.f32.mrf.mxu2 }
 0x46c   :  { %v3408_v4 = vpop.f32.mrf.mxu3 }
 0x46d   :  { %v6895_v52 = vadd.f32 %v3408_v4, %v2101_v47  ;;  %v6897_v15 = vpop.f32.mrf.mxu0  ;;  %v432_v47 = vld [vmem:[#allocation5 + $0x870] sm:$0xff]  ;;  %v906_v4 = vld [vmem:[#allocation5 + $0x1740] sm:$0xff] }
 0x46e   :  { %9303 = vst [vmem:[#allocation285_spill] sm:$0xff] %v6897_v15  ;;  %v6899_v61 = vpop.f32.mrf.mxu1  ;;  %v433_v15 = vld [vmem:[#allocation5 + $0x878] sm:$0xff] }
 0x46f   :  { %9304 = vst [vmem:[#allocation286_spill] sm:$0xff] %v6899_v61 }
 0x470   :  { %1440 = vmatmul.f32.gmra.mxu0 %v430_v59  ;;  %2151 = vmatmul.f32.gmra.mxu2 %v904_v23 }
 0x471   :  { %2747 = vmatmul.f32.gmra.mxu1 %v431_v34  ;;  %3458 = vmatmul.f32.gmra.mxu3 %v905_v42 }
 0x473   :  { %v2104_v62 = vpop.f32.mrf.mxu2 }
 0x474   :  { %v3411_v5 = vpop.f32.mrf.mxu3 }
 0x475   :  { %v6901_v37 = vadd.f32 %v3411_v5, %v2104_v62  ;;  %v6903_v35 = vpop.f32.mrf.mxu0  ;;  %v434_v62 = vld [vmem:[#allocation5 + $0x880] sm:$0xff]  ;;  %v908_v5 = vld [vmem:[#allocation5 + $0x1750] sm:$0xff] }
 0x476   :  { %9305 = vst [vmem:[#allocation287_spill] sm:$0xff] %v6903_v35  ;;  %v6905_v32 = vpop.f32.mrf.mxu1  ;;  %v435_v35 = vld [vmem:[#allocation5 + $0x888] sm:$0xff] }
 0x477   :  { %9306 = vst [vmem:[#allocation288_spill] sm:$0xff] %v6905_v32 }
 0x478   :  { %1443 = vmatmul.f32.gmra.mxu0 %v432_v47  ;;  %2154 = vmatmul.f32.gmra.mxu2 %v906_v4 }
 0x479   :  { %2750 = vmatmul.f32.gmra.mxu1 %v433_v15  ;;  %3461 = vmatmul.f32.gmra.mxu3 %v907_v12 }
 0x47b   :  { %v2107_v59 = vpop.f32.mrf.mxu2 }
 0x47c   :  { %v3414_v23 = vpop.f32.mrf.mxu3 }
 0x47d   :  { %v6907_v34 = vadd.f32 %v3414_v23, %v2107_v59  ;;  %v6909_v42 = vpop.f32.mrf.mxu0  ;;  %v436_v59 = vld [vmem:[#allocation5 + $0x890] sm:$0xff]  ;;  %v910_v23 = vld [vmem:[#allocation5 + $0x1760] sm:$0xff] }
 0x47e   :  { %9307 = vst [vmem:[#allocation289_spill] sm:$0xff] %v6909_v42  ;;  %v6911_v61 = vpop.f32.mrf.mxu1  ;;  %v437_v42 = vld [vmem:[#allocation5 + $0x898] sm:$0xff] }
 0x47f   :  { %9308 = vst [vmem:[#allocation290_spill] sm:$0xff] %v6911_v61 }
 0x480   :  { %1446 = vmatmul.f32.gmra.mxu0 %v434_v62  ;;  %2157 = vmatmul.f32.gmra.mxu2 %v908_v5 }
 0x481   :  { %2753 = vmatmul.f32.gmra.mxu1 %v435_v35  ;;  %3464 = vmatmul.f32.gmra.mxu3 %v909_v58 }
 0x483   :  { %v2110_v47 = vpop.f32.mrf.mxu2 }
 0x484   :  { %v3417_v4 = vpop.f32.mrf.mxu3 }
 0x485   :  { %v6913_v15 = vadd.f32 %v3417_v4, %v2110_v47  ;;  %v6915_v12 = vpop.f32.mrf.mxu0  ;;  %v438_v47 = vld [vmem:[#allocation5 + $0x8a0] sm:$0xff]  ;;  %v912_v4 = vld [vmem:[#allocation5 + $0x1770] sm:$0xff] }
 0x486   :  { %9309 = vst [vmem:[#allocation291_spill] sm:$0xff] %v6915_v12  ;;  %v6917_v32 = vpop.f32.mrf.mxu1  ;;  %v439_v12 = vld [vmem:[#allocation5 + $0x8a8] sm:$0xff] }
 0x487   :  { %9310 = vst [vmem:[#allocation292_spill] sm:$0xff] %v6917_v32 }
 0x488   :  { %1449 = vmatmul.f32.gmra.mxu0 %v436_v59  ;;  %2160 = vmatmul.f32.gmra.mxu2 %v910_v23 }
 0x489   :  { %2756 = vmatmul.f32.gmra.mxu1 %v437_v42  ;;  %3467 = vmatmul.f32.gmra.mxu3 %v911_v30 }
 0x48b   :  { %v2113_v62 = vpop.f32.mrf.mxu2 }
 0x48c   :  { %v3420_v5 = vpop.f32.mrf.mxu3 }
 0x48d   :  { %v6919_v35 = vadd.f32 %v3420_v5, %v2113_v62  ;;  %v6921_v58 = vpop.f32.mrf.mxu0  ;;  %v440_v62 = vld [vmem:[#allocation5 + $0x8b0] sm:$0xff]  ;;  %v914_v5 = vld [vmem:[#allocation5 + $0x1780] sm:$0xff] }
 0x48e   :  { %9311 = vst [vmem:[#allocation293_spill] sm:$0xff] %v6921_v58  ;;  %v6923_v61 = vpop.f32.mrf.mxu1  ;;  %v441_v58 = vld [vmem:[#allocation5 + $0x8b8] sm:$0xff] }
 0x48f   :  { %9312 = vst [vmem:[#allocation294_spill] sm:$0xff] %v6923_v61  ;;  %v6931_v61 = vld [vmem:[#allocation7 + $0xc] ss:$0 sm:$0xff] }
 0x490   :  { %1452 = vmatmul.f32.gmra.mxu0 %v438_v47  ;;  %2163 = vmatmul.f32.gmra.mxu2 %v912_v4  ;;  %v4306_v4 = vmul.f32 %v6931_v61, %v6883_v27  ;;  %v4307_v27 = vmul.f32 %v6931_v61, %v6889_v9 }
 0x491   :  { %2759 = vmatmul.f32.gmra.mxu1 %v439_v12  ;;  %3470 = vmatmul.f32.gmra.mxu3 %v913_v26  ;;  %v6933_v26 = vld [vmem:[#allocation7 + $0xd] ss:$0 sm:$0xff] }
 0x493   :  { %v2116_v59 = vpop.f32.mrf.mxu2 }
 0x494   :  { %v3423_v23 = vpop.f32.mrf.mxu3 }
 0x495   :  { %v6925_v42 = vadd.f32 %v3423_v23, %v2116_v59  ;;  %v6927_v30 = vpop.f32.mrf.mxu0 }
 0x496   :  { %9313 = vst [vmem:[#allocation295_spill] sm:$0xff] %v6927_v30  ;;  %v6929_v32 = vpop.f32.mrf.mxu1  ;;  %v442_v30 = vld [vmem:[#allocation5 + $0x8c0] sm:$0xff] }
 0x497   :  { %9314 = vst [vmem:[#allocation296_spill] sm:$0xff] %v6929_v32  ;;  %v916_v32 = vld [vmem:[#allocation5 + $0x1790] sm:$0xff] }
 0x498   :  { %1455 = vmatmul.f32.gmra.mxu0 %v440_v62  ;;  %2166 = vmatmul.f32.gmra.mxu2 %v914_v5  ;;  %v443_v62 = vld [vmem:[#allocation5 + $0x8c8] sm:$0xff]  ;;  %v917_v5 = vld [vmem:[#allocation5 + $0x1798] sm:$0xff] }
 0x499   :  { %2762 = vmatmul.f32.gmra.mxu1 %v441_v58  ;;  %3473 = vmatmul.f32.gmra.mxu3 %v915_v10 }
 0x49b   :  { %v2119_v12 = vpop.f32.mrf.mxu2 }
 0x49c   :  { %v3426_v47 = vpop.f32.mrf.mxu3 }
 0x49d   :  { %v3427_v59 = vadd.f32 %v3426_v47, %v2119_v12  ;;  %v6937_v23 = vpop.f32.mrf.mxu0 }
 0x49e   :  { %9315 = vst [vmem:[#allocation297_spill] sm:$0xff] %v6937_v23  ;;  %v6939_v17 = vpop.f32.mrf.mxu1  ;;  %v444_v23 = vld [vmem:[#allocation5 + $0x8d0] sm:$0xff] }
 0x49f   :  { %9316 = vst [vmem:[#allocation298_spill] sm:$0xff] %v6939_v17  ;;  %v4316_v50 = vmul.f32 %v6933_v26, %v3427_v59  ;;  %v918_v17 = vld [vmem:[#allocation5 + $0x17a0] sm:$0xff]  ;;  %v919_v59 = vld [vmem:[#allocation5 + $0x17a8] sm:$0xff] }
 0x4a0   :  { %1458 = vmatmul.f32.gmra.mxu0 %v442_v30  ;;  %2169 = vmatmul.f32.gmra.mxu2 %v916_v32  ;;  %v4540_v30 = vld [vmem:[#allocation10 + $0x38] sm:$0xff] }
 0x4a1   :  { %v6942_v10 = vadd.f32 %v4316_v50, %v4306_v4  ;;  %2765 = vmatmul.f32.gmra.mxu1 %v443_v62  ;;  %3476 = vmatmul.f32.gmra.mxu3 %v917_v5  ;;  %v4308_v4 = vmul.f32 %v6931_v61, %v6895_v52  ;;  %v4309_v52 = vmul.f32 %v6931_v61, %v6901_v37 }
 0x4a2   :  { %4557 = vmatpush.msrb.mxu2 %v4540_v30  ;;  %4789 = vmatpush.msrb.mxu3 %v4540_v30  ;;  %v4310_v37 = vmul.f32 %v6931_v61, %v6907_v34  ;;  %v4311_v34 = vmul.f32 %v6931_v61, %v6913_v15  ;;  %v4312_v15 = vmul.f32 %v6931_v61, %v6919_v35 }
 0x4a3   :  { %v2122_v58 = vpop.f32.mrf.mxu2  ;;  %v4313_v35 = vmul.f32 %v6931_v61, %v6925_v42 }
 0x4a4   :  { %v3429_v43 = vpop.f32.mrf.mxu3 }
 0x4a5   :  { %v3430_v12 = vadd.f32 %v3429_v43, %v2122_v58  ;;  %v6946_v47 = vpop.f32.mrf.mxu0  ;;  %v446_v58 = vld [vmem:[#allocation5 + $0x8e0] sm:$0xff] }
 0x4a6   :  { %9317 = vst [vmem:[#allocation299_spill] sm:$0xff] %v6946_v47  ;;  %v6948_v63 = vpop.f32.mrf.mxu1  ;;  %v449_v47 = vld [vmem:[#allocation5 + $0x8f8] sm:$0xff] }
 0x4a7   :  { %9318 = vst [vmem:[#allocation300_spill] sm:$0xff] %v6948_v63  ;;  %v4317_v32 = vmul.f32 %v6933_v26, %v3430_v12  ;;  %v920_v63 = vld [vmem:[#allocation5 + $0x17b0] sm:$0xff] }
 0x4a8   :  { %1461 = vmatmul.f32.gmra.mxu0 %v444_v23  ;;  %2172 = vmatmul.f32.gmra.mxu2 %v918_v17  ;;  %v447_v17 = vld [vmem:[#allocation5 + $0x8e8] sm:$0xff]  ;;  %v921_v23 = vld [vmem:[#allocation5 + $0x17b8] sm:$0xff] }
 0x4a9   :  { %v6951_v50 = vadd.f32 %v4317_v32, %v4307_v27  ;;  %2768 = vmatmul.f32.gmra.mxu1 %v445_v54  ;;  %3479 = vmatmul.f32.gmra.mxu3 %v919_v59 }
 0x4ab   :  { %v2125_v43 = vpop.f32.mrf.mxu2 }
 0x4ac   :  { %v3432_v9 = vpop.f32.mrf.mxu3 }
 0x4ad   :  { %v3433_v62 = vadd.f32 %v3432_v9, %v2125_v43  ;;  %v6955_v5 = vpop.f32.mrf.mxu0  ;;  %v448_v9 = vld [vmem:[#allocation5 + $0x8f0] sm:$0xff] }
 0x4ae   :  { %9319 = vst [vmem:[#allocation301_spill] sm:$0xff] %v6955_v5  ;;  %v6957_v12 = vpop.f32.mrf.mxu1 }
 0x4af   :  { %9320 = vst [vmem:[#allocation302_spill] sm:$0xff] %v6957_v12  ;;  %v4318_v54 = vmul.f32 %v6933_v26, %v3433_v62  ;;  %v922_v12 = vld [vmem:[#allocation5 + $0x17c0] sm:$0xff]  ;;  %v923_v62 = vld [vmem:[#allocation5 + $0x17c8] sm:$0xff] }
 0x4b0   :  { %1464 = vmatmul.f32.gmra.mxu0 %v446_v58  ;;  %2175 = vmatmul.f32.gmra.mxu2 %v920_v63 }
 0x4b1   :  { %v6960_v27 = vadd.f32 %v4318_v54, %v4308_v4  ;;  %2771 = vmatmul.f32.gmra.mxu1 %v447_v17  ;;  %3482 = vmatmul.f32.gmra.mxu3 %v921_v23 }
 0x4b3   :  { %v2128_v59 = vpop.f32.mrf.mxu2 }
 0x4b4   :  { %v3435_v32 = vpop.f32.mrf.mxu3 }
 0x4b5   :  { %v3436_v30 = vadd.f32 %v3435_v32, %v2128_v59  ;;  %v6964_v43 = vpop.f32.mrf.mxu0  ;;  %v450_v59 = vld [vmem:[#allocation5 + $0x900] sm:$0xff]  ;;  %v924_v32 = vld [vmem:[#allocation5 + $0x17d0] sm:$0xff] }
 0x4b6   :  { %9321 = vst [vmem:[#allocation303_spill] sm:$0xff] %v6964_v43  ;;  %v6966_v5 = vpop.f32.mrf.mxu1  ;;  %v451_v43 = vld [vmem:[#allocation5 + $0x908] sm:$0xff] }
 0x4b7   :  { %9322 = vst [vmem:[#allocation304_spill] sm:$0xff] %v6966_v5  ;;  %v4319_v63 = vmul.f32 %v6933_v26, %v3436_v30  ;;  %v925_v30 = vld [vmem:[#allocation5 + $0x17d8] sm:$0xff] }
 0x4b8   :  { %1467 = vmatmul.f32.gmra.mxu0 %v448_v9  ;;  %2178 = vmatmul.f32.gmra.mxu2 %v922_v12 }
 0x4b9   :  { %v6969_v4 = vadd.f32 %v4319_v63, %v4309_v52  ;;  %2774 = vmatmul.f32.gmra.mxu1 %v449_v47  ;;  %3485 = vmatmul.f32.gmra.mxu3 %v923_v62 }
 0x4bb   :  { %v2131_v58 = vpop.f32.mrf.mxu2 }
 0x4bc   :  { %v3438_v17 = vpop.f32.mrf.mxu3 }
 0x4bd   :  { %v3439_v23 = vadd.f32 %v3438_v17, %v2131_v58  ;;  %v6973_v54 = vpop.f32.mrf.mxu0  ;;  %v452_v58 = vld [vmem:[#allocation5 + $0x910] sm:$0xff]  ;;  %v926_v17 = vld [vmem:[#allocation5 + $0x17e0] sm:$0xff] }
 0x4be   :  { %9323 = vst [vmem:[#allocation305_spill] sm:$0xff] %v6973_v54  ;;  %v6975_v5 = vpop.f32.mrf.mxu1  ;;  %v453_v54 = vld [vmem:[#allocation5 + $0x918] sm:$0xff] }
 0x4bf   :  { %9324 = vst [vmem:[#allocation306_spill] sm:$0xff] %v6975_v5  ;;  %v4320_v12 = vmul.f32 %v6933_v26, %v3439_v23  ;;  %v927_v23 = vld [vmem:[#allocation5 + $0x17e8] sm:$0xff] }
 0x4c0   :  { %1470 = vmatmul.f32.gmra.mxu0 %v450_v59  ;;  %2181 = vmatmul.f32.gmra.mxu2 %v924_v32 }
 0x4c1   :  { %v6978_v47 = vadd.f32 %v4320_v12, %v4310_v37  ;;  %2777 = vmatmul.f32.gmra.mxu1 %v451_v43  ;;  %3488 = vmatmul.f32.gmra.mxu3 %v925_v30 }
 0x4c3   :  { %v2134_v52 = vpop.f32.mrf.mxu2 }
 0x4c4   :  { %v3441_v9 = vpop.f32.mrf.mxu3 }
 0x4c5   :  { %v3442_v62 = vadd.f32 %v3441_v9, %v2134_v52  ;;  %v6982_v63 = vpop.f32.mrf.mxu0  ;;  %v454_v52 = vld [vmem:[#allocation5 + $0x920] sm:$0xff]  ;;  %v928_v9 = vld [vmem:[#allocation5 + $0x17f0] sm:$0xff] }
 0x4c6   :  { %9325 = vst [vmem:[#allocation307_spill] sm:$0xff] %v6982_v63  ;;  %v6984_v5 = vpop.f32.mrf.mxu1  ;;  %v455_v63 = vld [vmem:[#allocation5 + $0x928] sm:$0xff] }
 0x4c7   :  { %9326 = vst [vmem:[#allocation308_spill] sm:$0xff] %v6984_v5  ;;  %v4321_v59 = vmul.f32 %v6933_v26, %v3442_v62  ;;  %v929_v62 = vld [vmem:[#allocation5 + $0x17f8] sm:$0xff] }
 0x4c8   :  { %1473 = vmatmul.f32.gmra.mxu0 %v452_v58  ;;  %2184 = vmatmul.f32.gmra.mxu2 %v926_v17 }
 0x4c9   :  { %v6987_v43 = vadd.f32 %v4321_v59, %v4311_v34  ;;  %2780 = vmatmul.f32.gmra.mxu1 %v453_v54  ;;  %3491 = vmatmul.f32.gmra.mxu3 %v927_v23 }
 0x4cb   :  { %v2137_v37 = vpop.f32.mrf.mxu2 }
 0x4cc   :  { %v3444_v32 = vpop.f32.mrf.mxu3 }
 0x4cd   :  { %v3445_v30 = vadd.f32 %v3444_v32, %v2137_v37  ;;  %v6991_v12 = vpop.f32.mrf.mxu0  ;;  %v456_v37 = vld [vmem:[#allocation5 + $0x930] sm:$0xff]  ;;  %v930_v32 = vld [vmem:[#allocation5 + $0x1800] sm:$0xff] }
 0x4ce   :  { %9327 = vst [vmem:[#allocation309_spill] sm:$0xff] %v6991_v12  ;;  %v6993_v5 = vpop.f32.mrf.mxu1  ;;  %v457_v12 = vld [vmem:[#allocation5 + $0x938] sm:$0xff] }
 0x4cf   :  { %9328 = vst [vmem:[#allocation310_spill] sm:$0xff] %v6993_v5  ;;  %v4322_v58 = vmul.f32 %v6933_v26, %v3445_v30  ;;  %v931_v30 = vld [vmem:[#allocation5 + $0x1808] sm:$0xff] }
 0x4d0   :  { %1476 = vmatmul.f32.gmra.mxu0 %v454_v52  ;;  %2187 = vmatmul.f32.gmra.mxu2 %v928_v9 }
 0x4d1   :  { %v6996_v54 = vadd.f32 %v4322_v58, %v4312_v15  ;;  %2783 = vmatmul.f32.gmra.mxu1 %v455_v63  ;;  %3494 = vmatmul.f32.gmra.mxu3 %v929_v62  ;;  %v458_v62 = vld [vmem:[#allocation5 + $0x940] sm:$0xff]  ;;  %v932_v58 = vld [vmem:[#allocation5 + $0x1810] sm:$0xff] }
 0x4d3   :  { %v2140_v34 = vpop.f32.mrf.mxu2 }
 0x4d4   :  { %v3447_v17 = vpop.f32.mrf.mxu3 }
 0x4d5   :  { %v3448_v23 = vadd.f32 %v3447_v17, %v2140_v34  ;;  %v7000_v59 = vpop.f32.mrf.mxu0  ;;  %v459_v17 = vld [vmem:[#allocation5 + $0x948] sm:$0xff] }
 0x4d6   :  { %9329 = vst [vmem:[#allocation311_spill] sm:$0xff] %v7000_v59  ;;  %v7002_v5 = vpop.f32.mrf.mxu1  ;;  %v941_v59 = vld [vmem:[#allocation5 + $0x1858] sm:$0xff] }
 0x4d7   :  { %9330 = vst [vmem:[#allocation312_spill] sm:$0xff] %v7002_v5  ;;  %v4323_v52 = vmul.f32 %v6933_v26, %v3448_v23  ;;  %v933_v5 = vld [vmem:[#allocation5 + $0x1818] sm:$0xff] }
 0x4d8   :  { %1479 = vmatmul.f32.gmra.mxu0 %v456_v37  ;;  %2190 = vmatmul.f32.gmra.mxu2 %v930_v32  ;;  %v460_v37 = vld [vmem:[#allocation5 + $0x950] sm:$0xff]  ;;  %v934_v32 = vld [vmem:[#allocation5 + $0x1820] sm:$0xff] }
 0x4d9   :  { %v7005_v63 = vadd.f32 %v4323_v52, %v4313_v35  ;;  %2786 = vmatmul.f32.gmra.mxu1 %v457_v12  ;;  %3497 = vmatmul.f32.gmra.mxu3 %v931_v30  ;;  %v461_v52 = vld [vmem:[#allocation5 + $0x958] sm:$0xff] }
 0x4db   :  { %v2143_v15 = vpop.f32.mrf.mxu2 }
 0x4dc   :  { %v3450_v9 = vpop.f32.mrf.mxu3 }
 0x4dd   :  { %v7007_v61 = vadd.f32 %v3450_v9, %v2143_v15  ;;  %v7009_v42 = vpop.f32.mrf.mxu0  ;;  %v935_v15 = vld [vmem:[#allocation5 + $0x1828] sm:$0xff] }
 0x4de   :  { %9331 = vst [vmem:[#allocation313_spill] sm:$0xff] %v7009_v42  ;;  %v7011_v34 = vpop.f32.mrf.mxu1  ;;  %v939_v42 = vld [vmem:[#allocation5 + $0x1848] sm:$0xff] }
 0x4df   :  { %9332 = vst [vmem:[#allocation314_spill] sm:$0xff] %v7011_v34  ;;  %v937_v34 = vld [vmem:[#allocation5 + $0x1838] sm:$0xff] }
 0x4e0   :  { %1482 = vmatmul.f32.gmra.mxu0 %v458_v62  ;;  %2193 = vmatmul.f32.gmra.mxu2 %v932_v58 }
 0x4e1   :  { %2789 = vmatmul.f32.gmra.mxu1 %v459_v17  ;;  %3500 = vmatmul.f32.gmra.mxu3 %v933_v5  ;;  %v462_v17 = vld [vmem:[#allocation5 + $0x960] sm:$0xff] }
 0x4e3   :  { %v2146_v26 = vpop.f32.mrf.mxu2 }
 0x4e4   :  { %v3453_v35 = vpop.f32.mrf.mxu3 }
 0x4e5   :  { %v7013_v12 = vadd.f32 %v3453_v35, %v2146_v26  ;;  %v7015_v23 = vpop.f32.mrf.mxu0  ;;  %v936_v26 = vld [vmem:[#allocation5 + $0x1830] sm:$0xff] }
 0x4e6   :  { %9333 = vst [vmem:[#allocation315_spill] sm:$0xff] %v7015_v23  ;;  %v7017_v30 = vpop.f32.mrf.mxu1  ;;  %v463_v23 = vld [vmem:[#allocation5 + $0x968] sm:$0xff] }
 0x4e7   :  { %9334 = vst [vmem:[#allocation316_spill] sm:$0xff] %v7017_v30 }
 0x4e8   :  { %1485 = vmatmul.f32.gmra.mxu0 %v460_v37  ;;  %2196 = vmatmul.f32.gmra.mxu2 %v934_v32 }
 0x4e9   :  { %2792 = vmatmul.f32.gmra.mxu1 %v461_v52  ;;  %3503 = vmatmul.f32.gmra.mxu3 %v935_v15 }
 0x4eb   :  { %v2149_v9 = vpop.f32.mrf.mxu2 }
 0x4ec   :  { %v3456_v62 = vpop.f32.mrf.mxu3 }
 0x4ed   :  { %v7019_v58 = vadd.f32 %v3456_v62, %v2149_v9  ;;  %v7021_v5 = vpop.f32.mrf.mxu0  ;;  %v464_v9 = vld [vmem:[#allocation5 + $0x970] sm:$0xff]  ;;  %v938_v62 = vld [vmem:[#allocation5 + $0x1840] sm:$0xff] }
 0x4ee   :  { %9335 = vst [vmem:[#allocation317_spill] sm:$0xff] %v7021_v5  ;;  %v7023_v35 = vpop.f32.mrf.mxu1  ;;  %v465_v5 = vld [vmem:[#allocation5 + $0x978] sm:$0xff] }
 0x4ef   :  { %9336 = vst [vmem:[#allocation318_spill] sm:$0xff] %v7023_v35 }
 0x4f0   :  { %1488 = vmatmul.f32.gmra.mxu0 %v462_v17  ;;  %2199 = vmatmul.f32.gmra.mxu2 %v936_v26 }
 0x4f1   :  { %2795 = vmatmul.f32.gmra.mxu1 %v463_v23  ;;  %3506 = vmatmul.f32.gmra.mxu3 %v937_v34 }
 0x4f3   :  { %v2152_v37 = vpop.f32.mrf.mxu2 }
 0x4f4   :  { %v3459_v32 = vpop.f32.mrf.mxu3 }
 0x4f5   :  { %v7025_v52 = vadd.f32 %v3459_v32, %v2152_v37  ;;  %v7027_v15 = vpop.f32.mrf.mxu0  ;;  %v466_v37 = vld [vmem:[#allocation5 + $0x980] sm:$0xff]  ;;  %v940_v32 = vld [vmem:[#allocation5 + $0x1850] sm:$0xff] }
 0x4f6   :  { %9337 = vst [vmem:[#allocation319_spill] sm:$0xff] %v7027_v15  ;;  %v7029_v30 = vpop.f32.mrf.mxu1  ;;  %v467_v15 = vld [vmem:[#allocation5 + $0x988] sm:$0xff] }
 0x4f7   :  { %9338 = vst [vmem:[#allocation320_spill] sm:$0xff] %v7029_v30 }
 0x4f8   :  { %1491 = vmatmul.f32.gmra.mxu0 %v464_v9  ;;  %2202 = vmatmul.f32.gmra.mxu2 %v938_v62 }
 0x4f9   :  { %2798 = vmatmul.f32.gmra.mxu1 %v465_v5  ;;  %3509 = vmatmul.f32.gmra.mxu3 %v939_v42 }
 0x4fb   :  { %v2155_v17 = vpop.f32.mrf.mxu2 }
 0x4fc   :  { %v3462_v26 = vpop.f32.mrf.mxu3 }
 0x4fd   :  { %v7031_v23 = vadd.f32 %v3462_v26, %v2155_v17  ;;  %v7033_v34 = vpop.f32.mrf.mxu0  ;;  %v468_v17 = vld [vmem:[#allocation5 + $0x990] sm:$0xff]  ;;  %v942_v26 = vld [vmem:[#allocation5 + $0x1860] sm:$0xff] }
 0x4fe   :  { %9339 = vst [vmem:[#allocation321_spill] sm:$0xff] %v7033_v34  ;;  %v7035_v35 = vpop.f32.mrf.mxu1  ;;  %v469_v34 = vld [vmem:[#allocation5 + $0x998] sm:$0xff] }
 0x4ff   :  { %9340 = vst [vmem:[#allocation322_spill] sm:$0xff] %v7035_v35 }
 0x500   :  { %1494 = vmatmul.f32.gmra.mxu0 %v466_v37  ;;  %2205 = vmatmul.f32.gmra.mxu2 %v940_v32  ;;  %v4539_v32 = vld [vmem:[#allocation10 + $0x30] sm:$0xff] }
 0x501   :  { %2801 = vmatmul.f32.gmra.mxu1 %v467_v15  ;;  %3512 = vmatmul.f32.gmra.mxu3 %v941_v59 }
 0x502   :  { %4558 = vmatpush.msrb.mxu2 %v4539_v32  ;;  %4790 = vmatpush.msrb.mxu3 %v4539_v32  ;;  %v946_v32 = vld [vmem:[#allocation5 + $0x1880] sm:$0xff] }
 0x503   :  { %v2158_v9 = vpop.f32.mrf.mxu2 }
 0x504   :  { %v3465_v62 = vpop.f32.mrf.mxu3 }
 0x505   :  { %v7037_v5 = vadd.f32 %v3465_v62, %v2158_v9  ;;  %v7039_v42 = vpop.f32.mrf.mxu0  ;;  %v470_v62 = vld [vmem:[#allocation5 + $0x9a0] sm:$0xff] }
 0x506   :  { %9341 = vst [vmem:[#allocation323_spill] sm:$0xff] %v7039_v42  ;;  %v7041_v30 = vpop.f32.mrf.mxu1  ;;  %v944_v42 = vld [vmem:[#allocation5 + $0x1870] sm:$0xff] }
 0x507   :  { %9342 = vst [vmem:[#allocation324_spill] sm:$0xff] %v7041_v30  ;;  %v471_v30 = vld [vmem:[#allocation5 + $0x9a8] sm:$0xff] }
 0x508   :  { %1497 = vmatmul.f32.gmra.mxu0 %v468_v17  ;;  %2208 = vmatmul.f32.gmra.mxu2 %v942_v26 }
 0x509   :  { %2804 = vmatmul.f32.gmra.mxu1 %v469_v34  ;;  %3515 = vmatmul.f32.gmra.mxu3 %v943_v24 }
 0x50b   :  { %v2161_v37 = vpop.f32.mrf.mxu2 }
 0x50c   :  { %v3468_v15 = vpop.f32.mrf.mxu3 }
 0x50d   :  { %v7043_v59 = vadd.f32 %v3468_v15, %v2161_v37  ;;  %v7045_v9 = vpop.f32.mrf.mxu0  ;;  %v472_v37 = vld [vmem:[#allocation5 + $0x9b0] sm:$0xff] }
 0x50e   :  { %9343 = vst [vmem:[#allocation325_spill] sm:$0xff] %v7045_v9  ;;  %v7047_v35 = vpop.f32.mrf.mxu1  ;;  %v473_v9 = vld [vmem:[#allocation5 + $0x9b8] sm:$0xff] }
 0x50f   :  { %9344 = vst [vmem:[#allocation326_spill] sm:$0xff] %v7047_v35  ;;  %v7055_v35 = vld [vmem:[#allocation7 + $0xe] ss:$0 sm:$0xff] }
 0x510   :  { %1500 = vmatmul.f32.gmra.mxu0 %v470_v62  ;;  %2211 = vmatmul.f32.gmra.mxu2 %v944_v42  ;;  %v4326_v62 = vmul.f32 %v7055_v35, %v7007_v61 }
 0x511   :  { %2807 = vmatmul.f32.gmra.mxu1 %v471_v30  ;;  %3518 = vmatmul.f32.gmra.mxu3 %v945_v6  ;;  %v7057_v6 = vld [vmem:[#allocation7 + $0xf] ss:$0 sm:$0xff] }
 0x513   :  { %v2164_v24 = vpop.f32.mrf.mxu2 }
 0x514   :  { %v3471_v34 = vpop.f32.mrf.mxu3 }
 0x515   :  { %v7049_v17 = vadd.f32 %v3471_v34, %v2164_v24  ;;  %v7051_v26 = vpop.f32.mrf.mxu0 }
 0x516   :  { %9345 = vst [vmem:[#allocation327_spill] sm:$0xff] %v7051_v26  ;;  %v7053_v15 = vpop.f32.mrf.mxu1  ;;  %v474_v26 = vld [vmem:[#allocation5 + $0x9c0] sm:$0xff] }
 0x517   :  { %9346 = vst [vmem:[#allocation328_spill] sm:$0xff] %v7053_v15  ;;  %v948_v15 = vld [vmem:[#allocation5 + $0x1890] sm:$0xff] }
 0x518   :  { %1503 = vmatmul.f32.gmra.mxu0 %v472_v37  ;;  %2214 = vmatmul.f32.gmra.mxu2 %v946_v32  ;;  %v475_v37 = vld [vmem:[#allocation5 + $0x9c8] sm:$0xff]  ;;  %v949_v32 = vld [vmem:[#allocation5 + $0x1898] sm:$0xff] }
 0x519   :  { %2810 = vmatmul.f32.gmra.mxu1 %v473_v9  ;;  %3521 = vmatmul.f32.gmra.mxu3 %v947_v36 }
 0x51b   :  { %v2167_v30 = vpop.f32.mrf.mxu2 }
 0x51c   :  { %v3474_v42 = vpop.f32.mrf.mxu3 }
 0x51d   :  { %v3475_v24 = vadd.f32 %v3474_v42, %v2167_v30  ;;  %v7061_v34 = vpop.f32.mrf.mxu0  ;;  %v4327_v30 = vmul.f32 %v7055_v35, %v7013_v12 }
 0x51e   :  { %9347 = vst [vmem:[#allocation329_spill] sm:$0xff] %v7061_v34  ;;  %v7063_v46 = vpop.f32.mrf.mxu1 }
 0x51f   :  { %9348 = vst [vmem:[#allocation330_spill] sm:$0xff] %v7063_v46  ;;  %v4336_v33 = vmul.f32 %v7057_v6, %v3475_v24  ;;  %v476_v46 = vld [vmem:[#allocation5 + $0x9d0] sm:$0xff] }
 0x520   :  { %1506 = vmatmul.f32.gmra.mxu0 %v474_v26  ;;  %2217 = vmatmul.f32.gmra.mxu2 %v948_v15  ;;  %v951_v15 = vld [vmem:[#allocation5 + $0x18a8] sm:$0xff] }
 0x521   :  { %v4388_v36 = vadd.f32 %v4336_v33, %v4326_v62  ;;  %2813 = vmatmul.f32.gmra.mxu1 %v475_v37  ;;  %3524 = vmatmul.f32.gmra.mxu3 %v949_v32  ;;  %v477_v33 = vld [vmem:[#allocation5 + $0x9d8] sm:$0xff]  ;;  %v4328_v37 = vmul.f32 %v7055_v35, %v7019_v58 }
 0x523   :  { %v4412_v9 = vadd.f32 %v4388_v36, %v6942_v10  ;;  %v2170_v25 = vpop.f32.mrf.mxu2  ;;  %v478_v36 = vld [vmem:[#allocation5 + $0x9e0] sm:$0xff] }
 0x524   :  { %v3477_v61 = vpop.f32.mrf.mxu3 }
 0x525   :  { %v3478_v42 = vadd.f32 %v3477_v61, %v2170_v25  ;;  %v7069_v34 = vpop.f32.mrf.mxu0  ;;  %v7072_v8 = vadd.f32 %v4412_v9, %v6811_v1  ;;  %v952_v9 = vld [vmem:[#allocation5 + $0x18b0] sm:$0xff] }
 0x526   :  { %v7074_v26 = vpop.f32.mrf.mxu1 }
 0x527   :  { %9349 = vst [vmem:[#allocation331_spill] sm:$0xff] %v7072_v8  ;;  %v4337_v62 = vmul.f32 %v7057_v6, %v3478_v42  ;;  %v511_v8 = vld [vmem:[#allocation5 + $0xae8] sm:$0xff] }
 0x528   :  { %1509 = vmatmul.f32.gmra.mxu0 %v476_v46  ;;  %2220 = vmatmul.f32.gmra.mxu2 %v950_v44  ;;  %v479_v44 = vld [vmem:[#allocation5 + $0x9e8] sm:$0xff] }
 0x529   :  { %v4389_v10 = vadd.f32 %v4337_v62, %v4327_v30  ;;  %2816 = vmatmul.f32.gmra.mxu1 %v477_v33  ;;  %3527 = vmatmul.f32.gmra.mxu3 %v951_v15  ;;  %v953_v30 = vld [vmem:[#allocation5 + $0x18b8] sm:$0xff]  ;;  %v4329_v62 = vmul.f32 %v7055_v35, %v7025_v52 }
 0x52b   :  { %v4413_v25 = vadd.f32 %v4389_v10, %v6951_v50  ;;  %v2173_v12 = vpop.f32.mrf.mxu2 }
 0x52c   :  { %v3480_v24 = vpop.f32.mrf.mxu3 }
 0x52d   :  { %v3481_v1 = vadd.f32 %v3480_v24, %v2173_v12  ;;  %v7080_v32 = vpop.f32.mrf.mxu0  ;;  %v7083_v61 = vadd.f32 %v4413_v25, %v6821_v39  ;;  %v480_v25 = vld [vmem:[#allocation5 + $0x9f0] sm:$0xff]  ;;  %v954_v12 = vld [vmem:[#allocation5 + $0x18c0] sm:$0xff] }
 0x52e   :  { %v7085_v46 = vpop.f32.mrf.mxu1 }
 0x52f   :  { %9350 = vst [vmem:[#allocation332_spill] sm:$0xff] %v7083_v61  ;;  %v4338_v42 = vmul.f32 %v7057_v6, %v3481_v1 }
 0x530   :  { %1512 = vmatmul.f32.gmra.mxu0 %v478_v36  ;;  %2223 = vmatmul.f32.gmra.mxu2 %v952_v9  ;;  %v955_v36 = vld [vmem:[#allocation5 + $0x18c8] sm:$0xff] }
 0x531   :  { %v4390_v50 = vadd.f32 %v4338_v42, %v4328_v37  ;;  %2819 = vmatmul.f32.gmra.mxu1 %v479_v44  ;;  %3530 = vmatmul.f32.gmra.mxu3 %v953_v30  ;;  %v481_v37 = vld [vmem:[#allocation5 + $0x9f8] sm:$0xff]  ;;  %v4330_v42 = vmul.f32 %v7055_v35, %v7031_v23 }
 0x533   :  { %v4414_v58 = vadd.f32 %v4390_v50, %v6960_v27  ;;  %v2176_v33 = vpop.f32.mrf.mxu2 }
 0x534   :  { %v3483_v15 = vpop.f32.mrf.mxu3 }
 0x535   :  { %v3484_v39 = vadd.f32 %v3483_v15, %v2176_v33  ;;  %v7091_v10 = vpop.f32.mrf.mxu0  ;;  %v7094_v24 = vadd.f32 %v4414_v58, %v6831_v7  ;;  %v482_v58 = vld [vmem:[#allocation5 + $0xa00] sm:$0xff]  ;;  %v956_v33 = vld [vmem:[#allocation5 + $0x18d0] sm:$0xff] }
 0x536   :  { %v7096_v1 = vpop.f32.mrf.mxu1 }
 0x537   :  { %9351 = vst [vmem:[#allocation333_spill] sm:$0xff] %v7094_v24  ;;  %v4339_v9 = vmul.f32 %v7057_v6, %v3484_v39  ;;  %v509_v24 = vld [vmem:[#allocation5 + $0xad8] sm:$0xff] }
 0x538   :  { %1515 = vmatmul.f32.gmra.mxu0 %v480_v25  ;;  %2226 = vmatmul.f32.gmra.mxu2 %v954_v12  ;;  %v957_v25 = vld [vmem:[#allocation5 + $0x18d8] sm:$0xff] }
 0x539   :  { %v4391_v27 = vadd.f32 %v4339_v9, %v4329_v62  ;;  %2822 = vmatmul.f32.gmra.mxu1 %v481_v37  ;;  %3533 = vmatmul.f32.gmra.mxu3 %v955_v36  ;;  %v483_v62 = vld [vmem:[#allocation5 + $0xa08] sm:$0xff]  ;;  %v4331_v9 = vmul.f32 %v7055_v35, %v7037_v5 }
 0x53b   :  { %v4415_v52 = vadd.f32 %v4391_v27, %v6969_v4  ;;  %v2179_v44 = vpop.f32.mrf.mxu2 }
 0x53c   :  { %v3486_v30 = vpop.f32.mrf.mxu3 }
 0x53d   :  { %v3487_v7 = vadd.f32 %v3486_v30, %v2179_v44  ;;  %v7102_v50 = vpop.f32.mrf.mxu0  ;;  %v7105_v15 = vadd.f32 %v4415_v52, %v6841_v41  ;;  %v484_v52 = vld [vmem:[#allocation5 + $0xa10] sm:$0xff]  ;;  %v958_v44 = vld [vmem:[#allocation5 + $0x18e0] sm:$0xff] }
 0x53e   :  { %v7107_v39 = vpop.f32.mrf.mxu1 }
 0x53f   :  { %9352 = vst [vmem:[#allocation334_spill] sm:$0xff] %v7105_v15  ;;  %v4340_v12 = vmul.f32 %v7057_v6, %v3487_v7 }
 0x540   :  { %1518 = vmatmul.f32.gmra.mxu0 %v482_v58  ;;  %2229 = vmatmul.f32.gmra.mxu2 %v956_v33  ;;  %v959_v58 = vld [vmem:[#allocation5 + $0x18e8] sm:$0xff] }
 0x541   :  { %v4392_v4 = vadd.f32 %v4340_v12, %v4330_v42  ;;  %2825 = vmatmul.f32.gmra.mxu1 %v483_v62  ;;  %3536 = vmatmul.f32.gmra.mxu3 %v957_v25  ;;  %v485_v42 = vld [vmem:[#allocation5 + $0xa18] sm:$0xff]  ;;  %v4332_v12 = vmul.f32 %v7055_v35, %v7043_v59 }
 0x543   :  { %v4416_v23 = vadd.f32 %v4392_v4, %v6978_v47  ;;  %v2182_v37 = vpop.f32.mrf.mxu2 }
 0x544   :  { %v3489_v36 = vpop.f32.mrf.mxu3 }
 0x545   :  { %v3490_v41 = vadd.f32 %v3489_v36, %v2182_v37  ;;  %v7113_v27 = vpop.f32.mrf.mxu0  ;;  %v7116_v30 = vadd.f32 %v4416_v23, %v6851_v20  ;;  %v486_v23 = vld [vmem:[#allocation5 + $0xa20] sm:$0xff]  ;;  %v960_v37 = vld [vmem:[#allocation5 + $0x18f0] sm:$0xff] }
 0x546   :  { %v7118_v7 = vpop.f32.mrf.mxu1 }
 0x547   :  { %9353 = vst [vmem:[#allocation335_spill] sm:$0xff] %v7116_v30  ;;  %v4341_v33 = vmul.f32 %v7057_v6, %v3490_v41  ;;  %v507_v30 = vld [vmem:[#allocation5 + $0xac8] sm:$0xff] }
 0x548   :  { %1521 = vmatmul.f32.gmra.mxu0 %v484_v52  ;;  %2232 = vmatmul.f32.gmra.mxu2 %v958_v44  ;;  %v961_v52 = vld [vmem:[#allocation5 + $0x18f8] sm:$0xff] }
 0x549   :  { %v4393_v47 = vadd.f32 %v4341_v33, %v4331_v9  ;;  %2828 = vmatmul.f32.gmra.mxu1 %v485_v42  ;;  %3539 = vmatmul.f32.gmra.mxu3 %v959_v58  ;;  %v487_v9 = vld [vmem:[#allocation5 + $0xa28] sm:$0xff]  ;;  %v4333_v33 = vmul.f32 %v7055_v35, %v7049_v17  ;;  %v490_v35 = vld [vmem:[#allocation5 + $0xa40] sm:$0xff] }
 0x54b   :  { %v4417_v5 = vadd.f32 %v4393_v47, %v6987_v43  ;;  %v2185_v62 = vpop.f32.mrf.mxu2 }
 0x54c   :  { %v3492_v25 = vpop.f32.mrf.mxu3 }
 0x54d   :  { %v3493_v20 = vadd.f32 %v3492_v25, %v2185_v62  ;;  %v7124_v4 = vpop.f32.mrf.mxu0  ;;  %v7127_v36 = vadd.f32 %v4417_v5, %v6861_v19  ;;  %v488_v5 = vld [vmem:[#allocation5 + $0xa30] sm:$0xff] }
 0x54e   :  { %v7129_v41 = vpop.f32.mrf.mxu1 }
 0x54f   :  { %9354 = vst [vmem:[#allocation336_spill] sm:$0xff] %v7127_v36  ;;  %v4342_v44 = vmul.f32 %v7057_v6, %v3493_v20  ;;  %v489_v20 = vld [vmem:[#allocation5 + $0xa38] sm:$0xff] }
 0x550   :  { %1524 = vmatmul.f32.gmra.mxu0 %v486_v23  ;;  %2235 = vmatmul.f32.gmra.mxu2 %v960_v37 }
 0x551   :  { %v4394_v43 = vadd.f32 %v4342_v44, %v4332_v12  ;;  %2831 = vmatmul.f32.gmra.mxu1 %v487_v9  ;;  %3542 = vmatmul.f32.gmra.mxu3 %v961_v52  ;;  %v492_v44 = vld [vmem:[#allocation5 + $0xa50] sm:$0xff] }
 0x553   :  { %v4418_v59 = vadd.f32 %v4394_v43, %v6996_v54  ;;  %v2188_v42 = vpop.f32.mrf.mxu2  ;;  %v493_v43 = vld [vmem:[#allocation5 + $0xa58] sm:$0xff] }
 0x554   :  { %v3495_v58 = vpop.f32.mrf.mxu3 }
 0x555   :  { %v3496_v19 = vadd.f32 %v3495_v58, %v2188_v42  ;;  %v7135_v47 = vpop.f32.mrf.mxu0  ;;  %v7138_v62 = vadd.f32 %v4418_v59, %v6871_v3  ;;  %v491_v3 = vld [vmem:[#allocation5 + $0xa48] sm:$0xff] }
 0x556   :  { %9355 = vst [vmem:[#allocation337_spill] sm:$0xff] %v7135_v47  ;;  %v7140_v25 = vpop.f32.mrf.mxu1  ;;  %v495_v58 = vld [vmem:[#allocation5 + $0xa68] sm:$0xff] }
 0x557   :  { %9356 = vst [vmem:[#allocation338_spill] sm:$0xff] %v7138_v62  ;;  %v4343_v12 = vmul.f32 %v7057_v6, %v3496_v19  ;;  %v496_v19 = vld [vmem:[#allocation5 + $0xa70] sm:$0xff]  ;;  %v505_v62 = vld [vmem:[#allocation5 + $0xab8] sm:$0xff] }
 0x558   :  { %9357 = vst [vmem:[#allocation339_spill] sm:$0xff] %v7140_v25  ;;  %1527 = vmatmul.f32.gmra.mxu0 %v488_v5 }
 0x559   :  { %v4395_v23 = vadd.f32 %v4343_v12, %v4333_v33  ;;  %2834 = vmatmul.f32.gmra.mxu1 %v489_v20  ;;  %v497_v20 = vld [vmem:[#allocation5 + $0xa78] sm:$0xff] }
 0x55b   :  { %v4419_v54 = vadd.f32 %v4395_v23, %v7005_v63  ;;  %v4538_v63 = vld [vmem:[#allocation10 + $0x28] sm:$0xff]  ;;  %v498_v23 = vld [vmem:[#allocation5 + $0xa80] sm:$0xff] }
 0x55c   :  { %4559 = vmatpush.msrb.mxu2 %v4538_v63  ;;  %4791 = vmatpush.msrb.mxu3 %v4538_v63  ;;  %v501_v63 = vld [vmem:[#allocation5 + $0xa98] sm:$0xff] }
 0x55d   :  { %v7144_v37 = vpop.f32.mrf.mxu0  ;;  %v7147_v17 = vadd.f32 %v4419_v54, %v6881_v31  ;;  %v494_v31 = vld [vmem:[#allocation5 + $0xa60] sm:$0xff] }
 0x55e   :  { %9358 = vst [vmem:[#allocation340_spill] sm:$0xff] %v7144_v37  ;;  %v7149_v9 = vpop.f32.mrf.mxu1  ;;  %v977_v37 = vld [vmem:[#allocation5 + $0x1978] sm:$0xff] }
 0x55f   :  { %9359 = vst [vmem:[#allocation341_spill] sm:$0xff] %v7147_v17 }
 0x560   :  { %9360 = vst [vmem:[#allocation342_spill] sm:$0xff] %v7149_v9  ;;  %1530 = vmatmul.f32.gmra.mxu0 %v490_v35  ;;  %v499_v35 = vld [vmem:[#allocation5 + $0xa88] sm:$0xff]  ;;  %v976_v9 = vld [vmem:[#allocation5 + $0x1970] sm:$0xff] }
 0x561   :  { %2837 = vmatmul.f32.gmra.mxu1 %v491_v3 }
 0x565   :  { %v7151_v52 = vpop.f32.mrf.mxu0 }
 0x566   :  { %9361 = vst [vmem:[#allocation343_spill] sm:$0xff] %v7151_v52  ;;  %v7153_v6 = vpop.f32.mrf.mxu1  ;;  %v975_v52 = vld [vmem:[#allocation5 + $0x1968] sm:$0xff] }
 0x567   :  { %9362 = vst [vmem:[#allocation344_spill] sm:$0xff] %v7153_v6  ;;  %v974_v6 = vld [vmem:[#allocation5 + $0x1960] sm:$0xff] }
 0x568   :  { %1533 = vmatmul.f32.gmra.mxu0 %v492_v44  ;;  %v500_v44 = vld [vmem:[#allocation5 + $0xa90] sm:$0xff] }
 0x569   :  { %2840 = vmatmul.f32.gmra.mxu1 %v493_v43 }
 0x56d   :  { %v7155_v59 = vpop.f32.mrf.mxu0 }
 0x56e   :  { %9363 = vst [vmem:[#allocation345_spill] sm:$0xff] %v7155_v59  ;;  %v7157_v42 = vpop.f32.mrf.mxu1  ;;  %v7277_v59 = vpop.f32.mrf.mxu3 }
 0x56f   :  { %9364 = vst [vmem:[#allocation346_spill] sm:$0xff] %v7157_v42 }
 0x570   :  { %1536 = vmatmul.f32.gmra.mxu0 %v494_v31  ;;  %9410 = vst [vmem:[#allocation392_spill] sm:$0xff] %v7277_v59  ;;  %v556_v59 = vld [vmem:[#allocation5 + $0xc50] sm:$0xff] }
 0x571   :  { %2843 = vmatmul.f32.gmra.mxu1 %v495_v58  ;;  %v502_v58 = vld [vmem:[#allocation5 + $0xaa0] sm:$0xff] }
 0x575   :  { %v7159_v33 = vpop.f32.mrf.mxu0 }
 0x576   :  { %9365 = vst [vmem:[#allocation347_spill] sm:$0xff] %v7159_v33  ;;  %v7161_v5 = vpop.f32.mrf.mxu1  ;;  %v552_v33 = vld [vmem:[#allocation5 + $0xc30] sm:$0xff] }
 0x577   :  { %9366 = vst [vmem:[#allocation348_spill] sm:$0xff] %v7161_v5 }
 0x578   :  { %1539 = vmatmul.f32.gmra.mxu0 %v496_v19 }
 0x579   :  { %2846 = vmatmul.f32.gmra.mxu1 %v497_v20  ;;  %v503_v20 = vld [vmem:[#allocation5 + $0xaa8] sm:$0xff] }
 0x57d   :  { %v7163_v12 = vpop.f32.mrf.mxu0 }
 0x57e   :  { %9367 = vst [vmem:[#allocation349_spill] sm:$0xff] %v7163_v12  ;;  %v7165_v54 = vpop.f32.mrf.mxu1  ;;  %v550_v12 = vld [vmem:[#allocation5 + $0xc20] sm:$0xff] }
 0x57f   :  { %9368 = vst [vmem:[#allocation350_spill] sm:$0xff] %v7165_v54 }
 0x580   :  { %1542 = vmatmul.f32.gmra.mxu0 %v498_v23  ;;  %v504_v23 = vld [vmem:[#allocation5 + $0xab0] sm:$0xff] }
 0x581   :  { %2849 = vmatmul.f32.gmra.mxu1 %v499_v35 }
 0x585   :  { %v7167_v3 = vpop.f32.mrf.mxu0 }
 0x586   :  { %9369 = vst [vmem:[#allocation351_spill] sm:$0xff] %v7167_v3  ;;  %v7169_v43 = vpop.f32.mrf.mxu1  ;;  %v548_v3 = vld [vmem:[#allocation5 + $0xc10] sm:$0xff] }
 0x587   :  { %9370 = vst [vmem:[#allocation352_spill] sm:$0xff] %v7169_v43 }
 0x588   :  { %1545 = vmatmul.f32.gmra.mxu0 %v500_v44  ;;  %v506_v44 = vld [vmem:[#allocation5 + $0xac0] sm:$0xff] }
 0x589   :  { %2852 = vmatmul.f32.gmra.mxu1 %v501_v63 }
 0x58d   :  { %v7171_v31 = vpop.f32.mrf.mxu0 }
 0x58e   :  { %9371 = vst [vmem:[#allocation353_spill] sm:$0xff] %v7171_v31  ;;  %v7173_v19 = vpop.f32.mrf.mxu1  ;;  %v546_v31 = vld [vmem:[#allocation5 + $0xc00] sm:$0xff] }
 0x58f   :  { %9372 = vst [vmem:[#allocation354_spill] sm:$0xff] %v7173_v19 }
 0x590   :  { %1548 = vmatmul.f32.gmra.mxu0 %v502_v58  ;;  %v508_v58 = vld [vmem:[#allocation5 + $0xad0] sm:$0xff] }
 0x591   :  { %2855 = vmatmul.f32.gmra.mxu1 %v503_v20 }
 0x595   :  { %v7175_v17 = vpop.f32.mrf.mxu0 }
 0x596   :  { %9373 = vst [vmem:[#allocation355_spill] sm:$0xff] %v7175_v17  ;;  %v7177_v35 = vpop.f32.mrf.mxu1  ;;  %v964_v17 = vld [vmem:[#allocation5 + $0x1910] sm:$0xff] }
 0x597   :  { %9374 = vst [vmem:[#allocation356_spill] sm:$0xff] %v7177_v35  ;;  %v544_v35 = vld [vmem:[#allocation5 + $0xbf0] sm:$0xff] }
 0x598   :  { %1551 = vmatmul.f32.gmra.mxu0 %v504_v23  ;;  %v510_v23 = vld [vmem:[#allocation5 + $0xae0] sm:$0xff] }
 0x599   :  { %2858 = vmatmul.f32.gmra.mxu1 %v505_v62 }
 0x59d   :  { %v7179_v36 = vpop.f32.mrf.mxu0 }
 0x59e   :  { %9375 = vst [vmem:[#allocation357_spill] sm:$0xff] %v7179_v36  ;;  %v7181_v63 = vpop.f32.mrf.mxu1  ;;  %v962_v36 = vld [vmem:[#allocation5 + $0x1900] sm:$0xff] }
 0x59f   :  { %9376 = vst [vmem:[#allocation358_spill] sm:$0xff] %v7181_v63  ;;  %2238 = vmatmul.f32.gmra.mxu2 %v962_v36  ;;  %v547_v36 = vld [vmem:[#allocation5 + $0xc08] sm:$0xff] }
 0x5a0   :  { %1554 = vmatmul.f32.gmra.mxu0 %v506_v44  ;;  %v512_v44 = vld [vmem:[#allocation5 + $0xaf0] sm:$0xff] }
 0x5a1   :  { %2861 = vmatmul.f32.gmra.mxu1 %v507_v30 }
 0x5a5   :  { %v7183_v15 = vpop.f32.mrf.mxu0 }
 0x5a6   :  { %9377 = vst [vmem:[#allocation359_spill] sm:$0xff] %v7183_v15  ;;  %v7185_v20 = vpop.f32.mrf.mxu1  ;;  %v513_v15 = vld [vmem:[#allocation5 + $0xaf8] sm:$0xff] }
 0x5a7   :  { %9378 = vst [vmem:[#allocation360_spill] sm:$0xff] %v7185_v20  ;;  %2241 = vmatmul.f32.gmra.mxu2 %v964_v17  ;;  %v549_v17 = vld [vmem:[#allocation5 + $0xc18] sm:$0xff] }
 0x5a8   :  { %1557 = vmatmul.f32.gmra.mxu0 %v508_v58  ;;  %v514_v58 = vld [vmem:[#allocation5 + $0xb00] sm:$0xff] }
 0x5a9   :  { %2864 = vmatmul.f32.gmra.mxu1 %v509_v24 }
 0x5ad   :  { %v7187_v61 = vpop.f32.mrf.mxu0 }
 0x5ae   :  { %9379 = vst [vmem:[#allocation361_spill] sm:$0xff] %v7187_v61  ;;  %v7189_v62 = vpop.f32.mrf.mxu1  ;;  %v515_v61 = vld [vmem:[#allocation5 + $0xb08] sm:$0xff] }
 0x5af   :  { %9380 = vst [vmem:[#allocation362_spill] sm:$0xff] %v7189_v62 }
 0x5b0   :  { %1560 = vmatmul.f32.gmra.mxu0 %v510_v23  ;;  %v516_v23 = vld [vmem:[#allocation5 + $0xb10] sm:$0xff] }
 0x5b1   :  { %2867 = vmatmul.f32.gmra.mxu1 %v511_v8 }
 0x5b5   :  { %v7191_v63 = vpop.f32.mrf.mxu0 }
 0x5b6   :  { %9381 = vst [vmem:[#allocation363_spill] sm:$0xff] %v7191_v63  ;;  %v7193_v30 = vpop.f32.mrf.mxu1  ;;  %v517_v63 = vld [vmem:[#allocation5 + $0xb18] sm:$0xff] }
 0x5b7   :  { %9382 = vst [vmem:[#allocation364_spill] sm:$0xff] %v7193_v30  ;;  %v4537_v30 = vld [vmem:[#allocation10 + $0x20] sm:$0xff] }
 0x5b8   :  { %1563 = vmatmul.f32.gmra.mxu0 %v512_v44  ;;  %4560 = vmatpush.msrb.mxu2 %v4537_v30  ;;  %v518_v44 = vld [vmem:[#allocation5 + $0xb20] sm:$0xff] }
 0x5b9   :  { %2870 = vmatmul.f32.gmra.mxu1 %v513_v15  ;;  %4792 = vmatpush.msrb.mxu3 %v4537_v30 }
 0x5bd   :  { %v7195_v20 = vpop.f32.mrf.mxu0 }
 0x5be   :  { %9383 = vst [vmem:[#allocation365_spill] sm:$0xff] %v7195_v20  ;;  %v7197_v24 = vpop.f32.mrf.mxu1 }
 0x5bf   :  { %9384 = vst [vmem:[#allocation366_spill] sm:$0xff] %v7197_v24  ;;  %v519_v24 = vld [vmem:[#allocation5 + $0xb28] sm:$0xff] }
 0x5c0   :  { %1566 = vmatmul.f32.gmra.mxu0 %v514_v58  ;;  %v520_v58 = vld [vmem:[#allocation5 + $0xb30] sm:$0xff] }
 0x5c1   :  { %2873 = vmatmul.f32.gmra.mxu1 %v515_v61 }
 0x5c5   :  { %v7199_v62 = vpop.f32.mrf.mxu0 }
 0x5c6   :  { %9385 = vst [vmem:[#allocation367_spill] sm:$0xff] %v7199_v62  ;;  %v7201_v8 = vpop.f32.mrf.mxu1 }
 0x5c7   :  { %9386 = vst [vmem:[#allocation368_spill] sm:$0xff] %v7201_v8  ;;  %v521_v8 = vld [vmem:[#allocation5 + $0xb38] sm:$0xff] }
 0x5c8   :  { %1569 = vmatmul.f32.gmra.mxu0 %v516_v23  ;;  %v522_v23 = vld [vmem:[#allocation5 + $0xb40] sm:$0xff] }
 0x5c9   :  { %2876 = vmatmul.f32.gmra.mxu1 %v517_v63 }
 0x5cd   :  { %v7203_v15 = vpop.f32.mrf.mxu0 }
 0x5ce   :  { %9387 = vst [vmem:[#allocation369_spill] sm:$0xff] %v7203_v15  ;;  %v7205_v20 = vpop.f32.mrf.mxu1  ;;  %v523_v15 = vld [vmem:[#allocation5 + $0xb48] sm:$0xff] }
 0x5cf   :  { %9388 = vst [vmem:[#allocation370_spill] sm:$0xff] %v7205_v20 }
 0x5d0   :  { %1572 = vmatmul.f32.gmra.mxu0 %v518_v44  ;;  %v524_v44 = vld [vmem:[#allocation5 + $0xb50] sm:$0xff] }
 0x5d1   :  { %2879 = vmatmul.f32.gmra.mxu1 %v519_v24 }
 0x5d5   :  { %v7207_v61 = vpop.f32.mrf.mxu0 }
 0x5d6   :  { %9389 = vst [vmem:[#allocation371_spill] sm:$0xff] %v7207_v61  ;;  %v7209_v62 = vpop.f32.mrf.mxu1  ;;  %v525_v61 = vld [vmem:[#allocation5 + $0xb58] sm:$0xff] }
 0x5d7   :  { %9390 = vst [vmem:[#allocation372_spill] sm:$0xff] %v7209_v62 }
 0x5d8   :  { %1575 = vmatmul.f32.gmra.mxu0 %v520_v58  ;;  %v526_v58 = vld [vmem:[#allocation5 + $0xb60] sm:$0xff] }
 0x5d9   :  { %2882 = vmatmul.f32.gmra.mxu1 %v521_v8 }
 0x5dd   :  { %v7211_v63 = vpop.f32.mrf.mxu0 }
 0x5de   :  { %9391 = vst [vmem:[#allocation373_spill] sm:$0xff] %v7211_v63  ;;  %v7213_v30 = vpop.f32.mrf.mxu1  ;;  %v527_v63 = vld [vmem:[#allocation5 + $0xb68] sm:$0xff] }
 0x5df   :  { %9392 = vst [vmem:[#allocation374_spill] sm:$0xff] %v7213_v30 }
 0x5e0   :  { %1578 = vmatmul.f32.gmra.mxu0 %v522_v23  ;;  %v528_v23 = vld [vmem:[#allocation5 + $0xb70] sm:$0xff] }
 0x5e1   :  { %2885 = vmatmul.f32.gmra.mxu1 %v523_v15 }
 0x5e5   :  { %v7215_v20 = vpop.f32.mrf.mxu0 }
 0x5e6   :  { %9393 = vst [vmem:[#allocation375_spill] sm:$0xff] %v7215_v20  ;;  %v7217_v24 = vpop.f32.mrf.mxu1  ;;  %v529_v20 = vld [vmem:[#allocation5 + $0xb78] sm:$0xff] }
 0x5e7   :  { %9394 = vst [vmem:[#allocation376_spill] sm:$0xff] %v7217_v24 }
 0x5e8   :  { %1581 = vmatmul.f32.gmra.mxu0 %v524_v44  ;;  %v530_v44 = vld [vmem:[#allocation5 + $0xb80] sm:$0xff] }
 0x5e9   :  { %2888 = vmatmul.f32.gmra.mxu1 %v525_v61 }
 0x5ed   :  { %v7219_v62 = vpop.f32.mrf.mxu0 }
 0x5ee   :  { %9395 = vst [vmem:[#allocation377_spill] sm:$0xff] %v7219_v62  ;;  %v7221_v8 = vpop.f32.mrf.mxu1  ;;  %v531_v62 = vld [vmem:[#allocation5 + $0xb88] sm:$0xff] }
 0x5ef   :  { %9396 = vst [vmem:[#allocation378_spill] sm:$0xff] %v7221_v8 }
 0x5f0   :  { %1584 = vmatmul.f32.gmra.mxu0 %v526_v58  ;;  %v532_v58 = vld [vmem:[#allocation5 + $0xb90] sm:$0xff] }
 0x5f1   :  { %2891 = vmatmul.f32.gmra.mxu1 %v527_v63 }
 0x5f5   :  { %v7223_v30 = vpop.f32.mrf.mxu0 }
 0x5f6   :  { %9397 = vst [vmem:[#allocation379_spill] sm:$0xff] %v7223_v30  ;;  %v7225_v15 = vpop.f32.mrf.mxu1  ;;  %v533_v30 = vld [vmem:[#allocation5 + $0xb98] sm:$0xff] }
 0x5f7   :  { %9398 = vst [vmem:[#allocation380_spill] sm:$0xff] %v7225_v15 }
 0x5f8   :  { %1587 = vmatmul.f32.gmra.mxu0 %v528_v23  ;;  %v534_v23 = vld [vmem:[#allocation5 + $0xba0] sm:$0xff] }
 0x5f9   :  { %2894 = vmatmul.f32.gmra.mxu1 %v529_v20 }
 0x5fd   :  { %v7227_v24 = vpop.f32.mrf.mxu0 }
 0x5fe   :  { %9399 = vst [vmem:[#allocation381_spill] sm:$0xff] %v7227_v24  ;;  %v7229_v61 = vpop.f32.mrf.mxu1  ;;  %v535_v24 = vld [vmem:[#allocation5 + $0xba8] sm:$0xff] }
 0x5ff   :  { %9400 = vst [vmem:[#allocation382_spill] sm:$0xff] %v7229_v61 }
 0x600   :  { %1590 = vmatmul.f32.gmra.mxu0 %v530_v44  ;;  %v536_v44 = vld [vmem:[#allocation5 + $0xbb0] sm:$0xff] }
 0x601   :  { %2897 = vmatmul.f32.gmra.mxu1 %v531_v62 }
 0x605   :  { %v7231_v8 = vpop.f32.mrf.mxu0 }
 0x606   :  { %9401 = vst [vmem:[#allocation383_spill] sm:$0xff] %v7231_v8  ;;  %v7233_v63 = vpop.f32.mrf.mxu1  ;;  %v537_v8 = vld [vmem:[#allocation5 + $0xbb8] sm:$0xff] }
 0x607   :  { %9402 = vst [vmem:[#allocation384_spill] sm:$0xff] %v7233_v63 }
 0x608   :  { %1593 = vmatmul.f32.gmra.mxu0 %v532_v58  ;;  %v538_v58 = vld [vmem:[#allocation5 + $0xbc0] sm:$0xff] }
 0x609   :  { %2900 = vmatmul.f32.gmra.mxu1 %v533_v30 }
 0x60d   :  { %v7235_v15 = vpop.f32.mrf.mxu0 }
 0x60e   :  { %9403 = vst [vmem:[#allocation385_spill] sm:$0xff] %v7235_v15  ;;  %v7237_v20 = vpop.f32.mrf.mxu1  ;;  %v539_v15 = vld [vmem:[#allocation5 + $0xbc8] sm:$0xff] }
 0x60f   :  { %9404 = vst [vmem:[#allocation386_spill] sm:$0xff] %v7237_v20 }
 0x610   :  { %1596 = vmatmul.f32.gmra.mxu0 %v534_v23  ;;  %v540_v23 = vld [vmem:[#allocation5 + $0xbd0] sm:$0xff] }
 0x611   :  { %2903 = vmatmul.f32.gmra.mxu1 %v535_v24 }
 0x615   :  { %v7239_v61 = vpop.f32.mrf.mxu0 }
 0x616   :  { %9405 = vst [vmem:[#allocation387_spill] sm:$0xff] %v7239_v61  ;;  %v7241_v62 = vpop.f32.mrf.mxu1  ;;  %v541_v61 = vld [vmem:[#allocation5 + $0xbd8] sm:$0xff] }
 0x617   :  { %9406 = vst [vmem:[#allocation388_spill] sm:$0xff] %v7241_v62  ;;  %v4536_v62 = vld [vmem:[#allocation10 + $0x18] sm:$0xff] }
 0x618   :  { %1599 = vmatmul.f32.gmra.mxu0 %v536_v44  ;;  %4561 = vmatpush.msrb.mxu2 %v4536_v62  ;;  %v542_v44 = vld [vmem:[#allocation5 + $0xbe0] sm:$0xff] }
 0x619   :  { %2906 = vmatmul.f32.gmra.mxu1 %v537_v8  ;;  %4793 = vmatpush.msrb.mxu3 %v4536_v62  ;;  %v965_v62 = vld [vmem:[#allocation5 + $0x1918] sm:$0xff] }
 0x61d   :  { %v7243_v63 = vpop.f32.mrf.mxu0 }
 0x61e   :  { %9407 = vst [vmem:[#allocation389_spill] sm:$0xff] %v7243_v63  ;;  %v7245_v30 = vpop.f32.mrf.mxu1 }
 0x61f   :  { %9408 = vst [vmem:[#allocation390_spill] sm:$0xff] %v7245_v30  ;;  %v543_v30 = vld [vmem:[#allocation5 + $0xbe8] sm:$0xff] }
 0x620   :  { %1602 = vmatmul.f32.gmra.mxu0 %v538_v58  ;;  %v963_v58 = vld [vmem:[#allocation5 + $0x1908] sm:$0xff] }
 0x621   :  { %2909 = vmatmul.f32.gmra.mxu1 %v539_v15  ;;  %3545 = vmatmul.f32.gmra.mxu3 %v963_v58 }
 0x625   :  { %v7247_v20 = vpop.f32.mrf.mxu0 }
 0x626   :  { %v7249_v24 = vpop.f32.mrf.mxu1 }
 0x628   :  { %1605 = vmatmul.f32.gmra.mxu0 %v540_v23 }
 0x629   :  { %2912 = vmatmul.f32.gmra.mxu1 %v541_v61  ;;  %v545_v61 = vld [vmem:[#allocation5 + $0xbf8] sm:$0xff]  ;;  %3548 = vmatmul.f32.gmra.mxu3 %v965_v62 }
 0x62d   :  { %v7251_v8 = vpop.f32.mrf.mxu0 }
 0x62e   :  { %v7253_v63 = vpop.f32.mrf.mxu1 }
 0x630   :  { %1608 = vmatmul.f32.gmra.mxu0 %v542_v44  ;;  %v966_v44 = vld [vmem:[#allocation5 + $0x1920] sm:$0xff] }
 0x631   :  { %2915 = vmatmul.f32.gmra.mxu1 %v543_v30  ;;  %v967_v30 = vld [vmem:[#allocation5 + $0x1928] sm:$0xff]  ;;  %2244 = vmatmul.f32.gmra.mxu2 %v966_v44 }
 0x632   :  { %3551 = vmatmul.f32.gmra.mxu3 %v967_v30  ;;  %v551_v44 = vld [vmem:[#allocation5 + $0xc28] sm:$0xff] }
 0x635   :  { %v7255_v15 = vpop.f32.mrf.mxu0 }
 0x636   :  { %v7257_v23 = vpop.f32.mrf.mxu1 }
 0x638   :  { %1611 = vmatmul.f32.gmra.mxu0 %v544_v35  ;;  %v968_v35 = vld [vmem:[#allocation5 + $0x1930] sm:$0xff] }
 0x639   :  { %2918 = vmatmul.f32.gmra.mxu1 %v545_v61  ;;  %v969_v61 = vld [vmem:[#allocation5 + $0x1938] sm:$0xff]  ;;  %2247 = vmatmul.f32.gmra.mxu2 %v968_v35 }
 0x63a   :  { %3554 = vmatmul.f32.gmra.mxu3 %v969_v61  ;;  %v553_v35 = vld [vmem:[#allocation5 + $0xc38] sm:$0xff]  ;;  %v7275_v61 = vpop.f32.mrf.mxu2 }
 0x63b   :  { %9409 = vst [vmem:[#allocation391_spill] sm:$0xff] %v7275_v61  ;;  %v557_v61 = vld [vmem:[#allocation5 + $0xc58] sm:$0xff] }
 0x63d   :  { %v7259_v19 = vpop.f32.mrf.mxu0 }
 0x63e   :  { %v7261_v43 = vpop.f32.mrf.mxu1 }
 0x640   :  { %1614 = vmatmul.f32.gmra.mxu0 %v546_v31  ;;  %v970_v31 = vld [vmem:[#allocation5 + $0x1940] sm:$0xff] }
 0x641   :  { %2921 = vmatmul.f32.gmra.mxu1 %v547_v36  ;;  %v971_v36 = vld [vmem:[#allocation5 + $0x1948] sm:$0xff]  ;;  %2250 = vmatmul.f32.gmra.mxu2 %v970_v31 }
 0x642   :  { %3557 = vmatmul.f32.gmra.mxu3 %v971_v36  ;;  %v555_v36 = vld [vmem:[#allocation5 + $0xc48] sm:$0xff] }
 0x645   :  { %v7263_v58 = vpop.f32.mrf.mxu0 }
 0x646   :  { %v7265_v54 = vpop.f32.mrf.mxu1 }
 0x648   :  { %1617 = vmatmul.f32.gmra.mxu0 %v548_v3  ;;  %v972_v3 = vld [vmem:[#allocation5 + $0x1950] sm:$0xff] }
 0x649   :  { %2924 = vmatmul.f32.gmra.mxu1 %v549_v17  ;;  %v973_v17 = vld [vmem:[#allocation5 + $0x1958] sm:$0xff]  ;;  %2253 = vmatmul.f32.gmra.mxu2 %v972_v3  ;;  %v7283_v3 = vpop.f32.mrf.mxu2 }
 0x64a   :  { %3560 = vmatmul.f32.gmra.mxu3 %v973_v17  ;;  %9413 = vst [vmem:[#allocation395_spill] sm:$0xff] %v7283_v3  ;;  %v7285_v17 = vpop.f32.mrf.mxu3  ;;  %v559_v3 = vld [vmem:[#allocation5 + $0xc68] sm:$0xff] }
 0x64b   :  { %9414 = vst [vmem:[#allocation396_spill] sm:$0xff] %v7285_v17 }
 0x64d   :  { %v7267_v62 = vpop.f32.mrf.mxu0 }
 0x64e   :  { %v7269_v5 = vpop.f32.mrf.mxu1 }
 0x650   :  { %1620 = vmatmul.f32.gmra.mxu0 %v550_v12  ;;  %v554_v12 = vld [vmem:[#allocation5 + $0xc40] sm:$0xff] }
 0x651   :  { %2927 = vmatmul.f32.gmra.mxu1 %v551_v44  ;;  %2256 = vmatmul.f32.gmra.mxu2 %v974_v6  ;;  %v7291_v6 = vpop.f32.mrf.mxu2 }
 0x652   :  { %3563 = vmatmul.f32.gmra.mxu3 %v975_v52  ;;  %9417 = vst [vmem:[#allocation399_spill] sm:$0xff] %v7291_v6  ;;  %v7293_v52 = vpop.f32.mrf.mxu3  ;;  %v980_v6 = vld [vmem:[#allocation5 + $0x1990] sm:$0xff] }
 0x653   :  { %9418 = vst [vmem:[#allocation400_spill] sm:$0xff] %v7293_v52  ;;  %v561_v52 = vld [vmem:[#allocation5 + $0xc78] sm:$0xff] }
 0x655   :  { %v7271_v30 = vpop.f32.mrf.mxu0 }
 0x656   :  { %v7273_v42 = vpop.f32.mrf.mxu1 }
 0x658   :  { %1623 = vmatmul.f32.gmra.mxu0 %v552_v33 }
 0x659   :  { %2930 = vmatmul.f32.gmra.mxu1 %v553_v35  ;;  %2259 = vmatmul.f32.gmra.mxu2 %v976_v9 }
 0x65a   :  { %3566 = vmatmul.f32.gmra.mxu3 %v977_v37  ;;  %v560_v37 = vld [vmem:[#allocation5 + $0xc70] sm:$0xff] }
 0x65d   :  { %v7279_v31 = vpop.f32.mrf.mxu0 }
 0x65e   :  { %9411 = vst [vmem:[#allocation393_spill] sm:$0xff] %v7279_v31  ;;  %v7281_v44 = vpop.f32.mrf.mxu1 }
 0x65f   :  { %9412 = vst [vmem:[#allocation394_spill] sm:$0xff] %v7281_v44  ;;  %v979_v44 = vld [vmem:[#allocation5 + $0x1988] sm:$0xff] }
 0x660   :  { %1626 = vmatmul.f32.gmra.mxu0 %v554_v12 }
 0x661   :  { %2933 = vmatmul.f32.gmra.mxu1 %v555_v36  ;;  %v558_v36 = vld [vmem:[#allocation5 + $0xc60] sm:$0xff] }
 0x662   :  { %3569 = vmatmul.f32.gmra.mxu3 %v979_v44  ;;  %v562_v44 = vld [vmem:[#allocation5 + $0xc80] sm:$0xff] }
 0x665   :  { %v7287_v33 = vpop.f32.mrf.mxu0 }
 0x666   :  { %9415 = vst [vmem:[#allocation397_spill] sm:$0xff] %v7287_v33  ;;  %v7289_v35 = vpop.f32.mrf.mxu1  ;;  %v978_v33 = vld [vmem:[#allocation5 + $0x1980] sm:$0xff] }
 0x667   :  { %9416 = vst [vmem:[#allocation398_spill] sm:$0xff] %v7289_v35  ;;  %2262 = vmatmul.f32.gmra.mxu2 %v978_v33  ;;  %v7305_v35 = vpop.f32.mrf.mxu3 }
 0x668   :  { %1629 = vmatmul.f32.gmra.mxu0 %v556_v59  ;;  %v7301_v59 = vpop.f32.mrf.mxu2  ;;  %9424 = vst [vmem:[#allocation406_spill] sm:$0xff] %v7305_v35  ;;  %v984_v35 = vld [vmem:[#allocation5 + $0x19b0] sm:$0xff] }
 0x669   :  { %2936 = vmatmul.f32.gmra.mxu1 %v557_v61  ;;  %9422 = vst [vmem:[#allocation404_spill] sm:$0xff] %v7301_v59 }
 0x66d   :  { %v7295_v12 = vpop.f32.mrf.mxu0 }
 0x66e   :  { %9419 = vst [vmem:[#allocation401_spill] sm:$0xff] %v7295_v12  ;;  %v7297_v17 = vpop.f32.mrf.mxu1  ;;  %v981_v12 = vld [vmem:[#allocation5 + $0x1998] sm:$0xff] }
 0x66f   :  { %9420 = vst [vmem:[#allocation402_spill] sm:$0xff] %v7297_v17  ;;  %2265 = vmatmul.f32.gmra.mxu2 %v980_v6  ;;  %3572 = vmatmul.f32.gmra.mxu3 %v981_v12  ;;  %v983_v17 = vld [vmem:[#allocation5 + $0x19a8] sm:$0xff]  ;;  %v564_v12 = vld [vmem:[#allocation5 + $0xc90] sm:$0xff] }
 0x670   :  { %1632 = vmatmul.f32.gmra.mxu0 %v558_v36  ;;  %v563_v36 = vld [vmem:[#allocation5 + $0xc88] sm:$0xff]  ;;  %v7311_v59 = vpop.f32.mrf.mxu2 }
 0x671   :  { %2939 = vmatmul.f32.gmra.mxu1 %v559_v3  ;;  %9427 = vst [vmem:[#allocation409_spill] sm:$0xff] %v7311_v59 }
 0x675   :  { %v7299_v9 = vpop.f32.mrf.mxu0 }
 0x676   :  { %9421 = vst [vmem:[#allocation403_spill] sm:$0xff] %v7299_v9  ;;  %v7303_v61 = vpop.f32.mrf.mxu1  ;;  %v982_v9 = vld [vmem:[#allocation5 + $0x19a0] sm:$0xff] }
 0x677   :  { %9423 = vst [vmem:[#allocation405_spill] sm:$0xff] %v7303_v61  ;;  %2268 = vmatmul.f32.gmra.mxu2 %v982_v9  ;;  %3575 = vmatmul.f32.gmra.mxu3 %v983_v17  ;;  %v7313_v61 = vpop.f32.mrf.mxu3 }
 0x678   :  { %1635 = vmatmul.f32.gmra.mxu0 %v560_v37  ;;  %9428 = vst [vmem:[#allocation410_spill] sm:$0xff] %v7313_v61  ;;  %v565_v37 = vld [vmem:[#allocation5 + $0xc98] sm:$0xff]  ;;  %v7319_v9 = vpop.f32.mrf.mxu2  ;;  %v566_v61 = vld [vmem:[#allocation5 + $0xca0] sm:$0xff] }
 0x679   :  { %2942 = vmatmul.f32.gmra.mxu1 %v561_v52  ;;  %9431 = vst [vmem:[#allocation413_spill] sm:$0xff] %v7319_v9  ;;  %v988_v9 = vld [vmem:[#allocation5 + $0x19d0] sm:$0xff] }
 0x67d   :  { %v7307_v33 = vpop.f32.mrf.mxu0 }
 0x67e   :  { %9425 = vst [vmem:[#allocation407_spill] sm:$0xff] %v7307_v33  ;;  %v7309_v3 = vpop.f32.mrf.mxu1  ;;  %v985_v33 = vld [vmem:[#allocation5 + $0x19b8] sm:$0xff] }
 0x67f   :  { %9426 = vst [vmem:[#allocation408_spill] sm:$0xff] %v7309_v3  ;;  %2271 = vmatmul.f32.gmra.mxu2 %v984_v35  ;;  %3578 = vmatmul.f32.gmra.mxu3 %v985_v33  ;;  %v7321_v17 = vpop.f32.mrf.mxu3  ;;  %v987_v3 = vld [vmem:[#allocation5 + $0x19c8] sm:$0xff] }
 0x680   :  { %1638 = vmatmul.f32.gmra.mxu0 %v562_v44  ;;  %9432 = vst [vmem:[#allocation414_spill] sm:$0xff] %v7321_v17  ;;  %v4535_v44 = vld [vmem:[#allocation10 + $0x10] sm:$0xff]  ;;  %v7327_v35 = vpop.f32.mrf.mxu2 }
 0x681   :  { %2945 = vmatmul.f32.gmra.mxu1 %v563_v36  ;;  %4562 = vmatpush.msrb.mxu2 %v4535_v44  ;;  %9435 = vst [vmem:[#allocation417_spill] sm:$0xff] %v7327_v35  ;;  %v569_v17 = vld [vmem:[#allocation5 + $0xcb8] sm:$0xff]  ;;  %v990_v35 = vld [vmem:[#allocation5 + $0x19e0] sm:$0xff] }
 0x682   :  { %4794 = vmatpush.msrb.mxu3 %v4535_v44 }
 0x685   :  { %v7315_v6 = vpop.f32.mrf.mxu0 }
 0x686   :  { %9429 = vst [vmem:[#allocation411_spill] sm:$0xff] %v7315_v6  ;;  %v7317_v52 = vpop.f32.mrf.mxu1  ;;  %v986_v6 = vld [vmem:[#allocation5 + $0x19c0] sm:$0xff] }
 0x687   :  { %9430 = vst [vmem:[#allocation412_spill] sm:$0xff] %v7317_v52  ;;  %v567_v52 = vld [vmem:[#allocation5 + $0xca8] sm:$0xff]  ;;  %2274 = vmatmul.f32.gmra.mxu2 %v986_v6  ;;  %3581 = vmatmul.f32.gmra.mxu3 %v987_v3  ;;  %v7329_v33 = vpop.f32.mrf.mxu3 }
 0x688   :  { %1641 = vmatmul.f32.gmra.mxu0 %v564_v12  ;;  %9436 = vst [vmem:[#allocation418_spill] sm:$0xff] %v7329_v33  ;;  %v7337_v3 = vpop.f32.mrf.mxu2  ;;  %v571_v33 = vld [vmem:[#allocation5 + $0xcc8] sm:$0xff] }
 0x689   :  { %2948 = vmatmul.f32.gmra.mxu1 %v565_v37  ;;  %v568_v37 = vld [vmem:[#allocation5 + $0xcb0] sm:$0xff]  ;;  %9440 = vst [vmem:[#allocation422_spill] sm:$0xff] %v7337_v3 }
 0x68d   :  { %v7323_v36 = vpop.f32.mrf.mxu0 }
 0x68e   :  { %9433 = vst [vmem:[#allocation415_spill] sm:$0xff] %v7323_v36  ;;  %v7325_v59 = vpop.f32.mrf.mxu1  ;;  %v989_v36 = vld [vmem:[#allocation5 + $0x19d8] sm:$0xff] }
 0x68f   :  { %9434 = vst [vmem:[#allocation416_spill] sm:$0xff] %v7325_v59  ;;  %2277 = vmatmul.f32.gmra.mxu2 %v988_v9  ;;  %3584 = vmatmul.f32.gmra.mxu3 %v989_v36  ;;  %v7341_v59 = vpop.f32.mrf.mxu3  ;;  %v572_v36 = vld [vmem:[#allocation5 + $0xcd0] sm:$0xff] }
 0x690   :  { %1644 = vmatmul.f32.gmra.mxu0 %v566_v61  ;;  %v570_v61 = vld [vmem:[#allocation5 + $0xcc0] sm:$0xff]  ;;  %9442 = vst [vmem:[#allocation424_spill] sm:$0xff] %v7341_v59  ;;  %v7347_v3 = vpop.f32.mrf.mxu2 }
 0x691   :  { %2951 = vmatmul.f32.gmra.mxu1 %v567_v52  ;;  %9445 = vst [vmem:[#allocation427_spill] sm:$0xff] %v7347_v3  ;;  %v994_v59 = vld [vmem:[#allocation5 + $0x1a00] sm:$0xff]  ;;  %v577_v3 = vld [vmem:[#allocation5 + $0xcf8] sm:$0xff] }
 0x695   :  { %v7331_v12 = vpop.f32.mrf.mxu0 }
 0x696   :  { %9437 = vst [vmem:[#allocation419_spill] sm:$0xff] %v7331_v12  ;;  %v7333_v44 = vpop.f32.mrf.mxu1  ;;  %v991_v12 = vld [vmem:[#allocation5 + $0x19e8] sm:$0xff] }
 0x697   :  { %9438 = vst [vmem:[#allocation420_spill] sm:$0xff] %v7333_v44  ;;  %2280 = vmatmul.f32.gmra.mxu2 %v990_v35  ;;  %3587 = vmatmul.f32.gmra.mxu3 %v991_v12  ;;  %v993_v44 = vld [vmem:[#allocation5 + $0x19f8] sm:$0xff]  ;;  %v574_v12 = vld [vmem:[#allocation5 + $0xce0] sm:$0xff] }
 0x698   :  { %1647 = vmatmul.f32.gmra.mxu0 %v568_v37  ;;  %v573_v37 = vld [vmem:[#allocation5 + $0xcd8] sm:$0xff] }
 0x699   :  { %2954 = vmatmul.f32.gmra.mxu1 %v569_v17 }
 0x69d   :  { %v7335_v6 = vpop.f32.mrf.mxu0 }
 0x69e   :  { %9439 = vst [vmem:[#allocation421_spill] sm:$0xff] %v7335_v6  ;;  %v7339_v52 = vpop.f32.mrf.mxu1  ;;  %v992_v6 = vld [vmem:[#allocation5 + $0x19f0] sm:$0xff] }
 0x69f   :  { %9441 = vst [vmem:[#allocation423_spill] sm:$0xff] %v7339_v52  ;;  %2283 = vmatmul.f32.gmra.mxu2 %v992_v6  ;;  %3590 = vmatmul.f32.gmra.mxu3 %v993_v44  ;;  %v7349_v52 = vpop.f32.mrf.mxu3  ;;  %v7355_v6 = vpop.f32.mrf.mxu2 }
 0x6a0   :  { %1650 = vmatmul.f32.gmra.mxu0 %v570_v61  ;;  %9446 = vst [vmem:[#allocation428_spill] sm:$0xff] %v7349_v52  ;;  %v575_v61 = vld [vmem:[#allocation5 + $0xce8] sm:$0xff]  ;;  %v576_v52 = vld [vmem:[#allocation5 + $0xcf0] sm:$0xff] }
 0x6a1   :  { %2957 = vmatmul.f32.gmra.mxu1 %v571_v33  ;;  %9449 = vst [vmem:[#allocation431_spill] sm:$0xff] %v7355_v6  ;;  %v579_v6 = vld [vmem:[#allocation5 + $0xd08] sm:$0xff] }
 0x6a5   :  { %v7343_v9 = vpop.f32.mrf.mxu0 }
 0x6a6   :  { %9443 = vst [vmem:[#allocation425_spill] sm:$0xff] %v7343_v9  ;;  %v7345_v17 = vpop.f32.mrf.mxu1  ;;  %v995_v9 = vld [vmem:[#allocation5 + $0x1a08] sm:$0xff] }
 0x6a7   :  { %9444 = vst [vmem:[#allocation426_spill] sm:$0xff] %v7345_v17  ;;  %2286 = vmatmul.f32.gmra.mxu2 %v994_v59  ;;  %3593 = vmatmul.f32.gmra.mxu3 %v995_v9  ;;  %v7357_v44 = vpop.f32.mrf.mxu3  ;;  %v997_v17 = vld [vmem:[#allocation5 + $0x1a18] sm:$0xff]  ;;  %v7363_v59 = vpop.f32.mrf.mxu2 }
 0x6a8   :  { %1653 = vmatmul.f32.gmra.mxu0 %v572_v36  ;;  %9450 = vst [vmem:[#allocation432_spill] sm:$0xff] %v7357_v44 }
 0x6a9   :  { %2960 = vmatmul.f32.gmra.mxu1 %v573_v37  ;;  %9453 = vst [vmem:[#allocation435_spill] sm:$0xff] %v7363_v59  ;;  %v1000_v59 = vld [vmem:[#allocation5 + $0x1a30] sm:$0xff] }
 0x6ad   :  { %v7351_v35 = vpop.f32.mrf.mxu0 }
 0x6ae   :  { %9447 = vst [vmem:[#allocation429_spill] sm:$0xff] %v7351_v35  ;;  %v7353_v33 = vpop.f32.mrf.mxu1  ;;  %v996_v35 = vld [vmem:[#allocation5 + $0x1a10] sm:$0xff] }
 0x6af   :  { %9448 = vst [vmem:[#allocation430_spill] sm:$0xff] %v7353_v33  ;;  %2289 = vmatmul.f32.gmra.mxu2 %v996_v35  ;;  %3596 = vmatmul.f32.gmra.mxu3 %v997_v17  ;;  %v7365_v9 = vpop.f32.mrf.mxu3  ;;  %v999_v33 = vld [vmem:[#allocation5 + $0x1a28] sm:$0xff]  ;;  %v581_v17 = vld [vmem:[#allocation5 + $0xd18] sm:$0xff] }
 0x6b0   :  { %1656 = vmatmul.f32.gmra.mxu0 %v574_v12  ;;  %9454 = vst [vmem:[#allocation436_spill] sm:$0xff] %v7365_v9  ;;  %v1001_v9 = vld [vmem:[#allocation5 + $0x1a38] sm:$0xff] }
 0x6b1   :  { %2963 = vmatmul.f32.gmra.mxu1 %v575_v61  ;;  %v578_v61 = vld [vmem:[#allocation5 + $0xd00] sm:$0xff] }
 0x6b5   :  { %v7359_v36 = vpop.f32.mrf.mxu0 }
 0x6b6   :  { %9451 = vst [vmem:[#allocation433_spill] sm:$0xff] %v7359_v36  ;;  %v7361_v37 = vpop.f32.mrf.mxu1  ;;  %v998_v36 = vld [vmem:[#allocation5 + $0x1a20] sm:$0xff] }
 0x6b7   :  { %9452 = vst [vmem:[#allocation434_spill] sm:$0xff] %v7361_v37  ;;  %2292 = vmatmul.f32.gmra.mxu2 %v998_v36  ;;  %3599 = vmatmul.f32.gmra.mxu3 %v999_v33  ;;  %v7375_v37 = vpop.f32.mrf.mxu2  ;;  %v582_v33 = vld [vmem:[#allocation5 + $0xd20] sm:$0xff] }
 0x6b8   :  { %1659 = vmatmul.f32.gmra.mxu0 %v576_v52  ;;  %v580_v52 = vld [vmem:[#allocation5 + $0xd10] sm:$0xff]  ;;  %9459 = vst [vmem:[#allocation441_spill] sm:$0xff] %v7375_v37  ;;  %v585_v37 = vld [vmem:[#allocation5 + $0xd38] sm:$0xff] }
 0x6b9   :  { %2966 = vmatmul.f32.gmra.mxu1 %v577_v3 }
 0x6bd   :  { %v7367_v12 = vpop.f32.mrf.mxu0 }
 0x6be   :  { %9455 = vst [vmem:[#allocation437_spill] sm:$0xff] %v7367_v12  ;;  %v7369_v44 = vpop.f32.mrf.mxu1  ;;  %v7377_v12 = vpop.f32.mrf.mxu3 }
 0x6bf   :  { %9456 = vst [vmem:[#allocation438_spill] sm:$0xff] %v7369_v44  ;;  %2295 = vmatmul.f32.gmra.mxu2 %v1000_v59  ;;  %3602 = vmatmul.f32.gmra.mxu3 %v1001_v9  ;;  %v586_v9 = vld [vmem:[#allocation5 + $0xd40] sm:$0xff] }
 0x6c0   :  { %1662 = vmatmul.f32.gmra.mxu0 %v578_v61  ;;  %9460 = vst [vmem:[#allocation442_spill] sm:$0xff] %v7377_v12  ;;  %v583_v61 = vld [vmem:[#allocation5 + $0xd28] sm:$0xff] }
 0x6c1   :  { %2969 = vmatmul.f32.gmra.mxu1 %v579_v6 }
 0x6c5   :  { %v7371_v35 = vpop.f32.mrf.mxu0 }
 0x6c6   :  { %9457 = vst [vmem:[#allocation439_spill] sm:$0xff] %v7371_v35  ;;  %v7373_v3 = vpop.f32.mrf.mxu1  ;;  %v584_v35 = vld [vmem:[#allocation5 + $0xd30] sm:$0xff] }
 0x6c7   :  { %9458 = vst [vmem:[#allocation440_spill] sm:$0xff] %v7373_v3 }
 0x6c8   :  { %1665 = vmatmul.f32.gmra.mxu0 %v580_v52 }
 0x6c9   :  { %2972 = vmatmul.f32.gmra.mxu1 %v581_v17  ;;  %v587_v17 = vld [vmem:[#allocation5 + $0xd48] sm:$0xff] }
 0x6cd   :  { %v7379_v36 = vpop.f32.mrf.mxu0 }
 0x6ce   :  { %9461 = vst [vmem:[#allocation443_spill] sm:$0xff] %v7379_v36  ;;  %v7381_v6 = vpop.f32.mrf.mxu1  ;;  %v1005_v36 = vld [vmem:[#allocation5 + $0x1a58] sm:$0xff] }
 0x6cf   :  { %9462 = vst [vmem:[#allocation444_spill] sm:$0xff] %v7381_v6  ;;  %v7407_v6 = vpop.f32.mrf.mxu2 }
 0x6d0   :  { %1668 = vmatmul.f32.gmra.mxu0 %v582_v33  ;;  %v588_v33 = vld [vmem:[#allocation5 + $0xd50] sm:$0xff]  ;;  %9475 = vst [vmem:[#allocation457_spill] sm:$0xff] %v7407_v6  ;;  %v599_v6 = vld [vmem:[#allocation5 + $0xda8] sm:$0xff] }
 0x6d1   :  { %2975 = vmatmul.f32.gmra.mxu1 %v583_v61 }
 0x6d5   :  { %v7383_v3 = vpop.f32.mrf.mxu0 }
 0x6d6   :  { %9463 = vst [vmem:[#allocation445_spill] sm:$0xff] %v7383_v3  ;;  %v7385_v44 = vpop.f32.mrf.mxu1  ;;  %v589_v3 = vld [vmem:[#allocation5 + $0xd58] sm:$0xff] }
 0x6d7   :  { %9464 = vst [vmem:[#allocation446_spill] sm:$0xff] %v7385_v44  ;;  %v4534_v44 = vld [vmem:[#allocation10 + $0x8] sm:$0xff] }
 0x6d8   :  { %1671 = vmatmul.f32.gmra.mxu0 %v584_v35  ;;  %4563 = vmatpush.msrb.mxu2 %v4534_v44  ;;  %v590_v35 = vld [vmem:[#allocation5 + $0xd60] sm:$0xff] }
 0x6d9   :  { %2978 = vmatmul.f32.gmra.mxu1 %v585_v37  ;;  %4795 = vmatpush.msrb.mxu3 %v4534_v44 }
 0x6dd   :  { %v7387_v59 = vpop.f32.mrf.mxu0 }
 0x6de   :  { %9465 = vst [vmem:[#allocation447_spill] sm:$0xff] %v7387_v59  ;;  %v7389_v52 = vpop.f32.mrf.mxu1 }
 0x6df   :  { %9466 = vst [vmem:[#allocation448_spill] sm:$0xff] %v7389_v52  ;;  %v591_v52 = vld [vmem:[#allocation5 + $0xd68] sm:$0xff] }
 0x6e0   :  { %1674 = vmatmul.f32.gmra.mxu0 %v586_v9 }
 0x6e1   :  { %2981 = vmatmul.f32.gmra.mxu1 %v587_v17  ;;  %v592_v17 = vld [vmem:[#allocation5 + $0xd70] sm:$0xff] }
 0x6e5   :  { %v7391_v12 = vpop.f32.mrf.mxu0 }
 0x6e6   :  { %9467 = vst [vmem:[#allocation449_spill] sm:$0xff] %v7391_v12  ;;  %v7393_v61 = vpop.f32.mrf.mxu1 }
 0x6e7   :  { %9468 = vst [vmem:[#allocation450_spill] sm:$0xff] %v7393_v61  ;;  %v593_v61 = vld [vmem:[#allocation5 + $0xd78] sm:$0xff] }
 0x6e8   :  { %1677 = vmatmul.f32.gmra.mxu0 %v588_v33  ;;  %v594_v33 = vld [vmem:[#allocation5 + $0xd80] sm:$0xff] }
 0x6e9   :  { %2984 = vmatmul.f32.gmra.mxu1 %v589_v3 }
 0x6ed   :  { %v7395_v37 = vpop.f32.mrf.mxu0 }
 0x6ee   :  { %9469 = vst [vmem:[#allocation451_spill] sm:$0xff] %v7395_v37  ;;  %v7397_v59 = vpop.f32.mrf.mxu1  ;;  %v595_v37 = vld [vmem:[#allocation5 + $0xd88] sm:$0xff] }
 0x6ef   :  { %9470 = vst [vmem:[#allocation452_spill] sm:$0xff] %v7397_v59  ;;  %v597_v59 = vld [vmem:[#allocation5 + $0xd98] sm:$0xff] }
 0x6f0   :  { %1680 = vmatmul.f32.gmra.mxu0 %v590_v35 }
 0x6f1   :  { %2987 = vmatmul.f32.gmra.mxu1 %v591_v52  ;;  %v596_v52 = vld [vmem:[#allocation5 + $0xd90] sm:$0xff] }
 0x6f5   :  { %v7399_v9 = vpop.f32.mrf.mxu0 }
 0x6f6   :  { %9471 = vst [vmem:[#allocation453_spill] sm:$0xff] %v7399_v9  ;;  %v7401_v12 = vpop.f32.mrf.mxu1 }
 0x6f7   :  { %9472 = vst [vmem:[#allocation454_spill] sm:$0xff] %v7401_v12  ;;  %v7413_v12 = vpop.f32.mrf.mxu3 }
 0x6f8   :  { %1683 = vmatmul.f32.gmra.mxu0 %v592_v17  ;;  %9478 = vst [vmem:[#allocation460_spill] sm:$0xff] %v7413_v12 }
 0x6f9   :  { %2990 = vmatmul.f32.gmra.mxu1 %v593_v61  ;;  %v7415_v61 = vpop.f32.mrf.mxu2 }
 0x6fa   :  { %9479 = vst [vmem:[#allocation461_spill] sm:$0xff] %v7415_v61  ;;  %v1003_v61 = vld [vmem:[#allocation5 + $0x1a48] sm:$0xff] }
 0x6fb   :  { %3605 = vmatmul.f32.gmra.mxu3 %v1003_v61  ;;  %v2674_v61 = vadd.f32 %v6817_v2, %v6815_v21  ;;  %v7453_v2 = vld [vmem:[#allocation7 + $0x1] ss:$0 sm:$0xff] }
 0x6fd   :  { %v7403_v3 = vpop.f32.mrf.mxu0 }
 0x6fe   :  { %9473 = vst [vmem:[#allocation455_spill] sm:$0xff] %v7403_v3  ;;  %v7405_v44 = vpop.f32.mrf.mxu1 }
 0x6ff   :  { %9474 = vst [vmem:[#allocation456_spill] sm:$0xff] %v7405_v44  ;;  %v598_v44 = vld [vmem:[#allocation5 + $0xda0] sm:$0xff] }
 0x700   :  { %1686 = vmatmul.f32.gmra.mxu0 %v594_v33 }
 0x701   :  { %2993 = vmatmul.f32.gmra.mxu1 %v595_v37  ;;  %v7421_v37 = vpop.f32.mrf.mxu3  ;;  %v7423_v33 = vpop.f32.mrf.mxu2 }
 0x702   :  { %9482 = vst [vmem:[#allocation464_spill] sm:$0xff] %v7421_v37  ;;  %v602_v37 = vld [vmem:[#allocation5 + $0xdc0] sm:$0xff] }
 0x703   :  { %9483 = vst [vmem:[#allocation465_spill] sm:$0xff] %v7423_v33  ;;  %3608 = vmatmul.f32.gmra.mxu3 %v1005_v36  ;;  %v2386_v36 = vadd.f32 %v6106_v0, %v6104_v55  ;;  %v1006_v55 = vld [vmem:[#allocation5 + $0x1a60] sm:$0xff]  ;;  %v1007_v0 = vld [vmem:[#allocation5 + $0x1a68] sm:$0xff] }
 0x705   :  { %v7409_v35 = vpop.f32.mrf.mxu0 }
 0x706   :  { %9476 = vst [vmem:[#allocation458_spill] sm:$0xff] %v7409_v35  ;;  %v7411_v9 = vpop.f32.mrf.mxu1  ;;  %v600_v35 = vld [vmem:[#allocation5 + $0xdb0] sm:$0xff] }
 0x707   :  { %9477 = vst [vmem:[#allocation459_spill] sm:$0xff] %v7411_v9 }
 0x708   :  { %1689 = vmatmul.f32.gmra.mxu0 %v596_v52  ;;  %v1002_v52 = vld [vmem:[#allocation5 + $0x1a40] sm:$0xff] }
 0x709   :  { %2996 = vmatmul.f32.gmra.mxu1 %v597_v59  ;;  %v601_v59 = vld [vmem:[#allocation5 + $0xdb8] sm:$0xff]  ;;  %2298 = vmatmul.f32.gmra.mxu2 %v1002_v52  ;;  %v7443_v52 = vld [vmem:[#allocation7 + $0x2] ss:$0 sm:$0xff] }
 0x70a   :  { %v3753_v21 = vmul.f32 %v7443_v52, %v2674_v61 }
 0x70d   :  { %v7417_v17 = vpop.f32.mrf.mxu0 }
 0x70e   :  { %9480 = vst [vmem:[#allocation462_spill] sm:$0xff] %v7417_v17  ;;  %v7419_v3 = vpop.f32.mrf.mxu1  ;;  %v1004_v17 = vld [vmem:[#allocation5 + $0x1a50] sm:$0xff] }
 0x70f   :  { %9481 = vst [vmem:[#allocation463_spill] sm:$0xff] %v7419_v3  ;;  %v7429_v3 = vpop.f32.mrf.mxu3  ;;  %3611 = vmatmul.f32.gmra.mxu3 %v1007_v0 }
 0x710   :  { %1692 = vmatmul.f32.gmra.mxu0 %v598_v44  ;;  %9486 = vst [vmem:[#allocation468_spill] sm:$0xff] %v7429_v3  ;;  %v7447_v3 = vld [vmem:[#allocation7 + $0x6] ss:$0 sm:$0xff] }
 0x711   :  { %2999 = vmatmul.f32.gmra.mxu1 %v599_v6  ;;  %v7433_v6 = vpop.f32.mrf.mxu2  ;;  %2301 = vmatmul.f32.gmra.mxu2 %v1004_v17  ;;  %v7449_v17 = vld [vmem:[#allocation7] ss:$0 sm:$0xff] }
 0x712   :  { %9488 = vst [vmem:[#allocation470_spill] sm:$0xff] %v7433_v6  ;;  %v2866_v6 = vadd.f32 %v7249_v24, %v7247_v20  ;;  %v604_v20 = vld [vmem:[#allocation5 + $0xdd0] sm:$0xff] }
 0x715   :  { %v7425_v9 = vpop.f32.mrf.mxu0 }
 0x716   :  { %9484 = vst [vmem:[#allocation466_spill] sm:$0xff] %v7425_v9  ;;  %v7427_v12 = vpop.f32.mrf.mxu1  ;;  %v603_v9 = vld [vmem:[#allocation5 + $0xdc8] sm:$0xff] }
 0x717   :  { %9485 = vst [vmem:[#allocation467_spill] sm:$0xff] %v7427_v12  ;;  %v7468_v12 = vld [vmem:[#allocation7 + $0x3] ss:$0 sm:$0xff] }
 0x718   :  { %1695 = vmatmul.f32.gmra.mxu0 %v600_v35  ;;  %v2482_v35 = vadd.f32 %v6298_v22, %v6296_v57  ;;  %v2770_v22 = vadd.f32 %v7074_v26, %v7069_v34  ;;  %v7458_v57 = vld [vmem:[#allocation7 + $0x4] ss:$0 sm:$0xff]  ;;  %v7471_v26 = vld [vmem:[#allocation7 + $0x5] ss:$0 sm:$0xff] }
 0x719   :  { %3002 = vmatmul.f32.gmra.mxu1 %v601_v59  ;;  %v2578_v59 = vadd.f32 %v6569_v60, %v6567_v53  ;;  %v7460_v60 = vpop.f32.mrf.mxu3  ;;  %v3821_v34 = vmul.f32 %v7458_v57, %v2866_v6  ;;  %2304 = vmatmul.f32.gmra.mxu2 %v1006_v55  ;;  %v2485_v6 = vadd.f32 %v6304_v16, %v6302_v56 }
 0x71a   :  { %9490 = vst [vmem:[#allocation472_spill] sm:$0xff] %v7460_v60  ;;  %v3685_v24 = vmul.f32 %v7449_v17, %v2482_v35  ;;  %v3889_v35 = vmul.f32 %v7447_v3, %v6030_v40  ;;  %v2680_v55 = vadd.f32 %v6837_v13, %v6835_v51  ;;  %v9497_v51 = vld [vmem:[#allocation59_spill] sm:$0xff] }
 0x71b   :  { %v3719_v61 = vmul.f32 %v7453_v2, %v2578_v59  ;;  %v3787_v59 = vmul.f32 %v7468_v12, %v2770_v22 }
 0x71d   :  { %v7431_v44 = vpop.f32.mrf.mxu0  ;;  %v4021_v25 = vadd.f32 %v3753_v21, %v3719_v61  ;;  %v4053_v40 = vadd.f32 %v3821_v34, %v3787_v59  ;;  %v9495_v59 = vld [vmem:[#allocation208_spill] sm:$0xff] }
 0x71e   :  { %9487 = vst [vmem:[#allocation469_spill] sm:$0xff] %v7431_v44  ;;  %v7435_v33 = vpop.f32.mrf.mxu1  ;;  %v7465_v44 = vld [vmem:[#allocation8] ss:$0 sm:$0xff] }
 0x71f   :  { %9489 = vst [vmem:[#allocation471_spill] sm:$0xff] %v7435_v33  ;;  %v605_v33 = vld [vmem:[#allocation5 + $0xdd8] sm:$0xff]  ;;  %v3651_v31 = vadd.f32 %v7465_v44, %v2386_v36  ;;  %v2389_v36 = vadd.f32 %v6112_v18, %v6110_v14 }
 0x720   :  { %1698 = vmatmul.f32.gmra.mxu0 %v602_v37 }
 0x721   :  { %3005 = vmatmul.f32.gmra.mxu1 %v603_v9  ;;  %v7463_v9 = vpop.f32.mrf.mxu2 }
 0x722   :  { %9491 = vst [vmem:[#allocation473_spill] sm:$0xff] %v7463_v9  ;;  %v2677_v9 = vadd.f32 %v6827_v45, %v6825_v11  ;;  %v2869_v45 = vadd.f32 %v7253_v63, %v7251_v8  ;;  %v1008_v8 = vld [vmem:[#allocation5 + $0x1a70] sm:$0xff] }
 0x723   :  { %2307 = vmatmul.f32.gmra.mxu2 %v1008_v8 }
 0x724   :  { %v3754_v21 = vmul.f32 %v7443_v52, %v2677_v9  ;;  %v3822_v14 = vmul.f32 %v7458_v57, %v2869_v45  ;;  %v2872_v45 = vadd.f32 %v7257_v23, %v7255_v15  ;;  %v1010_v15 = vld [vmem:[#allocation5 + $0x1a80] sm:$0xff]  ;;  %v1011_v23 = vld [vmem:[#allocation5 + $0x1a88] sm:$0xff] }
 0x725   :  { %v1654_v53 = vpop.f32.mrf.mxu0 }
 0x726   :  { %v2961_v37 = vpop.f32.mrf.mxu1 }
 0x727   :  { %v2962_v60 = vadd.f32 %v2961_v37, %v1654_v53  ;;  %v2581_v53 = vadd.f32 %v6578_v38, %v6576_v29  ;;  %v3989_v37 = vadd.f32 %v3685_v24, %v3651_v31  ;;  %v606_v29 = vld [vmem:[#allocation5 + $0xde0] sm:$0xff]  ;;  %v3686_v38 = vmul.f32 %v7449_v17, %v2485_v6  ;;  %v9496_v6 = vld [vmem:[#allocation209_spill] sm:$0xff] }
 0x728   :  { %1701 = vmatmul.f32.gmra.mxu0 %v604_v20  ;;  %v1009_v20 = vld [vmem:[#allocation5 + $0x1a78] sm:$0xff] }
 0x729   :  { %v3855_v47 = vmul.f32 %v7471_v26, %v2962_v60  ;;  %3008 = vmatmul.f32.gmra.mxu1 %v605_v33  ;;  %v4149_v22 = vadd.f32 %v4021_v25, %v3989_v37  ;;  %v2773_v33 = vadd.f32 %v7085_v46, %v7080_v32  ;;  %v7491_v60 = vpop.f32.mrf.mxu3  ;;  %v3720_v31 = vmul.f32 %v7453_v2, %v2581_v53  ;;  %v7499_v9 = vpop.f32.mrf.mxu2 }
 0x72a   :  { %9492 = vst [vmem:[#allocation474_spill] sm:$0xff] %v7491_v60  ;;  %3614 = vmatmul.f32.gmra.mxu3 %v1009_v20  ;;  %v3890_v32 = vmul.f32 %v7447_v3, %v6036_v49  ;;  %v3652_v46 = vadd.f32 %v7465_v44, %v2389_v36  ;;  %v2584_v53 = vadd.f32 %v9496_v6, %v9495_v59  ;;  %v9506_v6 = vld [vmem:[#allocation211_spill] sm:$0xff]  ;;  %v9945_v60 = vld [vmem:[#allocation469_spill] sm:$0xff] }
 0x72b   :  { %v4085_v11 = vadd.f32 %v3889_v35, %v3855_v47  ;;  %v607_v47 = vld [vmem:[#allocation5 + $0xde8] sm:$0xff]  ;;  %v4022_v24 = vadd.f32 %v3754_v21, %v3720_v31  ;;  %9493 = vst [vmem:[#allocation475_spill] sm:$0xff] %v7499_v9  ;;  %v3788_v0 = vmul.f32 %v7468_v12, %v2773_v33  ;;  %v9494_v35 = vld [vmem:[#allocation123_spill] sm:$0xff]  ;;  %v609_v31 = vld [vmem:[#allocation5 + $0xdf8] sm:$0xff]  ;;  %2310 = vmatmul.f32.gmra.mxu2 %v1010_v15 }
 0x72c   :  { %v2488_v49 = vadd.f32 %v9494_v35, %v6308_v48  ;;  %v3990_v37 = vadd.f32 %v3686_v38, %v3652_v46  ;;  %v9504_v35 = vld [vmem:[#allocation124_spill] sm:$0xff] }
 0x72d   :  { %v4181_v16 = vadd.f32 %v4085_v11, %v4053_v40  ;;  %v1657_v56 = vpop.f32.mrf.mxu0  ;;  %v4054_v40 = vadd.f32 %v3822_v14, %v3788_v0  ;;  %v9498_v11 = vld [vmem:[#allocation60_spill] sm:$0xff]  ;;  %v9503_v0 = vld [vmem:[#allocation175_spill] sm:$0xff] }
 0x72e   :  { %v2964_v63 = vpop.f32.mrf.mxu1  ;;  %v2392_v36 = vadd.f32 %v9498_v11, %v9497_v51  ;;  %v4150_v21 = vadd.f32 %v4022_v24, %v3990_v37  ;;  %v2875_v51 = vadd.f32 %v7261_v43, %v7259_v19  ;;  %v1012_v43 = vld [vmem:[#allocation5 + $0x1a90] sm:$0xff]  ;;  %v1013_v19 = vld [vmem:[#allocation5 + $0x1a98] sm:$0xff] }
 0x72f   :  { %v2965_v18 = vadd.f32 %v2964_v63, %v1657_v56  ;;  %v4213_v25 = vadd.f32 %v4181_v16, %v4149_v22  ;;  %v3755_v22 = vmul.f32 %v7443_v52, %v2680_v55  ;;  %v608_v16 = vld [vmem:[#allocation5 + $0xdf0] sm:$0xff]  ;;  %v3687_v56 = vmul.f32 %v7449_v17, %v2488_v49 }
 0x730   :  { %1704 = vmatmul.f32.gmra.mxu0 %v606_v29  ;;  %v3721_v29 = vmul.f32 %v7453_v2, %v2584_v53  ;;  %v3823_v63 = vmul.f32 %v7458_v57, %v2872_v45  ;;  %v3653_v14 = vadd.f32 %v7465_v44, %v2392_v36  ;;  %v9505_v49 = vld [vmem:[#allocation125_spill] sm:$0xff]  ;;  %v9507_v53 = vld [vmem:[#allocation212_spill] sm:$0xff]  ;;  %v9509_v36 = vld [vmem:[#allocation62_spill] sm:$0xff] }
 0x731   :  { %v3856_v61 = vmul.f32 %v7471_v26, %v2965_v18  ;;  %3011 = vmatmul.f32.gmra.mxu1 %v607_v47  ;;  %v7506_v34 = vadd.f32 %v4213_v25, %v6464_v28  ;;  %v2776_v28 = vadd.f32 %v7096_v1, %v7091_v10  ;;  %v7522_v47 = vpop.f32.mrf.mxu3  ;;  %v9500_v10 = vld [vmem:[#allocation26_spill] sm:$0xff]  ;;  %v9501_v18 = vld [vmem:[#allocation273_spill] sm:$0xff]  ;;  %v2491_v59 = vadd.f32 %v9505_v49, %v9504_v35  ;;  %v9517_v49 = vld [vmem:[#allocation127_spill] sm:$0xff] }
 0x732   :  { %9499 = vst [vmem:[#allocation123_spill] sm:$0xff] %v7522_v47  ;;  %3617 = vmatmul.f32.gmra.mxu3 %v1011_v23  ;;  %v3891_v1 = vmul.f32 %v7447_v3, %v9500_v10  ;;  %v9502_v25 = vld [vmem:[#allocation274_spill] sm:$0xff]  ;;  %v4023_v46 = vadd.f32 %v3755_v22, %v3721_v29  ;;  %v2587_v37 = vadd.f32 %v9507_v53, %v9506_v6  ;;  %v611_v23 = vld [vmem:[#allocation5 + $0xe08] sm:$0xff]  ;;  %v9511_v10 = vld [vmem:[#allocation29_spill] sm:$0xff] }
 0x733   :  { %v4086_v13 = vadd.f32 %v3890_v32, %v3856_v61  ;;  %v2683_v32 = vadd.f32 %v9502_v25, %v9501_v18  ;;  %v3789_v24 = vmul.f32 %v7468_v12, %v2776_v28  ;;  %v3991_v45 = vadd.f32 %v3687_v56, %v3653_v14  ;;  %2313 = vmatmul.f32.gmra.mxu2 %v1012_v43  ;;  %v9512_v14 = vld [vmem:[#allocation275_spill] sm:$0xff]  ;;  %v9513_v18 = vld [vmem:[#allocation276_spill] sm:$0xff]  ;;  %v9516_v35 = vld [vmem:[#allocation126_spill] sm:$0xff] }
 0x734   :  { %v3722_v56 = vmul.f32 %v7453_v2, %v2587_v37  ;;  %v2686_v25 = vadd.f32 %v9513_v18, %v9512_v14  ;;  %v9518_v6 = vld [vmem:[#allocation214_spill] sm:$0xff]  ;;  %v9519_v53 = vld [vmem:[#allocation215_spill] sm:$0xff]  ;;  %v1015_v43 = vld [vmem:[#allocation5 + $0x1aa8] sm:$0xff] }
 0x735   :  { %v4182_v33 = vadd.f32 %v4086_v13, %v4054_v40  ;;  %v1660_v48 = vpop.f32.mrf.mxu0  ;;  %v7538_v40 = vpop.f32.mrf.mxu2  ;;  %v4055_v13 = vadd.f32 %v3823_v63, %v3789_v24  ;;  %v3756_v28 = vmul.f32 %v7443_v52, %v2683_v32  ;;  %v3824_v63 = vmul.f32 %v7458_v57, %v2875_v51 }
 0x736   :  { %v2967_v38 = vpop.f32.mrf.mxu1  ;;  %9508 = vst [vmem:[#allocation208_spill] sm:$0xff] %v7538_v40  ;;  %v2590_v37 = vadd.f32 %v9519_v53, %v9518_v6  ;;  %v2878_v51 = vadd.f32 %v7265_v54, %v7263_v58  ;;  %v613_v58 = vld [vmem:[#allocation5 + $0xe18] sm:$0xff]  ;;  %v9897_v40 = vld [vmem:[#allocation459_spill] sm:$0xff] }
 0x737   :  { %v2968_v8 = vadd.f32 %v2967_v38, %v1660_v48  ;;  %v4214_v20 = vadd.f32 %v4182_v33, %v4150_v21  ;;  %v9510_v21 = vld [vmem:[#allocation63_spill] sm:$0xff]  ;;  %v4151_v33 = vadd.f32 %v4023_v46, %v3991_v45  ;;  %v2779_v48 = vadd.f32 %v7107_v39, %v7102_v50 }
 0x738   :  { %1707 = vmatmul.f32.gmra.mxu0 %v608_v16  ;;  %v2395_v22 = vadd.f32 %v9510_v21, %v9509_v36  ;;  %v610_v38 = vld [vmem:[#allocation5 + $0xe00] sm:$0xff]  ;;  %v3892_v50 = vmul.f32 %v7447_v3, %v9511_v10  ;;  %v9520_v36 = vld [vmem:[#allocation65_spill] sm:$0xff]  ;;  %v9521_v21 = vld [vmem:[#allocation66_spill] sm:$0xff] }
 0x739   :  { %v3857_v55 = vmul.f32 %v7471_v26, %v2968_v8  ;;  %3014 = vmatmul.f32.gmra.mxu1 %v609_v31  ;;  %v7532_v61 = vadd.f32 %v4214_v20, %v9503_v0  ;;  %v3688_v31 = vmul.f32 %v7449_v17, %v2491_v59  ;;  %v3790_v32 = vmul.f32 %v7468_v12, %v2779_v48  ;;  %v7556_v46 = vpop.f32.mrf.mxu3  ;;  %v9524_v10 = vld [vmem:[#allocation277_spill] sm:$0xff] }
 0x73a   :  { %3620 = vmatmul.f32.gmra.mxu3 %v1013_v19  ;;  %v3654_v39 = vadd.f32 %v7465_v44, %v2395_v22  ;;  %9514 = vst [vmem:[#allocation209_spill] sm:$0xff] %v7556_v46  ;;  %v2494_v59 = vadd.f32 %v9517_v49, %v9516_v35  ;;  %v2398_v22 = vadd.f32 %v9521_v21, %v9520_v36  ;;  %v9529_v49 = vld [vmem:[#allocation217_spill] sm:$0xff]  ;;  %v9895_v46 = vld [vmem:[#allocation324_spill] sm:$0xff] }
 0x73b   :  { %v4087_v11 = vadd.f32 %v3891_v1, %v3857_v55  ;;  %v4024_v1 = vadd.f32 %v3756_v28, %v3722_v56  ;;  %v9515_v55 = vld [vmem:[#allocation178_spill] sm:$0xff]  ;;  %v3757_v48 = vmul.f32 %v7443_v52, %v2686_v25  ;;  %v612_v56 = vld [vmem:[#allocation5 + $0xe10] sm:$0xff]  ;;  %v3825_v19 = vmul.f32 %v7458_v57, %v2878_v51 }
 0x73c   :  { %v3992_v45 = vadd.f32 %v3688_v31, %v3654_v39  ;;  %v3689_v31 = vmul.f32 %v7449_v17, %v2494_v59  ;;  %v9526_v25 = vld [vmem:[#allocation181_spill] sm:$0xff]  ;;  %v9530_v59 = vld [vmem:[#allocation218_spill] sm:$0xff] }
 0x73d   :  { %v4183_v16 = vadd.f32 %v4087_v11, %v4055_v13  ;;  %v1663_v29 = vpop.f32.mrf.mxu0  ;;  %v4056_v13 = vadd.f32 %v3824_v63, %v3790_v32  ;;  %v7570_v28 = vpop.f32.mrf.mxu2  ;;  %v2593_v6 = vadd.f32 %v9530_v59, %v9529_v49  ;;  %v9533_v36 = vld [vmem:[#allocation69_spill] sm:$0xff] }
 0x73e   :  { %v2970_v15 = vpop.f32.mrf.mxu1  ;;  %9522 = vst [vmem:[#allocation59_spill] sm:$0xff] %v7570_v28 }
 0x73f   :  { %v2971_v8 = vadd.f32 %v2970_v15, %v1663_v29  ;;  %v4215_v20 = vadd.f32 %v4183_v16, %v4151_v33  ;;  %v4152_v33 = vadd.f32 %v4024_v1, %v3992_v45  ;;  %v2782_v16 = vadd.f32 %v7118_v7, %v7113_v27 }
 0x740   :  { %1710 = vmatmul.f32.gmra.mxu0 %v610_v38  ;;  %v3723_v15 = vmul.f32 %v7453_v2, %v2590_v37  ;;  %v3655_v7 = vadd.f32 %v7465_v44, %v2398_v22  ;;  %v2881_v45 = vadd.f32 %v7269_v5, %v7267_v62  ;;  %v3724_v5 = vmul.f32 %v7453_v2, %v2593_v6 }
 0x741   :  { %v3858_v24 = vmul.f32 %v7471_v26, %v2971_v8  ;;  %3017 = vmatmul.f32.gmra.mxu1 %v611_v23  ;;  %v7560_v0 = vadd.f32 %v4215_v20, %v9515_v55  ;;  %v1014_v23 = vld [vmem:[#allocation5 + $0x1aa0] sm:$0xff]  ;;  %v9523_v20 = vld [vmem:[#allocation32_spill] sm:$0xff]  ;;  %v3791_v14 = vmul.f32 %v7468_v12, %v2782_v16  ;;  %v9528_v55 = vld [vmem:[#allocation129_spill] sm:$0xff] }
 0x742   :  { %2316 = vmatmul.f32.gmra.mxu2 %v1014_v23  ;;  %3623 = vmatmul.f32.gmra.mxu3 %v1015_v43  ;;  %v3893_v27 = vmul.f32 %v7447_v3, %v9523_v20  ;;  %v4025_v1 = vadd.f32 %v3757_v48, %v3723_v15  ;;  %v3993_v53 = vadd.f32 %v3689_v31, %v3655_v7  ;;  %v1017_v23 = vld [vmem:[#allocation5 + $0x1ab8] sm:$0xff]  ;;  %v9537_v7 = vld [vmem:[#allocation280_spill] sm:$0xff] }
 0x743   :  { %v4088_v11 = vadd.f32 %v3892_v50, %v3858_v24  ;;  %v9525_v50 = vld [vmem:[#allocation278_spill] sm:$0xff]  ;;  %v9527_v24 = vld [vmem:[#allocation128_spill] sm:$0xff]  ;;  %v4057_v37 = vadd.f32 %v3825_v19, %v3791_v14  ;;  %v2785_v48 = vadd.f32 %v7129_v41, %v7124_v4  ;;  %v3826_v43 = vmul.f32 %v7458_v57, %v2881_v45  ;;  %v9535_v41 = vld [vmem:[#allocation35_spill] sm:$0xff] }
 0x744   :  { %v2689_v39 = vadd.f32 %v9525_v50, %v9524_v10  ;;  %v2497_v35 = vadd.f32 %v9528_v55, %v9527_v24  ;;  %v9541_v55 = vld [vmem:[#allocation220_spill] sm:$0xff]  ;;  %v9543_v45 = vld [vmem:[#allocation71_spill] sm:$0xff] }
 0x745   :  { %v4184_v29 = vadd.f32 %v4088_v11, %v4056_v13  ;;  %v1666_v38 = vpop.f32.mrf.mxu0  ;;  %v7594_v13 = vpop.f32.mrf.mxu3  ;;  %v9532_v11 = vld [vmem:[#allocation68_spill] sm:$0xff]  ;;  %v3792_v50 = vmul.f32 %v7468_v12, %v2785_v48 }
 0x746   :  { %v2973_v54 = vpop.f32.mrf.mxu1  ;;  %9531 = vst [vmem:[#allocation60_spill] sm:$0xff] %v7594_v13  ;;  %v2401_v21 = vadd.f32 %v9533_v36, %v9532_v11  ;;  %v3758_v22 = vmul.f32 %v7443_v52, %v2689_v39  ;;  %v3690_v31 = vmul.f32 %v7449_v17, %v2497_v35  ;;  %v7603_v62 = vpop.f32.mrf.mxu2  ;;  %v9542_v35 = vld [vmem:[#allocation221_spill] sm:$0xff] }
 0x747   :  { %v2974_v63 = vadd.f32 %v2973_v54, %v1666_v38  ;;  %v4216_v8 = vadd.f32 %v4184_v29, %v4152_v33  ;;  %v4153_v33 = vadd.f32 %v4025_v1, %v3993_v53  ;;  %v614_v38 = vld [vmem:[#allocation5 + $0xe20] sm:$0xff]  ;;  %9534 = vst [vmem:[#allocation26_spill] sm:$0xff] %v7603_v62  ;;  %v615_v54 = vld [vmem:[#allocation5 + $0xe28] sm:$0xff]  ;;  %v2596_v49 = vadd.f32 %v9542_v35, %v9541_v55 }
 0x748   :  { %1713 = vmatmul.f32.gmra.mxu0 %v612_v56  ;;  %v4533_v56 = vld [vmem:[#allocation10] sm:$0xff]  ;;  %v4026_v20 = vadd.f32 %v3758_v22, %v3724_v5  ;;  %v4058_v6 = vadd.f32 %v3826_v43, %v3792_v50  ;;  %v2884_v53 = vadd.f32 %v7273_v42, %v7271_v30  ;;  %v617_v30 = vld [vmem:[#allocation5 + $0xe38] sm:$0xff]  ;;  %v9555_v55 = vld [vmem:[#allocation223_spill] sm:$0xff] }
 0x749   :  { %v3859_v18 = vmul.f32 %v7471_v26, %v2974_v63  ;;  %3020 = vmatmul.f32.gmra.mxu1 %v613_v58  ;;  %v7586_v32 = vadd.f32 %v4216_v8, %v9526_v25  ;;  %4564 = vmatpush.msrb.mxu2 %v4533_v56  ;;  %v1016_v58 = vld [vmem:[#allocation5 + $0x1ab0] sm:$0xff]  ;;  %v3894_v63 = vmul.f32 %v7447_v3, %v9535_v41  ;;  %v9538_v1 = vld [vmem:[#allocation184_spill] sm:$0xff]  ;;  %v9540_v25 = vld [vmem:[#allocation131_spill] sm:$0xff] }
 0x74a   :  { %4796 = vmatpush.msrb.mxu3 %v4533_v56  ;;  %2319 = vmatmul.f32.gmra.mxu2 %v1016_v58  ;;  %v3656_v8 = vadd.f32 %v7465_v44, %v2401_v21  ;;  %v9545_v22 = vld [vmem:[#allocation337_spill] sm:$0xff]  ;;  %v3725_v5 = vmul.f32 %v7453_v2, %v2596_v49  ;;  %v3827_v58 = vmul.f32 %v7458_v57, %v2884_v53  ;;  %v9556_v35 = vld [vmem:[#allocation224_spill] sm:$0xff] }
 0x74b   :  { %v4089_v51 = vadd.f32 %v3893_v27, %v3859_v18  ;;  %3626 = vmatmul.f32.gmra.mxu3 %v1017_v23  ;;  %v9536_v27 = vld [vmem:[#allocation279_spill] sm:$0xff]  ;;  %v9539_v18 = vld [vmem:[#allocation130_spill] sm:$0xff]  ;;  %v616_v56 = vld [vmem:[#allocation5 + $0xe30] sm:$0xff]  ;;  %v2599_v49 = vadd.f32 %v9556_v35, %v9555_v55 }
 0x74c   :  { %v2692_v10 = vadd.f32 %v9537_v7, %v9536_v27  ;;  %v2500_v24 = vadd.f32 %v9540_v25, %v9539_v18  ;;  %v3994_v59 = vadd.f32 %v3690_v31, %v3656_v8  ;;  %v9550_v8 = vld [vmem:[#allocation282_spill] sm:$0xff]  ;;  %v9553_v18 = vld [vmem:[#allocation132_spill] sm:$0xff]  ;;  %v9554_v25 = vld [vmem:[#allocation133_spill] sm:$0xff] }
 0x74d   :  { %v4185_v16 = vadd.f32 %v4089_v51, %v4057_v37  ;;  %v1669_v29 = vpop.f32.mrf.mxu0  ;;  %v9544_v51 = vld [vmem:[#allocation72_spill] sm:$0xff]  ;;  %v9557_v53 = vld [vmem:[#allocation393_spill] sm:$0xff] }
 0x74e   :  { %v2976_v15 = vpop.f32.mrf.mxu1  ;;  %v2404_v11 = vadd.f32 %v9544_v51, %v9543_v45  ;;  %v4154_v36 = vadd.f32 %v4026_v20, %v3994_v59  ;;  %v3759_v21 = vmul.f32 %v7443_v52, %v2692_v10  ;;  %v3691_v31 = vmul.f32 %v7449_v17, %v2500_v24  ;;  %v7637_v27 = vpop.f32.mrf.mxu2 }
 0x74f   :  { %v2977_v19 = vadd.f32 %v2976_v15, %v1669_v29  ;;  %v4217_v4 = vadd.f32 %v4185_v16, %v4153_v33  ;;  %v9546_v33 = vld [vmem:[#allocation339_spill] sm:$0xff]  ;;  %v7627_v16 = vpop.f32.mrf.mxu3  ;;  %9551 = vst [vmem:[#allocation274_spill] sm:$0xff] %v7637_v27  ;;  %v2503_v24 = vadd.f32 %v9554_v25, %v9553_v18  ;;  %v9751_v27 = vld [vmem:[#allocation438_spill] sm:$0xff] }
 0x750   :  { %1716 = vmatmul.f32.gmra.mxu0 %v614_v38  ;;  %v2788_v48 = vadd.f32 %v9546_v33, %v9545_v22  ;;  %9547 = vst [vmem:[#allocation273_spill] sm:$0xff] %v7627_v16  ;;  %v1018_v15 = vld [vmem:[#allocation5 + $0x1ac0] sm:$0xff]  ;;  %v3657_v41 = vadd.f32 %v7465_v44, %v2404_v11  ;;  %v4027_v7 = vadd.f32 %v3759_v21, %v3725_v5  ;;  %v9559_v11 = vld [vmem:[#allocation73_spill] sm:$0xff] }
 0x751   :  { %v3860_v39 = vmul.f32 %v7471_v26, %v2977_v19  ;;  %3023 = vmatmul.f32.gmra.mxu1 %v615_v54  ;;  %v7614_v14 = vadd.f32 %v4217_v4, %v9538_v1  ;;  %v1019_v54 = vld [vmem:[#allocation5 + $0x1ac8] sm:$0xff]  ;;  %v9548_v19 = vld [vmem:[#allocation38_spill] sm:$0xff]  ;;  %v9766_v16 = vld [vmem:[#allocation439_spill] sm:$0xff] }
 0x752   :  { %2322 = vmatmul.f32.gmra.mxu2 %v1018_v15  ;;  %v3895_v4 = vmul.f32 %v7447_v3, %v9548_v19  ;;  %v3793_v10 = vmul.f32 %v7468_v12, %v2788_v48  ;;  %v3995_v59 = vadd.f32 %v3691_v31, %v3657_v41  ;;  %v9561_v48 = vld [vmem:[#allocation340_spill] sm:$0xff]  ;;  %v3726_v31 = vmul.f32 %v7453_v2, %v2599_v49  ;;  %v9568_v49 = vld [vmem:[#allocation135_spill] sm:$0xff] }
 0x753   :  { %v4090_v37 = vadd.f32 %v3894_v63, %v3860_v39  ;;  %3629 = vmatmul.f32.gmra.mxu3 %v1019_v54  ;;  %v9549_v63 = vld [vmem:[#allocation281_spill] sm:$0xff]  ;;  %v9552_v39 = vld [vmem:[#allocation187_spill] sm:$0xff]  ;;  %v619_v54 = vld [vmem:[#allocation5 + $0xe48] sm:$0xff] }
 0x754   :  { %v2695_v20 = vadd.f32 %v9550_v8, %v9549_v63  ;;  %v4155_v33 = vadd.f32 %v4027_v7, %v3995_v59  ;;  %v9564_v63 = vld [vmem:[#allocation41_spill] sm:$0xff]  ;;  %v9569_v59 = vld [vmem:[#allocation136_spill] sm:$0xff] }
 0x755   :  { %v4186_v29 = vadd.f32 %v4090_v37, %v4058_v6  ;;  %v1672_v38 = vpop.f32.mrf.mxu0  ;;  %v4059_v6 = vadd.f32 %v3827_v58, %v3793_v10  ;;  %v9558_v37 = vld [vmem:[#allocation394_spill] sm:$0xff]  ;;  %v1020_v58 = vld [vmem:[#allocation5 + $0x1ad0] sm:$0xff]  ;;  %v3896_v8 = vmul.f32 %v7447_v3, %v9564_v63  ;;  %v9565_v10 = vld [vmem:[#allocation283_spill] sm:$0xff] }
 0x756   :  { %v2979_v42 = vpop.f32.mrf.mxu1  ;;  %v2887_v45 = vadd.f32 %v9558_v37, %v9557_v53  ;;  %v3760_v22 = vmul.f32 %v7443_v52, %v2695_v20  ;;  %v7672_v53 = vpop.f32.mrf.mxu2  ;;  %v9571_v37 = vld [vmem:[#allocation225_spill] sm:$0xff] }
 0x757   :  { %v2980_v23 = vadd.f32 %v2979_v42, %v1672_v38  ;;  %v4218_v43 = vadd.f32 %v4186_v29, %v4154_v36  ;;  %v9560_v36 = vld [vmem:[#allocation74_spill] sm:$0xff]  ;;  %v618_v42 = vld [vmem:[#allocation5 + $0xe40] sm:$0xff]  ;;  %v7658_v19 = vpop.f32.mrf.mxu3  ;;  %9570 = vst [vmem:[#allocation124_spill] sm:$0xff] %v7672_v53 }
 0x758   :  { %1719 = vmatmul.f32.gmra.mxu0 %v616_v56  ;;  %v2407_v21 = vadd.f32 %v9560_v36, %v9559_v11  ;;  %v9562_v29 = vld [vmem:[#allocation342_spill] sm:$0xff]  ;;  %9563 = vst [vmem:[#allocation175_spill] sm:$0xff] %v7658_v19  ;;  %v4028_v7 = vadd.f32 %v3760_v22, %v3726_v31  ;;  %v9573_v36 = vld [vmem:[#allocation397_spill] sm:$0xff] }
 0x759   :  { %v3861_v50 = vmul.f32 %v7471_v26, %v2980_v23  ;;  %3026 = vmatmul.f32.gmra.mxu1 %v617_v30  ;;  %v7642_v1 = vadd.f32 %v4218_v43, %v9552_v39  ;;  %v2791_v38 = vadd.f32 %v9562_v29, %v9561_v48  ;;  %v3692_v30 = vmul.f32 %v7449_v17, %v2503_v24  ;;  %v1021_v23 = vld [vmem:[#allocation5 + $0x1ad8] sm:$0xff]  ;;  %v9575_v48 = vld [vmem:[#allocation75_spill] sm:$0xff]  ;;  %v9576_v29 = vld [vmem:[#allocation76_spill] sm:$0xff] }
 0x75a   :  { %v3828_v43 = vmul.f32 %v7458_v57, %v2887_v45  ;;  %2325 = vmatmul.f32.gmra.mxu2 %v1020_v58  ;;  %v3658_v20 = vadd.f32 %v7465_v44, %v2407_v21  ;;  %v9567_v24 = vld [vmem:[#allocation190_spill] sm:$0xff]  ;;  %v620_v58 = vld [vmem:[#allocation5 + $0xe50] sm:$0xff] }
 0x75b   :  { %v4091_v51 = vadd.f32 %v3895_v4, %v3861_v50  ;;  %3632 = vmatmul.f32.gmra.mxu3 %v1021_v23  ;;  %v9566_v50 = vld [vmem:[#allocation284_spill] sm:$0xff]  ;;  %v3794_v18 = vmul.f32 %v7468_v12, %v2791_v38  ;;  %v9572_v45 = vld [vmem:[#allocation226_spill] sm:$0xff]  ;;  %v2410_v38 = vadd.f32 %v9576_v29, %v9575_v48  ;;  %v9587_v48 = vld [vmem:[#allocation401_spill] sm:$0xff] }
 0x75c   :  { %v2698_v39 = vadd.f32 %v9566_v50, %v9565_v10  ;;  %v3996_v35 = vadd.f32 %v3692_v30, %v3658_v20  ;;  %v9574_v21 = vld [vmem:[#allocation398_spill] sm:$0xff]  ;;  %v9578_v30 = vld [vmem:[#allocation344_spill] sm:$0xff] }
 0x75d   :  { %v4187_v56 = vadd.f32 %v4091_v51, %v4059_v6  ;;  %v1675_v5 = vpop.f32.mrf.mxu0  ;;  %v2506_v6 = vadd.f32 %v9569_v59, %v9568_v49  ;;  %v2602_v51 = vadd.f32 %v9572_v45, %v9571_v37  ;;  %v4060_v11 = vadd.f32 %v3828_v43, %v3794_v18  ;;  %v621_v43 = vld [vmem:[#allocation5 + $0xe58] sm:$0xff]  ;;  %v9579_v10 = vld [vmem:[#allocation44_spill] sm:$0xff]  ;;  %v9582_v59 = vld [vmem:[#allocation193_spill] sm:$0xff] }
 0x75e   :  { %v2982_v15 = vpop.f32.mrf.mxu1  ;;  %v2890_v22 = vadd.f32 %v9574_v21, %v9573_v36  ;;  %v3659_v50 = vadd.f32 %v7465_v44, %v2410_v38  ;;  %v9581_v18 = vld [vmem:[#allocation286_spill] sm:$0xff]  ;;  %v9584_v45 = vld [vmem:[#allocation139_spill] sm:$0xff]  ;;  %v9586_v36 = vld [vmem:[#allocation228_spill] sm:$0xff] }
 0x75f   :  { %v2983_v4 = vadd.f32 %v2982_v15, %v1675_v5  ;;  %v4219_v41 = vadd.f32 %v4187_v56, %v4155_v33  ;;  %v4156_v56 = vadd.f32 %v4028_v7, %v3996_v35  ;;  %v3761_v5 = vmul.f32 %v7443_v52, %v2698_v39  ;;  %v9580_v39 = vld [vmem:[#allocation285_spill] sm:$0xff]  ;;  %v9583_v37 = vld [vmem:[#allocation138_spill] sm:$0xff] }
 0x760   :  { %1722 = vmatmul.f32.gmra.mxu0 %v618_v42  ;;  %v9577_v42 = vld [vmem:[#allocation343_spill] sm:$0xff]  ;;  %v3693_v23 = vmul.f32 %v7449_v17, %v2506_v6  ;;  %v3829_v63 = vmul.f32 %v7458_v57, %v2890_v22  ;;  %v3897_v7 = vmul.f32 %v7447_v3, %v9579_v10  ;;  %v9588_v29 = vld [vmem:[#allocation402_spill] sm:$0xff] }
 0x761   :  { %v3862_v25 = vmul.f32 %v7471_v26, %v2983_v4  ;;  %3029 = vmatmul.f32.gmra.mxu1 %v619_v54  ;;  %v7668_v55 = vadd.f32 %v4219_v41, %v9567_v24  ;;  %v2794_v31 = vadd.f32 %v9578_v30, %v9577_v42  ;;  %v3727_v41 = vmul.f32 %v7453_v2, %v2602_v51  ;;  %v9590_v42 = vld [vmem:[#allocation78_spill] sm:$0xff] }
 0x762   :  { %v2509_v51 = vadd.f32 %v9584_v45, %v9583_v37  ;;  %v3997_v22 = vadd.f32 %v3693_v23, %v3659_v50  ;;  %v2893_v38 = vadd.f32 %v9588_v29, %v9587_v48  ;;  %v9596_v37 = vld [vmem:[#allocation288_spill] sm:$0xff]  ;;  %v9599_v48 = vld [vmem:[#allocation142_spill] sm:$0xff] }
 0x763   :  { %v4092_v33 = vadd.f32 %v3896_v8, %v3862_v25  ;;  %v2701_v25 = vadd.f32 %v9581_v18, %v9580_v39  ;;  %v4029_v24 = vadd.f32 %v3761_v5, %v3727_v41  ;;  %v3795_v35 = vmul.f32 %v7468_v12, %v2794_v31  ;;  %v9589_v5 = vld [vmem:[#allocation77_spill] sm:$0xff]  ;;  %v9749_v19 = vld [vmem:[#allocation306_spill] sm:$0xff] }
 0x764   :  { %v2413_v30 = vadd.f32 %v9590_v42, %v9589_v5  ;;  %v3694_v23 = vmul.f32 %v7449_v17, %v2509_v51  ;;  %v3830_v50 = vmul.f32 %v7458_v57, %v2893_v38  ;;  %v9600_v38 = vld [vmem:[#allocation229_spill] sm:$0xff] }
 0x765   :  { %v4188_v15 = vadd.f32 %v4092_v33, %v4060_v11  ;;  %v1678_v54 = vpop.f32.mrf.mxu0  ;;  %v9585_v11 = vld [vmem:[#allocation227_spill] sm:$0xff]  ;;  %v4061_v33 = vadd.f32 %v3829_v63, %v3795_v35  ;;  %v3762_v31 = vmul.f32 %v7443_v52, %v2701_v25 }
 0x766   :  { %v2985_v4 = vpop.f32.mrf.mxu1  ;;  %v2605_v21 = vadd.f32 %v9586_v36, %v9585_v11  ;;  %v9594_v25 = vld [vmem:[#allocation47_spill] sm:$0xff]  ;;  %v9597_v36 = vld [vmem:[#allocation196_spill] sm:$0xff] }
 0x767   :  { %v2986_v8 = vadd.f32 %v2985_v4, %v1678_v54  ;;  %v4220_v20 = vadd.f32 %v4188_v15, %v4156_v56  ;;  %v7705_v15 = vpop.f32.mrf.mxu2  ;;  %v4157_v54 = vadd.f32 %v4029_v24, %v3997_v22  ;;  %v9593_v4 = vld [vmem:[#allocation346_spill] sm:$0xff]  ;;  %v3898_v35 = vmul.f32 %v7447_v3, %v9594_v25 }
 0x768   :  { %1725 = vmatmul.f32.gmra.mxu0 %v620_v58  ;;  %9591 = vst [vmem:[#allocation125_spill] sm:$0xff] %v7705_v15  ;;  %v9592_v58 = vld [vmem:[#allocation345_spill] sm:$0xff]  ;;  %v3728_v63 = vmul.f32 %v7453_v2, %v2605_v21  ;;  %v3660_v24 = vadd.f32 %v7465_v44, %v2413_v30  ;;  %v9602_v30 = vld [vmem:[#allocation403_spill] sm:$0xff] }
 0x769   :  { %v3863_v49 = vmul.f32 %v7471_v26, %v2986_v8  ;;  %3032 = vmatmul.f32.gmra.mxu1 %v621_v43  ;;  %v7694_v6 = vadd.f32 %v4220_v20, %v9582_v59  ;;  %v2797_v43 = vadd.f32 %v9593_v4, %v9592_v58  ;;  %v622_v20 = vld [vmem:[#allocation5 + $0xe60] sm:$0xff] }
 0x76a   :  { %v9595_v59 = vld [vmem:[#allocation287_spill] sm:$0xff]  ;;  %v3998_v22 = vadd.f32 %v3694_v23, %v3660_v24 }
 0x76b   :  { %v4093_v56 = vadd.f32 %v3897_v7, %v3863_v49  ;;  %v623_v7 = vld [vmem:[#allocation5 + $0xe68] sm:$0xff]  ;;  %v4030_v49 = vadd.f32 %v3762_v31, %v3728_v63  ;;  %v2704_v45 = vadd.f32 %v9596_v37, %v9595_v59  ;;  %v3796_v51 = vmul.f32 %v7468_v12, %v2797_v43  ;;  %v9603_v31 = vld [vmem:[#allocation405_spill] sm:$0xff]  ;;  %v9604_v4 = vld [vmem:[#allocation79_spill] sm:$0xff] }
 0x76c   :  { %v9605_v43 = vld [vmem:[#allocation80_spill] sm:$0xff]  ;;  %v9606_v63 = vld [vmem:[#allocation347_spill] sm:$0xff]  ;;  %v625_v59 = vld [vmem:[#allocation5 + $0xe78] sm:$0xff] }
 0x76d   :  { %v4189_v41 = vadd.f32 %v4093_v56, %v4061_v33  ;;  %v1681_v8 = vpop.f32.mrf.mxu0  ;;  %v9598_v33 = vld [vmem:[#allocation141_spill] sm:$0xff]  ;;  %v9601_v56 = vld [vmem:[#allocation230_spill] sm:$0xff]  ;;  %v4062_v42 = vadd.f32 %v3830_v50, %v3796_v51 }
 0x76e   :  { %v2988_v10 = vpop.f32.mrf.mxu1  ;;  %v2512_v29 = vadd.f32 %v9599_v48, %v9598_v33  ;;  %v2608_v5 = vadd.f32 %v9601_v56, %v9600_v38  ;;  %v9611_v33 = vld [vmem:[#allocation290_spill] sm:$0xff] }
 0x76f   :  { %v2989_v39 = vadd.f32 %v2988_v10, %v1681_v8  ;;  %v4221_v18 = vadd.f32 %v4189_v41, %v4157_v54  ;;  %v2896_v54 = vadd.f32 %v9603_v31, %v9602_v30  ;;  %v2416_v41 = vadd.f32 %v9605_v43, %v9604_v4  ;;  %v9607_v10 = vld [vmem:[#allocation348_spill] sm:$0xff]  ;;  %v7734_v24 = vpop.f32.mrf.mxu2  ;;  %v9614_v31 = vld [vmem:[#allocation145_spill] sm:$0xff] }
 0x770   :  { %1728 = vmatmul.f32.gmra.mxu0 %v622_v20  ;;  %v4158_v8 = vadd.f32 %v4030_v49, %v3998_v22  ;;  %v3763_v20 = vmul.f32 %v7443_v52, %v2704_v45  ;;  %v2800_v23 = vadd.f32 %v9607_v10, %v9606_v63  ;;  %v3695_v25 = vmul.f32 %v7449_v17, %v2512_v29  ;;  %v9610_v22 = vld [vmem:[#allocation289_spill] sm:$0xff]  ;;  %v9613_v30 = vld [vmem:[#allocation144_spill] sm:$0xff]  ;;  %v9617_v63 = vld [vmem:[#allocation407_spill] sm:$0xff] }
 0x771   :  { %v3864_v11 = vmul.f32 %v7471_v26, %v2989_v39  ;;  %3035 = vmatmul.f32.gmra.mxu1 %v623_v7  ;;  %v7720_v21 = vadd.f32 %v4221_v18, %v9597_v36  ;;  %v624_v18 = vld [vmem:[#allocation5 + $0xe70] sm:$0xff]  ;;  %9608 = vst [vmem:[#allocation211_spill] sm:$0xff] %v7734_v24  ;;  %v3831_v37 = vmul.f32 %v7458_v57, %v2896_v54  ;;  %v9616_v4 = vld [vmem:[#allocation232_spill] sm:$0xff] }
 0x772   :  { %v3661_v36 = vadd.f32 %v7465_v44, %v2416_v41  ;;  %v2707_v48 = vadd.f32 %v9611_v33, %v9610_v22  ;;  %v3797_v38 = vmul.f32 %v7468_v12, %v2800_v23  ;;  %v2515_v54 = vadd.f32 %v9614_v31, %v9613_v30  ;;  %v9618_v10 = vld [vmem:[#allocation408_spill] sm:$0xff]  ;;  %v9620_v23 = vld [vmem:[#allocation82_spill] sm:$0xff]  ;;  %v626_v33 = vld [vmem:[#allocation5 + $0xe80] sm:$0xff] }
 0x773   :  { %v4094_v58 = vadd.f32 %v3898_v35, %v3864_v11  ;;  %v3729_v35 = vmul.f32 %v7453_v2, %v2608_v5  ;;  %v9609_v11 = vld [vmem:[#allocation50_spill] sm:$0xff]  ;;  %v9612_v5 = vld [vmem:[#allocation199_spill] sm:$0xff]  ;;  %v9623_v30 = vld [vmem:[#allocation53_spill] sm:$0xff] }
 0x774   :  { %v3899_v45 = vmul.f32 %v7447_v3, %v9609_v11  ;;  %v3999_v41 = vadd.f32 %v3695_v25, %v3661_v36  ;;  %v627_v36 = vld [vmem:[#allocation5 + $0xe88] sm:$0xff] }
 0x775   :  { %v4190_v7 = vadd.f32 %v4094_v58, %v4062_v42  ;;  %v1684_v39 = vpop.f32.mrf.mxu0  ;;  %v4031_v29 = vadd.f32 %v3763_v20, %v3729_v35  ;;  %v9615_v58 = vld [vmem:[#allocation231_spill] sm:$0xff]  ;;  %v9621_v35 = vld [vmem:[#allocation349_spill] sm:$0xff] }
 0x776   :  { %v2991_v50 = vpop.f32.mrf.mxu1  ;;  %v2611_v43 = vadd.f32 %v9616_v4, %v9615_v58  ;;  %v9625_v4 = vld [vmem:[#allocation291_spill] sm:$0xff] }
 0x777   :  { %v2992_v51 = vadd.f32 %v2991_v50, %v1684_v39  ;;  %v4222_v49 = vadd.f32 %v4190_v7, %v4158_v8  ;;  %v4063_v8 = vadd.f32 %v3831_v37, %v3797_v38  ;;  %v2899_v7 = vadd.f32 %v9618_v10, %v9617_v63  ;;  %v9619_v39 = vld [vmem:[#allocation81_spill] sm:$0xff]  ;;  %v7765_v58 = vpop.f32.mrf.mxu2  ;;  %v9627_v63 = vld [vmem:[#allocation202_spill] sm:$0xff] }
 0x778   :  { %1731 = vmatmul.f32.gmra.mxu0 %v624_v18  ;;  %v2419_v18 = vadd.f32 %v9620_v23, %v9619_v39  ;;  %v3764_v50 = vmul.f32 %v7443_v52, %v2707_v48  ;;  %v3730_v25 = vmul.f32 %v7453_v2, %v2611_v43  ;;  %v3900_v48 = vmul.f32 %v7447_v3, %v9623_v30  ;;  %v9630_v39 = vld [vmem:[#allocation148_spill] sm:$0xff] }
 0x779   :  { %v3865_v56 = vmul.f32 %v7471_v26, %v2992_v51  ;;  %3038 = vmatmul.f32.gmra.mxu1 %v625_v59  ;;  %v7746_v42 = vadd.f32 %v4222_v49, %v9612_v5  ;;  %v4159_v59 = vadd.f32 %v4031_v29, %v3999_v41  ;;  %v9622_v51 = vld [vmem:[#allocation350_spill] sm:$0xff]  ;;  %v3696_v5 = vmul.f32 %v7449_v17, %v2515_v54  ;;  %v9626_v41 = vld [vmem:[#allocation292_spill] sm:$0xff] }
 0x77a   :  { %v2803_v49 = vadd.f32 %v9622_v51, %v9621_v35  ;;  %v3662_v29 = vadd.f32 %v7465_v44, %v2419_v18  ;;  %v4032_v31 = vadd.f32 %v3764_v50, %v3730_v25  ;;  %9624 = vst [vmem:[#allocation212_spill] sm:$0xff] %v7765_v58  ;;  %v2710_v54 = vadd.f32 %v9626_v41, %v9625_v4  ;;  %v9631_v18 = vld [vmem:[#allocation233_spill] sm:$0xff]  ;;  %v9632_v50 = vld [vmem:[#allocation234_spill] sm:$0xff]  ;;  %v9633_v51 = vld [vmem:[#allocation411_spill] sm:$0xff] }
 0x77b   :  { %v4095_v20 = vadd.f32 %v3899_v45, %v3865_v56  ;;  %v3832_v45 = vmul.f32 %v7458_v57, %v2899_v7  ;;  %v9635_v25 = vld [vmem:[#allocation83_spill] sm:$0xff]  ;;  %v9638_v30 = vld [vmem:[#allocation352_spill] sm:$0xff]  ;;  %v628_v41 = vld [vmem:[#allocation5 + $0xe90] sm:$0xff] }
 0x77c   :  { %v3798_v43 = vmul.f32 %v7468_v12, %v2803_v49  ;;  %v4000_v7 = vadd.f32 %v3696_v5, %v3662_v29  ;;  %v9636_v49 = vld [vmem:[#allocation84_spill] sm:$0xff]  ;;  %v632_v58 = vld [vmem:[#allocation5 + $0xeb0] sm:$0xff] }
 0x77d   :  { %v4191_v11 = vadd.f32 %v4095_v20, %v4063_v8  ;;  %v1687_v22 = vpop.f32.mrf.mxu0  ;;  %v9629_v20 = vld [vmem:[#allocation147_spill] sm:$0xff] }
 0x77e   :  { %v2994_v37 = vpop.f32.mrf.mxu1  ;;  %v2518_v23 = vadd.f32 %v9630_v39, %v9629_v20  ;;  %v4064_v35 = vadd.f32 %v3832_v45, %v3798_v43  ;;  %v629_v45 = vld [vmem:[#allocation5 + $0xe98] sm:$0xff] }
 0x77f   :  { %v2995_v38 = vadd.f32 %v2994_v37, %v1687_v22  ;;  %v4223_v56 = vadd.f32 %v4191_v11, %v4159_v59  ;;  %v2614_v59 = vadd.f32 %v9632_v50, %v9631_v18  ;;  %v9634_v11 = vld [vmem:[#allocation412_spill] sm:$0xff]  ;;  %v2422_v37 = vadd.f32 %v9636_v49, %v9635_v25  ;;  %v9641_v50 = vld [vmem:[#allocation294_spill] sm:$0xff]  ;;  %v9645_v25 = vld [vmem:[#allocation151_spill] sm:$0xff] }
 0x780   :  { %1734 = vmatmul.f32.gmra.mxu0 %v626_v33  ;;  %v2902_v22 = vadd.f32 %v9634_v11, %v9633_v51  ;;  %v9639_v18 = vld [vmem:[#allocation56_spill] sm:$0xff] }
 0x781   :  { %v3866_v8 = vmul.f32 %v7471_v26, %v2995_v38  ;;  %3041 = vmatmul.f32.gmra.mxu1 %v627_v36  ;;  %v7772_v10 = vadd.f32 %v4223_v56, %v9627_v63  ;;  %v4160_v38 = vadd.f32 %v4032_v31, %v4000_v7  ;;  %v3765_v36 = vmul.f32 %v7443_v52, %v2710_v54  ;;  %v9637_v56 = vld [vmem:[#allocation351_spill] sm:$0xff]  ;;  %v9640_v7 = vld [vmem:[#allocation293_spill] sm:$0xff] }
 0x782   :  { %v2806_v5 = vadd.f32 %v9638_v30, %v9637_v56  ;;  %v3697_v63 = vmul.f32 %v7449_v17, %v2518_v23  ;;  %v3731_v43 = vmul.f32 %v7453_v2, %v2614_v59  ;;  %v3901_v31 = vmul.f32 %v7447_v3, %v9639_v18  ;;  %v9642_v59 = vld [vmem:[#allocation205_spill] sm:$0xff]  ;;  %v9647_v56 = vld [vmem:[#allocation236_spill] sm:$0xff] }
 0x783   :  { %9628 = vst [vmem:[#allocation62_spill] sm:$0xff] %v7772_v10  ;;  %v4096_v33 = vadd.f32 %v3900_v48, %v3866_v8  ;;  %v3833_v48 = vmul.f32 %v7458_v57, %v2902_v22  ;;  %v3663_v54 = vadd.f32 %v7465_v44, %v2422_v37  ;;  %v9644_v22 = vld [vmem:[#allocation150_spill] sm:$0xff]  ;;  %v7802_v37 = vpop.f32.mrf.mxu2 }
 0x784   :  { %v4033_v51 = vadd.f32 %v3765_v36, %v3731_v43  ;;  %v3799_v23 = vmul.f32 %v7468_v12, %v2806_v5  ;;  %v2521_v49 = vadd.f32 %v9645_v25, %v9644_v22  ;;  %9648 = vst [vmem:[#allocation29_spill] sm:$0xff] %v7802_v37  ;;  %v9650_v36 = vld [vmem:[#allocation416_spill] sm:$0xff]  ;;  %v9651_v43 = vld [vmem:[#allocation85_spill] sm:$0xff] }
 0x785   :  { %v4192_v29 = vadd.f32 %v4096_v33, %v4064_v35  ;;  %v1690_v4 = vpop.f32.mrf.mxu0  ;;  %v2713_v35 = vadd.f32 %v9641_v50, %v9640_v7  ;;  %v9653_v7 = vld [vmem:[#allocation353_spill] sm:$0xff]  ;;  %v9654_v50 = vld [vmem:[#allocation354_spill] sm:$0xff] }
 0x786   :  { %v2997_v20 = vpop.f32.mrf.mxu1 }
 0x787   :  { %v2998_v8 = vadd.f32 %v2997_v20, %v1690_v4  ;;  %v4224_v39 = vadd.f32 %v4192_v29, %v4160_v38  ;;  %v9646_v38 = vld [vmem:[#allocation235_spill] sm:$0xff]  ;;  %v4001_v29 = vadd.f32 %v3697_v63, %v3663_v54  ;;  %v4065_v4 = vadd.f32 %v3833_v48, %v3799_v23  ;;  %v631_v54 = vld [vmem:[#allocation5 + $0xea8] sm:$0xff] }
 0x788   :  { %1737 = vmatmul.f32.gmra.mxu0 %v628_v41  ;;  %v2617_v30 = vadd.f32 %v9647_v56, %v9646_v38  ;;  %v9649_v41 = vld [vmem:[#allocation415_spill] sm:$0xff]  ;;  %v3698_v56 = vmul.f32 %v7449_v17, %v2521_v49 }
 0x789   :  { %v3867_v11 = vmul.f32 %v7471_v26, %v2998_v8  ;;  %3044 = vmatmul.f32.gmra.mxu1 %v629_v45  ;;  %v7796_v33 = vadd.f32 %v4224_v39, %v9642_v59  ;;  %v2905_v20 = vadd.f32 %v9650_v36, %v9649_v41  ;;  %v9652_v8 = vld [vmem:[#allocation86_spill] sm:$0xff]  ;;  %v3766_v39 = vmul.f32 %v7443_v52, %v2713_v35  ;;  %v630_v38 = vld [vmem:[#allocation5 + $0xea0] sm:$0xff]  ;;  %v9655_v41 = vld [vmem:[#allocation57_spill] sm:$0xff] }
 0x78a   :  { %v2425_v45 = vadd.f32 %v9652_v8, %v9651_v43  ;;  %v4161_v18 = vadd.f32 %v4033_v51, %v4001_v29  ;;  %v2809_v59 = vadd.f32 %v9654_v50, %v9653_v7  ;;  %v3732_v63 = vmul.f32 %v7453_v2, %v2617_v30  ;;  %v9657_v36 = vld [vmem:[#allocation296_spill] sm:$0xff]  ;;  %v9658_v43 = vld [vmem:[#allocation206_spill] sm:$0xff] }
 0x78b   :  { %9643 = vst [vmem:[#allocation63_spill] sm:$0xff] %v7796_v33  ;;  %v4097_v5 = vadd.f32 %v3901_v31, %v3867_v11  ;;  %v3834_v31 = vmul.f32 %v7458_v57, %v2905_v20  ;;  %v3902_v35 = vmul.f32 %v7447_v3, %v9655_v41  ;;  %v9661_v7 = vld [vmem:[#allocation154_spill] sm:$0xff] }
 0x78c   :  { %v3664_v51 = vadd.f32 %v7465_v44, %v2425_v45  ;;  %v4034_v29 = vadd.f32 %v3766_v39, %v3732_v63  ;;  %v3800_v49 = vmul.f32 %v7468_v12, %v2809_v59  ;;  %v9665_v63 = vld [vmem:[#allocation420_spill] sm:$0xff] }
 0x78d   :  { %v4193_v22 = vadd.f32 %v4097_v5, %v4065_v4  ;;  %v1693_v25 = vpop.f32.mrf.mxu0  ;;  %v9656_v4 = vld [vmem:[#allocation295_spill] sm:$0xff]  ;;  %v9667_v59 = vld [vmem:[#allocation88_spill] sm:$0xff] }
 0x78e   :  { %v3000_v48 = vpop.f32.mrf.mxu1  ;;  %v2716_v5 = vadd.f32 %v9657_v36, %v9656_v4  ;;  %v4002_v20 = vadd.f32 %v3698_v56, %v3664_v51  ;;  %v4066_v39 = vadd.f32 %v3834_v31, %v3800_v49  ;;  %v9666_v4 = vld [vmem:[#allocation87_spill] sm:$0xff]  ;;  %v9670_v51 = vld [vmem:[#allocation356_spill] sm:$0xff] }
 0x78f   :  { %v3001_v23 = vadd.f32 %v3000_v48, %v1693_v25  ;;  %v4225_v11 = vadd.f32 %v4193_v22, %v4161_v18  ;;  %v9660_v18 = vld [vmem:[#allocation153_spill] sm:$0xff]  ;;  %v9663_v25 = vld [vmem:[#allocation238_spill] sm:$0xff]  ;;  %v2428_v36 = vadd.f32 %v9667_v59, %v9666_v4  ;;  %v9669_v56 = vld [vmem:[#allocation355_spill] sm:$0xff] }
 0x790   :  { %1740 = vmatmul.f32.gmra.mxu0 %v630_v38  ;;  %v2524_v50 = vadd.f32 %v9661_v7, %v9660_v18  ;;  %v9662_v22 = vld [vmem:[#allocation237_spill] sm:$0xff]  ;;  %v9664_v38 = vld [vmem:[#allocation419_spill] sm:$0xff]  ;;  %v9673_v4 = vld [vmem:[#allocation298_spill] sm:$0xff] }
 0x791   :  { %v3868_v30 = vmul.f32 %v7471_v26, %v3001_v23  ;;  %3047 = vmatmul.f32.gmra.mxu1 %v631_v54  ;;  %v7822_v8 = vadd.f32 %v4225_v11, %v9658_v43  ;;  %v2620_v45 = vadd.f32 %v9663_v25, %v9662_v22  ;;  %v2908_v48 = vadd.f32 %v9665_v63, %v9664_v38  ;;  %v7832_v23 = vpop.f32.mrf.mxu2  ;;  %v633_v22 = vld [vmem:[#allocation5 + $0xeb8] sm:$0xff] }
 0x792   :  { %9668 = vst [vmem:[#allocation276_spill] sm:$0xff] %v7832_v23  ;;  %v4162_v54 = vadd.f32 %v4034_v29, %v4002_v20  ;;  %v3767_v11 = vmul.f32 %v7443_v52, %v2716_v5  ;;  %v2812_v43 = vadd.f32 %v9670_v51, %v9669_v56  ;;  %v3699_v31 = vmul.f32 %v7449_v17, %v2524_v50  ;;  %v9671_v63 = vld [vmem:[#allocation58_spill] sm:$0xff]  ;;  %v9672_v20 = vld [vmem:[#allocation297_spill] sm:$0xff] }
 0x793   :  { %9659 = vst [vmem:[#allocation275_spill] sm:$0xff] %v7822_v8  ;;  %v4098_v41 = vadd.f32 %v3902_v35, %v3868_v30  ;;  %v3733_v35 = vmul.f32 %v7453_v2, %v2620_v45  ;;  %v3835_v30 = vmul.f32 %v7458_v57, %v2908_v48  ;;  %v3903_v29 = vmul.f32 %v7447_v3, %v9671_v63  ;;  %v9674_v45 = vld [vmem:[#allocation207_spill] sm:$0xff]  ;;  %v9676_v48 = vld [vmem:[#allocation156_spill] sm:$0xff]  ;;  %v9680_v23 = vld [vmem:[#allocation421_spill] sm:$0xff] }
 0x794   :  { %v3665_v5 = vadd.f32 %v7465_v44, %v2428_v36  ;;  %v3801_v50 = vmul.f32 %v7468_v12, %v2812_v43  ;;  %v9683_v43 = vld [vmem:[#allocation90_spill] sm:$0xff] }
 0x795   :  { %v4194_v18 = vadd.f32 %v4098_v41, %v4066_v39  ;;  %v1696_v7 = vpop.f32.mrf.mxu0  ;;  %v2719_v39 = vadd.f32 %v9673_v4, %v9672_v20  ;;  %v4035_v41 = vadd.f32 %v3767_v11, %v3733_v35  ;;  %v9681_v20 = vld [vmem:[#allocation423_spill] sm:$0xff]  ;;  %v9682_v35 = vld [vmem:[#allocation89_spill] sm:$0xff] }
 0x796   :  { %v3003_v49 = vpop.f32.mrf.mxu1  ;;  %v4003_v36 = vadd.f32 %v3699_v31, %v3665_v5  ;;  %v4067_v63 = vadd.f32 %v3835_v30, %v3801_v50  ;;  %v2431_v4 = vadd.f32 %v9683_v43, %v9682_v35  ;;  %v9695_v35 = vld [vmem:[#allocation242_spill] sm:$0xff] }
 0x797   :  { %v3004_v25 = vadd.f32 %v3003_v49, %v1696_v7  ;;  %v4226_v38 = vadd.f32 %v4194_v18, %v4162_v54  ;;  %v9677_v54 = vld [vmem:[#allocation157_spill] sm:$0xff]  ;;  %v9678_v18 = vld [vmem:[#allocation239_spill] sm:$0xff]  ;;  %v9679_v7 = vld [vmem:[#allocation240_spill] sm:$0xff] }
 0x798   :  { %1743 = vmatmul.f32.gmra.mxu0 %v632_v58  ;;  %v2527_v51 = vadd.f32 %v9677_v54, %v9676_v48  ;;  %v2623_v49 = vadd.f32 %v9679_v7, %v9678_v18  ;;  %v2911_v58 = vadd.f32 %v9681_v20, %v9680_v23  ;;  %v634_v54 = vld [vmem:[#allocation5 + $0xec0] sm:$0xff] }
 0x799   :  { %v3869_v59 = vmul.f32 %v7471_v26, %v3004_v25  ;;  %3050 = vmatmul.f32.gmra.mxu1 %v633_v22  ;;  %v7848_v56 = vadd.f32 %v4226_v38, %v9674_v45  ;;  %v3768_v22 = vmul.f32 %v7443_v52, %v2719_v39  ;;  %v4163_v25 = vadd.f32 %v4035_v41, %v4003_v36  ;;  %v9684_v38 = vld [vmem:[#allocation357_spill] sm:$0xff]  ;;  %v9685_v45 = vld [vmem:[#allocation358_spill] sm:$0xff]  ;;  %v7863_v30 = vpop.f32.mrf.mxu2  ;;  %v9688_v36 = vld [vmem:[#allocation299_spill] sm:$0xff] }
 0x79a   :  { %v2815_v37 = vadd.f32 %v9685_v45, %v9684_v38  ;;  %v3700_v18 = vmul.f32 %v7449_v17, %v2527_v51  ;;  %v3734_v31 = vmul.f32 %v7453_v2, %v2623_v49  ;;  %9686 = vst [vmem:[#allocation126_spill] sm:$0xff] %v7863_v30  ;;  %v3836_v5 = vmul.f32 %v7458_v57, %v2911_v58  ;;  %v9687_v52 = vld [vmem:[#allocation61_spill] sm:$0xff]  ;;  %v9690_v49 = vld [vmem:[#allocation210_spill] sm:$0xff]  ;;  %v9693_v58 = vld [vmem:[#allocation160_spill] sm:$0xff] }
 0x79b   :  { %9675 = vst [vmem:[#allocation178_spill] sm:$0xff] %v7848_v56  ;;  %v4099_v11 = vadd.f32 %v3903_v29, %v3869_v59  ;;  %v635_v29 = vld [vmem:[#allocation5 + $0xec8] sm:$0xff]  ;;  %v3904_v39 = vmul.f32 %v7447_v3, %v9687_v52  ;;  %v3666_v41 = vadd.f32 %v7465_v44, %v2431_v4  ;;  %v9694_v3 = vld [vmem:[#allocation241_spill] sm:$0xff]  ;;  %v9698_v45 = vld [vmem:[#allocation91_spill] sm:$0xff] }
 0x79c   :  { %v4036_v7 = vadd.f32 %v3768_v22, %v3734_v31  ;;  %v3802_v2 = vmul.f32 %v7468_v12, %v2815_v37  ;;  %v2626_v44 = vadd.f32 %v9695_v35, %v9694_v3  ;;  %v9696_v4 = vld [vmem:[#allocation425_spill] sm:$0xff]  ;;  %v9697_v22 = vld [vmem:[#allocation426_spill] sm:$0xff]  ;;  %v9699_v12 = vld [vmem:[#allocation92_spill] sm:$0xff] }
 0x79d   :  { %v4195_v24 = vadd.f32 %v4099_v11, %v4067_v63  ;;  %v1699_v48 = vpop.f32.mrf.mxu0  ;;  %v9689_v63 = vld [vmem:[#allocation300_spill] sm:$0xff]  ;;  %v4004_v57 = vadd.f32 %v3700_v18, %v3666_v41  ;;  %v2434_v37 = vadd.f32 %v9699_v12, %v9698_v45  ;;  %v9700_v18 = vld [vmem:[#allocation359_spill] sm:$0xff]  ;;  %v9708_v12 = vld [vmem:[#allocation162_spill] sm:$0xff] }
 0x79e   :  { %v3006_v23 = vpop.f32.mrf.mxu1  ;;  %v2722_v17 = vadd.f32 %v9689_v63, %v9688_v36  ;;  %v4068_v43 = vadd.f32 %v3836_v5, %v3802_v2  ;;  %v9701_v31 = vld [vmem:[#allocation360_spill] sm:$0xff]  ;;  %v7892_v41 = vld [vmem:[#allocation7 + $0x1] ss:$0 sm:$0xff]  ;;  %v7895_v36 = vld [vmem:[#allocation7 + $0x4] ss:$0 sm:$0xff] }
 0x79f   :  { %v3007_v50 = vadd.f32 %v3006_v23, %v1699_v48  ;;  %v4227_v59 = vadd.f32 %v4195_v24, %v4163_v25  ;;  %v9692_v24 = vld [vmem:[#allocation159_spill] sm:$0xff]  ;;  %v2914_v25 = vadd.f32 %v9697_v22, %v9696_v4  ;;  %v2818_v23 = vadd.f32 %v9701_v31, %v9700_v18  ;;  %v9711_v31 = vld [vmem:[#allocation244_spill] sm:$0xff] }
 0x7a0   :  { %1746 = vmatmul.f32.gmra.mxu0 %v634_v54  ;;  %v2530_v11 = vadd.f32 %v9693_v58, %v9692_v24  ;;  %v7884_v48 = vld [vmem:[#allocation7 + $0x2] ss:$0 sm:$0xff]  ;;  %v7898_v2 = vld [vmem:[#allocation7 + $0x6] ss:$0 sm:$0xff]  ;;  %v9703_v58 = vld [vmem:[#allocation301_spill] sm:$0xff] }
 0x7a1   :  { %v3870_v51 = vmul.f32 %v7471_v26, %v3007_v50  ;;  %3053 = vmatmul.f32.gmra.mxu1 %v635_v29  ;;  %v7874_v20 = vadd.f32 %v4227_v59, %v9690_v49  ;;  %v4164_v26 = vadd.f32 %v4036_v7, %v4004_v57  ;;  %v3769_v54 = vmul.f32 %v7884_v48, %v2722_v17  ;;  %v7889_v59 = vld [vmem:[#allocation7] ss:$0 sm:$0xff]  ;;  %v7902_v57 = vld [vmem:[#allocation8] ss:$0 sm:$0xff]  ;;  %v7907_v35 = vpop.f32.mrf.mxu2  ;;  %v7912_v22 = vld [vmem:[#allocation7 + $0x5] ss:$0 sm:$0xff] }
 0x7a2   :  { %v3701_v5 = vmul.f32 %v7889_v59, %v2530_v11  ;;  %v3837_v7 = vmul.f32 %v7895_v36, %v2914_v25  ;;  %v3667_v24 = vadd.f32 %v7902_v57, %v2434_v37  ;;  %v9704_v11 = vld [vmem:[#allocation302_spill] sm:$0xff]  ;;  %9705 = vst [vmem:[#allocation214_spill] sm:$0xff] %v7907_v35  ;;  %v9710_v18 = vld [vmem:[#allocation243_spill] sm:$0xff] }
 0x7a3   :  { %9691 = vst [vmem:[#allocation127_spill] sm:$0xff] %v7874_v20  ;;  %v4100_v38 = vadd.f32 %v3904_v39, %v3870_v51  ;;  %v3735_v39 = vmul.f32 %v7892_v41, %v2626_v44  ;;  %v9702_v51 = vld [vmem:[#allocation64_spill] sm:$0xff]  ;;  %v2725_v3 = vadd.f32 %v9704_v11, %v9703_v58  ;;  %v9715_v11 = vld [vmem:[#allocation94_spill] sm:$0xff] }
 0x7a4   :  { %v3905_v49 = vmul.f32 %v7898_v2, %v9702_v51 }
 0x7a5   :  { %v4196_v29 = vadd.f32 %v4100_v38, %v4068_v43  ;;  %v1702_v50 = vpop.f32.mrf.mxu0  ;;  %v4037_v44 = vadd.f32 %v3769_v54, %v3735_v39  ;;  %v7909_v43 = vld [vmem:[#allocation7 + $0x3] ss:$0 sm:$0xff]  ;;  %v9706_v38 = vld [vmem:[#allocation213_spill] sm:$0xff]  ;;  %v9713_v39 = vld [vmem:[#allocation430_spill] sm:$0xff] }
 0x7a6   :  { %v3009_v52 = vpop.f32.mrf.mxu1  ;;  %v3803_v4 = vmul.f32 %v7909_v43, %v2818_v23  ;;  %v9712_v54 = vld [vmem:[#allocation429_spill] sm:$0xff] }
 0x7a7   :  { %v3010_v63 = vadd.f32 %v3009_v52, %v1702_v50  ;;  %v4228_v17 = vadd.f32 %v4196_v29, %v4164_v26  ;;  %v9709_v26 = vld [vmem:[#allocation163_spill] sm:$0xff]  ;;  %v2629_v29 = vadd.f32 %v9711_v31, %v9710_v18  ;;  %v4005_v50 = vadd.f32 %v3701_v5, %v3667_v24  ;;  %v9714_v23 = vld [vmem:[#allocation93_spill] sm:$0xff] }
 0x7a8   :  { %v2533_v37 = vadd.f32 %v9709_v26, %v9708_v12  ;;  %v4069_v52 = vadd.f32 %v3837_v7, %v3803_v4  ;;  %v2917_v51 = vadd.f32 %v9713_v39, %v9712_v54  ;;  %v2437_v35 = vadd.f32 %v9715_v11, %v9714_v23  ;;  %v9719_v31 = vld [vmem:[#allocation303_spill] sm:$0xff]  ;;  %v9721_v39 = vld [vmem:[#allocation216_spill] sm:$0xff]  ;;  %v9724_v23 = vld [vmem:[#allocation166_spill] sm:$0xff] }
 0x7a9   :  { %v3871_v25 = vmul.f32 %v7912_v22, %v3010_v63  ;;  %v7916_v45 = vadd.f32 %v4228_v17, %v9706_v38  ;;  %v3770_v63 = vmul.f32 %v7884_v48, %v2725_v3  ;;  %v4165_v30 = vadd.f32 %v4037_v44, %v4005_v50  ;;  %v9716_v17 = vld [vmem:[#allocation361_spill] sm:$0xff]  ;;  %v9717_v38 = vld [vmem:[#allocation362_spill] sm:$0xff]  ;;  %v9720_v50 = vld [vmem:[#allocation304_spill] sm:$0xff] }
 0x7aa   :  { %v2821_v15 = vadd.f32 %v9717_v38, %v9716_v17  ;;  %v3702_v26 = vmul.f32 %v7889_v59, %v2533_v37  ;;  %v3736_v5 = vmul.f32 %v7892_v41, %v2629_v29  ;;  %v3838_v24 = vmul.f32 %v7895_v36, %v2917_v51  ;;  %v9723_v51 = vld [vmem:[#allocation165_spill] sm:$0xff]  ;;  %v9727_v17 = vld [vmem:[#allocation246_spill] sm:$0xff] }
 0x7ab   :  { %9707 = vst [vmem:[#allocation215_spill] sm:$0xff] %v7916_v45  ;;  %v4101_v58 = vadd.f32 %v3905_v49, %v3871_v25  ;;  %v9718_v25 = vld [vmem:[#allocation67_spill] sm:$0xff]  ;;  %v3668_v3 = vadd.f32 %v7902_v57, %v2437_v35  ;;  %v2728_v54 = vadd.f32 %v9720_v50, %v9719_v31  ;;  %v9726_v11 = vld [vmem:[#allocation245_spill] sm:$0xff] }
 0x7ac   :  { %v3906_v18 = vmul.f32 %v7898_v2, %v9718_v25  ;;  %v4038_v44 = vadd.f32 %v3770_v63, %v3736_v5  ;;  %v2632_v35 = vadd.f32 %v9727_v17, %v9726_v11  ;;  %v9728_v38 = vld [vmem:[#allocation433_spill] sm:$0xff]  ;;  %v9731_v25 = vld [vmem:[#allocation96_spill] sm:$0xff] }
 0x7ad   :  { %v4197_v53 = vadd.f32 %v4101_v58, %v4069_v52  ;;  %v1705_v12 = vpop.f32.mrf.mxu0  ;;  %v3804_v52 = vmul.f32 %v7909_v43, %v2821_v15  ;;  %v4006_v58 = vadd.f32 %v3702_v26, %v3668_v3  ;;  %v9730_v15 = vld [vmem:[#allocation95_spill] sm:$0xff]  ;;  %v9733_v3 = vld [vmem:[#allocation364_spill] sm:$0xff] }
 0x7ae   :  { %v3012_v7 = vpop.f32.mrf.mxu1  ;;  %v9732_v26 = vld [vmem:[#allocation363_spill] sm:$0xff] }
 0x7af   :  { %v3013_v4 = vadd.f32 %v3012_v7, %v1705_v12  ;;  %v4229_v49 = vadd.f32 %v4197_v53, %v4165_v30  ;;  %v2536_v53 = vadd.f32 %v9724_v23, %v9723_v51  ;;  %v7944_v30 = vpop.f32.mrf.mxu2  ;;  %v4070_v63 = vadd.f32 %v3838_v24, %v3804_v52  ;;  %v9729_v12 = vld [vmem:[#allocation434_spill] sm:$0xff] }
 0x7b0   :  { %9725 = vst [vmem:[#allocation66_spill] sm:$0xff] %v7944_v30  ;;  %v2920_v5 = vadd.f32 %v9729_v12, %v9728_v38  ;;  %v4166_v31 = vadd.f32 %v4038_v44, %v4006_v58  ;;  %v2824_v50 = vadd.f32 %v9733_v3, %v9732_v26  ;;  %v3737_v24 = vmul.f32 %v7892_v41, %v2632_v35  ;;  %v9736_v58 = vld [vmem:[#allocation248_spill] sm:$0xff]  ;;  %v9739_v35 = vld [vmem:[#allocation97_spill] sm:$0xff] }
 0x7b1   :  { %v3872_v37 = vmul.f32 %v7912_v22, %v3013_v4  ;;  %v7940_v29 = vadd.f32 %v4229_v49, %v9721_v39  ;;  %v2440_v4 = vadd.f32 %v9731_v25, %v9730_v15  ;;  %v3771_v49 = vmul.f32 %v7884_v48, %v2728_v54  ;;  %v9735_v54 = vld [vmem:[#allocation247_spill] sm:$0xff]  ;;  %v9741_v25 = vld [vmem:[#allocation168_spill] sm:$0xff] }
 0x7b2   :  { %v3703_v23 = vmul.f32 %v7889_v59, %v2536_v53  ;;  %v3839_v52 = vmul.f32 %v7895_v36, %v2920_v5  ;;  %v2635_v38 = vadd.f32 %v9736_v58, %v9735_v54  ;;  %v9740_v5 = vld [vmem:[#allocation98_spill] sm:$0xff] }
 0x7b3   :  { %9722 = vst [vmem:[#allocation65_spill] sm:$0xff] %v7940_v29  ;;  %v4102_v7 = vadd.f32 %v3906_v18, %v3872_v37  ;;  %v9734_v37 = vld [vmem:[#allocation70_spill] sm:$0xff]  ;;  %v3669_v44 = vadd.f32 %v7902_v57, %v2440_v4  ;;  %v4039_v12 = vadd.f32 %v3771_v49, %v3737_v24  ;;  %v9745_v49 = vld [vmem:[#allocation20_spill] sm:$0xff]  ;;  %v9746_v24 = vld [vmem:[#allocation21_spill] sm:$0xff] }
 0x7b4   :  { %v3907_v17 = vmul.f32 %v7898_v2, %v9734_v37  ;;  %v9744_v4 = vld [vmem:[#allocation366_spill] sm:$0xff] }
 0x7b5   :  { %v4198_v39 = vadd.f32 %v4102_v7, %v4070_v63  ;;  %v1708_v51 = vpop.f32.mrf.mxu0  ;;  %v3805_v63 = vmul.f32 %v7909_v43, %v2824_v50  ;;  %v9737_v7 = vld [vmem:[#allocation219_spill] sm:$0xff]  ;;  %v4007_v3 = vadd.f32 %v3703_v23, %v3669_v44  ;;  %v2347_v50 = vadd.f32 %v9746_v24, %v9745_v49  ;;  %v9757_v24 = vld [vmem:[#allocation100_spill] sm:$0xff] }
 0x7b6   :  { %v3015_v30 = vpop.f32.mrf.mxu1 }
 0x7b7   :  { %v3016_v11 = vadd.f32 %v3015_v30, %v1708_v51  ;;  %v4230_v18 = vadd.f32 %v4198_v39, %v4166_v31  ;;  %v2443_v30 = vadd.f32 %v9740_v5, %v9739_v35  ;;  %v9742_v31 = vld [vmem:[#allocation169_spill] sm:$0xff]  ;;  %v4071_v37 = vadd.f32 %v3839_v52, %v3805_v63  ;;  %v7977_v58 = vpop.f32.mrf.mxu2 }
 0x7b8   :  { %v2539_v26 = vadd.f32 %v9742_v31, %v9741_v25  ;;  %v9743_v39 = vld [vmem:[#allocation365_spill] sm:$0xff]  ;;  %9747 = vst [vmem:[#allocation277_spill] sm:$0xff] %v7977_v58 }
 0x7b9   :  { %v3873_v53 = vmul.f32 %v7912_v22, %v3016_v11  ;;  %v7966_v15 = vadd.f32 %v4230_v18, %v9737_v7  ;;  %v2827_v51 = vadd.f32 %v9744_v4, %v9743_v39  ;;  %v3740_v11 = vmul.f32 %v7884_v48, %v2635_v38  ;;  %v9748_v7 = vld [vmem:[#allocation305_spill] sm:$0xff]  ;;  %v9753_v4 = vld [vmem:[#allocation250_spill] sm:$0xff] }
 0x7ba   :  { %v4167_v18 = vadd.f32 %v4039_v12, %v4007_v3  ;;  %v2731_v35 = vadd.f32 %v9749_v19, %v9748_v7  ;;  %v9750_v5 = vld [vmem:[#allocation437_spill] sm:$0xff]  ;;  %v3706_v31 = vmul.f32 %v7892_v41, %v2539_v26  ;;  %v3638_v39 = vadd.f32 %v7902_v57, %v2347_v50  ;;  %v9754_v26 = vld [vmem:[#allocation222_spill] sm:$0xff]  ;;  %v9758_v7 = vld [vmem:[#allocation171_spill] sm:$0xff] }
 0x7bb   :  { %9738 = vst [vmem:[#allocation32_spill] sm:$0xff] %v7966_v15  ;;  %v4103_v54 = vadd.f32 %v3907_v17, %v3873_v53  ;;  %v2923_v25 = vadd.f32 %v9751_v27, %v9750_v5  ;;  %v3672_v17 = vmul.f32 %v7889_v59, %v2443_v30  ;;  %v3808_v63 = vmul.f32 %v7895_v36, %v2827_v51  ;;  %v9752_v3 = vld [vmem:[#allocation249_spill] sm:$0xff]  ;;  %v9756_v30 = vld [vmem:[#allocation99_spill] sm:$0xff] }
 0x7bc   :  { %v4008_v12 = vadd.f32 %v3740_v11, %v3706_v31  ;;  %v2638_v19 = vadd.f32 %v9753_v4, %v9752_v3  ;;  %v3774_v49 = vmul.f32 %v7909_v43, %v2731_v35  ;;  %v2446_v51 = vadd.f32 %v9757_v24, %v9756_v30  ;;  %v9762_v35 = vld [vmem:[#allocation22_spill] sm:$0xff]  ;;  %v9763_v3 = vld [vmem:[#allocation23_spill] sm:$0xff]  ;;  %v9767_v30 = vld [vmem:[#allocation440_spill] sm:$0xff] }
 0x7bd   :  { %v4199_v23 = vadd.f32 %v4103_v54, %v4071_v37  ;;  %v1711_v44 = vpop.f32.mrf.mxu0  ;;  %v3842_v27 = vmul.f32 %v7912_v22, %v2923_v25  ;;  %v3976_v50 = vadd.f32 %v3672_v17, %v3638_v39  ;;  %v2350_v25 = vadd.f32 %v9763_v3, %v9762_v35  ;;  %v9772_v3 = vld [vmem:[#allocation173_spill] sm:$0xff] }
 0x7be   :  { %v3018_v52 = vpop.f32.mrf.mxu1  ;;  %v4040_v11 = vadd.f32 %v3808_v63, %v3774_v49  ;;  %v2926_v24 = vadd.f32 %v9767_v30, %v9766_v16  ;;  %v3673_v17 = vmul.f32 %v7889_v59, %v2446_v51  ;;  %v9777_v30 = vld [vmem:[#allocation370_spill] sm:$0xff] }
 0x7bf   :  { %v3019_v53 = vadd.f32 %v3018_v52, %v1711_v44  ;;  %v4231_v38 = vadd.f32 %v4199_v23, %v4167_v18  ;;  %v9759_v18 = vld [vmem:[#allocation172_spill] sm:$0xff]  ;;  %v9760_v23 = vld [vmem:[#allocation367_spill] sm:$0xff]  ;;  %v4136_v4 = vadd.f32 %v4008_v12, %v3976_v50  ;;  %v8010_v39 = vpop.f32.mrf.mxu2  ;;  %v3639_v12 = vadd.f32 %v7902_v57, %v2350_v25 }
 0x7c0   :  { %v2542_v5 = vadd.f32 %v9759_v18, %v9758_v7  ;;  %v9761_v44 = vld [vmem:[#allocation368_spill] sm:$0xff]  ;;  %9768 = vst [vmem:[#allocation181_spill] sm:$0xff] %v8010_v39  ;;  %v9769_v50 = vld [vmem:[#allocation251_spill] sm:$0xff]  ;;  %v9799_v39 = vld [vmem:[#allocation446_spill] sm:$0xff] }
 0x7c1   :  { %v3876_v37 = vmul.f32 %v7898_v2, %v3019_v53  ;;  %v7993_v54 = vadd.f32 %v4231_v38, %v9754_v26  ;;  %v2830_v31 = vadd.f32 %v9761_v44, %v9760_v23  ;;  %v3741_v53 = vmul.f32 %v7884_v48, %v2638_v19  ;;  %v9764_v38 = vld [vmem:[#allocation307_spill] sm:$0xff]  ;;  %v9765_v26 = vld [vmem:[#allocation308_spill] sm:$0xff] }
 0x7c2   :  { %v2734_v58 = vadd.f32 %v9765_v26, %v9764_v38  ;;  %v3707_v63 = vmul.f32 %v7892_v41, %v2542_v5  ;;  %v9770_v23 = vld [vmem:[#allocation252_spill] sm:$0xff]  ;;  %v9771_v5 = vld [vmem:[#allocation134_spill] sm:$0xff]  ;;  %v3977_v35 = vadd.f32 %v3673_v17, %v3639_v12  ;;  %v9776_v26 = vld [vmem:[#allocation369_spill] sm:$0xff] }
 0x7c3   :  { %9755 = vst [vmem:[#allocation278_spill] sm:$0xff] %v7993_v54  ;;  %v4072_v52 = vadd.f32 %v3876_v37, %v3842_v27  ;;  %v3809_v27 = vmul.f32 %v7895_v36, %v2830_v31  ;;  %v2641_v44 = vadd.f32 %v9770_v23, %v9769_v50  ;;  %v9773_v31 = vld [vmem:[#allocation174_spill] sm:$0xff]  ;;  %v9780_v17 = vld [vmem:[#allocation309_spill] sm:$0xff]  ;;  %v9782_v23 = vld [vmem:[#allocation443_spill] sm:$0xff] }
 0x7c4   :  { %v4009_v18 = vadd.f32 %v3741_v53, %v3707_v63  ;;  %v3775_v16 = vmul.f32 %v7909_v43, %v2734_v58  ;;  %v9775_v38 = vld [vmem:[#allocation102_spill] sm:$0xff]  ;;  %v9778_v58 = vld [vmem:[#allocation24_spill] sm:$0xff] }
 0x7c5   :  { %v4168_v62 = vadd.f32 %v4072_v52, %v4040_v11  ;;  %v1714_v7 = vpop.f32.mrf.mxu0  ;;  %v3843_v11 = vmul.f32 %v7912_v22, %v2926_v24  ;;  %v9779_v24 = vld [vmem:[#allocation25_spill] sm:$0xff]  ;;  %v9781_v12 = vld [vmem:[#allocation310_spill] sm:$0xff] }
 0x7c6   :  { %v3021_v49 = vpop.f32.mrf.mxu1  ;;  %v4041_v53 = vadd.f32 %v3809_v27, %v3775_v16  ;;  %v2737_v50 = vadd.f32 %v9781_v12, %v9780_v17  ;;  %v9787_v17 = vld [vmem:[#allocation137_spill] sm:$0xff]  ;;  %v9789_v12 = vld [vmem:[#allocation104_spill] sm:$0xff] }
 0x7c7   :  { %v4200_v37 = vadd.f32 %v4168_v62, %v4136_v4  ;;  %v3022_v19 = vadd.f32 %v3021_v49, %v1714_v7  ;;  %v2545_v62 = vadd.f32 %v9773_v31, %v9772_v3  ;;  %v9774_v4 = vld [vmem:[#allocation101_spill] sm:$0xff]  ;;  %v2833_v7 = vadd.f32 %v9777_v30, %v9776_v26  ;;  %v9785_v30 = vld [vmem:[#allocation254_spill] sm:$0xff] }
 0x7c8   :  { %v2449_v25 = vadd.f32 %v9775_v38, %v9774_v4  ;;  %v2353_v49 = vadd.f32 %v9779_v24, %v9778_v58  ;;  %v8042_v24 = vpop.f32.mrf.mxu2 }
 0x7c9   :  { %v3877_v51 = vmul.f32 %v7898_v2, %v3022_v19  ;;  %v8020_v52 = vadd.f32 %v4200_v37, %v9771_v5  ;;  %v3742_v37 = vmul.f32 %v7884_v48, %v2641_v44  ;;  %v4137_v19 = vadd.f32 %v4009_v18, %v3977_v35  ;;  %v9783_v5 = vld [vmem:[#allocation444_spill] sm:$0xff]  ;;  %v9784_v35 = vld [vmem:[#allocation253_spill] sm:$0xff]  ;;  %9786 = vst [vmem:[#allocation128_spill] sm:$0xff] %v8042_v24 }
 0x7ca   :  { %v2929_v3 = vadd.f32 %v9783_v5, %v9782_v23  ;;  %v3708_v16 = vmul.f32 %v7892_v41, %v2545_v62  ;;  %v3640_v44 = vadd.f32 %v7902_v57, %v2353_v49  ;;  %v2644_v58 = vadd.f32 %v9785_v30, %v9784_v35  ;;  %v9790_v23 = vld [vmem:[#allocation176_spill] sm:$0xff]  ;;  %v9791_v49 = vld [vmem:[#allocation177_spill] sm:$0xff] }
 0x7cb   :  { %v4073_v63 = vadd.f32 %v3877_v51, %v3843_v11  ;;  %4565 = vmatmul.f32.vlgmr.msrb.gmra.mxu2 %v8020_v52  ;;  %v3674_v11 = vmul.f32 %v7889_v59, %v2449_v25  ;;  %v3810_v51 = vmul.f32 %v7895_v36, %v2833_v7  ;;  %v9788_v7 = vld [vmem:[#allocation103_spill] sm:$0xff]  ;;  %v9797_v24 = vld [vmem:[#allocation312_spill] sm:$0xff] }
 0x7cc   :  { %v4010_v18 = vadd.f32 %v3742_v37, %v3708_v16  ;;  %v2548_v37 = vadd.f32 %v9791_v49, %v9790_v23  ;;  %v9793_v16 = vld [vmem:[#allocation372_spill] sm:$0xff] }
 0x7cd   :  { %v4169_v31 = vadd.f32 %v4073_v63, %v4041_v53  ;;  %v1717_v27 = vpop.f32.mrf.mxu0  ;;  %v3776_v53 = vmul.f32 %v7909_v43, %v2737_v50  ;;  %v3844_v63 = vmul.f32 %v7912_v22, %v2929_v3  ;;  %v3978_v5 = vadd.f32 %v3674_v11, %v3640_v44  ;;  %v9794_v50 = vld [vmem:[#allocation27_spill] sm:$0xff]  ;;  %v9795_v3 = vld [vmem:[#allocation28_spill] sm:$0xff] }
 0x7ce   :  { %v3024_v4 = vpop.f32.mrf.mxu1 }
 0x7cf   :  { %v3025_v38 = vadd.f32 %v3024_v4, %v1717_v27  ;;  %v4201_v26 = vadd.f32 %v4169_v31, %v4137_v19  ;;  %v2452_v19 = vadd.f32 %v9789_v12, %v9788_v7  ;;  %v4042_v31 = vadd.f32 %v3810_v51, %v3776_v53  ;;  %v9792_v27 = vld [vmem:[#allocation371_spill] sm:$0xff]  ;;  %v9798_v12 = vld [vmem:[#allocation445_spill] sm:$0xff] }
 0x7d0   :  { %v2836_v4 = vadd.f32 %v9793_v16, %v9792_v27  ;;  %v4138_v30 = vadd.f32 %v4010_v18, %v3978_v5  ;;  %v2932_v23 = vadd.f32 %v9799_v39, %v9798_v12  ;;  %v3709_v53 = vmul.f32 %v7892_v41, %v2548_v37  ;;  %v9800_v5 = vld [vmem:[#allocation255_spill] sm:$0xff]  ;;  %v9801_v16 = vld [vmem:[#allocation256_spill] sm:$0xff] }
 0x7d1   :  { %v3878_v62 = vmul.f32 %v7898_v2, %v3025_v38  ;;  %v8048_v25 = vadd.f32 %v4201_v26, %v9787_v17  ;;  %v2356_v38 = vadd.f32 %v9795_v3, %v9794_v50  ;;  %v3743_v26 = vmul.f32 %v7884_v48, %v2644_v58  ;;  %v9796_v17 = vld [vmem:[#allocation311_spill] sm:$0xff] }
 0x7d2   :  { %v2740_v7 = vadd.f32 %v9797_v24, %v9796_v17  ;;  %v3675_v44 = vmul.f32 %v7889_v59, %v2452_v19  ;;  %v2647_v24 = vadd.f32 %v9801_v16, %v9800_v5  ;;  %v3845_v39 = vmul.f32 %v7912_v22, %v2932_v23  ;;  %v9802_v19 = vld [vmem:[#allocation140_spill] sm:$0xff]  ;;  %v9803_v3 = vld [vmem:[#allocation179_spill] sm:$0xff]  ;;  %v9810_v23 = vld [vmem:[#allocation30_spill] sm:$0xff] }
 0x7d3   :  { %v4074_v35 = vadd.f32 %v3878_v62, %v3844_v63  ;;  %4568 = vmatmul.f32.gmra.mxu2 %v8048_v25  ;;  %v3811_v62 = vmul.f32 %v7895_v36, %v2836_v4  ;;  %v3641_v58 = vadd.f32 %v7902_v57, %v2356_v38  ;;  %v4011_v18 = vadd.f32 %v3743_v26, %v3709_v53  ;;  %v9804_v4 = vld [vmem:[#allocation180_spill] sm:$0xff]  ;;  %v9806_v38 = vld [vmem:[#allocation105_spill] sm:$0xff]  ;;  %v9807_v26 = vld [vmem:[#allocation106_spill] sm:$0xff] }
 0x7d4   :  { %v3777_v50 = vmul.f32 %v7909_v43, %v2740_v7  ;;  %v2551_v17 = vadd.f32 %v9804_v4, %v9803_v3  ;;  %v2455_v12 = vadd.f32 %v9807_v26, %v9806_v38  ;;  %v9809_v53 = vld [vmem:[#allocation374_spill] sm:$0xff]  ;;  %v9812_v5 = vld [vmem:[#allocation313_spill] sm:$0xff]  ;;  %v9814_v3 = vld [vmem:[#allocation447_spill] sm:$0xff] }
 0x7d5   :  { %v4170_v11 = vadd.f32 %v4074_v35, %v4042_v31  ;;  %v1720_v51 = vpop.f32.mrf.mxu0  ;;  %v3979_v37 = vadd.f32 %v3675_v44, %v3641_v58  ;;  %v3744_v44 = vmul.f32 %v7884_v48, %v2647_v24  ;;  %v9813_v16 = vld [vmem:[#allocation314_spill] sm:$0xff]  ;;  %v9815_v4 = vld [vmem:[#allocation448_spill] sm:$0xff] }
 0x7d6   :  { %v3027_v63 = vpop.f32.mrf.mxu1 }
 0x7d7   :  { %v3028_v49 = vadd.f32 %v3027_v63, %v1720_v51  ;;  %v4202_v27 = vadd.f32 %v4170_v11, %v4138_v30  ;;  %v8078_v30 = vpop.f32.mrf.mxu2  ;;  %v4043_v11 = vadd.f32 %v3811_v62, %v3777_v50  ;;  %v9808_v51 = vld [vmem:[#allocation373_spill] sm:$0xff]  ;;  %v4139_v58 = vadd.f32 %v4011_v18, %v3979_v37 }
 0x7d8   :  { %9805 = vst [vmem:[#allocation129_spill] sm:$0xff] %v8078_v30  ;;  %v2839_v7 = vadd.f32 %v9809_v53, %v9808_v51  ;;  %v2935_v30 = vadd.f32 %v9815_v4, %v9814_v3  ;;  %v3710_v50 = vmul.f32 %v7892_v41, %v2551_v17  ;;  %v9816_v37 = vld [vmem:[#allocation257_spill] sm:$0xff]  ;;  %v9818_v17 = vld [vmem:[#allocation143_spill] sm:$0xff]  ;;  %v9820_v3 = vld [vmem:[#allocation108_spill] sm:$0xff] }
 0x7d9   :  { %v3879_v31 = vmul.f32 %v7898_v2, %v3028_v49  ;;  %v8074_v35 = vadd.f32 %v4202_v27, %v9802_v19  ;;  %v9811_v49 = vld [vmem:[#allocation31_spill] sm:$0xff]  ;;  %v2743_v19 = vadd.f32 %v9813_v16, %v9812_v5  ;;  %v9821_v4 = vld [vmem:[#allocation182_spill] sm:$0xff] }
 0x7da   :  { %v2359_v27 = vadd.f32 %v9811_v49, %v9810_v23  ;;  %v4012_v18 = vadd.f32 %v3744_v44, %v3710_v50  ;;  %v9817_v23 = vld [vmem:[#allocation258_spill] sm:$0xff]  ;;  %v9824_v50 = vld [vmem:[#allocation376_spill] sm:$0xff] }
 0x7db   :  { %v4075_v63 = vadd.f32 %v3879_v31, %v3845_v39  ;;  %4571 = vmatmul.f32.gmra.mxu2 %v8074_v35  ;;  %v3676_v39 = vmul.f32 %v7889_v59, %v2455_v12  ;;  %v3812_v31 = vmul.f32 %v7895_v36, %v2839_v7  ;;  %v2650_v49 = vadd.f32 %v9817_v23, %v9816_v37  ;;  %v9819_v12 = vld [vmem:[#allocation107_spill] sm:$0xff] }
 0x7dc   :  { %v3642_v24 = vadd.f32 %v7902_v57, %v2359_v27  ;;  %v3778_v5 = vmul.f32 %v7909_v43, %v2743_v19  ;;  %v2458_v7 = vadd.f32 %v9820_v3, %v9819_v12  ;;  %v9826_v19 = vld [vmem:[#allocation34_spill] sm:$0xff]  ;;  %v9828_v12 = vld [vmem:[#allocation315_spill] sm:$0xff]  ;;  %v9829_v3 = vld [vmem:[#allocation316_spill] sm:$0xff] }
 0x7dd   :  { %v4171_v38 = vadd.f32 %v4075_v63, %v4043_v11  ;;  %v1723_v62 = vpop.f32.mrf.mxu0  ;;  %v3846_v11 = vmul.f32 %v7912_v22, %v2935_v30  ;;  %v9825_v30 = vld [vmem:[#allocation33_spill] sm:$0xff]  ;;  %v2746_v13 = vadd.f32 %v9829_v3, %v9828_v12 }
 0x7de   :  { %v3030_v26 = vpop.f32.mrf.mxu1  ;;  %v3980_v27 = vadd.f32 %v3676_v39, %v3642_v24  ;;  %v4044_v44 = vadd.f32 %v3812_v31, %v3778_v5  ;;  %v9831_v39 = vld [vmem:[#allocation450_spill] sm:$0xff] }
 0x7df   :  { %v3031_v51 = vadd.f32 %v3030_v26, %v1723_v62  ;;  %v4203_v53 = vadd.f32 %v4171_v38, %v4139_v58  ;;  %v9822_v58 = vld [vmem:[#allocation183_spill] sm:$0xff]  ;;  %v8114_v23 = vpop.f32.mrf.mxu2  ;;  %v3779_v3 = vmul.f32 %v7909_v43, %v2746_v13 }
 0x7e0   :  { %v2554_v38 = vadd.f32 %v9822_v58, %v9821_v4  ;;  %v9823_v62 = vld [vmem:[#allocation375_spill] sm:$0xff]  ;;  %9827 = vst [vmem:[#allocation217_spill] sm:$0xff] %v8114_v23  ;;  %v9830_v4 = vld [vmem:[#allocation449_spill] sm:$0xff] }
 0x7e1   :  { %v3880_v63 = vmul.f32 %v7898_v2, %v3031_v51  ;;  %v8102_v16 = vadd.f32 %v4203_v53, %v9818_v17  ;;  %v2842_v26 = vadd.f32 %v9824_v50, %v9823_v62  ;;  %v2362_v51 = vadd.f32 %v9826_v19, %v9825_v30  ;;  %v9833_v19 = vld [vmem:[#allocation260_spill] sm:$0xff] }
 0x7e2   :  { %v3745_v53 = vmul.f32 %v7884_v48, %v2650_v49  ;;  %v4140_v17 = vadd.f32 %v4012_v18, %v3980_v27  ;;  %v2938_v31 = vadd.f32 %v9831_v39, %v9830_v4  ;;  %v9832_v27 = vld [vmem:[#allocation259_spill] sm:$0xff]  ;;  %v9835_v39 = vld [vmem:[#allocation185_spill] sm:$0xff] }
 0x7e3   :  { %v4076_v37 = vadd.f32 %v3880_v63, %v3846_v11  ;;  %4574 = vmatmul.f32.gmra.mxu2 %v8102_v16  ;;  %v3677_v11 = vmul.f32 %v7889_v59, %v2458_v7  ;;  %v3711_v63 = vmul.f32 %v7892_v41, %v2554_v38  ;;  %v3813_v62 = vmul.f32 %v7895_v36, %v2842_v26  ;;  %v9834_v7 = vld [vmem:[#allocation146_spill] sm:$0xff] }
 0x7e4   :  { %v3643_v30 = vadd.f32 %v7902_v57, %v2362_v51  ;;  %v2653_v12 = vadd.f32 %v9833_v19, %v9832_v27  ;;  %v9836_v26 = vld [vmem:[#allocation186_spill] sm:$0xff]  ;;  %v9838_v51 = vld [vmem:[#allocation109_spill] sm:$0xff] }
 0x7e5   :  { %v4172_v24 = vadd.f32 %v4076_v37, %v4044_v44  ;;  %v1726_v5 = vpop.f32.mrf.mxu0  ;;  %v4013_v18 = vadd.f32 %v3745_v53, %v3711_v63  ;;  %v3847_v44 = vmul.f32 %v7912_v22, %v2938_v31  ;;  %v9839_v53 = vld [vmem:[#allocation110_spill] sm:$0xff]  ;;  %v4045_v63 = vadd.f32 %v3813_v62, %v3779_v3  ;;  %v9842_v31 = vld [vmem:[#allocation36_spill] sm:$0xff] }
 0x7e6   :  { %v3033_v58 = vpop.f32.mrf.mxu1  ;;  %v3981_v38 = vadd.f32 %v3677_v11, %v3643_v30  ;;  %v9841_v27 = vld [vmem:[#allocation378_spill] sm:$0xff]  ;;  %v3746_v11 = vmul.f32 %v7884_v48, %v2653_v12 }
 0x7e7   :  { %v3034_v50 = vadd.f32 %v3033_v58, %v1726_v5  ;;  %v4204_v49 = vadd.f32 %v4172_v24, %v4140_v17  ;;  %v2557_v5 = vadd.f32 %v9836_v26, %v9835_v39  ;;  %v8134_v17 = vpop.f32.mrf.mxu3  ;;  %v2461_v24 = vadd.f32 %v9839_v53, %v9838_v51  ;;  %v9840_v58 = vld [vmem:[#allocation377_spill] sm:$0xff]  ;;  %v8144_v30 = vpop.f32.mrf.mxu2  ;;  %v9846_v26 = vld [vmem:[#allocation318_spill] sm:$0xff]  ;;  %v9848_v51 = vld [vmem:[#allocation452_spill] sm:$0xff] }
 0x7e8   :  { %9837 = vst [vmem:[#allocation218_spill] sm:$0xff] %v8134_v17  ;;  %v2845_v13 = vadd.f32 %v9841_v27, %v9840_v58  ;;  %v9845_v39 = vld [vmem:[#allocation317_spill] sm:$0xff]  ;;  %v9847_v17 = vld [vmem:[#allocation451_spill] sm:$0xff] }
 0x7e9   :  { %v3881_v37 = vmul.f32 %v7898_v2, %v3034_v50  ;;  %v8130_v4 = vadd.f32 %v4204_v49, %v9834_v7  ;;  %v9843_v50 = vld [vmem:[#allocation37_spill] sm:$0xff]  ;;  %9844 = vst [vmem:[#allocation68_spill] sm:$0xff] %v8144_v30  ;;  %v4141_v7 = vadd.f32 %v4013_v18, %v3981_v38  ;;  %v2749_v23 = vadd.f32 %v9846_v26, %v9845_v39  ;;  %v9850_v30 = vld [vmem:[#allocation262_spill] sm:$0xff] }
 0x7ea   :  { %v2365_v49 = vadd.f32 %v9843_v50, %v9842_v31  ;;  %v2941_v62 = vadd.f32 %v9848_v51, %v9847_v17  ;;  %v3678_v58 = vmul.f32 %v7889_v59, %v2461_v24  ;;  %v3814_v27 = vmul.f32 %v7895_v36, %v2845_v13  ;;  %v9849_v38 = vld [vmem:[#allocation261_spill] sm:$0xff]  ;;  %v9852_v24 = vld [vmem:[#allocation111_spill] sm:$0xff]  ;;  %v9853_v51 = vld [vmem:[#allocation112_spill] sm:$0xff] }
 0x7eb   :  { %v4077_v19 = vadd.f32 %v3881_v37, %v3847_v44  ;;  %4577 = vmatmul.f32.gmra.mxu2 %v8130_v4  ;;  %v3712_v44 = vmul.f32 %v7892_v41, %v2557_v5  ;;  %v2656_v39 = vadd.f32 %v9850_v30, %v9849_v38  ;;  %v3780_v26 = vmul.f32 %v7909_v43, %v2749_v23  ;;  %v9851_v5 = vld [vmem:[#allocation149_spill] sm:$0xff]  ;;  %v9858_v23 = vld [vmem:[#allocation39_spill] sm:$0xff] }
 0x7ec   :  { %v3644_v50 = vadd.f32 %v7902_v57, %v2365_v49  ;;  %v3848_v17 = vmul.f32 %v7912_v22, %v2941_v62  ;;  %v2464_v13 = vadd.f32 %v9853_v51, %v9852_v24  ;;  %v9859_v62 = vld [vmem:[#allocation40_spill] sm:$0xff]  ;;  %v9861_v24 = vld [vmem:[#allocation319_spill] sm:$0xff] }
 0x7ed   :  { %v4173_v3 = vadd.f32 %v4077_v19, %v4045_v63  ;;  %v1729_v53 = vpop.f32.mrf.mxu0  ;;  %v4014_v18 = vadd.f32 %v3746_v11, %v3712_v44  ;;  %v4046_v11 = vadd.f32 %v3814_v27, %v3780_v26  ;;  %v9856_v44 = vld [vmem:[#allocation379_spill] sm:$0xff]  ;;  %v9862_v51 = vld [vmem:[#allocation320_spill] sm:$0xff] }
 0x7ee   :  { %v3036_v37 = vpop.f32.mrf.mxu1  ;;  %v3982_v49 = vadd.f32 %v3678_v58, %v3644_v50  ;;  %v2752_v47 = vadd.f32 %v9862_v51, %v9861_v24  ;;  %v9864_v58 = vld [vmem:[#allocation454_spill] sm:$0xff]  ;;  %v9867_v24 = vld [vmem:[#allocation264_spill] sm:$0xff] }
 0x7ef   :  { %v3037_v31 = vadd.f32 %v3036_v37, %v1729_v53  ;;  %v4205_v12 = vadd.f32 %v4173_v3, %v4141_v7  ;;  %v9854_v53 = vld [vmem:[#allocation188_spill] sm:$0xff]  ;;  %v9855_v7 = vld [vmem:[#allocation189_spill] sm:$0xff] }
 0x7f0   :  { %v2560_v3 = vadd.f32 %v9855_v7, %v9854_v53  ;;  %v9857_v37 = vld [vmem:[#allocation380_spill] sm:$0xff]  ;;  %v4142_v28 = vadd.f32 %v4014_v18, %v3982_v49  ;;  %v9863_v53 = vld [vmem:[#allocation453_spill] sm:$0xff]  ;;  %v8180_v7 = vpop.f32.mrf.mxu2 }
 0x7f1   :  { %v3882_v63 = vmul.f32 %v7898_v2, %v3037_v31  ;;  %v8160_v19 = vadd.f32 %v4205_v12, %v9851_v5  ;;  %v2848_v30 = vadd.f32 %v9857_v37, %v9856_v44  ;;  %v2368_v31 = vadd.f32 %v9859_v62, %v9858_v23  ;;  %v8172_v5 = vpop.f32.mrf.mxu3  ;;  %9865 = vst [vmem:[#allocation35_spill] sm:$0xff] %v8180_v7  ;;  %v9866_v62 = vld [vmem:[#allocation263_spill] sm:$0xff] }
 0x7f2   :  { %v3747_v12 = vmul.f32 %v7884_v48, %v2656_v39  ;;  %9860 = vst [vmem:[#allocation69_spill] sm:$0xff] %v8172_v5  ;;  %v2944_v27 = vadd.f32 %v9864_v58, %v9863_v53  ;;  %v2659_v51 = vadd.f32 %v9867_v24, %v9866_v62  ;;  %v9869_v7 = vld [vmem:[#allocation191_spill] sm:$0xff] }
 0x7f3   :  { %v4078_v38 = vadd.f32 %v3882_v63, %v3848_v17  ;;  %4580 = vmatmul.f32.gmra.mxu2 %v8160_v19  ;;  %v3679_v17 = vmul.f32 %v7889_v59, %v2464_v13  ;;  %v3713_v63 = vmul.f32 %v7892_v41, %v2560_v3  ;;  %v3815_v39 = vmul.f32 %v7895_v36, %v2848_v30  ;;  %v9868_v3 = vld [vmem:[#allocation152_spill] sm:$0xff] }
 0x7f4   :  { %v3645_v18 = vadd.f32 %v7902_v57, %v2368_v31  ;;  %v9870_v30 = vld [vmem:[#allocation192_spill] sm:$0xff] }
 0x7f5   :  { %v4174_v50 = vadd.f32 %v4078_v38, %v4046_v11  ;;  %v1732_v26 = vpop.f32.mrf.mxu0  ;;  %v4015_v49 = vadd.f32 %v3747_v12, %v3713_v63  ;;  %v3781_v11 = vmul.f32 %v7909_v43, %v2752_v47  ;;  %v3849_v38 = vmul.f32 %v7912_v22, %v2944_v27  ;;  %v9873_v63 = vld [vmem:[#allocation381_spill] sm:$0xff]  ;;  %v9875_v47 = vld [vmem:[#allocation42_spill] sm:$0xff]  ;;  %v9876_v27 = vld [vmem:[#allocation43_spill] sm:$0xff] }
 0x7f6   :  { %v3039_v44 = vpop.f32.mrf.mxu1  ;;  %v3983_v58 = vadd.f32 %v3679_v17, %v3645_v18  ;;  %v9877_v17 = vld [vmem:[#allocation321_spill] sm:$0xff]  ;;  %v9878_v18 = vld [vmem:[#allocation322_spill] sm:$0xff] }
 0x7f7   :  { %v3040_v37 = vadd.f32 %v3039_v44, %v1732_v26  ;;  %v4206_v23 = vadd.f32 %v4174_v50, %v4142_v28  ;;  %v2563_v26 = vadd.f32 %v9870_v30, %v9869_v7  ;;  %v9871_v28 = vld [vmem:[#allocation113_spill] sm:$0xff]  ;;  %v9872_v50 = vld [vmem:[#allocation114_spill] sm:$0xff]  ;;  %v4047_v12 = vadd.f32 %v3815_v39, %v3781_v11  ;;  %v9879_v7 = vld [vmem:[#allocation455_spill] sm:$0xff] }
 0x7f8   :  { %v2467_v31 = vadd.f32 %v9872_v50, %v9871_v28  ;;  %v9874_v44 = vld [vmem:[#allocation382_spill] sm:$0xff]  ;;  %v2755_v5 = vadd.f32 %v9878_v18, %v9877_v17  ;;  %v9880_v30 = vld [vmem:[#allocation456_spill] sm:$0xff]  ;;  %v8214_v18 = vpop.f32.mrf.mxu2 }
 0x7f9   :  { %v3883_v13 = vmul.f32 %v7898_v2, %v3040_v37  ;;  %v8190_v53 = vadd.f32 %v4206_v23, %v9868_v3  ;;  %v2851_v62 = vadd.f32 %v9874_v44, %v9873_v63  ;;  %v2371_v37 = vadd.f32 %v9876_v27, %v9875_v47  ;;  %v8207_v50 = vpop.f32.mrf.mxu3  ;;  %v9882_v47 = vld [vmem:[#allocation265_spill] sm:$0xff]  ;;  %v9883_v27 = vld [vmem:[#allocation266_spill] sm:$0xff]  ;;  %9884 = vst [vmem:[#allocation280_spill] sm:$0xff] %v8214_v18 }
 0x7fa   :  { %v3748_v23 = vmul.f32 %v7884_v48, %v2659_v51  ;;  %v4143_v3 = vadd.f32 %v4015_v49, %v3983_v58  ;;  %v2947_v9 = vadd.f32 %v9880_v30, %v9879_v7  ;;  %v3714_v11 = vmul.f32 %v7892_v41, %v2563_v26  ;;  %9881 = vst [vmem:[#allocation279_spill] sm:$0xff] %v8207_v50  ;;  %v9885_v7 = vld [vmem:[#allocation155_spill] sm:$0xff]  ;;  %v9887_v30 = vld [vmem:[#allocation116_spill] sm:$0xff] }
 0x7fb   :  { %v4079_v24 = vadd.f32 %v3883_v13, %v3849_v38  ;;  %4583 = vmatmul.f32.gmra.mxu2 %v8190_v53  ;;  %v3680_v13 = vmul.f32 %v7889_v59, %v2467_v31  ;;  %v3816_v63 = vmul.f32 %v7895_v36, %v2851_v62  ;;  %v3646_v49 = vadd.f32 %v7902_v57, %v2371_v37  ;;  %v9886_v62 = vld [vmem:[#allocation115_spill] sm:$0xff] }
 0x7fc   :  { %v4016_v58 = vadd.f32 %v3748_v23, %v3714_v11  ;;  %v2662_v17 = vadd.f32 %v9883_v27, %v9882_v47  ;;  %v3850_v26 = vmul.f32 %v7912_v22, %v2947_v9  ;;  %v9889_v37 = vld [vmem:[#allocation195_spill] sm:$0xff]  ;;  %v9891_v47 = vld [vmem:[#allocation384_spill] sm:$0xff]  ;;  %v9892_v9 = vld [vmem:[#allocation45_spill] sm:$0xff] }
 0x7fd   :  { %v4175_v28 = vadd.f32 %v4079_v24, %v4047_v12  ;;  %v1735_v39 = vpop.f32.mrf.mxu0  ;;  %v3782_v12 = vmul.f32 %v7909_v43, %v2755_v5  ;;  %v9893_v5 = vld [vmem:[#allocation46_spill] sm:$0xff]  ;;  %v9894_v50 = vld [vmem:[#allocation323_spill] sm:$0xff] }
 0x7fe   :  { %v3042_v38 = vpop.f32.mrf.mxu1 }
 0x7ff   :  { %v3043_v44 = vadd.f32 %v3042_v38, %v1735_v39  ;;  %v4207_v51 = vadd.f32 %v4175_v28, %v4143_v3  ;;  %v2470_v3 = vadd.f32 %v9887_v30, %v9886_v62  ;;  %v9888_v28 = vld [vmem:[#allocation194_spill] sm:$0xff]  ;;  %v3984_v39 = vadd.f32 %v3680_v13, %v3646_v49  ;;  %v9890_v38 = vld [vmem:[#allocation383_spill] sm:$0xff] }
 0x800   :  { %v2566_v23 = vadd.f32 %v9889_v37, %v9888_v28  ;;  %v4048_v11 = vadd.f32 %v3816_v63, %v3782_v12  ;;  %v2854_v27 = vadd.f32 %v9891_v47, %v9890_v38  ;;  %v2758_v62 = vadd.f32 %v9895_v46, %v9894_v50  ;;  %v9896_v30 = vld [vmem:[#allocation458_spill] sm:$0xff]  ;;  %v9899_v47 = vld [vmem:[#allocation268_spill] sm:$0xff] }
 0x801   :  { %v3884_v24 = vmul.f32 %v7898_v2, %v3043_v44  ;;  %v8220_v31 = vadd.f32 %v4207_v51, %v9885_v7  ;;  %v2374_v44 = vadd.f32 %v9893_v5, %v9892_v9  ;;  %v3749_v51 = vmul.f32 %v7884_v48, %v2662_v17  ;;  %v8242_v50 = vpop.f32.mrf.mxu3  ;;  %v9902_v9 = vld [vmem:[#allocation197_spill] sm:$0xff]  ;;  %v9903_v5 = vld [vmem:[#allocation198_spill] sm:$0xff] }
 0x802   :  { %v4144_v7 = vadd.f32 %v4016_v58, %v3984_v39  ;;  %v2950_v28 = vadd.f32 %v9897_v40, %v9896_v30  ;;  %v3681_v49 = vmul.f32 %v7889_v59, %v2470_v3  ;;  %v3715_v12 = vmul.f32 %v7892_v41, %v2566_v23  ;;  %v9898_v39 = vld [vmem:[#allocation267_spill] sm:$0xff]  ;;  %9900 = vst [vmem:[#allocation184_spill] sm:$0xff] %v8242_v50  ;;  %v9901_v23 = vld [vmem:[#allocation158_spill] sm:$0xff] }
 0x803   :  { %v4080_v18 = vadd.f32 %v3884_v24, %v3850_v26  ;;  %4586 = vmatmul.f32.gmra.mxu2 %v8220_v31  ;;  %v3817_v24 = vmul.f32 %v7895_v36, %v2854_v27  ;;  %v3647_v17 = vadd.f32 %v7902_v57, %v2374_v44  ;;  %v2665_v46 = vadd.f32 %v9899_v47, %v9898_v39  ;;  %v8252_v44 = vpop.f32.mrf.mxu2  ;;  %v9906_v30 = vld [vmem:[#allocation118_spill] sm:$0xff]  ;;  %v9911_v47 = vld [vmem:[#allocation325_spill] sm:$0xff] }
 0x804   :  { %v4017_v58 = vadd.f32 %v3749_v51, %v3715_v12  ;;  %v3783_v40 = vmul.f32 %v7909_v43, %v2758_v62  ;;  %9904 = vst [vmem:[#allocation130_spill] sm:$0xff] %v8252_v44  ;;  %v9905_v51 = vld [vmem:[#allocation117_spill] sm:$0xff]  ;;  %v9914_v44 = vld [vmem:[#allocation463_spill] sm:$0xff] }
 0x805   :  { %v4176_v13 = vadd.f32 %v4080_v18, %v4048_v11  ;;  %v1738_v63 = vpop.f32.mrf.mxu0  ;;  %v3851_v18 = vmul.f32 %v7912_v22, %v2950_v28  ;;  %v3985_v27 = vadd.f32 %v3681_v49, %v3647_v17  ;;  %v9907_v12 = vld [vmem:[#allocation385_spill] sm:$0xff]  ;;  %v9909_v28 = vld [vmem:[#allocation48_spill] sm:$0xff]  ;;  %v3750_v49 = vmul.f32 %v7884_v48, %v2665_v46 }
 0x806   :  { %v3045_v26 = vpop.f32.mrf.mxu1 }
 0x807   :  { %v3046_v37 = vadd.f32 %v3045_v26, %v1738_v63  ;;  %v4208_v38 = vadd.f32 %v4176_v13, %v4144_v7  ;;  %v2569_v7 = vadd.f32 %v9903_v5, %v9902_v9  ;;  %v2473_v13 = vadd.f32 %v9906_v30, %v9905_v51  ;;  %v9908_v26 = vld [vmem:[#allocation386_spill] sm:$0xff] }
 0x808   :  { %v4049_v63 = vadd.f32 %v3817_v24, %v3783_v40  ;;  %v2857_v62 = vadd.f32 %v9908_v26, %v9907_v12  ;;  %v4145_v17 = vadd.f32 %v4017_v58, %v3985_v27  ;;  %v9913_v5 = vld [vmem:[#allocation462_spill] sm:$0xff]  ;;  %v9915_v27 = vld [vmem:[#allocation269_spill] sm:$0xff] }
 0x809   :  { %v3885_v3 = vmul.f32 %v7898_v2, %v3046_v37  ;;  %v8248_v11 = vadd.f32 %v4208_v38, %v9901_v23  ;;  %v9910_v37 = vld [vmem:[#allocation49_spill] sm:$0xff]  ;;  %v9912_v23 = vld [vmem:[#allocation326_spill] sm:$0xff]  ;;  %v2953_v50 = vadd.f32 %v9914_v44, %v9913_v5  ;;  %v3716_v40 = vmul.f32 %v7892_v41, %v2569_v7  ;;  %v9920_v5 = vld [vmem:[#allocation200_spill] sm:$0xff] }
 0x80a   :  { %v2377_v38 = vadd.f32 %v9910_v37, %v9909_v28  ;;  %v2761_v9 = vadd.f32 %v9912_v23, %v9911_v47  ;;  %v9916_v28 = vld [vmem:[#allocation270_spill] sm:$0xff]  ;;  %v9917_v7 = vld [vmem:[#allocation161_spill] sm:$0xff]  ;;  %v9919_v23 = vld [vmem:[#allocation120_spill] sm:$0xff] }
 0x80b   :  { %v4081_v39 = vadd.f32 %v3885_v3, %v3851_v18  ;;  %4589 = vmatmul.f32.gmra.mxu2 %v8248_v11  ;;  %v3682_v18 = vmul.f32 %v7889_v59, %v2473_v13  ;;  %v3818_v3 = vmul.f32 %v7895_v36, %v2857_v62  ;;  %v4018_v58 = vadd.f32 %v3750_v49, %v3716_v40  ;;  %v9918_v13 = vld [vmem:[#allocation119_spill] sm:$0xff] }
 0x80c   :  { %v3648_v46 = vadd.f32 %v7902_v57, %v2377_v38  ;;  %v2668_v37 = vadd.f32 %v9916_v28, %v9915_v27  ;;  %v3784_v47 = vmul.f32 %v7909_v43, %v2761_v9  ;;  %v3852_v44 = vmul.f32 %v7912_v22, %v2953_v50  ;;  %v8282_v38 = vpop.f32.mrf.mxu3  ;;  %v9923_v40 = vld [vmem:[#allocation387_spill] sm:$0xff] }
 0x80d   :  { %v4177_v51 = vadd.f32 %v4081_v39, %v4049_v63  ;;  %v1741_v24 = vpop.f32.mrf.mxu0  ;;  %v2476_v62 = vadd.f32 %v9919_v23, %v9918_v13  ;;  %9922 = vst [vmem:[#allocation131_spill] sm:$0xff] %v8282_v38  ;;  %v9925_v50 = vld [vmem:[#allocation51_spill] sm:$0xff]  ;;  %v9930_v38 = vld [vmem:[#allocation466_spill] sm:$0xff] }
 0x80e   :  { %v3048_v30 = vpop.f32.mrf.mxu1  ;;  %v3986_v49 = vadd.f32 %v3682_v18, %v3648_v46  ;;  %v3751_v28 = vmul.f32 %v7884_v48, %v2668_v37  ;;  %v9928_v23 = vld [vmem:[#allocation327_spill] sm:$0xff] }
 0x80f   :  { %v3049_v12 = vadd.f32 %v3048_v30, %v1741_v24  ;;  %v4209_v26 = vadd.f32 %v4177_v51, %v4145_v17  ;;  %v9921_v17 = vld [vmem:[#allocation201_spill] sm:$0xff]  ;;  %v4050_v24 = vadd.f32 %v3818_v3, %v3784_v47  ;;  %v9924_v30 = vld [vmem:[#allocation388_spill] sm:$0xff]  ;;  %v9931_v18 = vld [vmem:[#allocation467_spill] sm:$0xff] }
 0x810   :  { %v2572_v51 = vadd.f32 %v9921_v17, %v9920_v5  ;;  %v2860_v9 = vadd.f32 %v9924_v30, %v9923_v40  ;;  %v4146_v13 = vadd.f32 %v4018_v58, %v3986_v49  ;;  %v9929_v5 = vld [vmem:[#allocation328_spill] sm:$0xff]  ;;  %v2956_v3 = vadd.f32 %v9931_v18, %v9930_v38  ;;  %v9932_v49 = vld [vmem:[#allocation271_spill] sm:$0xff] }
 0x811   :  { %v3886_v63 = vmul.f32 %v7898_v2, %v3049_v12  ;;  %v8276_v39 = vadd.f32 %v4209_v26, %v9917_v7  ;;  %v9926_v12 = vld [vmem:[#allocation52_spill] sm:$0xff]  ;;  %v8290_v7 = vpop.f32.mrf.mxu2  ;;  %v2764_v17 = vadd.f32 %v9929_v5, %v9928_v23  ;;  %v9935_v18 = vld [vmem:[#allocation203_spill] sm:$0xff] }
 0x812   :  { %v2380_v26 = vadd.f32 %v9926_v12, %v9925_v50  ;;  %9927 = vst [vmem:[#allocation220_spill] sm:$0xff] %v8290_v7  ;;  %v3819_v30 = vmul.f32 %v7895_v36, %v2860_v9  ;;  %v9933_v7 = vld [vmem:[#allocation272_spill] sm:$0xff]  ;;  %v3853_v38 = vmul.f32 %v7912_v22, %v2956_v3  ;;  %v9942_v3 = vld [vmem:[#allocation55_spill] sm:$0xff] }
 0x813   :  { %v4082_v27 = vadd.f32 %v3886_v63, %v3852_v44  ;;  %4592 = vmatmul.f32.gmra.mxu2 %v8276_v39  ;;  %v3683_v44 = vmul.f32 %v7889_v59, %v2476_v62  ;;  %v3717_v63 = vmul.f32 %v7892_v41, %v2572_v51  ;;  %v2671_v23 = vadd.f32 %v9933_v7, %v9932_v49  ;;  %v9934_v62 = vld [vmem:[#allocation164_spill] sm:$0xff] }
 0x814   :  { %v3649_v12 = vadd.f32 %v7902_v57, %v2380_v26  ;;  %v3785_v5 = vmul.f32 %v7909_v43, %v2764_v17  ;;  %v9936_v9 = vld [vmem:[#allocation204_spill] sm:$0xff]  ;;  %v9941_v17 = vld [vmem:[#allocation54_spill] sm:$0xff] }
 0x815   :  { %v4178_v46 = vadd.f32 %v4082_v27, %v4050_v24  ;;  %v1744_v47 = vpop.f32.mrf.mxu0  ;;  %v4019_v58 = vadd.f32 %v3751_v28, %v3717_v63  ;;  %v9939_v63 = vld [vmem:[#allocation389_spill] sm:$0xff] }
 0x816   :  { %v3051_v40 = vpop.f32.mrf.mxu1  ;;  %v3987_v51 = vadd.f32 %v3683_v44, %v3649_v12  ;;  %v4051_v28 = vadd.f32 %v3819_v30, %v3785_v5  ;;  %v9943_v12 = vld [vmem:[#allocation329_spill] sm:$0xff] }
 0x817   :  { %v3052_v50 = vadd.f32 %v3051_v40, %v1744_v47  ;;  %v4210_v37 = vadd.f32 %v4178_v46, %v4146_v13  ;;  %v2575_v47 = vadd.f32 %v9936_v9, %v9935_v18  ;;  %v9937_v13 = vld [vmem:[#allocation121_spill] sm:$0xff]  ;;  %v9938_v46 = vld [vmem:[#allocation122_spill] sm:$0xff] }
 0x818   :  { %v2479_v26 = vadd.f32 %v9938_v46, %v9937_v13  ;;  %v9940_v40 = vld [vmem:[#allocation390_spill] sm:$0xff]  ;;  %v4147_v44 = vadd.f32 %v4019_v58, %v3987_v51  ;;  %v9946_v13 = vld [vmem:[#allocation471_spill] sm:$0xff] }
 0x819   :  { %v3887_v24 = vmul.f32 %v7898_v2, %v3052_v50  ;;  %v8306_v27 = vadd.f32 %v4210_v37, %v9934_v62  ;;  %v2863_v7 = vadd.f32 %v9940_v40, %v9939_v63  ;;  %v2383_v50 = vadd.f32 %v9942_v3, %v9941_v17  ;;  %v8318_v62 = vpop.f32.mrf.mxu3  ;;  %v9944_v18 = vld [vmem:[#allocation330_spill] sm:$0xff] }
 0x81a   :  { %v3752_v37 = vmul.f32 %v7884_v48, %v2671_v23  ;;  %v2767_v9 = vadd.f32 %v9944_v18, %v9943_v12  ;;  %v2959_v30 = vadd.f32 %v9946_v13, %v9945_v60  ;;  %v3684_v40 = vmul.f32 %v7889_v59, %v2479_v26 }
 0x81b   :  { %v4083_v49 = vadd.f32 %v3887_v24, %v3853_v38  ;;  %4595 = vmatmul.f32.gmra.mxu2 %v8306_v27  ;;  %v3718_v38 = vmul.f32 %v7892_v41, %v2575_v47  ;;  %v8325_v24 = vpop.f32.mrf.mxu2  ;;  %v3820_v48 = vmul.f32 %v7895_v36, %v2863_v7  ;;  %v3650_v58 = vadd.f32 %v7902_v57, %v2383_v50 }
 0x81c   :  { %v3786_v3 = vmul.f32 %v7909_v43, %v2767_v9  ;;  %v3854_v60 = vmul.f32 %v7912_v22, %v2959_v30  ;;  %v9948_v43 = vld [vmem:[#allocation170_spill] sm:$0xff] }
 0x81d   :  { %v4179_v5 = vadd.f32 %v4083_v49, %v4051_v28  ;;  %v1747_v46 = vpop.f32.mrf.mxu0  ;;  %v4020_v51 = vadd.f32 %v3752_v37, %v3718_v38  ;;  %v9947_v49 = vld [vmem:[#allocation167_spill] sm:$0xff]  ;;  %v3988_v47 = vadd.f32 %v3684_v40, %v3650_v58 }
 0x81e   :  { %v3054_v63 = vpop.f32.mrf.mxu1  ;;  %v4052_v12 = vadd.f32 %v3820_v48, %v3786_v3 }
 0x81f   :  { %v3055_v23 = vadd.f32 %v3054_v63, %v1747_v46  ;;  %v4211_v17 = vadd.f32 %v4179_v5, %v4147_v44  ;;  %v4148_v59 = vadd.f32 %v4020_v51, %v3988_v47 }
 0x821   :  { %v3888_v28 = vmul.f32 %v7898_v2, %v3055_v23  ;;  %v8334_v41 = vadd.f32 %v4211_v17, %v9947_v49  ;;  %v8337_v26 = vpop.f32.mrf.mxu3 }
 0x823   :  { %v4084_v18 = vadd.f32 %v3888_v28, %v3854_v60  ;;  %4598 = vmatmul.f32.gmra.mxu2 %v8334_v41  ;;  %v8339_v7 = vpop.f32.mrf.mxu2 }
 0x825   :  { %v4180_v36 = vadd.f32 %v4084_v18, %v4052_v12 }
 0x827   :  { %v4212_v57 = vadd.f32 %v4180_v36, %v4148_v59 }
 0x829   :  { %v8342_v50 = vadd.f32 %v4212_v57, %v9948_v43  ;;  %v8345_v2 = vpop.f32.mrf.mxu3 }
 0x82b   :  { %4601 = vmatmul.f32.gmra.mxu2 %v8342_v50  ;;  %v8347_v22 = vpop.f32.mrf.mxu2 }
 0x82c   :  { %9949 = vst [vmem:[#allocation221_spill] sm:$0xff] %v8347_v22 }
 0x831   :  { %v8350_v37 = vpop.f32.mrf.mxu3 }
 0x833   :  { %4604 = vmatmul.f32.gmra.mxu2 %v7506_v34  ;;  %v8353_v44 = vpop.f32.mrf.mxu2 }
 0x834   :  { %9950 = vst [vmem:[#allocation71_spill] sm:$0xff] %v8353_v44 }
 0x839   :  { %v8356_v9 = vpop.f32.mrf.mxu3 }
 0x83b   :  { %4607 = vmatmul.f32.gmra.mxu2 %v7532_v61  ;;  %v8358_v13 = vpop.f32.mrf.mxu2 }
 0x83c   :  { %9951 = vst [vmem:[#allocation72_spill] sm:$0xff] %v8358_v13 }
 0x841   :  { %v8361_v30 = vpop.f32.mrf.mxu3 }
 0x843   :  { %4610 = vmatmul.f32.gmra.mxu2 %v7560_v0 }
 0x849   :  { %v8372_v48 = vpop.f32.mrf.mxu3 }
 0x84b   :  { %4613 = vmatmul.f32.gmra.mxu2 %v7586_v32 }
 0x84e   :  { %v4566_v5 = vpop.f32.mrf.mxu2 }
 0x84f   :  { %v8364_v46 = vsub.f32 %v8020_v52, %v4566_v5 }
 0x851   :  { %v4738_v38 = vmul.f32 %v8364_v46, %v8364_v46  ;;  %v8382_v51 = vpop.f32.mrf.mxu3 }
 0x853   :  { %4616 = vmatmul.f32.gmra.mxu2 %v7614_v14  ;;  %4797 = vmatmul.f32.vlgmr.msrb.gmra.mxu3 %v4738_v38 }
 0x856   :  { %v4569_v63 = vpop.f32.mrf.mxu2 }
 0x857   :  { %v8370_v40 = vsub.f32 %v8048_v25, %v4569_v63 }
 0x859   :  { %v4739_v23 = vmul.f32 %v8370_v40, %v8370_v40 }
 0x85b   :  { %4619 = vmatmul.f32.gmra.mxu2 %v7642_v1  ;;  %4800 = vmatmul.f32.gmra.mxu3 %v4739_v23 }
 0x85e   :  { %v4572_v52 = vpop.f32.mrf.mxu2 }
 0x85f   :  { %v8378_v17 = vsub.f32 %v8074_v35, %v4572_v52  ;;  %v8391_v35 = vpop.f32.mrf.mxu3 }
 0x861   :  { %v4740_v58 = vmul.f32 %v8378_v17, %v8378_v17 }
 0x863   :  { %4622 = vmatmul.f32.gmra.mxu2 %v7668_v55  ;;  %4803 = vmatmul.f32.gmra.mxu3 %v4740_v58 }
 0x866   :  { %v4575_v25 = vpop.f32.mrf.mxu2 }
 0x867   :  { %v8386_v3 = vsub.f32 %v8102_v16, %v4575_v25  ;;  %v8399_v16 = vpop.f32.mrf.mxu3 }
 0x869   :  { %9952 = vst [vmem:[#allocation337_spill] sm:$0xff] %v8386_v3  ;;  %v4741_v60 = vmul.f32 %v8386_v3, %v8386_v3 }
 0x86b   :  { %4625 = vmatmul.f32.gmra.mxu2 %v7694_v6  ;;  %4806 = vmatmul.f32.gmra.mxu3 %v4741_v60 }
 0x86e   :  { %v4578_v28 = vpop.f32.mrf.mxu2 }
 0x86f   :  { %v8394_v49 = vsub.f32 %v8130_v4, %v4578_v28  ;;  %v8407_v4 = vpop.f32.mrf.mxu3 }
 0x871   :  { %9953 = vst [vmem:[#allocation339_spill] sm:$0xff] %v8394_v49  ;;  %v4742_v47 = vmul.f32 %v8394_v49, %v8394_v49  ;;  %v5628_v49 = vld [vmem:[#allocation7 + $0x16] ss:$0 sm:$0xff] }
 0x873   :  { %4628 = vmatmul.f32.gmra.mxu2 %v7720_v21  ;;  %4809 = vmatmul.f32.gmra.mxu3 %v4742_v47 }
 0x876   :  { %v4581_v12 = vpop.f32.mrf.mxu2 }
 0x877   :  { %v8402_v18 = vsub.f32 %v8160_v19, %v4581_v12  ;;  %v8418_v38 = vpop.f32.mrf.mxu3 }
 0x879   :  { %9954 = vst [vmem:[#allocation38_spill] sm:$0xff] %v8402_v18  ;;  %v4743_v59 = vmul.f32 %v8402_v18, %v8402_v18 }
 0x87b   :  { %4631 = vmatmul.f32.gmra.mxu2 %v7746_v42  ;;  %4812 = vmatmul.f32.gmra.mxu3 %v4743_v59 }
 0x87e   :  { %v4584_v36 = vpop.f32.mrf.mxu2 }
 0x87f   :  { %v8410_v57 = vsub.f32 %v8190_v53, %v4584_v36  ;;  %v8428_v58 = vpop.f32.mrf.mxu3 }
 0x881   :  { %9955 = vst [vmem:[#allocation281_spill] sm:$0xff] %v8410_v57  ;;  %v4744_v43 = vmul.f32 %v8410_v57, %v8410_v57  ;;  %v10001_v57 = vld [vmem:[#allocation468_spill] sm:$0xff] }
 0x883   :  { %4634 = vmatmul.f32.gmra.mxu2 %v7772_v10  ;;  %4815 = vmatmul.f32.gmra.mxu3 %v4744_v43 }
 0x886   :  { %v4587_v19 = vpop.f32.mrf.mxu2 }
 0x887   :  { %v8416_v5 = vsub.f32 %v8220_v31, %v4587_v19 }
 0x889   :  { %9956 = vst [vmem:[#allocation282_spill] sm:$0xff] %v8416_v5  ;;  %v4745_v63 = vmul.f32 %v8416_v5, %v8416_v5 }
 0x88b   :  { %4637 = vmatmul.f32.gmra.mxu2 %v7796_v33  ;;  %4818 = vmatmul.f32.gmra.mxu3 %v4745_v63  ;;  %v5623_v33 = vld [vmem:[#allocation8 + $0x2] ss:$0 sm:$0xff] }
 0x88e   :  { %v4590_v53 = vpop.f32.mrf.mxu2 }
 0x88f   :  { %v8424_v23 = vsub.f32 %v8248_v11, %v4590_v53  ;;  %v8437_v11 = vpop.f32.mrf.mxu3 }
 0x891   :  { %9957 = vst [vmem:[#allocation187_spill] sm:$0xff] %v8424_v23  ;;  %v4746_v52 = vmul.f32 %v8424_v23, %v8424_v23 }
 0x893   :  { %4640 = vmatmul.f32.gmra.mxu2 %v7822_v8  ;;  %4821 = vmatmul.f32.gmra.mxu3 %v4746_v52 }
 0x896   :  { %v4593_v31 = vpop.f32.mrf.mxu2 }
 0x897   :  { %v8432_v25 = vsub.f32 %v8276_v39, %v4593_v31  ;;  %v8445_v39 = vpop.f32.mrf.mxu3 }
 0x899   :  { %9958 = vst [vmem:[#allocation132_spill] sm:$0xff] %v8432_v25  ;;  %v4747_v60 = vmul.f32 %v8432_v25, %v8432_v25 }
 0x89b   :  { %4643 = vmatmul.f32.gmra.mxu2 %v7848_v56  ;;  %4824 = vmatmul.f32.gmra.mxu3 %v4747_v60  ;;  %v10000_v56 = vld [vmem:[#allocation465_spill] sm:$0xff] }
 0x89c   :  { %v3541_v8 = vadd.f32 %v10001_v57, %v10000_v56 }
 0x89e   :  { %v4596_v28 = vpop.f32.mrf.mxu2 }
 0x89f   :  { %v8440_v47 = vsub.f32 %v8306_v27, %v4596_v28  ;;  %v8456_v63 = vpop.f32.mrf.mxu3  ;;  %v9965_v28 = vld [vmem:[#allocation392_spill] sm:$0xff] }
 0x8a1   :  { %9959 = vst [vmem:[#allocation133_spill] sm:$0xff] %v8440_v47  ;;  %v4748_v12 = vmul.f32 %v8440_v47, %v8440_v47  ;;  %v9972_v47 = vld [vmem:[#allocation431_spill] sm:$0xff] }
 0x8a3   :  { %4646 = vmatmul.f32.gmra.mxu2 %v7874_v20  ;;  %4827 = vmatmul.f32.gmra.mxu3 %v4748_v12  ;;  %v9991_v20 = vld [vmem:[#allocation413_spill] sm:$0xff] }
 0x8a6   :  { %v4599_v59 = vpop.f32.mrf.mxu2 }
 0x8a7   :  { %v8448_v36 = vsub.f32 %v8334_v41, %v4599_v59  ;;  %v8466_v60 = vpop.f32.mrf.mxu3  ;;  %v8471_v59 = vld [vmem:[#allocation7 + $0x10] ss:$0 sm:$0xff] }
 0x8a8   :  { %9963 = vst [vmem:[#allocation394_spill] sm:$0xff] %v8466_v60  ;;  %v8625_v60 = vld [vmem:[#allocation13] ss:$0 sm:$0xff] }
 0x8a9   :  { %9960 = vst [vmem:[#allocation223_spill] sm:$0xff] %v8448_v36  ;;  %v4749_v43 = vmul.f32 %v8448_v36, %v8448_v36 }
 0x8ab   :  { %4649 = vmatmul.f32.gmra.mxu2 %v7916_v45  ;;  %4830 = vmatmul.f32.gmra.mxu3 %v4749_v43  ;;  %v9966_v43 = vld [vmem:[#allocation427_spill] sm:$0xff] }
 0x8ae   :  { %v4602_v27 = vpop.f32.mrf.mxu2 }
 0x8af   :  { %v8454_v19 = vsub.f32 %v8342_v50, %v4602_v27  ;;  %v9964_v50 = vld [vmem:[#allocation391_spill] sm:$0xff]  ;;  %v9967_v27 = vld [vmem:[#allocation428_spill] sm:$0xff] }
 0x8b0   :  { %v3499_v12 = vadd.f32 %v9965_v28, %v9964_v50  ;;  %v8485_v50 = vpop.f32.mrf.mxu3  ;;  %v9970_v28 = vld [vmem:[#allocation395_spill] sm:$0xff] }
 0x8b1   :  { %9961 = vst [vmem:[#allocation224_spill] sm:$0xff] %v8454_v19  ;;  %v4750_v53 = vmul.f32 %v8454_v19, %v8454_v19  ;;  %v8475_v19 = vld [vmem:[#allocation7 + $0x11] ss:$0 sm:$0xff] }
 0x8b2   :  { %9969 = vst [vmem:[#allocation74_spill] sm:$0xff] %v8485_v50 }
 0x8b3   :  { %4652 = vmatmul.f32.gmra.mxu2 %v7940_v29  ;;  %4833 = vmatmul.f32.gmra.mxu3 %v4750_v53  ;;  %v3523_v53 = vadd.f32 %v9967_v27, %v9966_v43  ;;  %v9971_v43 = vld [vmem:[#allocation396_spill] sm:$0xff] }
 0x8b4   :  { %v3502_v27 = vadd.f32 %v9971_v43, %v9970_v28  ;;  %v9973_v29 = vld [vmem:[#allocation432_spill] sm:$0xff]  ;;  %v9979_v28 = vld [vmem:[#allocation435_spill] sm:$0xff] }
 0x8b5   :  { %v4356_v36 = vmul.f32 %v8475_v19, %v3523_v53 }
 0x8b6   :  { %v4605_v41 = vpop.f32.mrf.mxu2  ;;  %v4347_v53 = vmul.f32 %v8471_v59, %v3502_v27 }
 0x8b7   :  { %v8462_v52 = vsub.f32 %v7506_v34, %v4605_v41 }
 0x8b9   :  { %9962 = vst [vmem:[#allocation393_spill] sm:$0xff] %v8462_v52  ;;  %v4751_v31 = vmul.f32 %v8462_v52, %v8462_v52  ;;  %v4346_v52 = vmul.f32 %v8471_v59, %v3499_v12 }
 0x8bb   :  { %4655 = vmatmul.f32.gmra.mxu2 %v7966_v15  ;;  %4836 = vmatmul.f32.gmra.mxu3 %v4751_v31  ;;  %v4396_v15 = vadd.f32 %v4356_v36, %v4346_v52  ;;  %v9977_v36 = vld [vmem:[#allocation399_spill] sm:$0xff]  ;;  %v9978_v52 = vld [vmem:[#allocation400_spill] sm:$0xff] }
 0x8be   :  { %v4608_v34 = vpop.f32.mrf.mxu2 }
 0x8bf   :  { %v8478_v41 = vsub.f32 %v7532_v61, %v4608_v34  ;;  %v3526_v61 = vadd.f32 %v9973_v29, %v9972_v47  ;;  %v3505_v29 = vadd.f32 %v9978_v52, %v9977_v36  ;;  %v9987_v52 = vld [vmem:[#allocation441_spill] sm:$0xff] }
 0x8c1   :  { %9968 = vst [vmem:[#allocation73_spill] sm:$0xff] %v8478_v41  ;;  %v4752_v31 = vmul.f32 %v8478_v41, %v8478_v41  ;;  %v4357_v41 = vmul.f32 %v8475_v19, %v3526_v61 }
 0x8c3   :  { %4658 = vmatmul.f32.gmra.mxu2 %v7993_v54  ;;  %4839 = vmatmul.f32.gmra.mxu3 %v4752_v31  ;;  %v9975_v54 = vld [vmem:[#allocation331_spill] sm:$0xff]  ;;  %v4397_v47 = vadd.f32 %v4357_v41, %v4347_v53  ;;  %v9985_v41 = vld [vmem:[#allocation404_spill] sm:$0xff]  ;;  %v9986_v53 = vld [vmem:[#allocation406_spill] sm:$0xff] }
 0x8c4   :  { %v8499_v25 = vadd.f32 %v9975_v54, %v4396_v15  ;;  %v3508_v36 = vadd.f32 %v9986_v53, %v9985_v41 }
 0x8c6   :  { %v4611_v34 = vpop.f32.mrf.mxu2  ;;  %9976 = vst [vmem:[#allocation342_spill] sm:$0xff] %v8499_v25 }
 0x8c7   :  { %v8492_v12 = vsub.f32 %v7560_v0, %v4611_v34  ;;  %v9980_v0 = vld [vmem:[#allocation436_spill] sm:$0xff]  ;;  %v8506_v34 = vpop.f32.mrf.mxu3 }
 0x8c8   :  { %v3529_v43 = vadd.f32 %v9980_v0, %v9979_v28  ;;  %9981 = vst [vmem:[#allocation41_spill] sm:$0xff] %v8506_v34  ;;  %v9988_v28 = vld [vmem:[#allocation442_spill] sm:$0xff] }
 0x8c9   :  { %9974 = vst [vmem:[#allocation340_spill] sm:$0xff] %v8492_v12  ;;  %v4753_v31 = vmul.f32 %v8492_v12, %v8492_v12  ;;  %v4348_v12 = vmul.f32 %v8471_v59, %v3505_v29  ;;  %v3532_v0 = vadd.f32 %v9988_v28, %v9987_v52  ;;  %v4349_v29 = vmul.f32 %v8471_v59, %v3508_v36  ;;  %v9994_v52 = vld [vmem:[#allocation417_spill] sm:$0xff]  ;;  %v9997_v36 = vld [vmem:[#allocation460_spill] sm:$0xff] }
 0x8ca   :  { %v4358_v15 = vmul.f32 %v8475_v19, %v3529_v43  ;;  %v9990_v43 = vld [vmem:[#allocation410_spill] sm:$0xff] }
 0x8cb   :  { %4661 = vmatmul.f32.gmra.mxu2 %v8499_v25  ;;  %4842 = vmatmul.f32.gmra.mxu3 %v4753_v31  ;;  %v9983_v31 = vld [vmem:[#allocation332_spill] sm:$0xff]  ;;  %v4359_v5 = vmul.f32 %v8475_v19, %v3532_v0 }
 0x8cc   :  { %v8516_v25 = vadd.f32 %v9983_v31, %v4397_v47  ;;  %v9992_v47 = vld [vmem:[#allocation414_spill] sm:$0xff] }
 0x8cd   :  { %v3514_v31 = vadd.f32 %v9992_v47, %v9991_v20  ;;  %v10004_v47 = vld [vmem:[#allocation422_spill] sm:$0xff] }
 0x8ce   :  { %v4614_v27 = vpop.f32.mrf.mxu2  ;;  %9984 = vst [vmem:[#allocation284_spill] sm:$0xff] %v8516_v25 }
 0x8cf   :  { %v8509_v61 = vsub.f32 %v7586_v32, %v4614_v27  ;;  %v4398_v32 = vadd.f32 %v4358_v15, %v4348_v12  ;;  %v9989_v27 = vld [vmem:[#allocation409_spill] sm:$0xff]  ;;  %v4351_v0 = vmul.f32 %v8471_v59, %v3514_v31 }
 0x8d0   :  { %v3511_v45 = vadd.f32 %v9990_v43, %v9989_v27  ;;  %v9996_v15 = vld [vmem:[#allocation457_spill] sm:$0xff]  ;;  %v9999_v27 = vld [vmem:[#allocation464_spill] sm:$0xff] }
 0x8d1   :  { %9982 = vst [vmem:[#allocation283_spill] sm:$0xff] %v8509_v61  ;;  %v4754_v54 = vmul.f32 %v8509_v61, %v8509_v61  ;;  %v3535_v28 = vadd.f32 %v9997_v36, %v9996_v15  ;;  %v4399_v15 = vadd.f32 %v4359_v5, %v4349_v29  ;;  %v10006_v36 = vld [vmem:[#allocation470_spill] sm:$0xff] }
 0x8d3   :  { %4664 = vmatmul.f32.gmra.mxu2 %v8516_v25  ;;  %4845 = vmatmul.f32.gmra.mxu3 %v4754_v54  ;;  %v9995_v54 = vld [vmem:[#allocation418_spill] sm:$0xff]  ;;  %v9998_v25 = vld [vmem:[#allocation461_spill] sm:$0xff]  ;;  %v4360_v57 = vmul.f32 %v8475_v19, %v3535_v28 }
 0x8d4   :  { %v3517_v12 = vadd.f32 %v9995_v54, %v9994_v52  ;;  %v3538_v43 = vadd.f32 %v9999_v27, %v9998_v25  ;;  %v10005_v52 = vld [vmem:[#allocation424_spill] sm:$0xff] }
 0x8d5   :  { %v3520_v54 = vadd.f32 %v10005_v52, %v10004_v47  ;;  %v10007_v27 = vld [vmem:[#allocation472_spill] sm:$0xff] }
 0x8d6   :  { %v4617_v23 = vpop.f32.mrf.mxu2  ;;  %v4798_v61 = vpop.f32.mrf.mxu3  ;;  %v4352_v56 = vmul.f32 %v8471_v59, %v3517_v12  ;;  %v4361_v25 = vmul.f32 %v8475_v19, %v3538_v43  ;;  %v10009_v12 = vld [vmem:[#allocation334_spill] sm:$0xff] }
 0x8d7   :  { %v8530_v41 = vsub.f32 %v7614_v14, %v4617_v23  ;;  %v8532_v53 = vadd.f32 1e-05, %v4798_v61  ;;  %v10002_v14 = vld [vmem:[#allocation333_spill] sm:$0xff]  ;;  %v4350_v61 = vmul.f32 %v8471_v59, %v3511_v45  ;;  %v3544_v45 = vadd.f32 %v10007_v27, %v10006_v36 }
 0x8d8   :  { %v8546_v23 = vadd.f32 %v10002_v14, %v4398_v32  ;;  %v4362_v32 = vmul.f32 %v8475_v19, %v3541_v8  ;;  %v4353_v47 = vmul.f32 %v8471_v59, %v3520_v54  ;;  %v4401_v43 = vadd.f32 %v4361_v25, %v4351_v0  ;;  %v10011_v27 = vld [vmem:[#allocation473_spill] sm:$0xff]  ;;  %v10013_v59 = vld [vmem:[#allocation208_spill] sm:$0xff] }
 0x8d9   :  { %9993 = vst [vmem:[#allocation190_spill] sm:$0xff] %v8530_v41  ;;  %v4755_v20 = vmul.f32 %v8530_v41, %v8530_v41  ;;  %5645 = vrsqrt.f32 %v8532_v53  ;;  %v4400_v28 = vadd.f32 %v4360_v57, %v4350_v61  ;;  %v4363_v36 = vmul.f32 %v8475_v19, %v3544_v45  ;;  %v10014_v54 = vld [vmem:[#allocation209_spill] sm:$0xff]  ;;  %v10016_v57 = vld [vmem:[#allocation336_spill] sm:$0xff]  ;;  %v10017_v45 = vld [vmem:[#allocation475_spill] sm:$0xff] }
 0x8da   :  { %10003 = vst [vmem:[#allocation135_spill] sm:$0xff] %v8546_v23  ;;  %v4402_v52 = vadd.f32 %v4362_v32, %v4352_v56  ;;  %v10015_v56 = vld [vmem:[#allocation335_spill] sm:$0xff]  ;;  %vm4933_vm1 = vweird.f32 %v8532_v53 }
 0x8db   :  { %4667 = vmatmul.f32.gmra.mxu2 %v8546_v23  ;;  %4848 = vmatmul.f32.gmra.mxu3 %v4755_v20  ;;  %v8566_v20 = vadd.f32 %v10009_v12, %v4399_v15  ;;  %v10012_v23 = vld [vmem:[#allocation474_spill] sm:$0xff]  ;;  %v3553_v15 = vadd.f32 %v10014_v54, %v10013_v59  ;;  %v8579_v19 = vadd.f32 %v10015_v56, %v4400_v28  ;;  %v10020_v54 = vld [vmem:[#allocation59_spill] sm:$0xff] }
 0x8dc   :  { %v3547_v18 = vadd.f32 %v10012_v23, %v10011_v27  ;;  %v8582_v23 = vadd.f32 %v10016_v57, %v4401_v43  ;;  %v8584_v25 = vadd.f32 %v4363_v36, %v4353_v47  ;;  %v10019_v27 = vld [vmem:[#allocation338_spill] sm:$0xff]  ;;  %v10023_v47 = vld [vmem:[#allocation273_spill] sm:$0xff]  ;;  %v10025_v57 = vld [vmem:[#allocation175_spill] sm:$0xff] }
 0x8dd   :  { %10010 = vst [vmem:[#allocation225_spill] sm:$0xff] %v8566_v20  ;;  %v8589_v59 = vadd.f32 %v10019_v27, %v4402_v52  ;;  %v10022_v43 = vld [vmem:[#allocation26_spill] sm:$0xff]  ;;  %v5626_v27 = vld [vmem:[#allocation7 + $0x14] ss:$0 sm:$0xff] }
 0x8de   :  { %v4620_v14 = vpop.f32.mrf.mxu2  ;;  %v4801_v31 = vpop.f32.mrf.mxu3  ;;  %v4438_v32 = vadd.f32 %v5623_v33, %v3547_v18  ;;  %v3559_v36 = vadd.f32 %v10023_v47, %v10022_v43  ;;  %v10024_v18 = vld [vmem:[#allocation274_spill] sm:$0xff]  ;;  %v10029_v43 = vld [vmem:[#allocation125_spill] sm:$0xff] }
 0x8df   :  { %v5646_v41 = vpop.eup %5645  ;;  %v8561_v5 = vsub.f32 %v7642_v1, %v4620_v14  ;;  %v8563_v29 = vadd.f32 1e-05, %v4801_v31  ;;  %v5624_v14 = vld [vmem:[#allocation7 + $0x12] ss:$0 sm:$0xff]  ;;  %v10018_v31 = vld [vmem:[#allocation123_spill] sm:$0xff]  ;;  %v3562_v34 = vadd.f32 %v10025_v57, %v10024_v18 }
 0x8e0   :  { %v4928_v8 = vmul.f32 %v5646_v41, %v8532_v53  ;;  %v3550_v12 = vadd.f32 %v10018_v31, %v10017_v45  ;;  %vm4934_vm0 = vweird.f32 %v5646_v41  ;;  %v10027_v31 = vld [vmem:[#allocation124_spill] sm:$0xff]  ;;  %v10030_v47 = vld [vmem:[#allocation69_spill] sm:$0xff]  ;;  %v10031_v18 = vld [vmem:[#allocation211_spill] sm:$0xff] }
 0x8e1   :  { %10008 = vst [vmem:[#allocation136_spill] sm:$0xff] %v8561_v5  ;;  %v4756_v1 = vmul.f32 %v8561_v5, %v8561_v5  ;;  %5647 = vrsqrt.f32 %v8563_v29  ;;  %v10021_v5 = vld [vmem:[#allocation60_spill] sm:$0xff]  ;;  %v3568_v50 = vadd.f32 %v10030_v47, %v10029_v43  ;;  %v10032_v57 = vld [vmem:[#allocation279_spill] sm:$0xff]  ;;  %vm4935_vm2 = vmor %vm4933_vm1, %vm4934_vm0  ;;  %vm4943_vm4 = vweird.f32 %v8563_v29 }
 0x8e2   :  { %v4929_v61 = vmul.f32 %v5646_v41, %v4928_v8  ;;  %v4442_v8 = vmul.f32 %v5624_v14, %v3553_v15  ;;  %v5625_v15 = vld [vmem:[#allocation7 + $0x13] ss:$0 sm:$0xff]  ;;  %v4439_v53 = vadd.f32 %v5623_v33, %v3550_v12 }
 0x8e3   :  { %4670 = vmatmul.f32.gmra.mxu2 %v8566_v20  ;;  %4851 = vmatmul.f32.gmra.mxu3 %v4756_v1  ;;  %v3556_v1 = vadd.f32 %v10021_v5, %v10020_v54  ;;  %v10028_v5 = vld [vmem:[#allocation218_spill] sm:$0xff]  ;;  %v4447_v22 = vmul.f32 %v5625_v15, %v3562_v34  ;;  %v4451_v3 = vmul.f32 %v5626_v27, %v3568_v50 }
 0x8e4   :  { %v4930_v0 = vmul.f32 0.5, %v4929_v61  ;;  %v8622_v47 = vadd.f32 %v4442_v8, %v4438_v32  ;;  %v10038_v34 = vld [vmem:[#allocation126_spill] sm:$0xff] }
 0x8e6   :  { %v4931_v61 = vsub.f32 1.5, %v4930_v0  ;;  %v4623_v28 = vpop.f32.mrf.mxu2  ;;  %v4804_v56 = vpop.f32.mrf.mxu3  ;;  %v3565_v0 = vadd.f32 %v10028_v5, %v10027_v31  ;;  %v10034_v5 = vld [vmem:[#allocation131_spill] sm:$0xff] }
 0x8e7   :  { %v8593_v20 = vpop.eup %5647  ;;  %v8600_v45 = vsub.f32 %v7668_v55, %v4623_v28  ;;  %v8602_v52 = vadd.f32 1e-05, %v4804_v56  ;;  %v3571_v55 = vadd.f32 %v10032_v57, %v10031_v18  ;;  %v5627_v28 = vld [vmem:[#allocation7 + $0x15] ss:$0 sm:$0xff]  ;;  %v8614_v56 = vld [vmem:[#allocation11] ss:$0 sm:$0xff]  ;;  %v4443_v18 = vmul.f32 %v5624_v14, %v3556_v1 }
 0x8e8   :  { %v4932_v54 = vmul.f32 %v5646_v41, %v4931_v61  ;;  %v4938_v13 = vmul.f32 %v8593_v20, %v8563_v29  ;;  %v10033_v61 = vld [vmem:[#allocation29_spill] sm:$0xff]  ;;  %v4450_v33 = vmul.f32 %v5626_v27, %v3565_v0  ;;  %v10037_v14 = vld [vmem:[#allocation276_spill] sm:$0xff]  ;;  %vm4944_vm3 = vweird.f32 %v8593_v20 }
 0x8e9   :  { %10026 = vst [vmem:[#allocation226_spill] sm:$0xff] %v8600_v45  ;;  %v4757_v31 = vmul.f32 %v8600_v45, %v8600_v45  ;;  %5649 = vrsqrt.f32 %v8602_v52  ;;  %v3577_v44 = vadd.f32 %v10034_v5, %v10033_v61  ;;  %v4446_v45 = vmul.f32 %v5625_v15, %v3559_v36  ;;  %v10035_v5 = vld [vmem:[#allocation212_spill] sm:$0xff]  ;;  %vm4945_vm5 = vmor %vm4943_vm4, %vm4944_vm3 }
 0x8ea   :  { %v4936_v10 = vsel %vm4935_vm2, %v5646_v41, %v4932_v54  ;;  %v4939_v43 = vmul.f32 %v8593_v20, %v4938_v13  ;;  %v4454_v61 = vmul.f32 %v5627_v28, %v3571_v55  ;;  %v10036_v41 = vld [vmem:[#allocation184_spill] sm:$0xff]  ;;  %v3583_v15 = vadd.f32 %v8337_v26, %v10038_v34  ;;  %v10039_v55 = vld [vmem:[#allocation66_spill] sm:$0xff] }
 0x8eb   :  { %v5357_v57 = vmul.f32 %v4936_v10, %v8364_v46  ;;  %4673 = vmatmul.f32.gmra.mxu2 %v8579_v19  ;;  %4854 = vmatmul.f32.gmra.mxu3 %v4757_v31  ;;  %v3574_v54 = vadd.f32 %v10036_v41, %v10035_v5  ;;  %v4458_v32 = vmul.f32 %v5628_v49, %v3577_v44  ;;  %v5629_v44 = vld [vmem:[#allocation7 + $0x17] ss:$0 sm:$0xff]  ;;  %v5630_v31 = vld [vmem:[#allocation7 + $0x18] ss:$0 sm:$0xff]  ;;  %vm4953_vm7 = vweird.f32 %v8602_v52 }
 0x8ec   :  { %v4940_v12 = vmul.f32 0.5, %v4939_v43  ;;  %v3580_v10 = vadd.f32 %v8318_v62, %v10037_v14  ;;  %v3589_v62 = vadd.f32 %v8350_v37, %v10039_v55  ;;  %v10041_v5 = vld [vmem:[#allocation277_spill] sm:$0xff]  ;;  %v4477_v41 = vadd.f32 %v4443_v18, %v4439_v53  ;;  %v5631_v18 = vld [vmem:[#allocation7 + $0x19] ss:$0 sm:$0xff] }
 0x8ed   :  { %v5404_v13 = vmul.f32 %v8614_v56, %v5357_v57  ;;  %v4480_v55 = vadd.f32 %v4458_v32, %v4454_v61 }
 0x8ee   :  { %v4941_v46 = vsub.f32 1.5, %v4940_v12  ;;  %v4626_v8 = vpop.f32.mrf.mxu2  ;;  %v4807_v1 = vpop.f32.mrf.mxu3  ;;  %v10040_v12 = vld [vmem:[#allocation214_spill] sm:$0xff]  ;;  %v4466_v34 = vmul.f32 %v5630_v31, %v3589_v62 }
 0x8ef   :  { %v5650_v36 = vpop.eup %5649  ;;  %v5451_v50 = vadd.f32 %v8625_v60, %v5404_v13  ;;  %v8638_v0 = vsub.f32 %v7694_v6, %v4626_v8  ;;  %v8640_v27 = vadd.f32 1e-05, %v4807_v1  ;;  %v3586_v26 = vadd.f32 %v8345_v2, %v10040_v12 }
 0x8f0   :  { %v4942_v43 = vmul.f32 %v8593_v20, %v4941_v46  ;;  %v4948_v57 = vmul.f32 %v5650_v36, %v8602_v52  ;;  %v3592_v6 = vadd.f32 %v8356_v9, %v10041_v5  ;;  %v4478_v13 = vadd.f32 %v4450_v33, %v4446_v45  ;;  %v10042_v45 = vld [vmem:[#allocation181_spill] sm:$0xff] }
 0x8f1   :  { %5494 = vst [vmem:[#allocation14] sm:$0xff] %v5451_v50  ;;  %v4758_v37 = vmul.f32 %v8638_v0, %v8638_v0  ;;  %5651 = vrsqrt.f32 %v8640_v27  ;;  %v4455_v46 = vmul.f32 %v5627_v28, %v3574_v54  ;;  %v4459_v8 = vmul.f32 %v5628_v49, %v3580_v10  ;;  %v10043_v28 = vld [vmem:[#allocation129_spill] sm:$0xff] }
 0x8f2   :  { %v4946_v29 = vsel %vm4945_vm5, %v8593_v20, %v4942_v43  ;;  %v4949_v14 = vmul.f32 %v5650_v36, %v4948_v57  ;;  %v4479_v9 = vadd.f32 %v4451_v3, %v4447_v22  ;;  %v4462_v1 = vmul.f32 %v5629_v44, %v3583_v15 }
 0x8f3   :  { %v5358_v2 = vmul.f32 %v4946_v29, %v8370_v40  ;;  %4676 = vmatmul.f32.gmra.mxu2 %v8582_v23  ;;  %4857 = vmatmul.f32.gmra.mxu3 %v4758_v37  ;;  %v4463_v12 = vmul.f32 %v5629_v44, %v3586_v26  ;;  %v4467_v5 = vmul.f32 %v5630_v31, %v3592_v6  ;;  %v8664_v40 = vld [vmem:[#allocation7 + $0x1a] ss:$0 sm:$0xff]  ;;  %vm4954_vm6 = vweird.f32 %v5650_v36  ;;  %v10044_v31 = vld [vmem:[#allocation128_spill] sm:$0xff] }
 0x8f4   :  { %v4950_v50 = vmul.f32 0.5, %v4949_v14  ;;  %v3595_v20 = vadd.f32 %v8361_v30, %v10042_v45  ;;  %v3601_v49 = vadd.f32 %v8382_v51, %v10043_v28  ;;  %v4481_v61 = vadd.f32 %v4459_v8, %v4455_v46  ;;  %vm4955_vm8 = vmor %vm4953_vm7, %vm4954_vm6  ;;  %v10045_v46 = vld [vmem:[#allocation341_spill] sm:$0xff]  ;;  %v5634_v28 = vld [vmem:[#allocation7 + $0x1b] ss:$0 sm:$0xff] }
 0x8f5   :  { %v5405_v53 = vmul.f32 %v8614_v56, %v5358_v2  ;;  %v4482_v30 = vadd.f32 %v4466_v34, %v4462_v1  ;;  %v4483_v62 = vadd.f32 %v4467_v5, %v4463_v12  ;;  %v3598_v43 = vadd.f32 %v8372_v48, %v10044_v31 }
 0x8f6   :  { %v4951_v33 = vsub.f32 1.5, %v4950_v50  ;;  %v4629_v22 = vpop.f32.mrf.mxu2  ;;  %v4810_v3 = vpop.f32.mrf.mxu3  ;;  %v4470_v57 = vmul.f32 %v5631_v18, %v3595_v20  ;;  %v4474_v26 = vmul.f32 %v8664_v40, %v3601_v49  ;;  %v4486_v48 = vadd.f32 %v4478_v13, %v8622_v47  ;;  %v10046_v50 = vld [vmem:[#allocation217_spill] sm:$0xff]  ;;  %v5633_v20 = vld [vmem:[#allocation8 + $0x3] ss:$0 sm:$0xff] }
 0x8f7   :  { %v8666_v54 = vpop.eup %5651  ;;  %v5452_v32 = vadd.f32 %v8625_v60, %v5405_v53  ;;  %v8670_v10 = vsub.f32 %v7720_v21, %v4629_v22  ;;  %v8672_v15 = vadd.f32 1e-05, %v4810_v3  ;;  %v8688_v29 = vadd.f32 %v4479_v9, %v4477_v41  ;;  %v5635_v3 = vld [vmem:[#allocation7 + $0x1c] ss:$0 sm:$0xff] }
 0x8f8   :  { %v4952_v44 = vmul.f32 %v5650_v36, %v4951_v33  ;;  %v4958_v51 = vmul.f32 %v8666_v54, %v8640_v27  ;;  %v8692_v8 = vadd.f32 %v10045_v46, %v8584_v25  ;;  %v4488_v2 = vadd.f32 %v4482_v30, %v4480_v55  ;;  %v10047_v25 = vld [vmem:[#allocation68_spill] sm:$0xff] }
 0x8f9   :  { %5495 = vst [vmem:[#allocation14 + $0x8] sm:$0xff] %v5452_v32  ;;  %v4759_v21 = vmul.f32 %v8670_v10, %v8670_v10  ;;  %5653 = vrsqrt.f32 %v8672_v15  ;;  %v8694_v1 = vadd.f32 %v4483_v62, %v4481_v61  ;;  %v3604_v12 = vadd.f32 %v8391_v35, %v10046_v50  ;;  %v5636_v32 = vld [vmem:[#allocation7 + $0x1d] ss:$0 sm:$0xff] }
 0x8fa   :  { %v4956_v6 = vsel %vm4955_vm8, %v5650_v36, %v4952_v44  ;;  %v4959_v52 = vmul.f32 %v8666_v54, %v4958_v51  ;;  %v8696_v36 = vmul.f32 %v5631_v18, %v3598_v43  ;;  %vm4964_vm9 = vweird.f32 %v8666_v54  ;;  %v10048_v18 = vld [vmem:[#allocation35_spill] sm:$0xff]  ;;  %v5637_v44 = vld [vmem:[#allocation7 + $0x1e] ss:$0 sm:$0xff]  ;;  %v5638_v51 = vld [vmem:[#allocation7 + $0x1f] ss:$0 sm:$0xff] }
 0x8fb   :  { %v5359_v37 = vmul.f32 %v4956_v6, %v8378_v17  ;;  %4679 = vmatmul.f32.gmra.mxu2 %v8589_v59  ;;  %4860 = vmatmul.f32.gmra.mxu3 %v4759_v21  ;;  %v8699_v17 = vadd.f32 %v4474_v26, %v4470_v57  ;;  %v3607_v55 = vadd.f32 %v8399_v16, %v10047_v25  ;;  %vm4963_vm10 = vweird.f32 %v8640_v27  ;;  %v10049_v16 = vld [vmem:[#allocation280_spill] sm:$0xff]  ;;  %v5639_v43 = vld [vmem:[#allocation7 + $0x20] ss:$0 sm:$0xff]  ;;  %v10052_v21 = vld [vmem:[#allocation337_spill] sm:$0xff] }
 0x8fc   :  { %v4960_v14 = vmul.f32 0.5, %v4959_v52  ;;  %v3610_v35 = vadd.f32 %v8407_v4, %v10048_v18  ;;  %v3613_v22 = vadd.f32 %v8418_v38, %v10049_v16  ;;  %vm4965_vm11 = vmor %vm4963_vm10, %vm4964_vm9  ;;  %v10051_v27 = vld [vmem:[#allocation220_spill] sm:$0xff]  ;;  %v3622_v38 = vadd.f32 %v8445_v39, %v8325_v24  ;;  %v10053_v52 = vld [vmem:[#allocation221_spill] sm:$0xff] }
 0x8fd   :  { %v5406_v34 = vmul.f32 %v8614_v56, %v5359_v37  ;;  %v3619_v30 = vadd.f32 %v8437_v11, %v10051_v27  ;;  %v3625_v31 = vadd.f32 %v8456_v63, %v8339_v7  ;;  %v4490_v26 = vadd.f32 %v4488_v2, %v4486_v48  ;;  %v10054_v24 = vld [vmem:[#allocation394_spill] sm:$0xff]  ;;  %v5640_v37 = vld [vmem:[#allocation7 + $0x21] ss:$0 sm:$0xff] }
 0x8fe   :  { %v4961_v47 = vsub.f32 1.5, %v4960_v14  ;;  %v4632_v41 = vpop.f32.mrf.mxu2  ;;  %v4813_v13 = vpop.f32.mrf.mxu3  ;;  %v4475_v11 = vmul.f32 %v8664_v40, %v3604_v12  ;;  %v4496_v6 = vadd.f32 %v5633_v20, %v3607_v55  ;;  %v3628_v39 = vadd.f32 %v10054_v24, %v10053_v52 }
 0x8ff   :  { %v8704_v9 = vpop.eup %5653  ;;  %v5453_v5 = vadd.f32 %v8625_v60, %v5406_v34  ;;  %v8710_v53 = vsub.f32 %v7746_v42, %v4632_v41  ;;  %v8712_v45 = vadd.f32 1e-05, %v4813_v13  ;;  %v10050_v42 = vld [vmem:[#allocation130_spill] sm:$0xff]  ;;  %v4499_v14 = vmul.f32 %v5634_v28, %v3610_v35 }
 0x900   :  { %v4962_v49 = vmul.f32 %v8666_v54, %v4961_v47  ;;  %v4968_v33 = vmul.f32 %v8704_v9, %v8672_v15  ;;  %v3616_v61 = vadd.f32 %v8428_v58, %v10050_v42  ;;  %v4502_v46 = vmul.f32 %v5635_v3, %v3613_v22  ;;  %v10055_v13 = vld [vmem:[#allocation62_spill] sm:$0xff]  ;;  %v10056_v42 = vld [vmem:[#allocation339_spill] sm:$0xff] }
 0x901   :  { %5496 = vst [vmem:[#allocation14 + $0x10] sm:$0xff] %v5453_v5  ;;  %v4760_v4 = vmul.f32 %v8710_v53, %v8710_v53  ;;  %5655 = vrsqrt.f32 %v8712_v45  ;;  %v4508_v63 = vmul.f32 %v5637_v44, %v3619_v30  ;;  %v4511_v50 = vmul.f32 %v5638_v51, %v3622_v38  ;;  %v10058_v30 = vld [vmem:[#allocation74_spill] sm:$0xff]  ;;  %v10059_v38 = vld [vmem:[#allocation72_spill] sm:$0xff] }
 0x902   :  { %v4966_v58 = vsel %vm4965_vm11, %v8666_v54, %v4962_v49  ;;  %v4969_v62 = vmul.f32 %v8704_v9, %v4968_v33  ;;  %v4505_v34 = vmul.f32 %v5636_v32, %v3616_v61  ;;  %vm4974_vm12 = vweird.f32 %v8704_v9 }
 0x903   :  { %v5360_v57 = vmul.f32 %v4966_v58, %v10052_v21  ;;  %4682 = vmatmul.f32.gmra.mxu2 %v8692_v8  ;;  %4863 = vmatmul.f32.gmra.mxu3 %v4760_v4  ;;  %v4514_v40 = vmul.f32 %v5639_v43, %v3625_v31  ;;  %v4517_v5 = vmul.f32 %v5640_v37, %v3628_v39  ;;  %vm4973_vm13 = vweird.f32 %v8672_v15  ;;  %v5642_v58 = vld [vmem:[#allocation7 + $0x23] ss:$0 sm:$0xff] }
 0x904   :  { %v4970_v54 = vmul.f32 0.5, %v4969_v62  ;;  %vm4975_vm14 = vmor %vm4973_vm13, %vm4974_vm12  ;;  %v8757_v28 = vadd.f32 %v4490_v26, %v8699_v17  ;;  %v4485_v49 = vadd.f32 %v4475_v11, %v8696_v36  ;;  %v4491_v15 = vadd.f32 %v8694_v1, %v8688_v29  ;;  %v10057_v17 = vld [vmem:[#allocation71_spill] sm:$0xff] }
 0x905   :  { %v5407_v7 = vmul.f32 %v8614_v56, %v5360_v57  ;;  %v4524_v22 = vadd.f32 %v4499_v14, %v4496_v6  ;;  %v4525_v3 = vadd.f32 %v4505_v34, %v4502_v46  ;;  %v4526_v32 = vadd.f32 %v4511_v50, %v4508_v63  ;;  %v5641_v36 = vld [vmem:[#allocation7 + $0x22] ss:$0 sm:$0xff]  ;;  %v10062_v63 = vld [vmem:[#allocation38_spill] sm:$0xff] }
 0x906   :  { %v4971_v47 = vsub.f32 1.5, %v4970_v54  ;;  %v4635_v41 = vpop.f32.mrf.mxu2  ;;  %v4816_v48 = vpop.f32.mrf.mxu3  ;;  %v4527_v4 = vadd.f32 %v4517_v5, %v4514_v40  ;;  %v3631_v44 = vadd.f32 %v10058_v30, %v10057_v17  ;;  %v8770_v43 = vadd.f32 %v4491_v15, %v4485_v49  ;;  %v10061_v11 = vld [vmem:[#allocation63_spill] sm:$0xff] }
 0x907   :  { %v5656_v2 = vpop.eup %5655  ;;  %v5454_v12 = vadd.f32 %v8625_v60, %v5407_v7  ;;  %v8746_v25 = vsub.f32 %v10055_v13, %v4635_v41  ;;  %v8748_v55 = vadd.f32 1e-05, %v4816_v48  ;;  %v4529_v57 = vadd.f32 %v4525_v3, %v4524_v22 }
 0x908   :  { %v4972_v20 = vmul.f32 %v8704_v9, %v4971_v47  ;;  %v4978_v18 = vmul.f32 %v5656_v2, %v8712_v45  ;;  %vm4984_vm15 = vweird.f32 %v5656_v2  ;;  %v4530_v24 = vadd.f32 %v4527_v4, %v4526_v32 }
 0x909   :  { %5497 = vst [vmem:[#allocation14 + $0x18] sm:$0xff] %v5454_v12  ;;  %v4761_v35 = vmul.f32 %v8746_v25, %v8746_v25  ;;  %5657 = vrsqrt.f32 %v8748_v55  ;;  %vm4983_vm0 = vweird.f32 %v8712_v45  ;;  %v4520_v54 = vmul.f32 %v5641_v36, %v3631_v44  ;;  %v10065_v36 = vld [vmem:[#allocation178_spill] sm:$0xff] }
 0x90a   :  { %v4976_v33 = vsel %vm4975_vm14, %v8704_v9, %v4972_v20  ;;  %v4979_v16 = vmul.f32 %v5656_v2, %v4978_v18  ;;  %v10060_v9 = vld [vmem:[#allocation41_spill] sm:$0xff]  ;;  %vm4985_vm1 = vmor %vm4983_vm0, %vm4984_vm15  ;;  %v4531_v48 = vadd.f32 %v4530_v24, %v4529_v57  ;;  %v10063_v18 = vld [vmem:[#allocation275_spill] sm:$0xff]  ;;  %vm4993_vm3 = vweird.f32 %v8748_v55 }
 0x90b   :  { %v5361_v61 = vmul.f32 %v4976_v33, %v10056_v42  ;;  %4685 = vmatmul.f32.gmra.mxu2 %v8757_v28  ;;  %4866 = vmatmul.f32.gmra.mxu3 %v4761_v35  ;;  %v3634_v51 = vadd.f32 %v10060_v9, %v10059_v38  ;;  %v10064_v42 = vld [vmem:[#allocation281_spill] sm:$0xff] }
 0x90c   :  { %v4980_v27 = vmul.f32 0.5, %v4979_v16 }
 0x90d   :  { %v5408_v29 = vmul.f32 %v8614_v56, %v5361_v61  ;;  %v4523_v14 = vmul.f32 %v5642_v58, %v3634_v51 }
 0x90e   :  { %v4981_v1 = vsub.f32 1.5, %v4980_v27  ;;  %v4638_v62 = vpop.f32.mrf.mxu2  ;;  %v4819_v31 = vpop.f32.mrf.mxu3 }
 0x90f   :  { %v5658_v21 = vpop.eup %5657  ;;  %v5455_v26 = vadd.f32 %v8625_v60, %v5408_v29  ;;  %v8774_v6 = vsub.f32 %v10061_v11, %v4638_v62  ;;  %v4820_v52 = vadd.f32 1e-05, %v4819_v31  ;;  %v4528_v45 = vadd.f32 %v4523_v14, %v4520_v54  ;;  %v10066_v31 = vld [vmem:[#allocation282_spill] sm:$0xff]  ;;  %v10067_v54 = vld [vmem:[#allocation127_spill] sm:$0xff] }
 0x910   :  { %v4982_v39 = vmul.f32 %v5656_v2, %v4981_v1  ;;  %v4988_v37 = vmul.f32 %v5658_v21, %v8748_v55  ;;  %vm4994_vm2 = vweird.f32 %v5658_v21 }
 0x911   :  { %5498 = vst [vmem:[#allocation14 + $0x20] sm:$0xff] %v5455_v26  ;;  %v4762_v46 = vmul.f32 %v8774_v6, %v8774_v6  ;;  %5659 = vrsqrt.f32 %v4820_v52  ;;  %vm4995_vm4 = vmor %vm4993_vm3, %vm4994_vm2  ;;  %v8791_v15 = vadd.f32 %v4531_v48, %v4528_v45  ;;  %vm5003_vm6 = vweird.f32 %v4820_v52  ;;  %v10068_v45 = vld [vmem:[#allocation187_spill] sm:$0xff] }
 0x912   :  { %v4986_v34 = vsel %vm4985_vm1, %v5656_v2, %v4982_v39  ;;  %v4989_v7 = vmul.f32 %v5658_v21, %v4988_v37 }
 0x913   :  { %v5362_v50 = vmul.f32 %v4986_v34, %v10062_v63  ;;  %4688 = vmatmul.f32.gmra.mxu2 %v8770_v43  ;;  %4869 = vmatmul.f32.gmra.mxu3 %v4762_v46 }
 0x914   :  { %v4990_v47 = vmul.f32 0.5, %v4989_v7 }
 0x915   :  { %v5409_v41 = vmul.f32 %v8614_v56, %v5362_v50 }
 0x916   :  { %v4991_v40 = vsub.f32 1.5, %v4990_v47  ;;  %v4641_v12 = vpop.f32.mrf.mxu2  ;;  %v4822_v13 = vpop.f32.mrf.mxu3 }
 0x917   :  { %v5660_v5 = vpop.eup %5659  ;;  %v5456_v20 = vadd.f32 %v8625_v60, %v5409_v41  ;;  %v8786_v2 = vsub.f32 %v10063_v18, %v4641_v12  ;;  %v4823_v35 = vadd.f32 1e-05, %v4822_v13 }
 0x918   :  { %v4992_v49 = vmul.f32 %v5658_v21, %v4991_v40  ;;  %v4998_v33 = vmul.f32 %v5660_v5, %v4820_v52  ;;  %vm5004_vm5 = vweird.f32 %v5660_v5 }
 0x919   :  { %5499 = vst [vmem:[#allocation14 + $0x28] sm:$0xff] %v5456_v20  ;;  %v4763_v16 = vmul.f32 %v8786_v2, %v8786_v2  ;;  %5661 = vrsqrt.f32 %v4823_v35  ;;  %vm5005_vm7 = vmor %vm5003_vm6, %vm5004_vm5  ;;  %vm5013_vm9 = vweird.f32 %v4823_v35 }
 0x91a   :  { %v4996_v22 = vsel %vm4995_vm4, %v5658_v21, %v4992_v49  ;;  %v4999_v3 = vmul.f32 %v5660_v5, %v4998_v33 }
 0x91b   :  { %v5363_v61 = vmul.f32 %v4996_v22, %v10064_v42  ;;  %4691 = vmatmul.f32.gmra.mxu2 %v8791_v15  ;;  %4872 = vmatmul.f32.gmra.mxu3 %v4763_v16 }
 0x91c   :  { %v5000_v32 = vmul.f32 0.5, %v4999_v3 }
 0x91d   :  { %v5410_v4 = vmul.f32 %v8614_v56, %v5363_v61 }
 0x91e   :  { %v5001_v55 = vsub.f32 1.5, %v5000_v32  ;;  %v4644_v27 = vpop.f32.mrf.mxu2  ;;  %v4825_v17 = vpop.f32.mrf.mxu3  ;;  %v10070_v32 = vld [vmem:[#allocation132_spill] sm:$0xff] }
 0x91f   :  { %v5662_v30 = vpop.eup %5661  ;;  %v5457_v44 = vadd.f32 %v8625_v60, %v5410_v4  ;;  %v8798_v38 = vsub.f32 %v10065_v36, %v4644_v27  ;;  %v4826_v9 = vadd.f32 1e-05, %v4825_v17 }
 0x920   :  { %v5002_v51 = vmul.f32 %v5660_v5, %v5001_v55  ;;  %v5008_v58 = vmul.f32 %v5662_v30, %v4823_v35  ;;  %vm5014_vm8 = vweird.f32 %v5662_v30  ;;  %v10069_v35 = vld [vmem:[#allocation215_spill] sm:$0xff] }
 0x921   :  { %5500 = vst [vmem:[#allocation14 + $0x30] sm:$0xff] %v5457_v44  ;;  %v4764_v29 = vmul.f32 %v8798_v38, %v8798_v38  ;;  %5663 = vrsqrt.f32 %v4826_v9  ;;  %vm5015_vm10 = vmor %vm5013_vm9, %vm5014_vm8  ;;  %vm5023_vm12 = vweird.f32 %v4826_v9 }
 0x922   :  { %v5006_v1 = vsel %vm5005_vm7, %v5660_v5, %v5002_v51  ;;  %v5009_v62 = vmul.f32 %v5662_v30, %v5008_v58  ;;  %v10071_v51 = vld [vmem:[#allocation65_spill] sm:$0xff] }
 0x923   :  { %v5364_v21 = vmul.f32 %v5006_v1, %v10066_v31  ;;  %4875 = vmatmul.f32.gmra.mxu3 %v4764_v29 }
 0x924   :  { %v5010_v57 = vmul.f32 0.5, %v5009_v62 }
 0x925   :  { %v5411_v26 = vmul.f32 %v8614_v56, %v5364_v21 }
 0x926   :  { %v5011_v11 = vsub.f32 1.5, %v5010_v57  ;;  %v4647_v24 = vpop.f32.mrf.mxu2  ;;  %v4828_v39 = vpop.f32.mrf.mxu3 }
 0x927   :  { %v5664_v52 = vpop.eup %5663  ;;  %v5458_v37 = vadd.f32 %v8625_v60, %v5411_v26  ;;  %v8806_v14 = vsub.f32 %v10067_v54, %v4647_v24  ;;  %v4829_v46 = vadd.f32 1e-05, %v4828_v39  ;;  %v10072_v26 = vld [vmem:[#allocation133_spill] sm:$0xff] }
 0x928   :  { %v5012_v34 = vmul.f32 %v5662_v30, %v5011_v11  ;;  %v5018_v7 = vmul.f32 %v5664_v52, %v4826_v9  ;;  %vm5024_vm11 = vweird.f32 %v5664_v52 }
 0x929   :  { %5501 = vst [vmem:[#allocation14 + $0x38] sm:$0xff] %v5458_v37  ;;  %v4765_v63 = vmul.f32 %v8806_v14, %v8806_v14  ;;  %5665 = vrsqrt.f32 %v4829_v46  ;;  %vm5025_vm13 = vmor %vm5023_vm12, %vm5024_vm11  ;;  %vm5033_vm15 = vweird.f32 %v4829_v46 }
 0x92a   :  { %v5016_v50 = vsel %vm5015_vm10, %v5662_v30, %v5012_v34  ;;  %v5019_v47 = vmul.f32 %v5664_v52, %v5018_v7  ;;  %v10073_v7 = vld [vmem:[#allocation32_spill] sm:$0xff] }
 0x92b   :  { %v5365_v41 = vmul.f32 %v5016_v50, %v10068_v45  ;;  %4878 = vmatmul.f32.gmra.mxu3 %v4765_v63 }
 0x92c   :  { %v5020_v48 = vmul.f32 0.5, %v5019_v47 }
 0x92d   :  { %v5412_v40 = vmul.f32 %v8614_v56, %v5365_v41 }
 0x92e   :  { %v5021_v12 = vsub.f32 1.5, %v5020_v48  ;;  %v4650_v13 = vpop.f32.mrf.mxu2  ;;  %v4831_v5 = vpop.f32.mrf.mxu3 }
 0x92f   :  { %v5666_v20 = vpop.eup %5665  ;;  %v5459_v18 = vadd.f32 %v8625_v60, %v5412_v40  ;;  %v8814_v49 = vsub.f32 %v10069_v35, %v4650_v13  ;;  %v4832_v33 = vadd.f32 1e-05, %v4831_v5 }
 0x930   :  { %v5022_v16 = vmul.f32 %v5664_v52, %v5021_v12  ;;  %v5028_v22 = vmul.f32 %v5666_v20, %v4829_v46  ;;  %vm5034_vm14 = vweird.f32 %v5666_v20  ;;  %v10074_v12 = vld [vmem:[#allocation223_spill] sm:$0xff] }
 0x931   :  { %5502 = vst [vmem:[#allocation14 + $0x40] sm:$0xff] %v5459_v18  ;;  %v4766_v3 = vmul.f32 %v8814_v49, %v8814_v49  ;;  %5667 = vrsqrt.f32 %v4832_v33  ;;  %vm5035_vm0 = vmor %vm5033_vm15, %vm5034_vm14  ;;  %vm5043_vm2 = vweird.f32 %v4832_v33 }
 0x932   :  { %v5026_v42 = vsel %vm5025_vm13, %v5664_v52, %v5022_v16  ;;  %v5029_v61 = vmul.f32 %v5666_v20, %v5028_v22 }
 0x933   :  { %v5366_v4 = vmul.f32 %v5026_v42, %v10070_v32  ;;  %4881 = vmatmul.f32.gmra.mxu3 %v4766_v3  ;;  %v10075_v3 = vld [vmem:[#allocation278_spill] sm:$0xff] }
 0x934   :  { %v5030_v55 = vmul.f32 0.5, %v5029_v61 }
 0x935   :  { %v5413_v27 = vmul.f32 %v8614_v56, %v5366_v4 }
 0x936   :  { %v5031_v17 = vsub.f32 1.5, %v5030_v55  ;;  %v4653_v30 = vpop.f32.mrf.mxu2  ;;  %v4834_v44 = vpop.f32.mrf.mxu3 }
 0x937   :  { %v5668_v36 = vpop.eup %5667  ;;  %v5460_v9 = vadd.f32 %v8625_v60, %v5413_v27  ;;  %v8822_v58 = vsub.f32 %v10071_v51, %v4653_v30  ;;  %v4835_v29 = vadd.f32 1e-05, %v4834_v44  ;;  %v10076_v30 = vld [vmem:[#allocation224_spill] sm:$0xff] }
 0x938   :  { %v5032_v1 = vmul.f32 %v5666_v20, %v5031_v17  ;;  %v5038_v62 = vmul.f32 %v5668_v36, %v4832_v33  ;;  %vm5044_vm1 = vweird.f32 %v5668_v36 }
 0x939   :  { %5503 = vst [vmem:[#allocation14 + $0x48] sm:$0xff] %v5460_v9  ;;  %v4767_v31 = vmul.f32 %v8822_v58, %v8822_v58  ;;  %5669 = vrsqrt.f32 %v4835_v29  ;;  %vm5045_vm3 = vmor %vm5043_vm2, %vm5044_vm1  ;;  %vm5053_vm5 = vweird.f32 %v4835_v29 }
 0x93a   :  { %v5036_v21 = vsel %vm5035_vm0, %v5666_v20, %v5032_v1  ;;  %v5039_v57 = vmul.f32 %v5668_v36, %v5038_v62 }
 0x93b   :  { %v5367_v11 = vmul.f32 %v5036_v21, %v10072_v26  ;;  %4884 = vmatmul.f32.gmra.mxu3 %v4767_v31  ;;  %v10077_v21 = vld [vmem:[#allocation342_spill] sm:$0xff] }
 0x93c   :  { %v5040_v24 = vmul.f32 0.5, %v5039_v57 }
 0x93d   :  { %v5414_v39 = vmul.f32 %v8614_v56, %v5367_v11 }
 0x93e   :  { %v5041_v52 = vsub.f32 1.5, %v5040_v24  ;;  %v4656_v37 = vpop.f32.mrf.mxu2  ;;  %v4837_v54 = vpop.f32.mrf.mxu3 }
 0x93f   :  { %v5670_v46 = vpop.eup %5669  ;;  %v5461_v34 = vadd.f32 %v8625_v60, %v5414_v39  ;;  %v8830_v63 = vsub.f32 %v10073_v7, %v4656_v37  ;;  %v4838_v50 = vadd.f32 1e-05, %v4837_v54  ;;  %v10078_v54 = vld [vmem:[#allocation393_spill] sm:$0xff] }
 0x940   :  { %v5042_v47 = vmul.f32 %v5668_v36, %v5041_v52  ;;  %v5048_v45 = vmul.f32 %v5670_v46, %v4835_v29  ;;  %vm5054_vm4 = vweird.f32 %v5670_v46 }
 0x941   :  { %5504 = vst [vmem:[#allocation14 + $0x50] sm:$0xff] %v5461_v34  ;;  %v4768_v41 = vmul.f32 %v8830_v63, %v8830_v63  ;;  %5671 = vrsqrt.f32 %v4838_v50  ;;  %vm5055_vm6 = vmor %vm5053_vm5, %vm5054_vm4  ;;  %vm5063_vm8 = vweird.f32 %v4838_v50 }
 0x942   :  { %v5046_v48 = vsel %vm5045_vm3, %v5668_v36, %v5042_v47  ;;  %v5049_v40 = vmul.f32 %v5670_v46, %v5048_v45 }
 0x943   :  { %v5368_v13 = vmul.f32 %v5046_v48, %v10074_v12  ;;  %4887 = vmatmul.f32.gmra.mxu3 %v4768_v41 }
 0x944   :  { %v5050_v5 = vmul.f32 0.5, %v5049_v40  ;;  %v10079_v40 = vld [vmem:[#allocation284_spill] sm:$0xff] }
 0x945   :  { %v5415_v20 = vmul.f32 %v8614_v56, %v5368_v13 }
 0x946   :  { %v5051_v18 = vsub.f32 1.5, %v5050_v5  ;;  %v4659_v35 = vpop.f32.mrf.mxu2  ;;  %v4840_v16 = vpop.f32.mrf.mxu3 }
 0x947   :  { %v5672_v33 = vpop.eup %5671  ;;  %v5462_v22 = vadd.f32 %v8625_v60, %v5415_v20  ;;  %v8838_v42 = vsub.f32 %v10075_v3, %v4659_v35  ;;  %v4841_v61 = vadd.f32 1e-05, %v4840_v16 }
 0x948   :  { %v5052_v32 = vmul.f32 %v5670_v46, %v5051_v18  ;;  %v5058_v4 = vmul.f32 %v5672_v33, %v4838_v50  ;;  %vm5064_vm7 = vweird.f32 %v5672_v33 }
 0x949   :  { %5505 = vst [vmem:[#allocation14 + $0x58] sm:$0xff] %v5462_v22  ;;  %v4769_v55 = vmul.f32 %v8838_v42, %v8838_v42  ;;  %5673 = vrsqrt.f32 %v4841_v61  ;;  %vm5065_vm9 = vmor %vm5063_vm8, %vm5064_vm7  ;;  %vm5073_vm11 = vweird.f32 %v4841_v61 }
 0x94a   :  { %v5056_v27 = vsel %vm5055_vm6, %v5670_v46, %v5052_v32  ;;  %v5059_v17 = vmul.f32 %v5672_v33, %v5058_v4 }
 0x94b   :  { %v5369_v44 = vmul.f32 %v5056_v27, %v10076_v30  ;;  %4890 = vmatmul.f32.gmra.mxu3 %v4769_v55  ;;  %v10081_v30 = vld [vmem:[#allocation135_spill] sm:$0xff] }
 0x94c   :  { %v5060_v36 = vmul.f32 0.5, %v5059_v17 }
 0x94d   :  { %v5416_v9 = vmul.f32 %v8614_v56, %v5369_v44 }
 0x94e   :  { %v5061_v51 = vsub.f32 1.5, %v5060_v36  ;;  %v4662_v1 = vpop.f32.mrf.mxu2  ;;  %v4843_v62 = vpop.f32.mrf.mxu3 }
 0x94f   :  { %v5674_v29 = vpop.eup %5673  ;;  %v5463_v31 = vadd.f32 %v8625_v60, %v5416_v9  ;;  %v8846_v57 = vsub.f32 %v10077_v21, %v4662_v1  ;;  %v4844_v26 = vadd.f32 1e-05, %v4843_v62 }
 0x950   :  { %v5062_v11 = vmul.f32 %v5672_v33, %v5061_v51  ;;  %v5068_v24 = vmul.f32 %v5674_v29, %v4841_v61  ;;  %vm5074_vm10 = vweird.f32 %v5674_v29 }
 0x951   :  { %5506 = vst [vmem:[#allocation14 + $0x60] sm:$0xff] %v5463_v31  ;;  %v4770_v39 = vmul.f32 %v8846_v57, %v8846_v57  ;;  %5675 = vrsqrt.f32 %v4844_v26  ;;  %vm5075_vm12 = vmor %vm5073_vm11, %vm5074_vm10  ;;  %vm5083_vm14 = vweird.f32 %v4844_v26  ;;  %v10082_v31 = vld [vmem:[#allocation340_spill] sm:$0xff] }
 0x952   :  { %v5066_v52 = vsel %vm5065_vm9, %v5672_v33, %v5062_v11  ;;  %v5069_v37 = vmul.f32 %v5674_v29, %v5068_v24  ;;  %v10080_v33 = vld [vmem:[#allocation73_spill] sm:$0xff] }
 0x953   :  { %v5370_v46 = vmul.f32 %v5066_v52, %v10078_v54  ;;  %4893 = vmatmul.f32.gmra.mxu3 %v4770_v39 }
 0x954   :  { %v5070_v34 = vmul.f32 0.5, %v5069_v37 }
 0x955   :  { %v5417_v7 = vmul.f32 %v8614_v56, %v5370_v46  ;;  %v10083_v46 = vld [vmem:[#allocation225_spill] sm:$0xff] }
 0x956   :  { %v5071_v47 = vsub.f32 1.5, %v5070_v34  ;;  %v4665_v45 = vpop.f32.mrf.mxu2  ;;  %v4846_v41 = vpop.f32.mrf.mxu3 }
 0x957   :  { %v5676_v50 = vpop.eup %5675  ;;  %v5464_v48 = vadd.f32 %v8625_v60, %v5417_v7  ;;  %v8854_v12 = vsub.f32 %v10079_v40, %v4665_v45  ;;  %v4847_v13 = vadd.f32 1e-05, %v4846_v41  ;;  %v10084_v40 = vld [vmem:[#allocation283_spill] sm:$0xff] }
 0x958   :  { %v5072_v5 = vmul.f32 %v5674_v29, %v5071_v47  ;;  %v5078_v20 = vmul.f32 %v5676_v50, %v4844_v26  ;;  %vm5084_vm13 = vweird.f32 %v5676_v50 }
 0x959   :  { %5507 = vst [vmem:[#allocation14 + $0x68] sm:$0xff] %v5464_v48  ;;  %v4771_v18 = vmul.f32 %v8854_v12, %v8854_v12  ;;  %5677 = vrsqrt.f32 %v4847_v13  ;;  %vm5085_vm15 = vmor %vm5083_vm14, %vm5084_vm13  ;;  %vm5093_vm1 = vweird.f32 %v4847_v13 }
 0x95a   :  { %v5076_v35 = vsel %vm5075_vm12, %v5674_v29, %v5072_v5  ;;  %v5079_v16 = vmul.f32 %v5676_v50, %v5078_v20 }
 0x95b   :  { %v5371_v22 = vmul.f32 %v5076_v35, %v10080_v33  ;;  %4896 = vmatmul.f32.gmra.mxu3 %v4771_v18 }
 0x95c   :  { %v5080_v3 = vmul.f32 0.5, %v5079_v16 }
 0x95d   :  { %v5418_v32 = vmul.f32 %v8614_v56, %v5371_v22 }
 0x95e   :  { %v5081_v4 = vsub.f32 1.5, %v5080_v3  ;;  %v4668_v55 = vpop.f32.mrf.mxu2  ;;  %v4849_v27 = vpop.f32.mrf.mxu3 }
 0x95f   :  { %v5678_v61 = vpop.eup %5677  ;;  %v5465_v17 = vadd.f32 %v8625_v60, %v5418_v32  ;;  %v8862_v44 = vsub.f32 %v10081_v30, %v4668_v55  ;;  %v4850_v36 = vadd.f32 1e-05, %v4849_v27  ;;  %v10085_v30 = vld [vmem:[#allocation190_spill] sm:$0xff] }
 0x960   :  { %v5082_v9 = vmul.f32 %v5676_v50, %v5081_v4  ;;  %v5088_v51 = vmul.f32 %v5678_v61, %v4847_v13  ;;  %vm5094_vm0 = vweird.f32 %v5678_v61 }
 0x961   :  { %5508 = vst [vmem:[#allocation14 + $0x70] sm:$0xff] %v5465_v17  ;;  %v4772_v1 = vmul.f32 %v8862_v44, %v8862_v44  ;;  %5679 = vrsqrt.f32 %v4850_v36  ;;  %vm5095_vm2 = vmor %vm5093_vm1, %vm5094_vm0  ;;  %vm5103_vm4 = vweird.f32 %v4850_v36 }
 0x962   :  { %v5086_v62 = vsel %vm5085_vm15, %v5676_v50, %v5082_v9  ;;  %v5089_v29 = vmul.f32 %v5678_v61, %v5088_v51 }
 0x963   :  { %v5372_v21 = vmul.f32 %v5086_v62, %v10082_v31  ;;  %4899 = vmatmul.f32.gmra.mxu3 %v4772_v1 }
 0x964   :  { %v5090_v11 = vmul.f32 0.5, %v5089_v29 }
 0x965   :  { %v5419_v24 = vmul.f32 %v8614_v56, %v5372_v21 }
 0x966   :  { %v5091_v39 = vsub.f32 1.5, %v5090_v11  ;;  %v4671_v52 = vpop.f32.mrf.mxu2  ;;  %v4852_v37 = vpop.f32.mrf.mxu3 }
 0x967   :  { %v5680_v26 = vpop.eup %5679  ;;  %v5466_v54 = vadd.f32 %v8625_v60, %v5419_v24  ;;  %v8870_v34 = vsub.f32 %v10083_v46, %v4671_v52  ;;  %v4853_v7 = vadd.f32 1e-05, %v4852_v37 }
 0x968   :  { %v5092_v47 = vmul.f32 %v5678_v61, %v5091_v39  ;;  %v5098_v45 = vmul.f32 %v5680_v26, %v4850_v36  ;;  %vm5104_vm3 = vweird.f32 %v5680_v26 }
 0x969   :  { %5509 = vst [vmem:[#allocation14 + $0x78] sm:$0xff] %v5466_v54  ;;  %v4773_v41 = vmul.f32 %v8870_v34, %v8870_v34  ;;  %5681 = vrsqrt.f32 %v4853_v7  ;;  %vm5105_vm5 = vmor %vm5103_vm4, %vm5104_vm3  ;;  %vm5113_vm7 = vweird.f32 %v4853_v7  ;;  %v10086_v54 = vld [vmem:[#allocation136_spill] sm:$0xff] }
 0x96a   :  { %v5096_v50 = vsel %vm5095_vm2, %v5678_v61, %v5092_v47  ;;  %v5099_v48 = vmul.f32 %v5680_v26, %v5098_v45 }
 0x96b   :  { %v5373_v5 = vmul.f32 %v5096_v50, %v10084_v40  ;;  %4902 = vmatmul.f32.gmra.mxu3 %v4773_v41 }
 0x96c   :  { %v5100_v20 = vmul.f32 0.5, %v5099_v48 }
 0x96d   :  { %v5420_v18 = vmul.f32 %v8614_v56, %v5373_v5 }
 0x96e   :  { %v5101_v35 = vsub.f32 1.5, %v5100_v20  ;;  %v4674_v16 = vpop.f32.mrf.mxu2  ;;  %v4855_v33 = vpop.f32.mrf.mxu3 }
 0x96f   :  { %v5682_v13 = vpop.eup %5681  ;;  %v5467_v22 = vadd.f32 %v8625_v60, %v5420_v18  ;;  %v8878_v3 = vsub.f32 %v8579_v19, %v4674_v16  ;;  %v4856_v32 = vadd.f32 1e-05, %v4855_v33 }
 0x970   :  { %v5102_v4 = vmul.f32 %v5680_v26, %v5101_v35  ;;  %v5108_v55 = vmul.f32 %v5682_v13, %v4853_v7  ;;  %vm5114_vm6 = vweird.f32 %v5682_v13 }
 0x971   :  { %5510 = vst [vmem:[#allocation14 + $0x80] sm:$0xff] %v5467_v22  ;;  %v4774_v27 = vmul.f32 %v8878_v3, %v8878_v3  ;;  %5683 = vrsqrt.f32 %v4856_v32  ;;  %vm5115_vm8 = vmor %vm5113_vm7, %vm5114_vm6  ;;  %vm5123_vm10 = vweird.f32 %v4856_v32 }
 0x972   :  { %v5106_v61 = vsel %vm5105_vm5, %v5680_v26, %v5102_v4  ;;  %v5109_v17 = vmul.f32 %v5682_v13, %v5108_v55 }
 0x973   :  { %v5374_v9 = vmul.f32 %v5106_v61, %v10085_v30  ;;  %4905 = vmatmul.f32.gmra.mxu3 %v4774_v27 }
 0x974   :  { %v5110_v51 = vmul.f32 0.5, %v5109_v17 }
 0x975   :  { %v5421_v1 = vmul.f32 %v8614_v56, %v5374_v9 }
 0x976   :  { %v5111_v19 = vsub.f32 1.5, %v5110_v51  ;;  %v4677_v62 = vpop.f32.mrf.mxu2  ;;  %v4858_v29 = vpop.f32.mrf.mxu3 }
 0x977   :  { %v5684_v36 = vpop.eup %5683  ;;  %v5468_v31 = vadd.f32 %v8625_v60, %v5421_v1  ;;  %v8886_v21 = vsub.f32 %v8582_v23, %v4677_v62  ;;  %v4859_v11 = vadd.f32 1e-05, %v4858_v29 }
 0x978   :  { %v5112_v24 = vmul.f32 %v5682_v13, %v5111_v19  ;;  %v5118_v39 = vmul.f32 %v5684_v36, %v4856_v32  ;;  %vm5124_vm9 = vweird.f32 %v5684_v36 }
 0x979   :  { %5511 = vst [vmem:[#allocation14 + $0x88] sm:$0xff] %v5468_v31  ;;  %v4775_v52 = vmul.f32 %v8886_v21, %v8886_v21  ;;  %5685 = vrsqrt.f32 %v4859_v11  ;;  %vm5125_vm11 = vmor %vm5123_vm10, %vm5124_vm9  ;;  %vm5133_vm13 = vweird.f32 %v4859_v11 }
 0x97a   :  { %v5116_v37 = vsel %vm5115_vm8, %v5682_v13, %v5112_v24  ;;  %v5119_v26 = vmul.f32 %v5684_v36, %v5118_v39  ;;  %v10087_v13 = vld [vmem:[#allocation226_spill] sm:$0xff] }
 0x97b   :  { %v5375_v46 = vmul.f32 %v5116_v37, %v10086_v54  ;;  %4908 = vmatmul.f32.gmra.mxu3 %v4775_v52  ;;  %v8910_v52 = vld [vmem:[#allocation13] ss:$0 sm:$0xff] }
 0x97c   :  { %v5120_v47 = vmul.f32 0.5, %v5119_v26 }
 0x97d   :  { %v5422_v45 = vmul.f32 %v8614_v56, %v5375_v46 }
 0x97e   :  { %v5121_v23 = vsub.f32 1.5, %v5120_v47  ;;  %v4680_v41 = vpop.f32.mrf.mxu2  ;;  %v4861_v50 = vpop.f32.mrf.mxu3 }
 0x97f   :  { %v5686_v7 = vpop.eup %5685  ;;  %v5469_v48 = vadd.f32 %v8625_v60, %v5422_v45  ;;  %v8894_v40 = vsub.f32 %v8589_v59, %v4680_v41  ;;  %v4862_v5 = vadd.f32 1e-05, %v4861_v50 }
 0x980   :  { %v5122_v20 = vmul.f32 %v5684_v36, %v5121_v23  ;;  %v5128_v18 = vmul.f32 %v5686_v7, %v4859_v11  ;;  %vm5134_vm12 = vweird.f32 %v5686_v7 }
 0x981   :  { %5512 = vst [vmem:[#allocation14 + $0x90] sm:$0xff] %v5469_v48  ;;  %v4776_v35 = vmul.f32 %v8894_v40, %v8894_v40  ;;  %5687 = vrsqrt.f32 %v4862_v5  ;;  %vm5135_vm14 = vmor %vm5133_vm13, %vm5134_vm12  ;;  %vm5143_vm0 = vweird.f32 %v4862_v5 }
 0x982   :  { %v5126_v16 = vsel %vm5125_vm11, %v5684_v36, %v5122_v20  ;;  %v5129_v33 = vmul.f32 %v5686_v7, %v5128_v18 }
 0x983   :  { %v5376_v22 = vmul.f32 %v5126_v16, %v10087_v13  ;;  %4911 = vmatmul.f32.gmra.mxu3 %v4776_v35 }
 0x984   :  { %v5130_v4 = vmul.f32 0.5, %v5129_v33 }
 0x985   :  { %v5423_v55 = vmul.f32 %v8614_v56, %v5376_v22 }
 0x986   :  { %v5131_v59 = vsub.f32 1.5, %v5130_v4  ;;  %v4683_v27 = vpop.f32.mrf.mxu2  ;;  %v4864_v61 = vpop.f32.mrf.mxu3 }
 0x987   :  { %v5688_v32 = vpop.eup %5687  ;;  %v5470_v17 = vadd.f32 %v8625_v60, %v5423_v55  ;;  %v8902_v30 = vsub.f32 %v8692_v8, %v4683_v27  ;;  %v4865_v9 = vadd.f32 1e-05, %v4864_v61  ;;  %v8907_v60 = vld [vmem:[#allocation11] ss:$0 sm:$0xff] }
 0x988   :  { %v5132_v51 = vmul.f32 %v5686_v7, %v5131_v59  ;;  %v5138_v1 = vmul.f32 %v5688_v32, %v4862_v5  ;;  %vm5144_vm15 = vweird.f32 %v5688_v32 }
 0x989   :  { %5513 = vst [vmem:[#allocation14 + $0x98] sm:$0xff] %v5470_v17  ;;  %v4777_v19 = vmul.f32 %v8902_v30, %v8902_v30  ;;  %5689 = vrsqrt.f32 %v4865_v9  ;;  %vm5145_vm1 = vmor %vm5143_vm0, %vm5144_vm15  ;;  %vm5153_vm3 = vweird.f32 %v4865_v9 }
 0x98a   :  { %v5136_v56 = vsel %vm5135_vm14, %v5686_v7, %v5132_v51  ;;  %v5139_v62 = vmul.f32 %v5688_v32, %v5138_v1 }
 0x98b   :  { %v5377_v29 = vmul.f32 %v5136_v56, %v8638_v0  ;;  %4914 = vmatmul.f32.gmra.mxu3 %v4777_v19 }
 0x98c   :  { %v5140_v36 = vmul.f32 0.5, %v5139_v62 }
 0x98d   :  { %v5424_v8 = vmul.f32 %v8907_v60, %v5377_v29 }
 0x98e   :  { %v5141_v31 = vsub.f32 1.5, %v5140_v36  ;;  %v4686_v11 = vpop.f32.mrf.mxu2  ;;  %v4867_v24 = vpop.f32.mrf.mxu3 }
 0x98f   :  { %v5690_v39 = vpop.eup %5689  ;;  %v5471_v37 = vadd.f32 %v8910_v52, %v5424_v8  ;;  %v8914_v26 = vsub.f32 %v8757_v28, %v4686_v11  ;;  %v4868_v54 = vadd.f32 1e-05, %v4867_v24 }
 0x990   :  { %v5142_v0 = vmul.f32 %v5688_v32, %v5141_v31  ;;  %v5148_v46 = vmul.f32 %v5690_v39, %v4865_v9  ;;  %vm5154_vm2 = vweird.f32 %v5690_v39 }
 0x991   :  { %5514 = vst [vmem:[#allocation14 + $0xa0] sm:$0xff] %v5471_v37  ;;  %v4778_v47 = vmul.f32 %v8914_v26, %v8914_v26  ;;  %5691 = vrsqrt.f32 %v4868_v54  ;;  %vm5155_vm4 = vmor %vm5153_vm3, %vm5154_vm2  ;;  %vm5163_vm6 = vweird.f32 %v4868_v54 }
 0x992   :  { %v5146_v45 = vsel %vm5145_vm1, %v5688_v32, %v5142_v0  ;;  %v5149_v23 = vmul.f32 %v5690_v39, %v5148_v46 }
 0x993   :  { %v5378_v41 = vmul.f32 %v5146_v45, %v8670_v10  ;;  %4917 = vmatmul.f32.gmra.mxu3 %v4778_v47 }
 0x994   :  { %v5150_v50 = vmul.f32 0.5, %v5149_v23 }
 0x995   :  { %v5425_v7 = vmul.f32 %v8907_v60, %v5378_v41 }
 0x996   :  { %v5151_v28 = vsub.f32 1.5, %v5150_v50  ;;  %v4689_v48 = vpop.f32.mrf.mxu2  ;;  %v4870_v20 = vpop.f32.mrf.mxu3 }
 0x997   :  { %v5692_v5 = vpop.eup %5691  ;;  %v5472_v18 = vadd.f32 %v8910_v52, %v5425_v7  ;;  %v8922_v35 = vsub.f32 %v8770_v43, %v4689_v48  ;;  %v4871_v16 = vadd.f32 1e-05, %v4870_v20 }
 0x998   :  { %v5152_v33 = vmul.f32 %v5690_v39, %v5151_v28  ;;  %v5158_v13 = vmul.f32 %v5692_v5, %v4868_v54  ;;  %vm5164_vm5 = vweird.f32 %v5692_v5 }
 0x999   :  { %5515 = vst [vmem:[#allocation14 + $0xa8] sm:$0xff] %v5472_v18  ;;  %v4779_v10 = vmul.f32 %v8922_v35, %v8922_v35  ;;  %5693 = vrsqrt.f32 %v4871_v16  ;;  %vm5165_vm7 = vmor %vm5163_vm6, %vm5164_vm5  ;;  %vm5173_vm9 = vweird.f32 %v4871_v16 }
 0x99a   :  { %v5156_v22 = vsel %vm5155_vm4, %v5690_v39, %v5152_v33  ;;  %v5159_v4 = vmul.f32 %v5692_v5, %v5158_v13 }
 0x99b   :  { %v5379_v55 = vmul.f32 %v5156_v22, %v8710_v53  ;;  %4920 = vmatmul.f32.gmra.mxu3 %v4779_v10 }
 0x99c   :  { %v5160_v59 = vmul.f32 0.5, %v5159_v4 }
 0x99d   :  { %v5426_v27 = vmul.f32 %v8907_v60, %v5379_v55 }
 0x99e   :  { %v5161_v43 = vsub.f32 1.5, %v5160_v59  ;;  %v4692_v61 = vpop.f32.mrf.mxu2  ;;  %v4873_v32 = vpop.f32.mrf.mxu3 }
 0x99f   :  { %v5694_v17 = vpop.eup %5693  ;;  %v5473_v9 = vadd.f32 %v8910_v52, %v5426_v27  ;;  %v8930_v51 = vsub.f32 %v8791_v15, %v4692_v61  ;;  %v4874_v1 = vadd.f32 1e-05, %v4873_v32 }
 0x9a0   :  { %v5162_v19 = vmul.f32 %v5692_v5, %v5161_v43  ;;  %v5168_v56 = vmul.f32 %v5694_v17, %v4871_v16  ;;  %vm5174_vm8 = vweird.f32 %v5694_v17 }
 0x9a1   :  { %5516 = vst [vmem:[#allocation14 + $0xb0] sm:$0xff] %v5473_v9  ;;  %v4780_v53 = vmul.f32 %v8930_v51, %v8930_v51  ;;  %5695 = vrsqrt.f32 %v4874_v1  ;;  %vm5175_vm10 = vmor %vm5173_vm9, %vm5174_vm8  ;;  %vm5183_vm12 = vweird.f32 %v4874_v1 }
 0x9a2   :  { %v5166_v62 = vsel %vm5165_vm7, %v5692_v5, %v5162_v19  ;;  %v5169_v29 = vmul.f32 %v5694_v17, %v5168_v56 }
 0x9a3   :  { %v5380_v36 = vmul.f32 %v5166_v62, %v8746_v25  ;;  %4923 = vmatmul.f32.gmra.mxu3 %v4780_v53 }
 0x9a4   :  { %v5170_v8 = vmul.f32 0.5, %v5169_v29 }
 0x9a5   :  { %v5427_v31 = vmul.f32 %v8907_v60, %v5380_v36 }
 0x9a6   :  { %v5171_v15 = vsub.f32 1.5, %v5170_v8  ;;  %v4876_v11 = vpop.f32.mrf.mxu3 }
 0x9a7   :  { %v5696_v24 = vpop.eup %5695  ;;  %v5474_v39 = vadd.f32 %v8910_v52, %v5427_v31  ;;  %v4877_v37 = vadd.f32 1e-05, %v4876_v11 }
 0x9a8   :  { %v5172_v54 = vmul.f32 %v5694_v17, %v5171_v15  ;;  %v5178_v0 = vmul.f32 %v5696_v24, %v4874_v1  ;;  %vm5184_vm11 = vweird.f32 %v5696_v24 }
 0x9a9   :  { %5517 = vst [vmem:[#allocation14 + $0xb8] sm:$0xff] %v5474_v39  ;;  %5697 = vrsqrt.f32 %v4877_v37  ;;  %vm5185_vm13 = vmor %vm5183_vm12, %vm5184_vm11  ;;  %vm5193_vm15 = vweird.f32 %v4877_v37 }
 0x9aa   :  { %v5176_v46 = vsel %vm5175_vm10, %v5694_v17, %v5172_v54  ;;  %v5179_v47 = vmul.f32 %v5696_v24, %v5178_v0 }
 0x9ab   :  { %v5381_v25 = vmul.f32 %v5176_v46, %v8774_v6 }
 0x9ac   :  { %v5180_v45 = vmul.f32 0.5, %v5179_v47 }
 0x9ad   :  { %v5428_v23 = vmul.f32 %v8907_v60, %v5381_v25 }
 0x9ae   :  { %v5181_v41 = vsub.f32 1.5, %v5180_v45  ;;  %v4879_v50 = vpop.f32.mrf.mxu3 }
 0x9af   :  { %v5698_v7 = vpop.eup %5697  ;;  %v5475_v28 = vadd.f32 %v8910_v52, %v5428_v23  ;;  %v4880_v48 = vadd.f32 1e-05, %v4879_v50 }
 0x9b0   :  { %v5182_v20 = vmul.f32 %v5696_v24, %v5181_v41  ;;  %v5188_v5 = vmul.f32 %v5698_v7, %v4877_v37  ;;  %vm5194_vm14 = vweird.f32 %v5698_v7 }
 0x9b1   :  { %5518 = vst [vmem:[#allocation14 + $0xc0] sm:$0xff] %v5475_v28  ;;  %5699 = vrsqrt.f32 %v4880_v48  ;;  %vm5195_vm0 = vmor %vm5193_vm15, %vm5194_vm14  ;;  %vm5203_vm2 = vweird.f32 %v4880_v48 }
 0x9b2   :  { %v5186_v18 = vsel %vm5185_vm13, %v5696_v24, %v5182_v20  ;;  %v5189_v16 = vmul.f32 %v5698_v7, %v5188_v5 }
 0x9b3   :  { %v5382_v6 = vmul.f32 %v5186_v18, %v8786_v2 }
 0x9b4   :  { %v5190_v33 = vmul.f32 0.5, %v5189_v16 }
 0x9b5   :  { %v5429_v13 = vmul.f32 %v8907_v60, %v5382_v6 }
 0x9b6   :  { %v5191_v10 = vsub.f32 1.5, %v5190_v33  ;;  %v4882_v22 = vpop.f32.mrf.mxu3 }
 0x9b7   :  { %v5700_v4 = vpop.eup %5699  ;;  %v5476_v55 = vadd.f32 %v8910_v52, %v5429_v13  ;;  %v4883_v59 = vadd.f32 1e-05, %v4882_v22 }
 0x9b8   :  { %v5192_v27 = vmul.f32 %v5698_v7, %v5191_v10  ;;  %v5198_v43 = vmul.f32 %v5700_v4, %v4880_v48  ;;  %vm5204_vm1 = vweird.f32 %v5700_v4 }
 0x9b9   :  { %5519 = vst [vmem:[#allocation14 + $0xc8] sm:$0xff] %v5476_v55  ;;  %5701 = vrsqrt.f32 %v4883_v59  ;;  %vm5205_vm3 = vmor %vm5203_vm2, %vm5204_vm1  ;;  %vm5213_vm5 = vweird.f32 %v4883_v59 }
 0x9ba   :  { %v5196_v61 = vsel %vm5195_vm0, %v5698_v7, %v5192_v27  ;;  %v5199_v32 = vmul.f32 %v5700_v4, %v5198_v43 }
 0x9bb   :  { %v5383_v2 = vmul.f32 %v5196_v61, %v8798_v38 }
 0x9bc   :  { %v5200_v17 = vmul.f32 0.5, %v5199_v32 }
 0x9bd   :  { %v5430_v9 = vmul.f32 %v8907_v60, %v5383_v2 }
 0x9be   :  { %v5201_v1 = vsub.f32 1.5, %v5200_v17  ;;  %v4885_v19 = vpop.f32.mrf.mxu3 }
 0x9bf   :  { %v5702_v56 = vpop.eup %5701  ;;  %v5477_v53 = vadd.f32 %v8910_v52, %v5430_v9  ;;  %v4886_v62 = vadd.f32 1e-05, %v4885_v19 }
 0x9c0   :  { %v5202_v29 = vmul.f32 %v5700_v4, %v5201_v1  ;;  %v5208_v36 = vmul.f32 %v5702_v56, %v4883_v59  ;;  %vm5214_vm4 = vweird.f32 %v5702_v56 }
 0x9c1   :  { %5520 = vst [vmem:[#allocation14 + $0xd0] sm:$0xff] %v5477_v53  ;;  %5703 = vrsqrt.f32 %v4886_v62  ;;  %vm5215_vm6 = vmor %vm5213_vm5, %vm5214_vm4  ;;  %vm5223_vm8 = vweird.f32 %v4886_v62 }
 0x9c2   :  { %v5206_v8 = vsel %vm5205_vm3, %v5700_v4, %v5202_v29  ;;  %v5209_v31 = vmul.f32 %v5702_v56, %v5208_v36 }
 0x9c3   :  { %v5384_v38 = vmul.f32 %v5206_v8, %v8806_v14 }
 0x9c4   :  { %v5210_v15 = vmul.f32 0.5, %v5209_v31 }
 0x9c5   :  { %v5431_v11 = vmul.f32 %v8907_v60, %v5384_v38 }
 0x9c6   :  { %v5211_v24 = vsub.f32 1.5, %v5210_v15  ;;  %v4888_v39 = vpop.f32.mrf.mxu3 }
 0x9c7   :  { %v5704_v37 = vpop.eup %5703  ;;  %v5478_v54 = vadd.f32 %v8910_v52, %v5431_v11  ;;  %v4889_v0 = vadd.f32 1e-05, %v4888_v39 }
 0x9c8   :  { %v5212_v46 = vmul.f32 %v5702_v56, %v5211_v24  ;;  %v5218_v47 = vmul.f32 %v5704_v37, %v4886_v62  ;;  %vm5224_vm7 = vweird.f32 %v5704_v37 }
 0x9c9   :  { %5521 = vst [vmem:[#allocation14 + $0xd8] sm:$0xff] %v5478_v54  ;;  %5705 = vrsqrt.f32 %v4889_v0  ;;  %vm5225_vm9 = vmor %vm5223_vm8, %vm5224_vm7  ;;  %vm5233_vm11 = vweird.f32 %v4889_v0 }
 0x9ca   :  { %v5216_v25 = vsel %vm5215_vm6, %v5702_v56, %v5212_v46  ;;  %v5219_v45 = vmul.f32 %v5704_v37, %v5218_v47 }
 0x9cb   :  { %v5385_v14 = vmul.f32 %v5216_v25, %v8814_v49 }
 0x9cc   :  { %v5220_v23 = vmul.f32 0.5, %v5219_v45 }
 0x9cd   :  { %v5432_v41 = vmul.f32 %v8907_v60, %v5385_v14 }
 0x9ce   :  { %v5221_v50 = vsub.f32 1.5, %v5220_v23  ;;  %v4891_v7 = vpop.f32.mrf.mxu3 }
 0x9cf   :  { %v5706_v28 = vpop.eup %5705  ;;  %v5479_v48 = vadd.f32 %v8910_v52, %v5432_v41  ;;  %v4892_v20 = vadd.f32 1e-05, %v4891_v7 }
 0x9d0   :  { %v5222_v5 = vmul.f32 %v5704_v37, %v5221_v50  ;;  %v5228_v18 = vmul.f32 %v5706_v28, %v4889_v0  ;;  %vm5234_vm10 = vweird.f32 %v5706_v28 }
 0x9d1   :  { %5522 = vst [vmem:[#allocation14 + $0xe0] sm:$0xff] %v5479_v48  ;;  %5707 = vrsqrt.f32 %v4892_v20  ;;  %vm5235_vm12 = vmor %vm5233_vm11, %vm5234_vm10  ;;  %vm5243_vm14 = vweird.f32 %v4892_v20 }
 0x9d2   :  { %v5226_v16 = vsel %vm5225_vm9, %v5704_v37, %v5222_v5  ;;  %v5229_v6 = vmul.f32 %v5706_v28, %v5228_v18 }
 0x9d3   :  { %v5386_v49 = vmul.f32 %v5226_v16, %v8822_v58 }
 0x9d4   :  { %v5230_v33 = vmul.f32 0.5, %v5229_v6 }
 0x9d5   :  { %v5433_v13 = vmul.f32 %v8907_v60, %v5386_v49 }
 0x9d6   :  { %v5231_v10 = vsub.f32 1.5, %v5230_v33  ;;  %v4894_v22 = vpop.f32.mrf.mxu3 }
 0x9d7   :  { %v5708_v4 = vpop.eup %5707  ;;  %v5480_v55 = vadd.f32 %v8910_v52, %v5433_v13  ;;  %v4895_v59 = vadd.f32 1e-05, %v4894_v22 }
 0x9d8   :  { %v5232_v27 = vmul.f32 %v5706_v28, %v5231_v10  ;;  %v5238_v43 = vmul.f32 %v5708_v4, %v4892_v20  ;;  %vm5244_vm13 = vweird.f32 %v5708_v4 }
 0x9d9   :  { %5523 = vst [vmem:[#allocation14 + $0xe8] sm:$0xff] %v5480_v55  ;;  %5709 = vrsqrt.f32 %v4895_v59  ;;  %vm5245_vm15 = vmor %vm5243_vm14, %vm5244_vm13  ;;  %vm5253_vm1 = vweird.f32 %v4895_v59 }
 0x9da   :  { %v5236_v61 = vsel %vm5235_vm12, %v5706_v28, %v5232_v27  ;;  %v5239_v32 = vmul.f32 %v5708_v4, %v5238_v43 }
 0x9db   :  { %v5387_v58 = vmul.f32 %v5236_v61, %v8830_v63 }
 0x9dc   :  { %v5240_v2 = vmul.f32 0.5, %v5239_v32 }
 0x9dd   :  { %v5434_v17 = vmul.f32 %v8907_v60, %v5387_v58 }
 0x9de   :  { %v5241_v9 = vsub.f32 1.5, %v5240_v2  ;;  %v4897_v1 = vpop.f32.mrf.mxu3 }
 0x9df   :  { %v5710_v19 = vpop.eup %5709  ;;  %v5481_v56 = vadd.f32 %v8910_v52, %v5434_v17  ;;  %v4898_v53 = vadd.f32 1e-05, %v4897_v1 }
 0x9e0   :  { %v5242_v62 = vmul.f32 %v5708_v4, %v5241_v9  ;;  %v5248_v29 = vmul.f32 %v5710_v19, %v4895_v59  ;;  %vm5254_vm0 = vweird.f32 %v5710_v19 }
 0x9e1   :  { %5524 = vst [vmem:[#allocation14 + $0xf0] sm:$0xff] %v5481_v56  ;;  %5711 = vrsqrt.f32 %v4898_v53  ;;  %vm5255_vm2 = vmor %vm5253_vm1, %vm5254_vm0  ;;  %vm5263_vm4 = vweird.f32 %v4898_v53 }
 0x9e2   :  { %v5246_v36 = vsel %vm5245_vm15, %v5708_v4, %v5242_v62  ;;  %v5249_v8 = vmul.f32 %v5710_v19, %v5248_v29 }
 0x9e3   :  { %v5388_v63 = vmul.f32 %v5246_v36, %v8838_v42 }
 0x9e4   :  { %v5250_v31 = vmul.f32 0.5, %v5249_v8 }
 0x9e5   :  { %v5435_v38 = vmul.f32 %v8907_v60, %v5388_v63 }
 0x9e6   :  { %v5251_v15 = vsub.f32 1.5, %v5250_v31  ;;  %v4900_v11 = vpop.f32.mrf.mxu3 }
 0x9e7   :  { %v5712_v24 = vpop.eup %5711  ;;  %v5482_v39 = vadd.f32 %v8910_v52, %v5435_v38  ;;  %v4901_v37 = vadd.f32 1e-05, %v4900_v11 }
 0x9e8   :  { %v5252_v54 = vmul.f32 %v5710_v19, %v5251_v15  ;;  %v5258_v0 = vmul.f32 %v5712_v24, %v4898_v53  ;;  %vm5264_vm3 = vweird.f32 %v5712_v24 }
 0x9e9   :  { %5525 = vst [vmem:[#allocation14 + $0xf8] sm:$0xff] %v5482_v39  ;;  %5713 = vrsqrt.f32 %v4901_v37  ;;  %vm5265_vm5 = vmor %vm5263_vm4, %vm5264_vm3  ;;  %vm5273_vm7 = vweird.f32 %v4901_v37 }
 0x9ea   :  { %v5256_v46 = vsel %vm5255_vm2, %v5710_v19, %v5252_v54  ;;  %v5259_v47 = vmul.f32 %v5712_v24, %v5258_v0 }
 0x9eb   :  { %v5389_v42 = vmul.f32 %v5256_v46, %v8846_v57 }
 0x9ec   :  { %v5260_v25 = vmul.f32 0.5, %v5259_v47 }
 0x9ed   :  { %v5436_v45 = vmul.f32 %v8907_v60, %v5389_v42 }
 0x9ee   :  { %v5261_v14 = vsub.f32 1.5, %v5260_v25  ;;  %v4903_v23 = vpop.f32.mrf.mxu3 }
 0x9ef   :  { %v5714_v41 = vpop.eup %5713  ;;  %v5483_v50 = vadd.f32 %v8910_v52, %v5436_v45  ;;  %v4904_v7 = vadd.f32 1e-05, %v4903_v23 }
 0x9f0   :  { %v5262_v28 = vmul.f32 %v5712_v24, %v5261_v14  ;;  %v5268_v48 = vmul.f32 %v5714_v41, %v4901_v37  ;;  %vm5274_vm6 = vweird.f32 %v5714_v41 }
 0x9f1   :  { %5526 = vst [vmem:[#allocation14 + $0x100] sm:$0xff] %v5483_v50  ;;  %5715 = vrsqrt.f32 %v4904_v7  ;;  %vm5275_vm8 = vmor %vm5273_vm7, %vm5274_vm6  ;;  %vm5283_vm10 = vweird.f32 %v4904_v7 }
 0x9f2   :  { %v5266_v20 = vsel %vm5265_vm5, %v5712_v24, %v5262_v28  ;;  %v5269_v5 = vmul.f32 %v5714_v41, %v5268_v48 }
 0x9f3   :  { %v5390_v57 = vmul.f32 %v5266_v20, %v8854_v12 }
 0x9f4   :  { %v5270_v18 = vmul.f32 0.5, %v5269_v5 }
 0x9f5   :  { %v5437_v16 = vmul.f32 %v8907_v60, %v5390_v57 }
 0x9f6   :  { %v5271_v6 = vsub.f32 1.5, %v5270_v18  ;;  %v4906_v49 = vpop.f32.mrf.mxu3 }
 0x9f7   :  { %v5716_v33 = vpop.eup %5715  ;;  %v5484_v13 = vadd.f32 %v8910_v52, %v5437_v16  ;;  %v4907_v10 = vadd.f32 1e-05, %v4906_v49 }
 0x9f8   :  { %v5272_v22 = vmul.f32 %v5714_v41, %v5271_v6  ;;  %v5278_v4 = vmul.f32 %v5716_v33, %v4904_v7  ;;  %vm5284_vm9 = vweird.f32 %v5716_v33 }
 0x9f9   :  { %5527 = vst [vmem:[#allocation14 + $0x108] sm:$0xff] %v5484_v13  ;;  %5717 = vrsqrt.f32 %v4907_v10  ;;  %vm5285_vm11 = vmor %vm5283_vm10, %vm5284_vm9  ;;  %vm5293_vm13 = vweird.f32 %v4907_v10 }
 0x9fa   :  { %v5276_v55 = vsel %vm5275_vm8, %v5714_v41, %v5272_v22  ;;  %v5279_v59 = vmul.f32 %v5716_v33, %v5278_v4 }
 0x9fb   :  { %v5391_v12 = vmul.f32 %v5276_v55, %v8862_v44 }
 0x9fc   :  { %v5280_v27 = vmul.f32 0.5, %v5279_v59 }
 0x9fd   :  { %v5438_v43 = vmul.f32 %v8907_v60, %v5391_v12 }
 0x9fe   :  { %v5281_v61 = vsub.f32 1.5, %v5280_v27  ;;  %v4909_v32 = vpop.f32.mrf.mxu3 }
 0x9ff   :  { %v5718_v58 = vpop.eup %5717  ;;  %v5485_v2 = vadd.f32 %v8910_v52, %v5438_v43  ;;  %v4910_v17 = vadd.f32 1e-05, %v4909_v32 }
 0xa00   :  { %v5282_v9 = vmul.f32 %v5716_v33, %v5281_v61  ;;  %v5288_v1 = vmul.f32 %v5718_v58, %v4907_v10  ;;  %vm5294_vm12 = vweird.f32 %v5718_v58 }
 0xa01   :  { %5528 = vst [vmem:[#allocation14 + $0x110] sm:$0xff] %v5485_v2  ;;  %5719 = vrsqrt.f32 %v4910_v17  ;;  %vm5295_vm14 = vmor %vm5293_vm13, %vm5294_vm12  ;;  %vm5303_vm0 = vweird.f32 %v4910_v17 }
 0xa02   :  { %v5286_v19 = vsel %vm5285_vm11, %v5716_v33, %v5282_v9  ;;  %v5289_v56 = vmul.f32 %v5718_v58, %v5288_v1 }
 0xa03   :  { %v5392_v44 = vmul.f32 %v5286_v19, %v8870_v34 }
 0xa04   :  { %v5290_v53 = vmul.f32 0.5, %v5289_v56 }
 0xa05   :  { %v5439_v62 = vmul.f32 %v8907_v60, %v5392_v44 }
 0xa06   :  { %v5291_v29 = vsub.f32 1.5, %v5290_v53  ;;  %v4912_v36 = vpop.f32.mrf.mxu3 }
 0xa07   :  { %v5720_v8 = vpop.eup %5719  ;;  %v5486_v63 = vadd.f32 %v8910_v52, %v5439_v62  ;;  %v4913_v31 = vadd.f32 1e-05, %v4912_v36 }
 0xa08   :  { %v5292_v38 = vmul.f32 %v5718_v58, %v5291_v29  ;;  %v5298_v15 = vmul.f32 %v5720_v8, %v4910_v17  ;;  %vm5304_vm15 = vweird.f32 %v5720_v8 }
 0xa09   :  { %5529 = vst [vmem:[#allocation14 + $0x118] sm:$0xff] %v5486_v63  ;;  %5721 = vrsqrt.f32 %v4913_v31  ;;  %vm5305_vm1 = vmor %vm5303_vm0, %vm5304_vm15  ;;  %vm5313_vm3 = vweird.f32 %v4913_v31 }
 0xa0a   :  { %v5296_v11 = vsel %vm5295_vm14, %v5718_v58, %v5292_v38  ;;  %v5299_v24 = vmul.f32 %v5720_v8, %v5298_v15 }
 0xa0b   :  { %v5393_v34 = vmul.f32 %v5296_v11, %v8878_v3 }
 0xa0c   :  { %v5300_v39 = vmul.f32 0.5, %v5299_v24 }
 0xa0d   :  { %v5440_v37 = vmul.f32 %v8907_v60, %v5393_v34 }
 0xa0e   :  { %v5301_v54 = vsub.f32 1.5, %v5300_v39  ;;  %v4915_v0 = vpop.f32.mrf.mxu3 }
 0xa0f   :  { %v5722_v46 = vpop.eup %5721  ;;  %v5487_v47 = vadd.f32 %v8910_v52, %v5440_v37  ;;  %v4916_v42 = vadd.f32 1e-05, %v4915_v0 }
 0xa10   :  { %v5302_v25 = vmul.f32 %v5720_v8, %v5301_v54  ;;  %v5308_v45 = vmul.f32 %v5722_v46, %v4913_v31  ;;  %vm5314_vm2 = vweird.f32 %v5722_v46 }
 0xa11   :  { %5530 = vst [vmem:[#allocation14 + $0x120] sm:$0xff] %v5487_v47  ;;  %5723 = vrsqrt.f32 %v4916_v42  ;;  %vm5315_vm4 = vmor %vm5313_vm3, %vm5314_vm2  ;;  %vm5323_vm6 = vweird.f32 %v4916_v42 }
 0xa12   :  { %v5306_v14 = vsel %vm5305_vm1, %v5720_v8, %v5302_v25  ;;  %v5309_v23 = vmul.f32 %v5722_v46, %v5308_v45 }
 0xa13   :  { %v5394_v3 = vmul.f32 %v5306_v14, %v8886_v21 }
 0xa14   :  { %v5310_v41 = vmul.f32 0.5, %v5309_v23 }
 0xa15   :  { %v5441_v50 = vmul.f32 %v8907_v60, %v5394_v3 }
 0xa16   :  { %v5311_v7 = vsub.f32 1.5, %v5310_v41  ;;  %v4918_v28 = vpop.f32.mrf.mxu3 }
 0xa17   :  { %v5724_v48 = vpop.eup %5723  ;;  %v5488_v20 = vadd.f32 %v8910_v52, %v5441_v50  ;;  %v4919_v5 = vadd.f32 1e-05, %v4918_v28 }
 0xa18   :  { %v5312_v57 = vmul.f32 %v5722_v46, %v5311_v7  ;;  %v5318_v18 = vmul.f32 %v5724_v48, %v4916_v42  ;;  %vm5324_vm5 = vweird.f32 %v5724_v48 }
 0xa19   :  { %5531 = vst [vmem:[#allocation14 + $0x128] sm:$0xff] %v5488_v20  ;;  %5725 = vrsqrt.f32 %v4919_v5  ;;  %vm5325_vm7 = vmor %vm5323_vm6, %vm5324_vm5  ;;  %vm5333_vm9 = vweird.f32 %v4919_v5 }
 0xa1a   :  { %v5316_v16 = vsel %vm5315_vm4, %v5722_v46, %v5312_v57  ;;  %v5319_v6 = vmul.f32 %v5724_v48, %v5318_v18 }
 0xa1b   :  { %v5395_v21 = vmul.f32 %v5316_v16, %v8894_v40 }
 0xa1c   :  { %v5320_v49 = vmul.f32 0.5, %v5319_v6 }
 0xa1d   :  { %v5442_v33 = vmul.f32 %v8907_v60, %v5395_v21 }
 0xa1e   :  { %v5321_v13 = vsub.f32 1.5, %v5320_v49  ;;  %v4921_v10 = vpop.f32.mrf.mxu3 }
 0xa1f   :  { %v5726_v22 = vpop.eup %5725  ;;  %v5489_v4 = vadd.f32 %v8910_v52, %v5442_v33  ;;  %v4922_v55 = vadd.f32 1e-05, %v4921_v10 }
 0xa20   :  { %v5322_v59 = vmul.f32 %v5724_v48, %v5321_v13  ;;  %v5328_v12 = vmul.f32 %v5726_v22, %v4919_v5  ;;  %vm5334_vm8 = vweird.f32 %v5726_v22 }
 0xa21   :  { %5532 = vst [vmem:[#allocation14 + $0x130] sm:$0xff] %v5489_v4  ;;  %5727 = vrsqrt.f32 %v4922_v55  ;;  %vm5335_vm10 = vmor %vm5333_vm9, %vm5334_vm8  ;;  %vm5343_vm12 = vweird.f32 %v4922_v55 }
 0xa22   :  { %v5326_v27 = vsel %vm5325_vm7, %v5724_v48, %v5322_v59  ;;  %v5329_v43 = vmul.f32 %v5726_v22, %v5328_v12 }
 0xa23   :  { %v5396_v40 = vmul.f32 %v5326_v27, %v8902_v30 }
 0xa24   :  { %v5330_v61 = vmul.f32 0.5, %v5329_v43 }
 0xa25   :  { %v5443_v32 = vmul.f32 %v8907_v60, %v5396_v40 }
 0xa26   :  { %v5331_v58 = vsub.f32 1.5, %v5330_v61  ;;  %v4924_v2 = vpop.f32.mrf.mxu3 }
 0xa27   :  { %v5728_v17 = vpop.eup %5727  ;;  %v5490_v9 = vadd.f32 %v8910_v52, %v5443_v32  ;;  %v4925_v1 = vadd.f32 1e-05, %v4924_v2 }
 0xa28   :  { %v5332_v19 = vmul.f32 %v5726_v22, %v5331_v58  ;;  %v5338_v56 = vmul.f32 %v5728_v17, %v4922_v55  ;;  %vm5344_vm11 = vweird.f32 %v5728_v17 }
 0xa29   :  { %5533 = vst [vmem:[#allocation14 + $0x138] sm:$0xff] %v5490_v9  ;;  %5729 = vrsqrt.f32 %v4925_v1  ;;  %vm5345_vm13 = vmor %vm5343_vm12, %vm5344_vm11  ;;  %vm5353_vm15 = vweird.f32 %v4925_v1 }
 0xa2a   :  { %v5336_v44 = vsel %vm5335_vm10, %v5726_v22, %v5332_v19  ;;  %v5339_v53 = vmul.f32 %v5728_v17, %v5338_v56 }
 0xa2b   :  { %v5397_v30 = vmul.f32 %v5336_v44, %v8914_v26 }
 0xa2c   :  { %v5340_v62 = vmul.f32 0.5, %v5339_v53 }
 0xa2d   :  { %v5444_v29 = vmul.f32 %v8907_v60, %v5397_v30 }
 0xa2e   :  { %v5341_v36 = vsub.f32 1.5, %v5340_v62 }
 0xa2f   :  { %v5730_v8 = vpop.eup %5729  ;;  %v5491_v63 = vadd.f32 %v8910_v52, %v5444_v29 }
 0xa30   :  { %v5342_v31 = vmul.f32 %v5728_v17, %v5341_v36  ;;  %v5348_v38 = vmul.f32 %v5730_v8, %v4925_v1  ;;  %vm5354_vm14 = vweird.f32 %v5730_v8 }
 0xa31   :  { %5534 = vst [vmem:[#allocation14 + $0x140] sm:$0xff] %v5491_v63  ;;  %vm5355_vm0 = vmor %vm5353_vm15, %vm5354_vm14 }
 0xa32   :  { %v5346_v15 = vsel %vm5345_vm13, %v5728_v17, %v5342_v31  ;;  %v5349_v11 = vmul.f32 %v5730_v8, %v5348_v38 }
 0xa33   :  { %v5398_v24 = vmul.f32 %v5346_v15, %v8922_v35 }
 0xa34   :  { %v5350_v34 = vmul.f32 0.5, %v5349_v11 }
 0xa35   :  { %v5445_v26 = vmul.f32 %v8907_v60, %v5398_v24 }
 0xa36   :  { %v5351_v39 = vsub.f32 1.5, %v5350_v34 }
 0xa37   :  { %v5492_v37 = vadd.f32 %v8910_v52, %v5445_v26 }
 0xa38   :  { %v5352_v54 = vmul.f32 %v5730_v8, %v5351_v39 }
 0xa39   :  { %5535 = vst [vmem:[#allocation14 + $0x148] sm:$0xff] %v5492_v37 }
 0xa3a   :  { %v5356_v0 = vsel %vm5355_vm0, %v5730_v8, %v5352_v54 }
 0xa3b   :  { %v5399_v46 = vmul.f32 %v5356_v0, %v8930_v51 }
 0xa3d   :  { %v5446_v35 = vmul.f32 %v8907_v60, %v5399_v46 }
 0xa3f   :  { %v5493_v47 = vadd.f32 %v8910_v52, %v5446_v35 }
 0xa41   :  { %5536 = vst [vmem:[#allocation14 + $0x150] sm:$0xff] %v5493_v47 }
 0xa42   :  { %5549 = dma.vmem_to_hbm [thread:$0]  %s5542_s6, 5504, %s5544_s14, [#allocation4], %s5950_s21, %s5950_s21, %s5951_s22  }
 0xa43   :  { %5942 = dma.done.wait [#allocation4], 5504  }
 0xa44   :  { %5943 = vsyncadd [#allocation4], 4294961792 }
 0xa45   :  { %5554 = vsyncpa [#allocation3], 1 }
 0xa46   :  { %5555 = vsyncpa [#allocation6], 1 }
 0xa47   :  { %5556 = vsyncpa [#allocation9], 1 }
 0xa48   :  { %5557 = vsyncpa [#allocation12], 1 }
 0xa49   :  { %5558 = vsyncpa [#allocation4], 1 }

</bundles_post_ra>
